<compile_context>
chip_gen: v7x
topology: tpu7x:2x2x1
jax: 0.10.0
libtpu: 0.0.40
codegen_flags: <defaults>
</compile_context>

<pallas_src>
from functools import partial

import jax
import jax.numpy as jnp
from jax.experimental import pallas as pl
from jax.experimental.pallas import tpu as pltpu


def _gelu(x):
    # exact (erf) GELU, matching torch.nn.GELU(approximate='none')
    return 0.5 * x * (1.0 + jax.lax.erf(x * 0.7071067811865476))


def _layernorm_cf(x, g, b, eps):
    # channels_first LayerNorm of the reference; channel = last dim here
    u = jnp.mean(x, axis=-1, keepdims=True)
    d = x - u
    v = jnp.mean(d * d, axis=-1, keepdims=True)
    return d * jax.lax.rsqrt(v + eps) * g + b


# ----------------------------------------------------------------------------
# Fused SA block:  x1 = SA(LN1(x)) + x
# ----------------------------------------------------------------------------
def _sa_kernel(x_ref, g_ref, b_ref, mw_ref, mb_ref, aw_ref, ab_ref, o_ref,
               cat_ref, pad_ref, tmp_ref, *, H, W, C, n_levels, eps):
    x = x_ref[0].astype(jnp.float32)                        # (H, W, C)
    n1 = _layernorm_cf(x, g_ref[...], b_ref[...], eps)      # (H, W, C)

    for i in range(n_levels):
        f = 1 << i
        Hs, Ws = H // f, W // f

        # zero the 1-px halo of this level's (Hs+2, Ws+2) region of pad scratch
        pad_ref[0:1, 0:Ws + 2, :] = jnp.zeros((1, Ws + 2, C), jnp.float32)
        pad_ref[Hs + 1:Hs + 2, 0:Ws + 2, :] = jnp.zeros((1, Ws + 2, C), jnp.float32)
        pad_ref[0:Hs + 2, 0:1, :] = jnp.zeros((Hs + 2, 1, C), jnp.float32)
        pad_ref[0:Hs + 2, Ws + 1:Ws + 2, :] = jnp.zeros((Hs + 2, 1, C), jnp.float32)

        # interior <- (adaptive-max-pooled) n1.  All C channels are carried;
        # channels outside this level's chunk are killed by zero weights below.
        if i == 0:
            pad_ref[1:H + 1, 1:W + 1, :] = n1
        else:
            # max pool along H: leading-dim reshape + reduce (layout no-op)
            th = n1.reshape(Hs, f, W, C).max(axis=1)         # (Hs, W, C)
            tmp_ref[0:Hs, 0:W, :] = th
            # max pool along W: per pooled column, reduce an f-wide window
            for q in range(Ws):
                pad_ref[1:Hs + 1, 1 + q:2 + q, :] = (
                    tmp_ref[0:Hs, q * f:(q + 1) * f, :].max(axis=1, keepdims=True))

        # depthwise 3x3 conv, padding=1 (chunk-masked weights / bias)
        acc = jnp.zeros((Hs, Ws, C), jnp.float32)
        for dy in range(3):
            for dx in range(3):
                acc = acc + pad_ref[dy:dy + Hs, dx:dx + Ws, :] * mw_ref[i, dy, dx]
        sc = acc + mb_ref[i]                                 # (Hs, Ws, C)

        # nearest upsample back to (H, W) and accumulate into the concat buffer
        if i == 0:
            cat_ref[...] = sc
        else:
            tmp_ref[0:Hs, 0:Ws, :] = sc
            for q in range(Ws):
                col = tmp_ref[0:Hs, q:q + 1, :]              # (Hs, 1, C)
                col = jnp.broadcast_to(col[:, None, :, :], (Hs, f, 1, C))
                col = col.reshape(Hs * f, 1, C)              # (H, 1, C)
                blk = jnp.broadcast_to(col, (Hs * f, f, C))  # (H, f, C)
                cat_ref[:, q * f:(q + 1) * f, :] = (
                    cat_ref[:, q * f:(q + 1) * f, :] + blk)

    # 1x1 aggregation on the MXU (bf16 in / f32 acc), GELU gate * n1, residual
    cat2 = cat_ref[...].reshape(H * W, C).astype(jnp.bfloat16)
    y = jnp.dot(cat2, aw_ref[...], preferred_element_type=jnp.float32) + ab_ref[...]
    y = _gelu(y).reshape(H, W, C)
    o_ref[0] = (y * n1 + x).astype(o_ref.dtype)


# ----------------------------------------------------------------------------
# Fused CC block:  x2 = CC(LN2(x1)) + x1
# ----------------------------------------------------------------------------
def _cc_kernel(x_ref, g_ref, b_ref, w1_ref, b1_ref, w2_ref, b2_ref, o_ref,
               pad_ref, *, H, W, C, Ch, eps):
    x = x_ref[0].astype(jnp.float32)                         # (H, W, C)
    n2 = _layernorm_cf(x, g_ref[...], b_ref[...], eps)

    # zero 1-px halo + interior in VMEM (no HBM-side jnp.pad round trip)
    pad_ref[0:1, :, :] = jnp.zeros((1, W + 2, C), jnp.float32)
    pad_ref[H + 1:H + 2, :, :] = jnp.zeros((1, W + 2, C), jnp.float32)
    pad_ref[:, 0:1, :] = jnp.zeros((H + 2, 1, C), jnp.float32)
    pad_ref[:, W + 1:W + 2, :] = jnp.zeros((H + 2, 1, C), jnp.float32)
    pad_ref[1:H + 1, 1:W + 1, :] = n2

    # 3x3 conv C -> Ch as 9 shifted (H*W, C) @ (C, Ch) MXU matmuls, f32 acc
    # (kernel is HBM-bound; an im2col K=9C slab would add more VMEM traffic
    #  than the MXU saves at these sizes)
    acc = jnp.zeros((H * W, Ch), jnp.float32)
    for t in range(9):
        dy, dx = t // 3, t % 3
        patch = pad_ref[dy:dy + H, dx:dx + W, :].reshape(H * W, C)
        acc = acc + jnp.dot(patch.astype(jnp.bfloat16), w1_ref[t],
                            preferred_element_type=jnp.float32)
    h = _gelu(acc + b1_ref[...])
    y = jnp.dot(h.astype(jnp.bfloat16), w2_ref[...],
                preferred_element_type=jnp.float32) + b2_ref[...]
    o_ref[0] = (y.reshape(H, W, C) + x).astype(o_ref.dtype)


# ----------------------------------------------------------------------------
# Full GMFE forward (NCHW in / NCHW out, like the PyTorch module)
# ----------------------------------------------------------------------------
def gmfe_forward(x_nchw, params, n_levels=4, eps=1e-6):
    x = jnp.transpose(x_nchw, (0, 2, 3, 1))                  # NCHW -> NHWC
    N, H, W, C = x.shape
    cd = C // n_levels
    Ch = params["cc_w1"].shape[-1]

    # ---- parameter packing (tiny, folded by XLA under jit) ----
    g1 = params["ln1_g"].reshape(1, C).astype(jnp.float32)
    bl1 = params["ln1_b"].reshape(1, C).astype(jnp.float32)
    g2 = params["ln2_g"].reshape(1, C).astype(jnp.float32)
    bl2 = params["ln2_b"].reshape(1, C).astype(jnp.float32)
    # chunk-masked full-C depthwise weights / biases (zero outside each chunk)
    mw = jnp.zeros((n_levels, 3, 3, C), jnp.float32)
    mb = jnp.zeros((n_levels, 1, 1, C), jnp.float32)
    for i in range(n_levels):
        mw = mw.at[i, :, :, i * cd:(i + 1) * cd].set(params["mfr_w"][i])
        mb = mb.at[i, 0, 0, i * cd:(i + 1) * cd].set(params["mfr_b"][i])
    aw = params["aggr_w"].astype(jnp.bfloat16)               # (C, C)
    ab = params["aggr_b"].reshape(1, C).astype(jnp.float32)
    w1 = params["cc_w1"].astype(jnp.bfloat16)                # (9, C, Ch)
    cb1 = params["cc_b1"].reshape(1, Ch).astype(jnp.float32)
    w2 = params["cc_w2"].astype(jnp.bfloat16)                # (Ch, C)
    cb2 = params["cc_b2"].reshape(1, C).astype(jnp.float32)

    cparams = pltpu.CompilerParams(
        dimension_semantics=("parallel",),
        vmem_limit_bytes=32 * 1024 * 1024)

    # ---- fused SA residual block ----
    x1 = pl.pallas_call(
        partial(_sa_kernel, H=H, W=W, C=C, n_levels=n_levels, eps=eps),
        out_shape=jax.ShapeDtypeStruct((N, H, W, C), x.dtype),
        grid=(N,),
        in_specs=[
            pl.BlockSpec((1, H, W, C), lambda n: (n, 0, 0, 0)),
            pl.BlockSpec((1, C), lambda n: (0, 0)),
            pl.BlockSpec((1, C), lambda n: (0, 0)),
            pl.BlockSpec((n_levels, 3, 3, C), lambda n: (0, 0, 0, 0)),
            pl.BlockSpec((n_levels, 1, 1, C), lambda n: (0, 0, 0, 0)),
            pl.BlockSpec((C, C), lambda n: (0, 0)),
            pl.BlockSpec((1, C), lambda n: (0, 0)),
        ],
        out_specs=pl.BlockSpec((1, H, W, C), lambda n: (n, 0, 0, 0)),
        scratch_shapes=[
            pltpu.VMEM((H, W, C), jnp.float32),              # concat accumulator
            pltpu.VMEM((H + 2, W + 2, C), jnp.float32),      # zero-halo buffer
            pltpu.VMEM((H // 2, W, C), jnp.float32),         # pool/upsample bounce
        ],
        compiler_params=cparams,
    )(x, g1, bl1, mw, mb, aw, ab)

    # ---- fused CC residual block ----
    x2 = pl.pallas_call(
        partial(_cc_kernel, H=H, W=W, C=C, Ch=Ch, eps=eps),
        out_shape=jax.ShapeDtypeStruct((N, H, W, C), x.dtype),
        grid=(N,),
        in_specs=[
            pl.BlockSpec((1, H, W, C), lambda n: (n, 0, 0, 0)),
            pl.BlockSpec((1, C), lambda n: (0, 0)),
            pl.BlockSpec((1, C), lambda n: (0, 0)),
            pl.BlockSpec((9, C, Ch), lambda n: (0, 0, 0)),
            pl.BlockSpec((1, Ch), lambda n: (0, 0)),
            pl.BlockSpec((Ch, C), lambda n: (0, 0)),
            pl.BlockSpec((1, C), lambda n: (0, 0)),
        ],
        out_specs=pl.BlockSpec((1, H, W, C), lambda n: (n, 0, 0, 0)),
        scratch_shapes=[
            pltpu.VMEM((H + 2, W + 2, C), jnp.float32),      # zero-halo LN2 buffer
        ],
        compiler_params=cparams,
    )(x1, g2, bl2, w1, cb1, w2, cb2)

    return jnp.transpose(x2, (0, 3, 1, 2))                   # back to NCHW


# ----------------------------------------------------------------------------
if __name__ == "__main__":
    key = jax.random.PRNGKey(0)
    N, C, H, W = 2, 16, 16, 16          # dim=16, spatial 16x16 (divisible by 8)
    n_levels = 4
    cd = C // n_levels
    hidden = int(C * 2.0)               # ffn_scale = 2.0

    keys = jax.random.split(key, 16)
    x = jax.random.normal(keys[0], (N, C, H, W), jnp.float32)

    params = {
        # LayerNorm params follow the module's __init__ (ones / zeros)
        "ln1_g": jnp.ones((C,), jnp.float32),
        "ln1_b": jnp.zeros((C,), jnp.float32),
        "ln2_g": jnp.ones((C,), jnp.float32),
        "ln2_b": jnp.zeros((C,), jnp.float32),
        # SA: 4 depthwise 3x3 convs (per-channel kernels, HWC layout) + biases
        "mfr_w": [0.1 * jax.random.normal(keys[1 + i], (3, 3, cd), jnp.float32)
                  for i in range(n_levels)],
        "mfr_b": [0.1 * jax.random.normal(keys[5 + i], (cd,), jnp.float32)
                  for i in range(n_levels)],
        # SA: 1x1 aggregation conv (Cin, Cout) + bias
        "aggr_w": 0.1 * jax.random.normal(keys[9], (C, C), jnp.float32),
        "aggr_b": 0.1 * jax.random.normal(keys[10], (C,), jnp.float32),
        # CC: 3x3 conv (9 taps, Cin, Ch) + bias, 1x1 conv (Ch, Cout) + bias
        "cc_w1": 0.1 * jax.random.normal(keys[11], (9, C, hidden), jnp.float32),
        "cc_b1": 0.1 * jax.random.normal(keys[12], (hidden,), jnp.float32),
        "cc_w2": 0.1 * jax.random.normal(keys[13], (hidden, C), jnp.float32),
        "cc_b2": 0.1 * jax.random.normal(keys[14], (C,), jnp.float32),
    }

    out = jax.jit(gmfe_forward)(x, params)
    jax.block_until_ready(out)
    assert out.shape == (N, C, H, W), out.shape
    assert bool(jnp.all(jnp.isfinite(out)))
    print("KERNEL_OK")
</pallas_src>

<mosaic_0001>
module attributes {stable_mosaic.version = 11 : i64} {
  func.func @_sa_kernel(%arg0: i32, %arg1: memref<1x16x16x16xf32, #tpu.memory_space<vmem>>, %arg2: memref<1x16xf32, #tpu.memory_space<vmem>>, %arg3: memref<1x16xf32, #tpu.memory_space<vmem>>, %arg4: memref<4x3x3x16xf32, #tpu.memory_space<vmem>>, %arg5: memref<4x1x1x16xf32, #tpu.memory_space<vmem>>, %arg6: memref<16x16xbf16, #tpu.memory_space<vmem>>, %arg7: memref<1x16xf32, #tpu.memory_space<vmem>>, %arg8: memref<1x16x16x16xf32, #tpu.memory_space<vmem>>, %arg9: memref<16x16x16xf32, #tpu.memory_space<vmem>>, %arg10: memref<18x18x16xf32, #tpu.memory_space<vmem>>, %arg11: memref<8x16x16xf32, #tpu.memory_space<vmem>>) attributes {dimension_semantics = [#tpu.dimension_semantics<parallel>], iteration_bounds = array<i64: 2>, scalar_prefetch = 0 : i64, scratch_operands = 3 : i64, tpu.core_type = #tpu.core_type<tc>, window_params = [{transform_indices = @transform_0, window_bounds = array<i64: 1, 16, 16, 16>}, {pipeline_mode = #tpu.pipeline_mode<synchronous>, transform_indices = @transform_1, window_bounds = array<i64: 1, 16>}, {pipeline_mode = #tpu.pipeline_mode<synchronous>, transform_indices = @transform_2, window_bounds = array<i64: 1, 16>}, {pipeline_mode = #tpu.pipeline_mode<synchronous>, transform_indices = @transform_3, window_bounds = array<i64: 4, 3, 3, 16>}, {pipeline_mode = #tpu.pipeline_mode<synchronous>, transform_indices = @transform_4, window_bounds = array<i64: 4, 1, 1, 16>}, {pipeline_mode = #tpu.pipeline_mode<synchronous>, transform_indices = @transform_5, window_bounds = array<i64: 16, 16>}, {pipeline_mode = #tpu.pipeline_mode<synchronous>, transform_indices = @transform_6, window_bounds = array<i64: 1, 16>}, {transform_indices = @transform_7, window_bounds = array<i64: 1, 16, 16, 16>}]} {
    %c0 = arith.constant 0 : index
    %c0_0 = arith.constant 0 : index
    %c0_1 = arith.constant 0 : index
    %c0_2 = arith.constant 0 : index
    %0 = vector.load %arg1[%c0, %c0_0, %c0_1, %c0_2] : memref<1x16x16x16xf32, #tpu.memory_space<vmem>>, vector<1x16x16x16xf32>
    %1 = vector.shape_cast %0 : vector<1x16x16x16xf32> to vector<16x16x16xf32>
    %c0_3 = arith.constant 0 : index
    %c0_4 = arith.constant 0 : index
    %2 = vector.load %arg2[%c0_3, %c0_4] : memref<1x16xf32, #tpu.memory_space<vmem>>, vector<1x16xf32>
    %c0_5 = arith.constant 0 : index
    %c0_6 = arith.constant 0 : index
    %3 = vector.load %arg3[%c0_5, %c0_6] : memref<1x16xf32, #tpu.memory_space<vmem>>, vector<1x16xf32>
    %cst = arith.constant dense<0.000000e+00> : vector<16x16xf32>
    %4 = vector.multi_reduction <add>, %1, %cst [2] : vector<16x16x16xf32> to vector<16x16xf32>
    %5 = vector.shape_cast %4 : vector<16x16xf32> to vector<16x16x1xf32>
    %cst_7 = arith.constant 1.600000e+01 : f32
    %6 = vector.broadcast %cst_7 : f32 to vector<16x16x1xf32>
    %7 = arith.divf %5, %6 : vector<16x16x1xf32>
    %8 = vector.broadcast %7 : vector<16x16x1xf32> to vector<16x16x16xf32>
    %9 = arith.subf %1, %8 : vector<16x16x16xf32>
    %10 = arith.mulf %9, %9 : vector<16x16x16xf32>
    %cst_8 = arith.constant dense<0.000000e+00> : vector<16x16xf32>
    %11 = vector.multi_reduction <add>, %10, %cst_8 [2] : vector<16x16x16xf32> to vector<16x16xf32>
    %12 = vector.shape_cast %11 : vector<16x16xf32> to vector<16x16x1xf32>
    %cst_9 = arith.constant 1.600000e+01 : f32
    %13 = vector.broadcast %cst_9 : f32 to vector<16x16x1xf32>
    %14 = arith.divf %12, %13 : vector<16x16x1xf32>
    %cst_10 = arith.constant 9.99999997E-7 : f32
    %15 = vector.broadcast %cst_10 : f32 to vector<16x16x1xf32>
    %16 = arith.addf %14, %15 : vector<16x16x1xf32>
    %17 = math.rsqrt %16 : vector<16x16x1xf32>
    %18 = vector.broadcast %17 : vector<16x16x1xf32> to vector<16x16x16xf32>
    %19 = arith.mulf %9, %18 : vector<16x16x16xf32>
    %20 = vector.shape_cast %2 : vector<1x16xf32> to vector<1x1x16xf32>
    %21 = vector.broadcast %20 : vector<1x1x16xf32> to vector<16x16x16xf32>
    %22 = arith.mulf %19, %21 : vector<16x16x16xf32>
    %23 = vector.shape_cast %3 : vector<1x16xf32> to vector<1x1x16xf32>
    %24 = vector.broadcast %23 : vector<1x1x16xf32> to vector<16x16x16xf32>
    %25 = arith.addf %22, %24 : vector<16x16x16xf32>
    %cst_11 = arith.constant 0.000000e+00 : f32
    %26 = vector.broadcast %cst_11 : f32 to vector<1x18x16xf32>
    %c0_12 = arith.constant 0 : index
    %c0_13 = arith.constant 0 : index
    %c0_14 = arith.constant 0 : index
    %27 = vector.load %arg10[%c0_12, %c0_13, %c0_14] : memref<18x18x16xf32, #tpu.memory_space<vmem>>, vector<1x18x16xf32>
    tpu.vector_store %arg10[%c0_12, %c0_13, %c0_14], %26 {strides = array<i32>} : memref<18x18x16xf32, #tpu.memory_space<vmem>>, vector<1x18x16xf32>,
    %cst_15 = arith.constant 0.000000e+00 : f32
    %28 = vector.broadcast %cst_15 : f32 to vector<1x18x16xf32>
    %c17 = arith.constant 17 : index
    %c0_16 = arith.constant 0 : index
    %c0_17 = arith.constant 0 : index
    %29 = vector.load %arg10[%c17, %c0_16, %c0_17] : memref<18x18x16xf32, #tpu.memory_space<vmem>>, vector<1x18x16xf32>
    tpu.vector_store %arg10[%c17, %c0_16, %c0_17], %28 {strides = array<i32>} : memref<18x18x16xf32, #tpu.memory_space<vmem>>, vector<1x18x16xf32>,
    %cst_18 = arith.constant 0.000000e+00 : f32
    %30 = vector.broadcast %cst_18 : f32 to vector<18x1x16xf32>
    %c0_19 = arith.constant 0 : index
    %c0_20 = arith.constant 0 : index
    %c0_21 = arith.constant 0 : index
    %31 = vector.load %arg10[%c0_19, %c0_20, %c0_21] : memref<18x18x16xf32, #tpu.memory_space<vmem>>, vector<18x1x16xf32>
    tpu.vector_store %arg10[%c0_19, %c0_20, %c0_21], %30 {strides = array<i32>} : memref<18x18x16xf32, #tpu.memory_space<vmem>>, vector<18x1x16xf32>,
    %cst_22 = arith.constant 0.000000e+00 : f32
    %32 = vector.broadcast %cst_22 : f32 to vector<18x1x16xf32>
    %c0_23 = arith.constant 0 : index
    %c17_24 = arith.constant 17 : index
    %c0_25 = arith.constant 0 : index
    %33 = vector.load %arg10[%c0_23, %c17_24, %c0_25] : memref<18x18x16xf32, #tpu.memory_space<vmem>>, vector<18x1x16xf32>
    tpu.vector_store %arg10[%c0_23, %c17_24, %c0_25], %32 {strides = array<i32>} : memref<18x18x16xf32, #tpu.memory_space<vmem>>, vector<18x1x16xf32>,
    %c1 = arith.constant 1 : index
    %c1_26 = arith.constant 1 : index
    %c0_27 = arith.constant 0 : index
    %34 = vector.load %arg10[%c1, %c1_26, %c0_27] : memref<18x18x16xf32, #tpu.memory_space<vmem>>, vector<16x16x16xf32>
    tpu.vector_store %arg10[%c1, %c1_26, %c0_27], %25 {strides = array<i32>} : memref<18x18x16xf32, #tpu.memory_space<vmem>>, vector<16x16x16xf32>,
    %cst_28 = arith.constant 0.000000e+00 : f32
    %35 = vector.broadcast %cst_28 : f32 to vector<16x16x16xf32>
    %c0_29 = arith.constant 0 : index
    %c0_30 = arith.constant 0 : index
    %c0_31 = arith.constant 0 : index
    %36 = vector.load %arg10[%c0_29, %c0_30, %c0_31] : memref<18x18x16xf32, #tpu.memory_space<vmem>>, vector<16x16x16xf32>
    %c0_32 = arith.constant 0 : index
    %c0_33 = arith.constant 0 : index
    %c0_34 = arith.constant 0 : index
    %c0_35 = arith.constant 0 : index
    %37 = vector.load %arg4[%c0_32, %c0_33, %c0_34, %c0_35] : memref<4x3x3x16xf32, #tpu.memory_space<vmem>>, vector<1x1x1x16xf32>
    %38 = vector.shape_cast %37 : vector<1x1x1x16xf32> to vector<16xf32>
    %39 = vector.shape_cast %38 : vector<16xf32> to vector<1x1x16xf32>
    %40 = vector.broadcast %39 : vector<1x1x16xf32> to vector<16x16x16xf32>
    %41 = arith.mulf %36, %40 : vector<16x16x16xf32>
    %42 = arith.addf %35, %41 : vector<16x16x16xf32>
    %c0_36 = arith.constant 0 : index
    %c1_37 = arith.constant 1 : index
    %c0_38 = arith.constant 0 : index
    %43 = vector.load %arg10[%c0_36, %c1_37, %c0_38] : memref<18x18x16xf32, #tpu.memory_space<vmem>>, vector<16x16x16xf32>
    %c0_39 = arith.constant 0 : index
    %c0_40 = arith.constant 0 : index
    %c1_41 = arith.constant 1 : index
    %c0_42 = arith.constant 0 : index
    %44 = vector.load %arg4[%c0_39, %c0_40, %c1_41, %c0_42] : memref<4x3x3x16xf32, #tpu.memory_space<vmem>>, vector<1x1x1x16xf32>
    %45 = vector.shape_cast %44 : vector<1x1x1x16xf32> to vector<16xf32>
    %46 = vector.shape_cast %45 : vector<16xf32> to vector<1x1x16xf32>
    %47 = vector.broadcast %46 : vector<1x1x16xf32> to vector<16x16x16xf32>
    %48 = arith.mulf %43, %47 : vector<16x16x16xf32>
    %49 = arith.addf %42, %48 : vector<16x16x16xf32>
    %c0_43 = arith.constant 0 : index
    %c2 = arith.constant 2 : index
    %c0_44 = arith.constant 0 : index
    %50 = vector.load %arg10[%c0_43, %c2, %c0_44] : memref<18x18x16xf32, #tpu.memory_space<vmem>>, vector<16x16x16xf32>
    %c0_45 = arith.constant 0 : index
    %c0_46 = arith.constant 0 : index
    %c2_47 = arith.constant 2 : index
    %c0_48 = arith.constant 0 : index
    %51 = vector.load %arg4[%c0_45, %c0_46, %c2_47, %c0_48] : memref<4x3x3x16xf32, #tpu.memory_space<vmem>>, vector<1x1x1x16xf32>
    %52 = vector.shape_cast %51 : vector<1x1x1x16xf32> to vector<16xf32>
    %53 = vector.shape_cast %52 : vector<16xf32> to vector<1x1x16xf32>
    %54 = vector.broadcast %53 : vector<1x1x16xf32> to vector<16x16x16xf32>
    %55 = arith.mulf %50, %54 : vector<16x16x16xf32>
    %56 = arith.addf %49, %55 : vector<16x16x16xf32>
    %c1_49 = arith.constant 1 : index
    %c0_50 = arith.constant 0 : index
    %c0_51 = arith.constant 0 : index
    %57 = vector.load %arg10[%c1_49, %c0_50, %c0_51] : memref<18x18x16xf32, #tpu.memory_space<vmem>>, vector<16x16x16xf32>
    %c0_52 = arith.constant 0 : index
    %c1_53 = arith.constant 1 : index
    %c0_54 = arith.constant 0 : index
    %c0_55 = arith.constant 0 : index
    %58 = vector.load %arg4[%c0_52, %c1_53, %c0_54, %c0_55] : memref<4x3x3x16xf32, #tpu.memory_space<vmem>>, vector<1x1x1x16xf32>
    %59 = vector.shape_cast %58 : vector<1x1x1x16xf32> to vector<16xf32>
    %60 = vector.shape_cast %59 : vector<16xf32> to vector<1x1x16xf32>
    %61 = vector.broadcast %60 : vector<1x1x16xf32> to vector<16x16x16xf32>
    %62 = arith.mulf %57, %61 : vector<16x16x16xf32>
    %63 = arith.addf %56, %62 : vector<16x16x16xf32>
    %c1_56 = arith.constant 1 : index
    %c1_57 = arith.constant 1 : index
    %c0_58 = arith.constant 0 : index
    %64 = vector.load %arg10[%c1_56, %c1_57, %c0_58] : memref<18x18x16xf32, #tpu.memory_space<vmem>>, vector<16x16x16xf32>
    %c0_59 = arith.constant 0 : index
    %c1_60 = arith.constant 1 : index
    %c1_61 = arith.constant 1 : index
    %c0_62 = arith.constant 0 : index
    %65 = vector.load %arg4[%c0_59, %c1_60, %c1_61, %c0_62] : memref<4x3x3x16xf32, #tpu.memory_space<vmem>>, vector<1x1x1x16xf32>
    %66 = vector.shape_cast %65 : vector<1x1x1x16xf32> to vector<16xf32>
    %67 = vector.shape_cast %66 : vector<16xf32> to vector<1x1x16xf32>
    %68 = vector.broadcast %67 : vector<1x1x16xf32> to vector<16x16x16xf32>
    %69 = arith.mulf %64, %68 : vector<16x16x16xf32>
    %70 = arith.addf %63, %69 : vector<16x16x16xf32>
    %c1_63 = arith.constant 1 : index
    %c2_64 = arith.constant 2 : index
    %c0_65 = arith.constant 0 : index
    %71 = vector.load %arg10[%c1_63, %c2_64, %c0_65] : memref<18x18x16xf32, #tpu.memory_space<vmem>>, vector<16x16x16xf32>
    %c0_66 = arith.constant 0 : index
    %c1_67 = arith.constant 1 : index
    %c2_68 = arith.constant 2 : index
    %c0_69 = arith.constant 0 : index
    %72 = vector.load %arg4[%c0_66, %c1_67, %c2_68, %c0_69] : memref<4x3x3x16xf32, #tpu.memory_space<vmem>>, vector<1x1x1x16xf32>
    %73 = vector.shape_cast %72 : vector<1x1x1x16xf32> to vector<16xf32>
    %74 = vector.shape_cast %73 : vector<16xf32> to vector<1x1x16xf32>
    %75 = vector.broadcast %74 : vector<1x1x16xf32> to vector<16x16x16xf32>
    %76 = arith.mulf %71, %75 : vector<16x16x16xf32>
    %77 = arith.addf %70, %76 : vector<16x16x16xf32>
    %c2_70 = arith.constant 2 : index
    %c0_71 = arith.constant 0 : index
    %c0_72 = arith.constant 0 : index
    %78 = vector.load %arg10[%c2_70, %c0_71, %c0_72] : memref<18x18x16xf32, #tpu.memory_space<vmem>>, vector<16x16x16xf32>
    %c0_73 = arith.constant 0 : index
    %c2_74 = arith.constant 2 : index
    %c0_75 = arith.constant 0 : index
    %c0_76 = arith.constant 0 : index
    %79 = vector.load %arg4[%c0_73, %c2_74, %c0_75, %c0_76] : memref<4x3x3x16xf32, #tpu.memory_space<vmem>>, vector<1x1x1x16xf32>
    %80 = vector.shape_cast %79 : vector<1x1x1x16xf32> to vector<16xf32>
    %81 = vector.shape_cast %80 : vector<16xf32> to vector<1x1x16xf32>
    %82 = vector.broadcast %81 : vector<1x1x16xf32> to vector<16x16x16xf32>
    %83 = arith.mulf %78, %82 : vector<16x16x16xf32>
    %84 = arith.addf %77, %83 : vector<16x16x16xf32>
    %c2_77 = arith.constant 2 : index
    %c1_78 = arith.constant 1 : index
    %c0_79 = arith.constant 0 : index
    %85 = vector.load %arg10[%c2_77, %c1_78, %c0_79] : memref<18x18x16xf32, #tpu.memory_space<vmem>>, vector<16x16x16xf32>
    %c0_80 = arith.constant 0 : index
    %c2_81 = arith.constant 2 : index
    %c1_82 = arith.constant 1 : index
    %c0_83 = arith.constant 0 : index
    %86 = vector.load %arg4[%c0_80, %c2_81, %c1_82, %c0_83] : memref<4x3x3x16xf32, #tpu.memory_space<vmem>>, vector<1x1x1x16xf32>
    %87 = vector.shape_cast %86 : vector<1x1x1x16xf32> to vector<16xf32>
    %88 = vector.shape_cast %87 : vector<16xf32> to vector<1x1x16xf32>
    %89 = vector.broadcast %88 : vector<1x1x16xf32> to vector<16x16x16xf32>
    %90 = arith.mulf %85, %89 : vector<16x16x16xf32>
    %91 = arith.addf %84, %90 : vector<16x16x16xf32>
    %c2_84 = arith.constant 2 : index
    %c2_85 = arith.constant 2 : index
    %c0_86 = arith.constant 0 : index
    %92 = vector.load %arg10[%c2_84, %c2_85, %c0_86] : memref<18x18x16xf32, #tpu.memory_space<vmem>>, vector<16x16x16xf32>
    %c0_87 = arith.constant 0 : index
    %c2_88 = arith.constant 2 : index
    %c2_89 = arith.constant 2 : index
    %c0_90 = arith.constant 0 : index
    %93 = vector.load %arg4[%c0_87, %c2_88, %c2_89, %c0_90] : memref<4x3x3x16xf32, #tpu.memory_space<vmem>>, vector<1x1x1x16xf32>
    %94 = vector.shape_cast %93 : vector<1x1x1x16xf32> to vector<16xf32>
    %95 = vector.shape_cast %94 : vector<16xf32> to vector<1x1x16xf32>
    %96 = vector.broadcast %95 : vector<1x1x16xf32> to vector<16x16x16xf32>
    %97 = arith.mulf %92, %96 : vector<16x16x16xf32>
    %98 = arith.addf %91, %97 : vector<16x16x16xf32>
    %c0_91 = arith.constant 0 : index
    %c0_92 = arith.constant 0 : index
    %c0_93 = arith.constant 0 : index
    %c0_94 = arith.constant 0 : index
    %99 = vector.load %arg5[%c0_91, %c0_92, %c0_93, %c0_94] : memref<4x1x1x16xf32, #tpu.memory_space<vmem>>, vector<1x1x1x16xf32>
    %100 = vector.shape_cast %99 : vector<1x1x1x16xf32> to vector<1x1x16xf32>
    %101 = vector.broadcast %100 : vector<1x1x16xf32> to vector<16x16x16xf32>
    %102 = arith.addf %98, %101 : vector<16x16x16xf32>
    %c0_95 = arith.constant 0 : index
    %c0_96 = arith.constant 0 : index
    %c0_97 = arith.constant 0 : index
    %103 = vector.load %arg9[%c0_95, %c0_96, %c0_97] : memref<16x16x16xf32, #tpu.memory_space<vmem>>, vector<16x16x16xf32>
    tpu.vector_store %arg9[%c0_95, %c0_96, %c0_97], %102 {strides = array<i32>} : memref<16x16x16xf32, #tpu.memory_space<vmem>>, vector<16x16x16xf32>,
    %cst_98 = arith.constant 0.000000e+00 : f32
    %104 = vector.broadcast %cst_98 : f32 to vector<1x10x16xf32>
    %c0_99 = arith.constant 0 : index
    %c0_100 = arith.constant 0 : index
    %c0_101 = arith.constant 0 : index
    %105 = vector.load %arg10[%c0_99, %c0_100, %c0_101] : memref<18x18x16xf32, #tpu.memory_space<vmem>>, vector<1x10x16xf32>
    tpu.vector_store %arg10[%c0_99, %c0_100, %c0_101], %104 {strides = array<i32>} : memref<18x18x16xf32, #tpu.memory_space<vmem>>, vector<1x10x16xf32>,
    %cst_102 = arith.constant 0.000000e+00 : f32
    %106 = vector.broadcast %cst_102 : f32 to vector<1x10x16xf32>
    %c9 = arith.constant 9 : index
    %c0_103 = arith.constant 0 : index
    %c0_104 = arith.constant 0 : index
    %107 = vector.load %arg10[%c9, %c0_103, %c0_104] : memref<18x18x16xf32, #tpu.memory_space<vmem>>, vector<1x10x16xf32>
    tpu.vector_store %arg10[%c9, %c0_103, %c0_104], %106 {strides = array<i32>} : memref<18x18x16xf32, #tpu.memory_space<vmem>>, vector<1x10x16xf32>,
    %cst_105 = arith.constant 0.000000e+00 : f32
    %108 = vector.broadcast %cst_105 : f32 to vector<10x1x16xf32>
    %c0_106 = arith.constant 0 : index
    %c0_107 = arith.constant 0 : index
    %c0_108 = arith.constant 0 : index
    %109 = vector.load %arg10[%c0_106, %c0_107, %c0_108] : memref<18x18x16xf32, #tpu.memory_space<vmem>>, vector<10x1x16xf32>
    tpu.vector_store %arg10[%c0_106, %c0_107, %c0_108], %108 {strides = array<i32>} : memref<18x18x16xf32, #tpu.memory_space<vmem>>, vector<10x1x16xf32>,
    %cst_109 = arith.constant 0.000000e+00 : f32
    %110 = vector.broadcast %cst_109 : f32 to vector<10x1x16xf32>
    %c0_110 = arith.constant 0 : index
    %c9_111 = arith.constant 9 : index
    %c0_112 = arith.constant 0 : index
    %111 = vector.load %arg10[%c0_110, %c9_111, %c0_112] : memref<18x18x16xf32, #tpu.memory_space<vmem>>, vector<10x1x16xf32>
    tpu.vector_store %arg10[%c0_110, %c9_111, %c0_112], %110 {strides = array<i32>} : memref<18x18x16xf32, #tpu.memory_space<vmem>>, vector<10x1x16xf32>,
    %112 = vector.shape_cast %25 : vector<16x16x16xf32> to vector<8x2x16x16xf32>
    %cst_113 = arith.constant dense<0xFF800000> : vector<8x16x16xf32>
    %113 = vector.multi_reduction <maximumf>, %112, %cst_113 [1] : vector<8x2x16x16xf32> to vector<8x16x16xf32>
    %c0_114 = arith.constant 0 : index
    %c0_115 = arith.constant 0 : index
    %c0_116 = arith.constant 0 : index
    %114 = vector.load %arg11[%c0_114, %c0_115, %c0_116] : memref<8x16x16xf32, #tpu.memory_space<vmem>>, vector<8x16x16xf32>
    tpu.vector_store %arg11[%c0_114, %c0_115, %c0_116], %113 {strides = array<i32>} : memref<8x16x16xf32, #tpu.memory_space<vmem>>, vector<8x16x16xf32>,
    %c0_117 = arith.constant 0 : index
    %c0_118 = arith.constant 0 : index
    %c0_119 = arith.constant 0 : index
    %115 = vector.load %arg11[%c0_117, %c0_118, %c0_119] : memref<8x16x16xf32, #tpu.memory_space<vmem>>, vector<8x2x16xf32>
    %cst_120 = arith.constant dense<0xFF800000> : vector<8x16xf32>
    %116 = vector.multi_reduction <maximumf>, %115, %cst_120 [1] : vector<8x2x16xf32> to vector<8x16xf32>
    %117 = vector.shape_cast %116 : vector<8x16xf32> to vector<8x1x16xf32>
    %c1_121 = arith.constant 1 : index
    %c1_122 = arith.constant 1 : index
    %c0_123 = arith.constant 0 : index
    %118 = vector.load %arg10[%c1_121, %c1_122, %c0_123] : memref<18x18x16xf32, #tpu.memory_space<vmem>>, vector<8x1x16xf32>
    tpu.vector_store %arg10[%c1_121, %c1_122, %c0_123], %117 {strides = array<i32>} : memref<18x18x16xf32, #tpu.memory_space<vmem>>, vector<8x1x16xf32>,
    %c0_124 = arith.constant 0 : index
    %c2_125 = arith.constant 2 : index
    %c0_126 = arith.constant 0 : index
    %119 = vector.load %arg11[%c0_124, %c2_125, %c0_126] : memref<8x16x16xf32, #tpu.memory_space<vmem>>, vector<8x2x16xf32>
    %cst_127 = arith.constant dense<0xFF800000> : vector<8x16xf32>
    %120 = vector.multi_reduction <maximumf>, %119, %cst_127 [1] : vector<8x2x16xf32> to vector<8x16xf32>
    %121 = vector.shape_cast %120 : vector<8x16xf32> to vector<8x1x16xf32>
    %c1_128 = arith.constant 1 : index
    %c2_129 = arith.constant 2 : index
    %c0_130 = arith.constant 0 : index
    %122 = vector.load %arg10[%c1_128, %c2_129, %c0_130] : memref<18x18x16xf32, #tpu.memory_space<vmem>>, vector<8x1x16xf32>
    tpu.vector_store %arg10[%c1_128, %c2_129, %c0_130], %121 {strides = array<i32>} : memref<18x18x16xf32, #tpu.memory_space<vmem>>, vector<8x1x16xf32>,
    %c0_131 = arith.constant 0 : index
    %c4 = arith.constant 4 : index
    %c0_132 = arith.constant 0 : index
    %123 = vector.load %arg11[%c0_131, %c4, %c0_132] : memref<8x16x16xf32, #tpu.memory_space<vmem>>, vector<8x2x16xf32>
    %cst_133 = arith.constant dense<0xFF800000> : vector<8x16xf32>
    %124 = vector.multi_reduction <maximumf>, %123, %cst_133 [1] : vector<8x2x16xf32> to vector<8x16xf32>
    %125 = vector.shape_cast %124 : vector<8x16xf32> to vector<8x1x16xf32>
    %c1_134 = arith.constant 1 : index
    %c3 = arith.constant 3 : index
    %c0_135 = arith.constant 0 : index
    %126 = vector.load %arg10[%c1_134, %c3, %c0_135] : memref<18x18x16xf32, #tpu.memory_space<vmem>>, vector<8x1x16xf32>
    tpu.vector_store %arg10[%c1_134, %c3, %c0_135], %125 {strides = array<i32>} : memref<18x18x16xf32, #tpu.memory_space<vmem>>, vector<8x1x16xf32>,
    %c0_136 = arith.constant 0 : index
    %c6 = arith.constant 6 : index
    %c0_137 = arith.constant 0 : index
    %127 = vector.load %arg11[%c0_136, %c6, %c0_137] : memref<8x16x16xf32, #tpu.memory_space<vmem>>, vector<8x2x16xf32>
    %cst_138 = arith.constant dense<0xFF800000> : vector<8x16xf32>
    %128 = vector.multi_reduction <maximumf>, %127, %cst_138 [1] : vector<8x2x16xf32> to vector<8x16xf32>
    %129 = vector.shape_cast %128 : vector<8x16xf32> to vector<8x1x16xf32>
    %c1_139 = arith.constant 1 : index
    %c4_140 = arith.constant 4 : index
    %c0_141 = arith.constant 0 : index
    %130 = vector.load %arg10[%c1_139, %c4_140, %c0_141] : memref<18x18x16xf32, #tpu.memory_space<vmem>>, vector<8x1x16xf32>
    tpu.vector_store %arg10[%c1_139, %c4_140, %c0_141], %129 {strides = array<i32>} : memref<18x18x16xf32, #tpu.memory_space<vmem>>, vector<8x1x16xf32>,
    %c0_142 = arith.constant 0 : index
    %c8 = arith.constant 8 : index
    %c0_143 = arith.constant 0 : index
    %131 = vector.load %arg11[%c0_142, %c8, %c0_143] : memref<8x16x16xf32, #tpu.memory_space<vmem>>, vector<8x2x16xf32>
    %cst_144 = arith.constant dense<0xFF800000> : vector<8x16xf32>
    %132 = vector.multi_reduction <maximumf>, %131, %cst_144 [1] : vector<8x2x16xf32> to vector<8x16xf32>
    %133 = vector.shape_cast %132 : vector<8x16xf32> to vector<8x1x16xf32>
    %c1_145 = arith.constant 1 : index
    %c5 = arith.constant 5 : index
    %c0_146 = arith.constant 0 : index
    %134 = vector.load %arg10[%c1_145, %c5, %c0_146] : memref<18x18x16xf32, #tpu.memory_space<vmem>>, vector<8x1x16xf32>
    tpu.vector_store %arg10[%c1_145, %c5, %c0_146], %133 {strides = array<i32>} : memref<18x18x16xf32, #tpu.memory_space<vmem>>, vector<8x1x16xf32>,
    %c0_147 = arith.constant 0 : index
    %c10 = arith.constant 10 : index
    %c0_148 = arith.constant 0 : index
    %135 = vector.load %arg11[%c0_147, %c10, %c0_148] : memref<8x16x16xf32, #tpu.memory_space<vmem>>, vector<8x2x16xf32>
    %cst_149 = arith.constant dense<0xFF800000> : vector<8x16xf32>
    %136 = vector.multi_reduction <maximumf>, %135, %cst_149 [1] : vector<8x2x16xf32> to vector<8x16xf32>
    %137 = vector.shape_cast %136 : vector<8x16xf32> to vector<8x1x16xf32>
    %c1_150 = arith.constant 1 : index
    %c6_151 = arith.constant 6 : index
    %c0_152 = arith.constant 0 : index
    %138 = vector.load %arg10[%c1_150, %c6_151, %c0_152] : memref<18x18x16xf32, #tpu.memory_space<vmem>>, vector<8x1x16xf32>
    tpu.vector_store %arg10[%c1_150, %c6_151, %c0_152], %137 {strides = array<i32>} : memref<18x18x16xf32, #tpu.memory_space<vmem>>, vector<8x1x16xf32>,
    %c0_153 = arith.constant 0 : index
    %c12 = arith.constant 12 : index
    %c0_154 = arith.constant 0 : index
    %139 = vector.load %arg11[%c0_153, %c12, %c0_154] : memref<8x16x16xf32, #tpu.memory_space<vmem>>, vector<8x2x16xf32>
    %cst_155 = arith.constant dense<0xFF800000> : vector<8x16xf32>
    %140 = vector.multi_reduction <maximumf>, %139, %cst_155 [1] : vector<8x2x16xf32> to vector<8x16xf32>
    %141 = vector.shape_cast %140 : vector<8x16xf32> to vector<8x1x16xf32>
    %c1_156 = arith.constant 1 : index
    %c7 = arith.constant 7 : index
    %c0_157 = arith.constant 0 : index
    %142 = vector.load %arg10[%c1_156, %c7, %c0_157] : memref<18x18x16xf32, #tpu.memory_space<vmem>>, vector<8x1x16xf32>
    tpu.vector_store %arg10[%c1_156, %c7, %c0_157], %141 {strides = array<i32>} : memref<18x18x16xf32, #tpu.memory_space<vmem>>, vector<8x1x16xf32>,
    %c0_158 = arith.constant 0 : index
    %c14 = arith.constant 14 : index
    %c0_159 = arith.constant 0 : index
    %143 = vector.load %arg11[%c0_158, %c14, %c0_159] : memref<8x16x16xf32, #tpu.memory_space<vmem>>, vector<8x2x16xf32>
    %cst_160 = arith.constant dense<0xFF800000> : vector<8x16xf32>
    %144 = vector.multi_reduction <maximumf>, %143, %cst_160 [1] : vector<8x2x16xf32> to vector<8x16xf32>
    %145 = vector.shape_cast %144 : vector<8x16xf32> to vector<8x1x16xf32>
    %c1_161 = arith.constant 1 : index
    %c8_162 = arith.constant 8 : index
    %c0_163 = arith.constant 0 : index
    %146 = vector.load %arg10[%c1_161, %c8_162, %c0_163] : memref<18x18x16xf32, #tpu.memory_space<vmem>>, vector<8x1x16xf32>
    tpu.vector_store %arg10[%c1_161, %c8_162, %c0_163], %145 {strides = array<i32>} : memref<18x18x16xf32, #tpu.memory_space<vmem>>, vector<8x1x16xf32>,
    %cst_164 = arith.constant 0.000000e+00 : f32
    %147 = vector.broadcast %cst_164 : f32 to vector<8x8x16xf32>
    %c0_165 = arith.constant 0 : index
    %c0_166 = arith.constant 0 : index
    %c0_167 = arith.constant 0 : index
    %148 = vector.load %arg10[%c0_165, %c0_166, %c0_167] : memref<18x18x16xf32, #tpu.memory_space<vmem>>, vector<8x8x16xf32>
    %c1_168 = arith.constant 1 : index
    %c0_169 = arith.constant 0 : index
    %c0_170 = arith.constant 0 : index
    %c0_171 = arith.constant 0 : index
    %149 = vector.load %arg4[%c1_168, %c0_169, %c0_170, %c0_171] : memref<4x3x3x16xf32, #tpu.memory_space<vmem>>, vector<1x1x1x16xf32>
    %150 = vector.shape_cast %149 : vector<1x1x1x16xf32> to vector<16xf32>
    %151 = vector.shape_cast %150 : vector<16xf32> to vector<1x1x16xf32>
    %152 = vector.broadcast %151 : vector<1x1x16xf32> to vector<8x8x16xf32>
    %153 = arith.mulf %148, %152 : vector<8x8x16xf32>
    %154 = arith.addf %147, %153 : vector<8x8x16xf32>
    %c0_172 = arith.constant 0 : index
    %c1_173 = arith.constant 1 : index
    %c0_174 = arith.constant 0 : index
    %155 = vector.load %arg10[%c0_172, %c1_173, %c0_174] : memref<18x18x16xf32, #tpu.memory_space<vmem>>, vector<8x8x16xf32>
    %c1_175 = arith.constant 1 : index
    %c0_176 = arith.constant 0 : index
    %c1_177 = arith.constant 1 : index
    %c0_178 = arith.constant 0 : index
    %156 = vector.load %arg4[%c1_175, %c0_176, %c1_177, %c0_178] : memref<4x3x3x16xf32, #tpu.memory_space<vmem>>, vector<1x1x1x16xf32>
    %157 = vector.shape_cast %156 : vector<1x1x1x16xf32> to vector<16xf32>
    %158 = vector.shape_cast %157 : vector<16xf32> to vector<1x1x16xf32>
    %159 = vector.broadcast %158 : vector<1x1x16xf32> to vector<8x8x16xf32>
    %160 = arith.mulf %155, %159 : vector<8x8x16xf32>
    %161 = arith.addf %154, %160 : vector<8x8x16xf32>
    %c0_179 = arith.constant 0 : index
    %c2_180 = arith.constant 2 : index
    %c0_181 = arith.constant 0 : index
    %162 = vector.load %arg10[%c0_179, %c2_180, %c0_181] : memref<18x18x16xf32, #tpu.memory_space<vmem>>, vector<8x8x16xf32>
    %c1_182 = arith.constant 1 : index
    %c0_183 = arith.constant 0 : index
    %c2_184 = arith.constant 2 : index
    %c0_185 = arith.constant 0 : index
    %163 = vector.load %arg4[%c1_182, %c0_183, %c2_184, %c0_185] : memref<4x3x3x16xf32, #tpu.memory_space<vmem>>, vector<1x1x1x16xf32>
    %164 = vector.shape_cast %163 : vector<1x1x1x16xf32> to vector<16xf32>
    %165 = vector.shape_cast %164 : vector<16xf32> to vector<1x1x16xf32>
    %166 = vector.broadcast %165 : vector<1x1x16xf32> to vector<8x8x16xf32>
    %167 = arith.mulf %162, %166 : vector<8x8x16xf32>
    %168 = arith.addf %161, %167 : vector<8x8x16xf32>
    %c1_186 = arith.constant 1 : index
    %c0_187 = arith.constant 0 : index
    %c0_188 = arith.constant 0 : index
    %169 = vector.load %arg10[%c1_186, %c0_187, %c0_188] : memref<18x18x16xf32, #tpu.memory_space<vmem>>, vector<8x8x16xf32>
    %c1_189 = arith.constant 1 : index
    %c1_190 = arith.constant 1 : index
    %c0_191 = arith.constant 0 : index
    %c0_192 = arith.constant 0 : index
    %170 = vector.load %arg4[%c1_189, %c1_190, %c0_191, %c0_192] : memref<4x3x3x16xf32, #tpu.memory_space<vmem>>, vector<1x1x1x16xf32>
    %171 = vector.shape_cast %170 : vector<1x1x1x16xf32> to vector<16xf32>
    %172 = vector.shape_cast %171 : vector<16xf32> to vector<1x1x16xf32>
    %173 = vector.broadcast %172 : vector<1x1x16xf32> to vector<8x8x16xf32>
    %174 = arith.mulf %169, %173 : vector<8x8x16xf32>
    %175 = arith.addf %168, %174 : vector<8x8x16xf32>
    %c1_193 = arith.constant 1 : index
    %c1_194 = arith.constant 1 : index
    %c0_195 = arith.constant 0 : index
    %176 = vector.load %arg10[%c1_193, %c1_194, %c0_195] : memref<18x18x16xf32, #tpu.memory_space<vmem>>, vector<8x8x16xf32>
    %c1_196 = arith.constant 1 : index
    %c1_197 = arith.constant 1 : index
    %c1_198 = arith.constant 1 : index
    %c0_199 = arith.constant 0 : index
    %177 = vector.load %arg4[%c1_196, %c1_197, %c1_198, %c0_199] : memref<4x3x3x16xf32, #tpu.memory_space<vmem>>, vector<1x1x1x16xf32>
    %178 = vector.shape_cast %177 : vector<1x1x1x16xf32> to vector<16xf32>
    %179 = vector.shape_cast %178 : vector<16xf32> to vector<1x1x16xf32>
    %180 = vector.broadcast %179 : vector<1x1x16xf32> to vector<8x8x16xf32>
    %181 = arith.mulf %176, %180 : vector<8x8x16xf32>
    %182 = arith.addf %175, %181 : vector<8x8x16xf32>
    %c1_200 = arith.constant 1 : index
    %c2_201 = arith.constant 2 : index
    %c0_202 = arith.constant 0 : index
    %183 = vector.load %arg10[%c1_200, %c2_201, %c0_202] : memref<18x18x16xf32, #tpu.memory_space<vmem>>, vector<8x8x16xf32>
    %c1_203 = arith.constant 1 : index
    %c1_204 = arith.constant 1 : index
    %c2_205 = arith.constant 2 : index
    %c0_206 = arith.constant 0 : index
    %184 = vector.load %arg4[%c1_203, %c1_204, %c2_205, %c0_206] : memref<4x3x3x16xf32, #tpu.memory_space<vmem>>, vector<1x1x1x16xf32>
    %185 = vector.shape_cast %184 : vector<1x1x1x16xf32> to vector<16xf32>
    %186 = vector.shape_cast %185 : vector<16xf32> to vector<1x1x16xf32>
    %187 = vector.broadcast %186 : vector<1x1x16xf32> to vector<8x8x16xf32>
    %188 = arith.mulf %183, %187 : vector<8x8x16xf32>
    %189 = arith.addf %182, %188 : vector<8x8x16xf32>
    %c2_207 = arith.constant 2 : index
    %c0_208 = arith.constant 0 : index
    %c0_209 = arith.constant 0 : index
    %190 = vector.load %arg10[%c2_207, %c0_208, %c0_209] : memref<18x18x16xf32, #tpu.memory_space<vmem>>, vector<8x8x16xf32>
    %c1_210 = arith.constant 1 : index
    %c2_211 = arith.constant 2 : index
    %c0_212 = arith.constant 0 : index
    %c0_213 = arith.constant 0 : index
    %191 = vector.load %arg4[%c1_210, %c2_211, %c0_212, %c0_213] : memref<4x3x3x16xf32, #tpu.memory_space<vmem>>, vector<1x1x1x16xf32>
    %192 = vector.shape_cast %191 : vector<1x1x1x16xf32> to vector<16xf32>
    %193 = vector.shape_cast %192 : vector<16xf32> to vector<1x1x16xf32>
    %194 = vector.broadcast %193 : vector<1x1x16xf32> to vector<8x8x16xf32>
    %195 = arith.mulf %190, %194 : vector<8x8x16xf32>
    %196 = arith.addf %189, %195 : vector<8x8x16xf32>
    %c2_214 = arith.constant 2 : index
    %c1_215 = arith.constant 1 : index
    %c0_216 = arith.constant 0 : index
    %197 = vector.load %arg10[%c2_214, %c1_215, %c0_216] : memref<18x18x16xf32, #tpu.memory_space<vmem>>, vector<8x8x16xf32>
    %c1_217 = arith.constant 1 : index
    %c2_218 = arith.constant 2 : index
    %c1_219 = arith.constant 1 : index
    %c0_220 = arith.constant 0 : index
    %198 = vector.load %arg4[%c1_217, %c2_218, %c1_219, %c0_220] : memref<4x3x3x16xf32, #tpu.memory_space<vmem>>, vector<1x1x1x16xf32>
    %199 = vector.shape_cast %198 : vector<1x1x1x16xf32> to vector<16xf32>
    %200 = vector.shape_cast %199 : vector<16xf32> to vector<1x1x16xf32>
    %201 = vector.broadcast %200 : vector<1x1x16xf32> to vector<8x8x16xf32>
    %202 = arith.mulf %197, %201 : vector<8x8x16xf32>
    %203 = arith.addf %196, %202 : vector<8x8x16xf32>
    %c2_221 = arith.constant 2 : index
    %c2_222 = arith.constant 2 : index
    %c0_223 = arith.constant 0 : index
    %204 = vector.load %arg10[%c2_221, %c2_222, %c0_223] : memref<18x18x16xf32, #tpu.memory_space<vmem>>, vector<8x8x16xf32>
    %c1_224 = arith.constant 1 : index
    %c2_225 = arith.constant 2 : index
    %c2_226 = arith.constant 2 : index
    %c0_227 = arith.constant 0 : index
    %205 = vector.load %arg4[%c1_224, %c2_225, %c2_226, %c0_227] : memref<4x3x3x16xf32, #tpu.memory_space<vmem>>, vector<1x1x1x16xf32>
    %206 = vector.shape_cast %205 : vector<1x1x1x16xf32> to vector<16xf32>
    %207 = vector.shape_cast %206 : vector<16xf32> to vector<1x1x16xf32>
    %208 = vector.broadcast %207 : vector<1x1x16xf32> to vector<8x8x16xf32>
    %209 = arith.mulf %204, %208 : vector<8x8x16xf32>
    %210 = arith.addf %203, %209 : vector<8x8x16xf32>
    %c1_228 = arith.constant 1 : index
    %c0_229 = arith.constant 0 : index
    %c0_230 = arith.constant 0 : index
    %c0_231 = arith.constant 0 : index
    %211 = vector.load %arg5[%c1_228, %c0_229, %c0_230, %c0_231] : memref<4x1x1x16xf32, #tpu.memory_space<vmem>>, vector<1x1x1x16xf32>
    %212 = vector.shape_cast %211 : vector<1x1x1x16xf32> to vector<1x1x16xf32>
    %213 = vector.broadcast %212 : vector<1x1x16xf32> to vector<8x8x16xf32>
    %214 = arith.addf %210, %213 : vector<8x8x16xf32>
    %c0_232 = arith.constant 0 : index
    %c0_233 = arith.constant 0 : index
    %c0_234 = arith.constant 0 : index
    %215 = vector.load %arg11[%c0_232, %c0_233, %c0_234] : memref<8x16x16xf32, #tpu.memory_space<vmem>>, vector<8x8x16xf32>
    tpu.vector_store %arg11[%c0_232, %c0_233, %c0_234], %214 {strides = array<i32>} : memref<8x16x16xf32, #tpu.memory_space<vmem>>, vector<8x8x16xf32>,
    %c0_235 = arith.constant 0 : index
    %c0_236 = arith.constant 0 : index
    %c0_237 = arith.constant 0 : index
    %216 = vector.load %arg11[%c0_235, %c0_236, %c0_237] : memref<8x16x16xf32, #tpu.memory_space<vmem>>, vector<8x1x16xf32>
    %217 = vector.shape_cast %216 : vector<8x1x16xf32> to vector<8x1x1x16xf32>
    %218 = vector.shape_cast %217 : vector<8x1x1x16xf32> to vector<8x1x1x16xf32>
    %219 = vector.broadcast %218 : vector<8x1x1x16xf32> to vector<8x2x1x16xf32>
    %220 = vector.shape_cast %219 : vector<8x2x1x16xf32> to vector<16x1x16xf32>
    %221 = vector.shape_cast %220 : vector<16x1x16xf32> to vector<16x1x16xf32>
    %222 = vector.broadcast %221 : vector<16x1x16xf32> to vector<16x2x16xf32>
    %c0_238 = arith.constant 0 : index
    %c0_239 = arith.constant 0 : index
    %c0_240 = arith.constant 0 : index
    %223 = vector.load %arg9[%c0_238, %c0_239, %c0_240] : memref<16x16x16xf32, #tpu.memory_space<vmem>>, vector<16x2x16xf32>
    %224 = arith.addf %223, %222 : vector<16x2x16xf32>
    %c0_241 = arith.constant 0 : index
    %c0_242 = arith.constant 0 : index
    %c0_243 = arith.constant 0 : index
    %225 = vector.load %arg9[%c0_241, %c0_242, %c0_243] : memref<16x16x16xf32, #tpu.memory_space<vmem>>, vector<16x2x16xf32>
    tpu.vector_store %arg9[%c0_241, %c0_242, %c0_243], %224 {strides = array<i32>} : memref<16x16x16xf32, #tpu.memory_space<vmem>>, vector<16x2x16xf32>,
    %c0_244 = arith.constant 0 : index
    %c1_245 = arith.constant 1 : index
    %c0_246 = arith.constant 0 : index
    %226 = vector.load %arg11[%c0_244, %c1_245, %c0_246] : memref<8x16x16xf32, #tpu.memory_space<vmem>>, vector<8x1x16xf32>
    %227 = vector.shape_cast %226 : vector<8x1x16xf32> to vector<8x1x1x16xf32>
    %228 = vector.shape_cast %227 : vector<8x1x1x16xf32> to vector<8x1x1x16xf32>
    %229 = vector.broadcast %228 : vector<8x1x1x16xf32> to vector<8x2x1x16xf32>
    %230 = vector.shape_cast %229 : vector<8x2x1x16xf32> to vector<16x1x16xf32>
    %231 = vector.shape_cast %230 : vector<16x1x16xf32> to vector<16x1x16xf32>
    %232 = vector.broadcast %231 : vector<16x1x16xf32> to vector<16x2x16xf32>
    %c0_247 = arith.constant 0 : index
    %c2_248 = arith.constant 2 : index
    %c0_249 = arith.constant 0 : index
    %233 = vector.load %arg9[%c0_247, %c2_248, %c0_249] : memref<16x16x16xf32, #tpu.memory_space<vmem>>, vector<16x2x16xf32>
    %234 = arith.addf %233, %232 : vector<16x2x16xf32>
    %c0_250 = arith.constant 0 : index
    %c2_251 = arith.constant 2 : index
    %c0_252 = arith.constant 0 : index
    %235 = vector.load %arg9[%c0_250, %c2_251, %c0_252] : memref<16x16x16xf32, #tpu.memory_space<vmem>>, vector<16x2x16xf32>
    tpu.vector_store %arg9[%c0_250, %c2_251, %c0_252], %234 {strides = array<i32>} : memref<16x16x16xf32, #tpu.memory_space<vmem>>, vector<16x2x16xf32>,
    %c0_253 = arith.constant 0 : index
    %c2_254 = arith.constant 2 : index
    %c0_255 = arith.constant 0 : index
    %236 = vector.load %arg11[%c0_253, %c2_254, %c0_255] : memref<8x16x16xf32, #tpu.memory_space<vmem>>, vector<8x1x16xf32>
    %237 = vector.shape_cast %236 : vector<8x1x16xf32> to vector<8x1x1x16xf32>
    %238 = vector.shape_cast %237 : vector<8x1x1x16xf32> to vector<8x1x1x16xf32>
    %239 = vector.broadcast %238 : vector<8x1x1x16xf32> to vector<8x2x1x16xf32>
    %240 = vector.shape_cast %239 : vector<8x2x1x16xf32> to vector<16x1x16xf32>
    %241 = vector.shape_cast %240 : vector<16x1x16xf32> to vector<16x1x16xf32>
    %242 = vector.broadcast %241 : vector<16x1x16xf32> to vector<16x2x16xf32>
    %c0_256 = arith.constant 0 : index
    %c4_257 = arith.constant 4 : index
    %c0_258 = arith.constant 0 : index
    %243 = vector.load %arg9[%c0_256, %c4_257, %c0_258] : memref<16x16x16xf32, #tpu.memory_space<vmem>>, vector<16x2x16xf32>
    %244 = arith.addf %243, %242 : vector<16x2x16xf32>
    %c0_259 = arith.constant 0 : index
    %c4_260 = arith.constant 4 : index
    %c0_261 = arith.constant 0 : index
    %245 = vector.load %arg9[%c0_259, %c4_260, %c0_261] : memref<16x16x16xf32, #tpu.memory_space<vmem>>, vector<16x2x16xf32>
    tpu.vector_store %arg9[%c0_259, %c4_260, %c0_261], %244 {strides = array<i32>} : memref<16x16x16xf32, #tpu.memory_space<vmem>>, vector<16x2x16xf32>,
    %c0_262 = arith.constant 0 : index
    %c3_263 = arith.constant 3 : index
    %c0_264 = arith.constant 0 : index
    %246 = vector.load %arg11[%c0_262, %c3_263, %c0_264] : memref<8x16x16xf32, #tpu.memory_space<vmem>>, vector<8x1x16xf32>
    %247 = vector.shape_cast %246 : vector<8x1x16xf32> to vector<8x1x1x16xf32>
    %248 = vector.shape_cast %247 : vector<8x1x1x16xf32> to vector<8x1x1x16xf32>
    %249 = vector.broadcast %248 : vector<8x1x1x16xf32> to vector<8x2x1x16xf32>
    %250 = vector.shape_cast %249 : vector<8x2x1x16xf32> to vector<16x1x16xf32>
    %251 = vector.shape_cast %250 : vector<16x1x16xf32> to vector<16x1x16xf32>
    %252 = vector.broadcast %251 : vector<16x1x16xf32> to vector<16x2x16xf32>
    %c0_265 = arith.constant 0 : index
    %c6_266 = arith.constant 6 : index
    %c0_267 = arith.constant 0 : index
    %253 = vector.load %arg9[%c0_265, %c6_266, %c0_267] : memref<16x16x16xf32, #tpu.memory_space<vmem>>, vector<16x2x16xf32>
    %254 = arith.addf %253, %252 : vector<16x2x16xf32>
    %c0_268 = arith.constant 0 : index
    %c6_269 = arith.constant 6 : index
    %c0_270 = arith.constant 0 : index
    %255 = vector.load %arg9[%c0_268, %c6_269, %c0_270] : memref<16x16x16xf32, #tpu.memory_space<vmem>>, vector<16x2x16xf32>
    tpu.vector_store %arg9[%c0_268, %c6_269, %c0_270], %254 {strides = array<i32>} : memref<16x16x16xf32, #tpu.memory_space<vmem>>, vector<16x2x16xf32>,
    %c0_271 = arith.constant 0 : index
    %c4_272 = arith.constant 4 : index
    %c0_273 = arith.constant 0 : index
    %256 = vector.load %arg11[%c0_271, %c4_272, %c0_273] : memref<8x16x16xf32, #tpu.memory_space<vmem>>, vector<8x1x16xf32>
    %257 = vector.shape_cast %256 : vector<8x1x16xf32> to vector<8x1x1x16xf32>
    %258 = vector.shape_cast %257 : vector<8x1x1x16xf32> to vector<8x1x1x16xf32>
    %259 = vector.broadcast %258 : vector<8x1x1x16xf32> to vector<8x2x1x16xf32>
    %260 = vector.shape_cast %259 : vector<8x2x1x16xf32> to vector<16x1x16xf32>
    %261 = vector.shape_cast %260 : vector<16x1x16xf32> to vector<16x1x16xf32>
    %262 = vector.broadcast %261 : vector<16x1x16xf32> to vector<16x2x16xf32>
    %c0_274 = arith.constant 0 : index
    %c8_275 = arith.constant 8 : index
    %c0_276 = arith.constant 0 : index
    %263 = vector.load %arg9[%c0_274, %c8_275, %c0_276] : memref<16x16x16xf32, #tpu.memory_space<vmem>>, vector<16x2x16xf32>
    %264 = arith.addf %263, %262 : vector<16x2x16xf32>
    %c0_277 = arith.constant 0 : index
    %c8_278 = arith.constant 8 : index
    %c0_279 = arith.constant 0 : index
    %265 = vector.load %arg9[%c0_277, %c8_278, %c0_279] : memref<16x16x16xf32, #tpu.memory_space<vmem>>, vector<16x2x16xf32>
    tpu.vector_store %arg9[%c0_277, %c8_278, %c0_279], %264 {strides = array<i32>} : memref<16x16x16xf32, #tpu.memory_space<vmem>>, vector<16x2x16xf32>,
    %c0_280 = arith.constant 0 : index
    %c5_281 = arith.constant 5 : index
    %c0_282 = arith.constant 0 : index
    %266 = vector.load %arg11[%c0_280, %c5_281, %c0_282] : memref<8x16x16xf32, #tpu.memory_space<vmem>>, vector<8x1x16xf32>
    %267 = vector.shape_cast %266 : vector<8x1x16xf32> to vector<8x1x1x16xf32>
    %268 = vector.shape_cast %267 : vector<8x1x1x16xf32> to vector<8x1x1x16xf32>
    %269 = vector.broadcast %268 : vector<8x1x1x16xf32> to vector<8x2x1x16xf32>
    %270 = vector.shape_cast %269 : vector<8x2x1x16xf32> to vector<16x1x16xf32>
    %271 = vector.shape_cast %270 : vector<16x1x16xf32> to vector<16x1x16xf32>
    %272 = vector.broadcast %271 : vector<16x1x16xf32> to vector<16x2x16xf32>
    %c0_283 = arith.constant 0 : index
    %c10_284 = arith.constant 10 : index
    %c0_285 = arith.constant 0 : index
    %273 = vector.load %arg9[%c0_283, %c10_284, %c0_285] : memref<16x16x16xf32, #tpu.memory_space<vmem>>, vector<16x2x16xf32>
    %274 = arith.addf %273, %272 : vector<16x2x16xf32>
    %c0_286 = arith.constant 0 : index
    %c10_287 = arith.constant 10 : index
    %c0_288 = arith.constant 0 : index
    %275 = vector.load %arg9[%c0_286, %c10_287, %c0_288] : memref<16x16x16xf32, #tpu.memory_space<vmem>>, vector<16x2x16xf32>
    tpu.vector_store %arg9[%c0_286, %c10_287, %c0_288], %274 {strides = array<i32>} : memref<16x16x16xf32, #tpu.memory_space<vmem>>, vector<16x2x16xf32>,
    %c0_289 = arith.constant 0 : index
    %c6_290 = arith.constant 6 : index
    %c0_291 = arith.constant 0 : index
    %276 = vector.load %arg11[%c0_289, %c6_290, %c0_291] : memref<8x16x16xf32, #tpu.memory_space<vmem>>, vector<8x1x16xf32>
    %277 = vector.shape_cast %276 : vector<8x1x16xf32> to vector<8x1x1x16xf32>
    %278 = vector.shape_cast %277 : vector<8x1x1x16xf32> to vector<8x1x1x16xf32>
    %279 = vector.broadcast %278 : vector<8x1x1x16xf32> to vector<8x2x1x16xf32>
    %280 = vector.shape_cast %279 : vector<8x2x1x16xf32> to vector<16x1x16xf32>
    %281 = vector.shape_cast %280 : vector<16x1x16xf32> to vector<16x1x16xf32>
    %282 = vector.broadcast %281 : vector<16x1x16xf32> to vector<16x2x16xf32>
    %c0_292 = arith.constant 0 : index
    %c12_293 = arith.constant 12 : index
    %c0_294 = arith.constant 0 : index
    %283 = vector.load %arg9[%c0_292, %c12_293, %c0_294] : memref<16x16x16xf32, #tpu.memory_space<vmem>>, vector<16x2x16xf32>
    %284 = arith.addf %283, %282 : vector<16x2x16xf32>
    %c0_295 = arith.constant 0 : index
    %c12_296 = arith.constant 12 : index
    %c0_297 = arith.constant 0 : index
    %285 = vector.load %arg9[%c0_295, %c12_296, %c0_297] : memref<16x16x16xf32, #tpu.memory_space<vmem>>, vector<16x2x16xf32>
    tpu.vector_store %arg9[%c0_295, %c12_296, %c0_297], %284 {strides = array<i32>} : memref<16x16x16xf32, #tpu.memory_space<vmem>>, vector<16x2x16xf32>,
    %c0_298 = arith.constant 0 : index
    %c7_299 = arith.constant 7 : index
    %c0_300 = arith.constant 0 : index
    %286 = vector.load %arg11[%c0_298, %c7_299, %c0_300] : memref<8x16x16xf32, #tpu.memory_space<vmem>>, vector<8x1x16xf32>
    %287 = vector.shape_cast %286 : vector<8x1x16xf32> to vector<8x1x1x16xf32>
    %288 = vector.shape_cast %287 : vector<8x1x1x16xf32> to vector<8x1x1x16xf32>
    %289 = vector.broadcast %288 : vector<8x1x1x16xf32> to vector<8x2x1x16xf32>
    %290 = vector.shape_cast %289 : vector<8x2x1x16xf32> to vector<16x1x16xf32>
    %291 = vector.shape_cast %290 : vector<16x1x16xf32> to vector<16x1x16xf32>
    %292 = vector.broadcast %291 : vector<16x1x16xf32> to vector<16x2x16xf32>
    %c0_301 = arith.constant 0 : index
    %c14_302 = arith.constant 14 : index
    %c0_303 = arith.constant 0 : index
    %293 = vector.load %arg9[%c0_301, %c14_302, %c0_303] : memref<16x16x16xf32, #tpu.memory_space<vmem>>, vector<16x2x16xf32>
    %294 = arith.addf %293, %292 : vector<16x2x16xf32>
    %c0_304 = arith.constant 0 : index
    %c14_305 = arith.constant 14 : index
    %c0_306 = arith.constant 0 : index
    %295 = vector.load %arg9[%c0_304, %c14_305, %c0_306] : memref<16x16x16xf32, #tpu.memory_space<vmem>>, vector<16x2x16xf32>
    tpu.vector_store %arg9[%c0_304, %c14_305, %c0_306], %294 {strides = array<i32>} : memref<16x16x16xf32, #tpu.memory_space<vmem>>, vector<16x2x16xf32>,
    %cst_307 = arith.constant 0.000000e+00 : f32
    %296 = vector.broadcast %cst_307 : f32 to vector<1x6x16xf32>
    %c0_308 = arith.constant 0 : index
    %c0_309 = arith.constant 0 : index
    %c0_310 = arith.constant 0 : index
    %297 = vector.load %arg10[%c0_308, %c0_309, %c0_310] : memref<18x18x16xf32, #tpu.memory_space<vmem>>, vector<1x6x16xf32>
    tpu.vector_store %arg10[%c0_308, %c0_309, %c0_310], %296 {strides = array<i32>} : memref<18x18x16xf32, #tpu.memory_space<vmem>>, vector<1x6x16xf32>,
    %cst_311 = arith.constant 0.000000e+00 : f32
    %298 = vector.broadcast %cst_311 : f32 to vector<1x6x16xf32>
    %c5_312 = arith.constant 5 : index
    %c0_313 = arith.constant 0 : index
    %c0_314 = arith.constant 0 : index
    %299 = vector.load %arg10[%c5_312, %c0_313, %c0_314] : memref<18x18x16xf32, #tpu.memory_space<vmem>>, vector<1x6x16xf32>
    tpu.vector_store %arg10[%c5_312, %c0_313, %c0_314], %298 {strides = array<i32>} : memref<18x18x16xf32, #tpu.memory_space<vmem>>, vector<1x6x16xf32>,
    %cst_315 = arith.constant 0.000000e+00 : f32
    %300 = vector.broadcast %cst_315 : f32 to vector<6x1x16xf32>
    %c0_316 = arith.constant 0 : index
    %c0_317 = arith.constant 0 : index
    %c0_318 = arith.constant 0 : index
    %301 = vector.load %arg10[%c0_316, %c0_317, %c0_318] : memref<18x18x16xf32, #tpu.memory_space<vmem>>, vector<6x1x16xf32>
    tpu.vector_store %arg10[%c0_316, %c0_317, %c0_318], %300 {strides = array<i32>} : memref<18x18x16xf32, #tpu.memory_space<vmem>>, vector<6x1x16xf32>,
    %cst_319 = arith.constant 0.000000e+00 : f32
    %302 = vector.broadcast %cst_319 : f32 to vector<6x1x16xf32>
    %c0_320 = arith.constant 0 : index
    %c5_321 = arith.constant 5 : index
    %c0_322 = arith.constant 0 : index
    %303 = vector.load %arg10[%c0_320, %c5_321, %c0_322] : memref<18x18x16xf32, #tpu.memory_space<vmem>>, vector<6x1x16xf32>
    tpu.vector_store %arg10[%c0_320, %c5_321, %c0_322], %302 {strides = array<i32>} : memref<18x18x16xf32, #tpu.memory_space<vmem>>, vector<6x1x16xf32>,
    %304 = vector.shape_cast %25 : vector<16x16x16xf32> to vector<4x4x16x16xf32>
    %cst_323 = arith.constant dense<0xFF800000> : vector<4x16x16xf32>
    %305 = vector.multi_reduction <maximumf>, %304, %cst_323 [1] : vector<4x4x16x16xf32> to vector<4x16x16xf32>
    %c0_324 = arith.constant 0 : index
    %c0_325 = arith.constant 0 : index
    %c0_326 = arith.constant 0 : index
    %306 = vector.load %arg11[%c0_324, %c0_325, %c0_326] : memref<8x16x16xf32, #tpu.memory_space<vmem>>, vector<4x16x16xf32>
    tpu.vector_store %arg11[%c0_324, %c0_325, %c0_326], %305 {strides = array<i32>} : memref<8x16x16xf32, #tpu.memory_space<vmem>>, vector<4x16x16xf32>,
    %c0_327 = arith.constant 0 : index
    %c0_328 = arith.constant 0 : index
    %c0_329 = arith.constant 0 : index
    %307 = vector.load %arg11[%c0_327, %c0_328, %c0_329] : memref<8x16x16xf32, #tpu.memory_space<vmem>>, vector<4x4x16xf32>
    %cst_330 = arith.constant dense<0xFF800000> : vector<4x16xf32>
    %308 = vector.multi_reduction <maximumf>, %307, %cst_330 [1] : vector<4x4x16xf32> to vector<4x16xf32>
    %309 = vector.shape_cast %308 : vector<4x16xf32> to vector<4x1x16xf32>
    %c1_331 = arith.constant 1 : index
    %c1_332 = arith.constant 1 : index
    %c0_333 = arith.constant 0 : index
    %310 = vector.load %arg10[%c1_331, %c1_332, %c0_333] : memref<18x18x16xf32, #tpu.memory_space<vmem>>, vector<4x1x16xf32>
    tpu.vector_store %arg10[%c1_331, %c1_332, %c0_333], %309 {strides = array<i32>} : memref<18x18x16xf32, #tpu.memory_space<vmem>>, vector<4x1x16xf32>,
    %c0_334 = arith.constant 0 : index
    %c4_335 = arith.constant 4 : index
    %c0_336 = arith.constant 0 : index
    %311 = vector.load %arg11[%c0_334, %c4_335, %c0_336] : memref<8x16x16xf32, #tpu.memory_space<vmem>>, vector<4x4x16xf32>
    %cst_337 = arith.constant dense<0xFF800000> : vector<4x16xf32>
    %312 = vector.multi_reduction <maximumf>, %311, %cst_337 [1] : vector<4x4x16xf32> to vector<4x16xf32>
    %313 = vector.shape_cast %312 : vector<4x16xf32> to vector<4x1x16xf32>
    %c1_338 = arith.constant 1 : index
    %c2_339 = arith.constant 2 : index
    %c0_340 = arith.constant 0 : index
    %314 = vector.load %arg10[%c1_338, %c2_339, %c0_340] : memref<18x18x16xf32, #tpu.memory_space<vmem>>, vector<4x1x16xf32>
    tpu.vector_store %arg10[%c1_338, %c2_339, %c0_340], %313 {strides = array<i32>} : memref<18x18x16xf32, #tpu.memory_space<vmem>>, vector<4x1x16xf32>,
    %c0_341 = arith.constant 0 : index
    %c8_342 = arith.constant 8 : index
    %c0_343 = arith.constant 0 : index
    %315 = vector.load %arg11[%c0_341, %c8_342, %c0_343] : memref<8x16x16xf32, #tpu.memory_space<vmem>>, vector<4x4x16xf32>
    %cst_344 = arith.constant dense<0xFF800000> : vector<4x16xf32>
    %316 = vector.multi_reduction <maximumf>, %315, %cst_344 [1] : vector<4x4x16xf32> to vector<4x16xf32>
    %317 = vector.shape_cast %316 : vector<4x16xf32> to vector<4x1x16xf32>
    %c1_345 = arith.constant 1 : index
    %c3_346 = arith.constant 3 : index
    %c0_347 = arith.constant 0 : index
    %318 = vector.load %arg10[%c1_345, %c3_346, %c0_347] : memref<18x18x16xf32, #tpu.memory_space<vmem>>, vector<4x1x16xf32>
    tpu.vector_store %arg10[%c1_345, %c3_346, %c0_347], %317 {strides = array<i32>} : memref<18x18x16xf32, #tpu.memory_space<vmem>>, vector<4x1x16xf32>,
    %c0_348 = arith.constant 0 : index
    %c12_349 = arith.constant 12 : index
    %c0_350 = arith.constant 0 : index
    %319 = vector.load %arg11[%c0_348, %c12_349, %c0_350] : memref<8x16x16xf32, #tpu.memory_space<vmem>>, vector<4x4x16xf32>
    %cst_351 = arith.constant dense<0xFF800000> : vector<4x16xf32>
    %320 = vector.multi_reduction <maximumf>, %319, %cst_351 [1] : vector<4x4x16xf32> to vector<4x16xf32>
    %321 = vector.shape_cast %320 : vector<4x16xf32> to vector<4x1x16xf32>
    %c1_352 = arith.constant 1 : index
    %c4_353 = arith.constant 4 : index
    %c0_354 = arith.constant 0 : index
    %322 = vector.load %arg10[%c1_352, %c4_353, %c0_354] : memref<18x18x16xf32, #tpu.memory_space<vmem>>, vector<4x1x16xf32>
    tpu.vector_store %arg10[%c1_352, %c4_353, %c0_354], %321 {strides = array<i32>} : memref<18x18x16xf32, #tpu.memory_space<vmem>>, vector<4x1x16xf32>,
    %cst_355 = arith.constant 0.000000e+00 : f32
    %323 = vector.broadcast %cst_355 : f32 to vector<4x4x16xf32>
    %c0_356 = arith.constant 0 : index
    %c0_357 = arith.constant 0 : index
    %c0_358 = arith.constant 0 : index
    %324 = vector.load %arg10[%c0_356, %c0_357, %c0_358] : memref<18x18x16xf32, #tpu.memory_space<vmem>>, vector<4x4x16xf32>
    %c2_359 = arith.constant 2 : index
    %c0_360 = arith.constant 0 : index
    %c0_361 = arith.constant 0 : index
    %c0_362 = arith.constant 0 : index
    %325 = vector.load %arg4[%c2_359, %c0_360, %c0_361, %c0_362] : memref<4x3x3x16xf32, #tpu.memory_space<vmem>>, vector<1x1x1x16xf32>
    %326 = vector.shape_cast %325 : vector<1x1x1x16xf32> to vector<16xf32>
    %327 = vector.shape_cast %326 : vector<16xf32> to vector<1x1x16xf32>
    %328 = vector.broadcast %327 : vector<1x1x16xf32> to vector<4x4x16xf32>
    %329 = arith.mulf %324, %328 : vector<4x4x16xf32>
    %330 = arith.addf %323, %329 : vector<4x4x16xf32>
    %c0_363 = arith.constant 0 : index
    %c1_364 = arith.constant 1 : index
    %c0_365 = arith.constant 0 : index
    %331 = vector.load %arg10[%c0_363, %c1_364, %c0_365] : memref<18x18x16xf32, #tpu.memory_space<vmem>>, vector<4x4x16xf32>
    %c2_366 = arith.constant 2 : index
    %c0_367 = arith.constant 0 : index
    %c1_368 = arith.constant 1 : index
    %c0_369 = arith.constant 0 : index
    %332 = vector.load %arg4[%c2_366, %c0_367, %c1_368, %c0_369] : memref<4x3x3x16xf32, #tpu.memory_space<vmem>>, vector<1x1x1x16xf32>
    %333 = vector.shape_cast %332 : vector<1x1x1x16xf32> to vector<16xf32>
    %334 = vector.shape_cast %333 : vector<16xf32> to vector<1x1x16xf32>
    %335 = vector.broadcast %334 : vector<1x1x16xf32> to vector<4x4x16xf32>
    %336 = arith.mulf %331, %335 : vector<4x4x16xf32>
    %337 = arith.addf %330, %336 : vector<4x4x16xf32>
    %c0_370 = arith.constant 0 : index
    %c2_371 = arith.constant 2 : index
    %c0_372 = arith.constant 0 : index
    %338 = vector.load %arg10[%c0_370, %c2_371, %c0_372] : memref<18x18x16xf32, #tpu.memory_space<vmem>>, vector<4x4x16xf32>
    %c2_373 = arith.constant 2 : index
    %c0_374 = arith.constant 0 : index
    %c2_375 = arith.constant 2 : index
    %c0_376 = arith.constant 0 : index
    %339 = vector.load %arg4[%c2_373, %c0_374, %c2_375, %c0_376] : memref<4x3x3x16xf32, #tpu.memory_space<vmem>>, vector<1x1x1x16xf32>
    %340 = vector.shape_cast %339 : vector<1x1x1x16xf32> to vector<16xf32>
    %341 = vector.shape_cast %340 : vector<16xf32> to vector<1x1x16xf32>
    %342 = vector.broadcast %341 : vector<1x1x16xf32> to vector<4x4x16xf32>
    %343 = arith.mulf %338, %342 : vector<4x4x16xf32>
    %344 = arith.addf %337, %343 : vector<4x4x16xf32>
    %c1_377 = arith.constant 1 : index
    %c0_378 = arith.constant 0 : index
    %c0_379 = arith.constant 0 : index
    %345 = vector.load %arg10[%c1_377, %c0_378, %c0_379] : memref<18x18x16xf32, #tpu.memory_space<vmem>>, vector<4x4x16xf32>
    %c2_380 = arith.constant 2 : index
    %c1_381 = arith.constant 1 : index
    %c0_382 = arith.constant 0 : index
    %c0_383 = arith.constant 0 : index
    %346 = vector.load %arg4[%c2_380, %c1_381, %c0_382, %c0_383] : memref<4x3x3x16xf32, #tpu.memory_space<vmem>>, vector<1x1x1x16xf32>
    %347 = vector.shape_cast %346 : vector<1x1x1x16xf32> to vector<16xf32>
    %348 = vector.shape_cast %347 : vector<16xf32> to vector<1x1x16xf32>
    %349 = vector.broadcast %348 : vector<1x1x16xf32> to vector<4x4x16xf32>
    %350 = arith.mulf %345, %349 : vector<4x4x16xf32>
    %351 = arith.addf %344, %350 : vector<4x4x16xf32>
    %c1_384 = arith.constant 1 : index
    %c1_385 = arith.constant 1 : index
    %c0_386 = arith.constant 0 : index
    %352 = vector.load %arg10[%c1_384, %c1_385, %c0_386] : memref<18x18x16xf32, #tpu.memory_space<vmem>>, vector<4x4x16xf32>
    %c2_387 = arith.constant 2 : index
    %c1_388 = arith.constant 1 : index
    %c1_389 = arith.constant 1 : index
    %c0_390 = arith.constant 0 : index
    %353 = vector.load %arg4[%c2_387, %c1_388, %c1_389, %c0_390] : memref<4x3x3x16xf32, #tpu.memory_space<vmem>>, vector<1x1x1x16xf32>
    %354 = vector.shape_cast %353 : vector<1x1x1x16xf32> to vector<16xf32>
    %355 = vector.shape_cast %354 : vector<16xf32> to vector<1x1x16xf32>
    %356 = vector.broadcast %355 : vector<1x1x16xf32> to vector<4x4x16xf32>
    %357 = arith.mulf %352, %356 : vector<4x4x16xf32>
    %358 = arith.addf %351, %357 : vector<4x4x16xf32>
    %c1_391 = arith.constant 1 : index
    %c2_392 = arith.constant 2 : index
    %c0_393 = arith.constant 0 : index
    %359 = vector.load %arg10[%c1_391, %c2_392, %c0_393] : memref<18x18x16xf32, #tpu.memory_space<vmem>>, vector<4x4x16xf32>
    %c2_394 = arith.constant 2 : index
    %c1_395 = arith.constant 1 : index
    %c2_396 = arith.constant 2 : index
    %c0_397 = arith.constant 0 : index
    %360 = vector.load %arg4[%c2_394, %c1_395, %c2_396, %c0_397] : memref<4x3x3x16xf32, #tpu.memory_space<vmem>>, vector<1x1x1x16xf32>
    %361 = vector.shape_cast %360 : vector<1x1x1x16xf32> to vector<16xf32>
    %362 = vector.shape_cast %361 : vector<16xf32> to vector<1x1x16xf32>
    %363 = vector.broadcast %362 : vector<1x1x16xf32> to vector<4x4x16xf32>
    %364 = arith.mulf %359, %363 : vector<4x4x16xf32>
    %365 = arith.addf %358, %364 : vector<4x4x16xf32>
    %c2_398 = arith.constant 2 : index
    %c0_399 = arith.constant 0 : index
    %c0_400 = arith.constant 0 : index
    %366 = vector.load %arg10[%c2_398, %c0_399, %c0_400] : memref<18x18x16xf32, #tpu.memory_space<vmem>>, vector<4x4x16xf32>
    %c2_401 = arith.constant 2 : index
    %c2_402 = arith.constant 2 : index
    %c0_403 = arith.constant 0 : index
    %c0_404 = arith.constant 0 : index
    %367 = vector.load %arg4[%c2_401, %c2_402, %c0_403, %c0_404] : memref<4x3x3x16xf32, #tpu.memory_space<vmem>>, vector<1x1x1x16xf32>
    %368 = vector.shape_cast %367 : vector<1x1x1x16xf32> to vector<16xf32>
    %369 = vector.shape_cast %368 : vector<16xf32> to vector<1x1x16xf32>
    %370 = vector.broadcast %369 : vector<1x1x16xf32> to vector<4x4x16xf32>
    %371 = arith.mulf %366, %370 : vector<4x4x16xf32>
    %372 = arith.addf %365, %371 : vector<4x4x16xf32>
    %c2_405 = arith.constant 2 : index
    %c1_406 = arith.constant 1 : index
    %c0_407 = arith.constant 0 : index
    %373 = vector.load %arg10[%c2_405, %c1_406, %c0_407] : memref<18x18x16xf32, #tpu.memory_space<vmem>>, vector<4x4x16xf32>
    %c2_408 = arith.constant 2 : index
    %c2_409 = arith.constant 2 : index
    %c1_410 = arith.constant 1 : index
    %c0_411 = arith.constant 0 : index
    %374 = vector.load %arg4[%c2_408, %c2_409, %c1_410, %c0_411] : memref<4x3x3x16xf32, #tpu.memory_space<vmem>>, vector<1x1x1x16xf32>
    %375 = vector.shape_cast %374 : vector<1x1x1x16xf32> to vector<16xf32>
    %376 = vector.shape_cast %375 : vector<16xf32> to vector<1x1x16xf32>
    %377 = vector.broadcast %376 : vector<1x1x16xf32> to vector<4x4x16xf32>
    %378 = arith.mulf %373, %377 : vector<4x4x16xf32>
    %379 = arith.addf %372, %378 : vector<4x4x16xf32>
    %c2_412 = arith.constant 2 : index
    %c2_413 = arith.constant 2 : index
    %c0_414 = arith.constant 0 : index
    %380 = vector.load %arg10[%c2_412, %c2_413, %c0_414] : memref<18x18x16xf32, #tpu.memory_space<vmem>>, vector<4x4x16xf32>
    %c2_415 = arith.constant 2 : index
    %c2_416 = arith.constant 2 : index
    %c2_417 = arith.constant 2 : index
    %c0_418 = arith.constant 0 : index
    %381 = vector.load %arg4[%c2_415, %c2_416, %c2_417, %c0_418] : memref<4x3x3x16xf32, #tpu.memory_space<vmem>>, vector<1x1x1x16xf32>
    %382 = vector.shape_cast %381 : vector<1x1x1x16xf32> to vector<16xf32>
    %383 = vector.shape_cast %382 : vector<16xf32> to vector<1x1x16xf32>
    %384 = vector.broadcast %383 : vector<1x1x16xf32> to vector<4x4x16xf32>
    %385 = arith.mulf %380, %384 : vector<4x4x16xf32>
    %386 = arith.addf %379, %385 : vector<4x4x16xf32>
    %c2_419 = arith.constant 2 : index
    %c0_420 = arith.constant 0 : index
    %c0_421 = arith.constant 0 : index
    %c0_422 = arith.constant 0 : index
    %387 = vector.load %arg5[%c2_419, %c0_420, %c0_421, %c0_422] : memref<4x1x1x16xf32, #tpu.memory_space<vmem>>, vector<1x1x1x16xf32>
    %388 = vector.shape_cast %387 : vector<1x1x1x16xf32> to vector<1x1x16xf32>
    %389 = vector.broadcast %388 : vector<1x1x16xf32> to vector<4x4x16xf32>
    %390 = arith.addf %386, %389 : vector<4x4x16xf32>
    %c0_423 = arith.constant 0 : index
    %c0_424 = arith.constant 0 : index
    %c0_425 = arith.constant 0 : index
    %391 = vector.load %arg11[%c0_423, %c0_424, %c0_425] : memref<8x16x16xf32, #tpu.memory_space<vmem>>, vector<4x4x16xf32>
    tpu.vector_store %arg11[%c0_423, %c0_424, %c0_425], %390 {strides = array<i32>} : memref<8x16x16xf32, #tpu.memory_space<vmem>>, vector<4x4x16xf32>,
    %c0_426 = arith.constant 0 : index
    %c0_427 = arith.constant 0 : index
    %c0_428 = arith.constant 0 : index
    %392 = vector.load %arg11[%c0_426, %c0_427, %c0_428] : memref<8x16x16xf32, #tpu.memory_space<vmem>>, vector<4x1x16xf32>
    %393 = vector.shape_cast %392 : vector<4x1x16xf32> to vector<4x1x1x16xf32>
    %394 = vector.shape_cast %393 : vector<4x1x1x16xf32> to vector<4x1x1x16xf32>
    %395 = vector.broadcast %394 : vector<4x1x1x16xf32> to vector<4x4x1x16xf32>
    %396 = vector.shape_cast %395 : vector<4x4x1x16xf32> to vector<16x1x16xf32>
    %397 = vector.shape_cast %396 : vector<16x1x16xf32> to vector<16x1x16xf32>
    %398 = vector.broadcast %397 : vector<16x1x16xf32> to vector<16x4x16xf32>
    %c0_429 = arith.constant 0 : index
    %c0_430 = arith.constant 0 : index
    %c0_431 = arith.constant 0 : index
    %399 = vector.load %arg9[%c0_429, %c0_430, %c0_431] : memref<16x16x16xf32, #tpu.memory_space<vmem>>, vector<16x4x16xf32>
    %400 = arith.addf %399, %398 : vector<16x4x16xf32>
    %c0_432 = arith.constant 0 : index
    %c0_433 = arith.constant 0 : index
    %c0_434 = arith.constant 0 : index
    %401 = vector.load %arg9[%c0_432, %c0_433, %c0_434] : memref<16x16x16xf32, #tpu.memory_space<vmem>>, vector<16x4x16xf32>
    tpu.vector_store %arg9[%c0_432, %c0_433, %c0_434], %400 {strides = array<i32>} : memref<16x16x16xf32, #tpu.memory_space<vmem>>, vector<16x4x16xf32>,
    %c0_435 = arith.constant 0 : index
    %c1_436 = arith.constant 1 : index
    %c0_437 = arith.constant 0 : index
    %402 = vector.load %arg11[%c0_435, %c1_436, %c0_437] : memref<8x16x16xf32, #tpu.memory_space<vmem>>, vector<4x1x16xf32>
    %403 = vector.shape_cast %402 : vector<4x1x16xf32> to vector<4x1x1x16xf32>
    %404 = vector.shape_cast %403 : vector<4x1x1x16xf32> to vector<4x1x1x16xf32>
    %405 = vector.broadcast %404 : vector<4x1x1x16xf32> to vector<4x4x1x16xf32>
    %406 = vector.shape_cast %405 : vector<4x4x1x16xf32> to vector<16x1x16xf32>
    %407 = vector.shape_cast %406 : vector<16x1x16xf32> to vector<16x1x16xf32>
    %408 = vector.broadcast %407 : vector<16x1x16xf32> to vector<16x4x16xf32>
    %c0_438 = arith.constant 0 : index
    %c4_439 = arith.constant 4 : index
    %c0_440 = arith.constant 0 : index
    %409 = vector.load %arg9[%c0_438, %c4_439, %c0_440] : memref<16x16x16xf32, #tpu.memory_space<vmem>>, vector<16x4x16xf32>
    %410 = arith.addf %409, %408 : vector<16x4x16xf32>
    %c0_441 = arith.constant 0 : index
    %c4_442 = arith.constant 4 : index
    %c0_443 = arith.constant 0 : index
    %411 = vector.load %arg9[%c0_441, %c4_442, %c0_443] : memref<16x16x16xf32, #tpu.memory_space<vmem>>, vector<16x4x16xf32>
    tpu.vector_store %arg9[%c0_441, %c4_442, %c0_443], %410 {strides = array<i32>} : memref<16x16x16xf32, #tpu.memory_space<vmem>>, vector<16x4x16xf32>,
    %c0_444 = arith.constant 0 : index
    %c2_445 = arith.constant 2 : index
    %c0_446 = arith.constant 0 : index
    %412 = vector.load %arg11[%c0_444, %c2_445, %c0_446] : memref<8x16x16xf32, #tpu.memory_space<vmem>>, vector<4x1x16xf32>
    %413 = vector.shape_cast %412 : vector<4x1x16xf32> to vector<4x1x1x16xf32>
    %414 = vector.shape_cast %413 : vector<4x1x1x16xf32> to vector<4x1x1x16xf32>
    %415 = vector.broadcast %414 : vector<4x1x1x16xf32> to vector<4x4x1x16xf32>
    %416 = vector.shape_cast %415 : vector<4x4x1x16xf32> to vector<16x1x16xf32>
    %417 = vector.shape_cast %416 : vector<16x1x16xf32> to vector<16x1x16xf32>
    %418 = vector.broadcast %417 : vector<16x1x16xf32> to vector<16x4x16xf32>
    %c0_447 = arith.constant 0 : index
    %c8_448 = arith.constant 8 : index
    %c0_449 = arith.constant 0 : index
    %419 = vector.load %arg9[%c0_447, %c8_448, %c0_449] : memref<16x16x16xf32, #tpu.memory_space<vmem>>, vector<16x4x16xf32>
    %420 = arith.addf %419, %418 : vector<16x4x16xf32>
    %c0_450 = arith.constant 0 : index
    %c8_451 = arith.constant 8 : index
    %c0_452 = arith.constant 0 : index
    %421 = vector.load %arg9[%c0_450, %c8_451, %c0_452] : memref<16x16x16xf32, #tpu.memory_space<vmem>>, vector<16x4x16xf32>
    tpu.vector_store %arg9[%c0_450, %c8_451, %c0_452], %420 {strides = array<i32>} : memref<16x16x16xf32, #tpu.memory_space<vmem>>, vector<16x4x16xf32>,
    %c0_453 = arith.constant 0 : index
    %c3_454 = arith.constant 3 : index
    %c0_455 = arith.constant 0 : index
    %422 = vector.load %arg11[%c0_453, %c3_454, %c0_455] : memref<8x16x16xf32, #tpu.memory_space<vmem>>, vector<4x1x16xf32>
    %423 = vector.shape_cast %422 : vector<4x1x16xf32> to vector<4x1x1x16xf32>
    %424 = vector.shape_cast %423 : vector<4x1x1x16xf32> to vector<4x1x1x16xf32>
    %425 = vector.broadcast %424 : vector<4x1x1x16xf32> to vector<4x4x1x16xf32>
    %426 = vector.shape_cast %425 : vector<4x4x1x16xf32> to vector<16x1x16xf32>
    %427 = vector.shape_cast %426 : vector<16x1x16xf32> to vector<16x1x16xf32>
    %428 = vector.broadcast %427 : vector<16x1x16xf32> to vector<16x4x16xf32>
    %c0_456 = arith.constant 0 : index
    %c12_457 = arith.constant 12 : index
    %c0_458 = arith.constant 0 : index
    %429 = vector.load %arg9[%c0_456, %c12_457, %c0_458] : memref<16x16x16xf32, #tpu.memory_space<vmem>>, vector<16x4x16xf32>
    %430 = arith.addf %429, %428 : vector<16x4x16xf32>
    %c0_459 = arith.constant 0 : index
    %c12_460 = arith.constant 12 : index
    %c0_461 = arith.constant 0 : index
    %431 = vector.load %arg9[%c0_459, %c12_460, %c0_461] : memref<16x16x16xf32, #tpu.memory_space<vmem>>, vector<16x4x16xf32>
    tpu.vector_store %arg9[%c0_459, %c12_460, %c0_461], %430 {strides = array<i32>} : memref<16x16x16xf32, #tpu.memory_space<vmem>>, vector<16x4x16xf32>,
    %cst_462 = arith.constant 0.000000e+00 : f32
    %432 = vector.broadcast %cst_462 : f32 to vector<1x4x16xf32>
    %c0_463 = arith.constant 0 : index
    %c0_464 = arith.constant 0 : index
    %c0_465 = arith.constant 0 : index
    %433 = vector.load %arg10[%c0_463, %c0_464, %c0_465] : memref<18x18x16xf32, #tpu.memory_space<vmem>>, vector<1x4x16xf32>
    tpu.vector_store %arg10[%c0_463, %c0_464, %c0_465], %432 {strides = array<i32>} : memref<18x18x16xf32, #tpu.memory_space<vmem>>, vector<1x4x16xf32>,
    %cst_466 = arith.constant 0.000000e+00 : f32
    %434 = vector.broadcast %cst_466 : f32 to vector<1x4x16xf32>
    %c3_467 = arith.constant 3 : index
    %c0_468 = arith.constant 0 : index
    %c0_469 = arith.constant 0 : index
    %435 = vector.load %arg10[%c3_467, %c0_468, %c0_469] : memref<18x18x16xf32, #tpu.memory_space<vmem>>, vector<1x4x16xf32>
    tpu.vector_store %arg10[%c3_467, %c0_468, %c0_469], %434 {strides = array<i32>} : memref<18x18x16xf32, #tpu.memory_space<vmem>>, vector<1x4x16xf32>,
    %cst_470 = arith.constant 0.000000e+00 : f32
    %436 = vector.broadcast %cst_470 : f32 to vector<4x1x16xf32>
    %c0_471 = arith.constant 0 : index
    %c0_472 = arith.constant 0 : index
    %c0_473 = arith.constant 0 : index
    %437 = vector.load %arg10[%c0_471, %c0_472, %c0_473] : memref<18x18x16xf32, #tpu.memory_space<vmem>>, vector<4x1x16xf32>
    tpu.vector_store %arg10[%c0_471, %c0_472, %c0_473], %436 {strides = array<i32>} : memref<18x18x16xf32, #tpu.memory_space<vmem>>, vector<4x1x16xf32>,
    %cst_474 = arith.constant 0.000000e+00 : f32
    %438 = vector.broadcast %cst_474 : f32 to vector<4x1x16xf32>
    %c0_475 = arith.constant 0 : index
    %c3_476 = arith.constant 3 : index
    %c0_477 = arith.constant 0 : index
    %439 = vector.load %arg10[%c0_475, %c3_476, %c0_477] : memref<18x18x16xf32, #tpu.memory_space<vmem>>, vector<4x1x16xf32>
    tpu.vector_store %arg10[%c0_475, %c3_476, %c0_477], %438 {strides = array<i32>} : memref<18x18x16xf32, #tpu.memory_space<vmem>>, vector<4x1x16xf32>,
    %440 = vector.shape_cast %25 : vector<16x16x16xf32> to vector<2x8x16x16xf32>
    %cst_478 = arith.constant dense<0xFF800000> : vector<2x16x16xf32>
    %441 = vector.multi_reduction <maximumf>, %440, %cst_478 [1] : vector<2x8x16x16xf32> to vector<2x16x16xf32>
    %c0_479 = arith.constant 0 : index
    %c0_480 = arith.constant 0 : index
    %c0_481 = arith.constant 0 : index
    %442 = vector.load %arg11[%c0_479, %c0_480, %c0_481] : memref<8x16x16xf32, #tpu.memory_space<vmem>>, vector<2x16x16xf32>
    tpu.vector_store %arg11[%c0_479, %c0_480, %c0_481], %441 {strides = array<i32>} : memref<8x16x16xf32, #tpu.memory_space<vmem>>, vector<2x16x16xf32>,
    %c0_482 = arith.constant 0 : index
    %c0_483 = arith.constant 0 : index
    %c0_484 = arith.constant 0 : index
    %443 = vector.load %arg11[%c0_482, %c0_483, %c0_484] : memref<8x16x16xf32, #tpu.memory_space<vmem>>, vector<2x8x16xf32>
    %cst_485 = arith.constant dense<0xFF800000> : vector<2x16xf32>
    %444 = vector.multi_reduction <maximumf>, %443, %cst_485 [1] : vector<2x8x16xf32> to vector<2x16xf32>
    %445 = vector.shape_cast %444 : vector<2x16xf32> to vector<2x1x16xf32>
    %c1_486 = arith.constant 1 : index
    %c1_487 = arith.constant 1 : index
    %c0_488 = arith.constant 0 : index
    %446 = vector.load %arg10[%c1_486, %c1_487, %c0_488] : memref<18x18x16xf32, #tpu.memory_space<vmem>>, vector<2x1x16xf32>
    tpu.vector_store %arg10[%c1_486, %c1_487, %c0_488], %445 {strides = array<i32>} : memref<18x18x16xf32, #tpu.memory_space<vmem>>, vector<2x1x16xf32>,
    %c0_489 = arith.constant 0 : index
    %c8_490 = arith.constant 8 : index
    %c0_491 = arith.constant 0 : index
    %447 = vector.load %arg11[%c0_489, %c8_490, %c0_491] : memref<8x16x16xf32, #tpu.memory_space<vmem>>, vector<2x8x16xf32>
    %cst_492 = arith.constant dense<0xFF800000> : vector<2x16xf32>
    %448 = vector.multi_reduction <maximumf>, %447, %cst_492 [1] : vector<2x8x16xf32> to vector<2x16xf32>
    %449 = vector.shape_cast %448 : vector<2x16xf32> to vector<2x1x16xf32>
    %c1_493 = arith.constant 1 : index
    %c2_494 = arith.constant 2 : index
    %c0_495 = arith.constant 0 : index
    %450 = vector.load %arg10[%c1_493, %c2_494, %c0_495] : memref<18x18x16xf32, #tpu.memory_space<vmem>>, vector<2x1x16xf32>
    tpu.vector_store %arg10[%c1_493, %c2_494, %c0_495], %449 {strides = array<i32>} : memref<18x18x16xf32, #tpu.memory_space<vmem>>, vector<2x1x16xf32>,
    %cst_496 = arith.constant 0.000000e+00 : f32
    %451 = vector.broadcast %cst_496 : f32 to vector<2x2x16xf32>
    %c0_497 = arith.constant 0 : index
    %c0_498 = arith.constant 0 : index
    %c0_499 = arith.constant 0 : index
    %452 = vector.load %arg10[%c0_497, %c0_498, %c0_499] : memref<18x18x16xf32, #tpu.memory_space<vmem>>, vector<2x2x16xf32>
    %c3_500 = arith.constant 3 : index
    %c0_501 = arith.constant 0 : index
    %c0_502 = arith.constant 0 : index
    %c0_503 = arith.constant 0 : index
    %453 = vector.load %arg4[%c3_500, %c0_501, %c0_502, %c0_503] : memref<4x3x3x16xf32, #tpu.memory_space<vmem>>, vector<1x1x1x16xf32>
    %454 = vector.shape_cast %453 : vector<1x1x1x16xf32> to vector<16xf32>
    %455 = vector.shape_cast %454 : vector<16xf32> to vector<1x1x16xf32>
    %456 = vector.broadcast %455 : vector<1x1x16xf32> to vector<2x2x16xf32>
    %457 = arith.mulf %452, %456 : vector<2x2x16xf32>
    %458 = arith.addf %451, %457 : vector<2x2x16xf32>
    %c0_504 = arith.constant 0 : index
    %c1_505 = arith.constant 1 : index
    %c0_506 = arith.constant 0 : index
    %459 = vector.load %arg10[%c0_504, %c1_505, %c0_506] : memref<18x18x16xf32, #tpu.memory_space<vmem>>, vector<2x2x16xf32>
    %c3_507 = arith.constant 3 : index
    %c0_508 = arith.constant 0 : index
    %c1_509 = arith.constant 1 : index
    %c0_510 = arith.constant 0 : index
    %460 = vector.load %arg4[%c3_507, %c0_508, %c1_509, %c0_510] : memref<4x3x3x16xf32, #tpu.memory_space<vmem>>, vector<1x1x1x16xf32>
    %461 = vector.shape_cast %460 : vector<1x1x1x16xf32> to vector<16xf32>
    %462 = vector.shape_cast %461 : vector<16xf32> to vector<1x1x16xf32>
    %463 = vector.broadcast %462 : vector<1x1x16xf32> to vector<2x2x16xf32>
    %464 = arith.mulf %459, %463 : vector<2x2x16xf32>
    %465 = arith.addf %458, %464 : vector<2x2x16xf32>
    %c0_511 = arith.constant 0 : index
    %c2_512 = arith.constant 2 : index
    %c0_513 = arith.constant 0 : index
    %466 = vector.load %arg10[%c0_511, %c2_512, %c0_513] : memref<18x18x16xf32, #tpu.memory_space<vmem>>, vector<2x2x16xf32>
    %c3_514 = arith.constant 3 : index
    %c0_515 = arith.constant 0 : index
    %c2_516 = arith.constant 2 : index
    %c0_517 = arith.constant 0 : index
    %467 = vector.load %arg4[%c3_514, %c0_515, %c2_516, %c0_517] : memref<4x3x3x16xf32, #tpu.memory_space<vmem>>, vector<1x1x1x16xf32>
    %468 = vector.shape_cast %467 : vector<1x1x1x16xf32> to vector<16xf32>
    %469 = vector.shape_cast %468 : vector<16xf32> to vector<1x1x16xf32>
    %470 = vector.broadcast %469 : vector<1x1x16xf32> to vector<2x2x16xf32>
    %471 = arith.mulf %466, %470 : vector<2x2x16xf32>
    %472 = arith.addf %465, %471 : vector<2x2x16xf32>
    %c1_518 = arith.constant 1 : index
    %c0_519 = arith.constant 0 : index
    %c0_520 = arith.constant 0 : index
    %473 = vector.load %arg10[%c1_518, %c0_519, %c0_520] : memref<18x18x16xf32, #tpu.memory_space<vmem>>, vector<2x2x16xf32>
    %c3_521 = arith.constant 3 : index
    %c1_522 = arith.constant 1 : index
    %c0_523 = arith.constant 0 : index
    %c0_524 = arith.constant 0 : index
    %474 = vector.load %arg4[%c3_521, %c1_522, %c0_523, %c0_524] : memref<4x3x3x16xf32, #tpu.memory_space<vmem>>, vector<1x1x1x16xf32>
    %475 = vector.shape_cast %474 : vector<1x1x1x16xf32> to vector<16xf32>
    %476 = vector.shape_cast %475 : vector<16xf32> to vector<1x1x16xf32>
    %477 = vector.broadcast %476 : vector<1x1x16xf32> to vector<2x2x16xf32>
    %478 = arith.mulf %473, %477 : vector<2x2x16xf32>
    %479 = arith.addf %472, %478 : vector<2x2x16xf32>
    %c1_525 = arith.constant 1 : index
    %c1_526 = arith.constant 1 : index
    %c0_527 = arith.constant 0 : index
    %480 = vector.load %arg10[%c1_525, %c1_526, %c0_527] : memref<18x18x16xf32, #tpu.memory_space<vmem>>, vector<2x2x16xf32>
    %c3_528 = arith.constant 3 : index
    %c1_529 = arith.constant 1 : index
    %c1_530 = arith.constant 1 : index
    %c0_531 = arith.constant 0 : index
    %481 = vector.load %arg4[%c3_528, %c1_529, %c1_530, %c0_531] : memref<4x3x3x16xf32, #tpu.memory_space<vmem>>, vector<1x1x1x16xf32>
    %482 = vector.shape_cast %481 : vector<1x1x1x16xf32> to vector<16xf32>
    %483 = vector.shape_cast %482 : vector<16xf32> to vector<1x1x16xf32>
    %484 = vector.broadcast %483 : vector<1x1x16xf32> to vector<2x2x16xf32>
    %485 = arith.mulf %480, %484 : vector<2x2x16xf32>
    %486 = arith.addf %479, %485 : vector<2x2x16xf32>
    %c1_532 = arith.constant 1 : index
    %c2_533 = arith.constant 2 : index
    %c0_534 = arith.constant 0 : index
    %487 = vector.load %arg10[%c1_532, %c2_533, %c0_534] : memref<18x18x16xf32, #tpu.memory_space<vmem>>, vector<2x2x16xf32>
    %c3_535 = arith.constant 3 : index
    %c1_536 = arith.constant 1 : index
    %c2_537 = arith.constant 2 : index
    %c0_538 = arith.constant 0 : index
    %488 = vector.load %arg4[%c3_535, %c1_536, %c2_537, %c0_538] : memref<4x3x3x16xf32, #tpu.memory_space<vmem>>, vector<1x1x1x16xf32>
    %489 = vector.shape_cast %488 : vector<1x1x1x16xf32> to vector<16xf32>
    %490 = vector.shape_cast %489 : vector<16xf32> to vector<1x1x16xf32>
    %491 = vector.broadcast %490 : vector<1x1x16xf32> to vector<2x2x16xf32>
    %492 = arith.mulf %487, %491 : vector<2x2x16xf32>
    %493 = arith.addf %486, %492 : vector<2x2x16xf32>
    %c2_539 = arith.constant 2 : index
    %c0_540 = arith.constant 0 : index
    %c0_541 = arith.constant 0 : index
    %494 = vector.load %arg10[%c2_539, %c0_540, %c0_541] : memref<18x18x16xf32, #tpu.memory_space<vmem>>, vector<2x2x16xf32>
    %c3_542 = arith.constant 3 : index
    %c2_543 = arith.constant 2 : index
    %c0_544 = arith.constant 0 : index
    %c0_545 = arith.constant 0 : index
    %495 = vector.load %arg4[%c3_542, %c2_543, %c0_544, %c0_545] : memref<4x3x3x16xf32, #tpu.memory_space<vmem>>, vector<1x1x1x16xf32>
    %496 = vector.shape_cast %495 : vector<1x1x1x16xf32> to vector<16xf32>
    %497 = vector.shape_cast %496 : vector<16xf32> to vector<1x1x16xf32>
    %498 = vector.broadcast %497 : vector<1x1x16xf32> to vector<2x2x16xf32>
    %499 = arith.mulf %494, %498 : vector<2x2x16xf32>
    %500 = arith.addf %493, %499 : vector<2x2x16xf32>
    %c2_546 = arith.constant 2 : index
    %c1_547 = arith.constant 1 : index
    %c0_548 = arith.constant 0 : index
    %501 = vector.load %arg10[%c2_546, %c1_547, %c0_548] : memref<18x18x16xf32, #tpu.memory_space<vmem>>, vector<2x2x16xf32>
    %c3_549 = arith.constant 3 : index
    %c2_550 = arith.constant 2 : index
    %c1_551 = arith.constant 1 : index
    %c0_552 = arith.constant 0 : index
    %502 = vector.load %arg4[%c3_549, %c2_550, %c1_551, %c0_552] : memref<4x3x3x16xf32, #tpu.memory_space<vmem>>, vector<1x1x1x16xf32>
    %503 = vector.shape_cast %502 : vector<1x1x1x16xf32> to vector<16xf32>
    %504 = vector.shape_cast %503 : vector<16xf32> to vector<1x1x16xf32>
    %505 = vector.broadcast %504 : vector<1x1x16xf32> to vector<2x2x16xf32>
    %506 = arith.mulf %501, %505 : vector<2x2x16xf32>
    %507 = arith.addf %500, %506 : vector<2x2x16xf32>
    %c2_553 = arith.constant 2 : index
    %c2_554 = arith.constant 2 : index
    %c0_555 = arith.constant 0 : index
    %508 = vector.load %arg10[%c2_553, %c2_554, %c0_555] : memref<18x18x16xf32, #tpu.memory_space<vmem>>, vector<2x2x16xf32>
    %c3_556 = arith.constant 3 : index
    %c2_557 = arith.constant 2 : index
    %c2_558 = arith.constant 2 : index
    %c0_559 = arith.constant 0 : index
    %509 = vector.load %arg4[%c3_556, %c2_557, %c2_558, %c0_559] : memref<4x3x3x16xf32, #tpu.memory_space<vmem>>, vector<1x1x1x16xf32>
    %510 = vector.shape_cast %509 : vector<1x1x1x16xf32> to vector<16xf32>
    %511 = vector.shape_cast %510 : vector<16xf32> to vector<1x1x16xf32>
    %512 = vector.broadcast %511 : vector<1x1x16xf32> to vector<2x2x16xf32>
    %513 = arith.mulf %508, %512 : vector<2x2x16xf32>
    %514 = arith.addf %507, %513 : vector<2x2x16xf32>
    %c3_560 = arith.constant 3 : index
    %c0_561 = arith.constant 0 : index
    %c0_562 = arith.constant 0 : index
    %c0_563 = arith.constant 0 : index
    %515 = vector.load %arg5[%c3_560, %c0_561, %c0_562, %c0_563] : memref<4x1x1x16xf32, #tpu.memory_space<vmem>>, vector<1x1x1x16xf32>
    %516 = vector.shape_cast %515 : vector<1x1x1x16xf32> to vector<1x1x16xf32>
    %517 = vector.broadcast %516 : vector<1x1x16xf32> to vector<2x2x16xf32>
    %518 = arith.addf %514, %517 : vector<2x2x16xf32>
    %c0_564 = arith.constant 0 : index
    %c0_565 = arith.constant 0 : index
    %c0_566 = arith.constant 0 : index
    %519 = vector.load %arg11[%c0_564, %c0_565, %c0_566] : memref<8x16x16xf32, #tpu.memory_space<vmem>>, vector<2x2x16xf32>
    tpu.vector_store %arg11[%c0_564, %c0_565, %c0_566], %518 {strides = array<i32>} : memref<8x16x16xf32, #tpu.memory_space<vmem>>, vector<2x2x16xf32>,
    %c0_567 = arith.constant 0 : index
    %c0_568 = arith.constant 0 : index
    %c0_569 = arith.constant 0 : index
    %520 = vector.load %arg11[%c0_567, %c0_568, %c0_569] : memref<8x16x16xf32, #tpu.memory_space<vmem>>, vector<2x1x16xf32>
    %521 = vector.shape_cast %520 : vector<2x1x16xf32> to vector<2x1x1x16xf32>
    %522 = vector.shape_cast %521 : vector<2x1x1x16xf32> to vector<2x1x1x16xf32>
    %523 = vector.broadcast %522 : vector<2x1x1x16xf32> to vector<2x8x1x16xf32>
    %524 = vector.shape_cast %523 : vector<2x8x1x16xf32> to vector<16x1x16xf32>
    %525 = vector.shape_cast %524 : vector<16x1x16xf32> to vector<16x1x16xf32>
    %526 = vector.broadcast %525 : vector<16x1x16xf32> to vector<16x8x16xf32>
    %c0_570 = arith.constant 0 : index
    %c0_571 = arith.constant 0 : index
    %c0_572 = arith.constant 0 : index
    %527 = vector.load %arg9[%c0_570, %c0_571, %c0_572] : memref<16x16x16xf32, #tpu.memory_space<vmem>>, vector<16x8x16xf32>
    %528 = arith.addf %527, %526 : vector<16x8x16xf32>
    %c0_573 = arith.constant 0 : index
    %c0_574 = arith.constant 0 : index
    %c0_575 = arith.constant 0 : index
    %529 = vector.load %arg9[%c0_573, %c0_574, %c0_575] : memref<16x16x16xf32, #tpu.memory_space<vmem>>, vector<16x8x16xf32>
    tpu.vector_store %arg9[%c0_573, %c0_574, %c0_575], %528 {strides = array<i32>} : memref<16x16x16xf32, #tpu.memory_space<vmem>>, vector<16x8x16xf32>,
    %c0_576 = arith.constant 0 : index
    %c1_577 = arith.constant 1 : index
    %c0_578 = arith.constant 0 : index
    %530 = vector.load %arg11[%c0_576, %c1_577, %c0_578] : memref<8x16x16xf32, #tpu.memory_space<vmem>>, vector<2x1x16xf32>
    %531 = vector.shape_cast %530 : vector<2x1x16xf32> to vector<2x1x1x16xf32>
    %532 = vector.shape_cast %531 : vector<2x1x1x16xf32> to vector<2x1x1x16xf32>
    %533 = vector.broadcast %532 : vector<2x1x1x16xf32> to vector<2x8x1x16xf32>
    %534 = vector.shape_cast %533 : vector<2x8x1x16xf32> to vector<16x1x16xf32>
    %535 = vector.shape_cast %534 : vector<16x1x16xf32> to vector<16x1x16xf32>
    %536 = vector.broadcast %535 : vector<16x1x16xf32> to vector<16x8x16xf32>
    %c0_579 = arith.constant 0 : index
    %c8_580 = arith.constant 8 : index
    %c0_581 = arith.constant 0 : index
    %537 = vector.load %arg9[%c0_579, %c8_580, %c0_581] : memref<16x16x16xf32, #tpu.memory_space<vmem>>, vector<16x8x16xf32>
    %538 = arith.addf %537, %536 : vector<16x8x16xf32>
    %c0_582 = arith.constant 0 : index
    %c8_583 = arith.constant 8 : index
    %c0_584 = arith.constant 0 : index
    %539 = vector.load %arg9[%c0_582, %c8_583, %c0_584] : memref<16x16x16xf32, #tpu.memory_space<vmem>>, vector<16x8x16xf32>
    tpu.vector_store %arg9[%c0_582, %c8_583, %c0_584], %538 {strides = array<i32>} : memref<16x16x16xf32, #tpu.memory_space<vmem>>, vector<16x8x16xf32>,
    %c0_585 = arith.constant 0 : index
    %c0_586 = arith.constant 0 : index
    %c0_587 = arith.constant 0 : index
    %540 = vector.load %arg9[%c0_585, %c0_586, %c0_587] : memref<16x16x16xf32, #tpu.memory_space<vmem>>, vector<16x16x16xf32>
    %541 = vector.shape_cast %540 : vector<16x16x16xf32> to vector<256x16xf32>
    %542 = arith.truncf %541 : vector<256x16xf32> to vector<256x16xbf16>
    %c0_588 = arith.constant 0 : index
    %c0_589 = arith.constant 0 : index
    %543 = vector.load %arg6[%c0_588, %c0_589] : memref<16x16xbf16, #tpu.memory_space<vmem>>, vector<16x16xbf16>
    %cst_590 = arith.constant dense<0.000000e+00> : vector<256x16xf32>
    %544 = tpu.matmul %542, %543, %cst_590 {dimension_numbers = #tpu.dot_dimension_numbers<[1], [0], [0], [1], [0, 0, 1, 1], [], []>} : vector<256x16xbf16>, vector<16x16xbf16>, vector<256x16xf32> -> vector<256x16xf32>
    %c0_591 = arith.constant 0 : index
    %c0_592 = arith.constant 0 : index
    %545 = vector.load %arg7[%c0_591, %c0_592] : memref<1x16xf32, #tpu.memory_space<vmem>>, vector<1x16xf32>
    %546 = vector.broadcast %545 : vector<1x16xf32> to vector<256x16xf32>
    %547 = arith.addf %544, %546 : vector<256x16xf32>
    %cst_593 = arith.constant 5.000000e-01 : f32
    %548 = vector.broadcast %cst_593 : f32 to vector<256x16xf32>
    %549 = arith.mulf %548, %547 : vector<256x16xf32>
    %cst_594 = arith.constant 0.707106769 : f32
    %550 = vector.broadcast %cst_594 : f32 to vector<256x16xf32>
    %551 = arith.mulf %547, %550 : vector<256x16xf32>
    %552 = math.erf %551 : vector<256x16xf32>
    %cst_595 = arith.constant 1.000000e+00 : f32
    %553 = vector.broadcast %cst_595 : f32 to vector<256x16xf32>
    %554 = arith.addf %553, %552 : vector<256x16xf32>
    %555 = arith.mulf %549, %554 : vector<256x16xf32>
    %556 = vector.shape_cast %555 : vector<256x16xf32> to vector<16x16x16xf32>
    %557 = arith.mulf %556, %25 : vector<16x16x16xf32>
    %558 = arith.addf %557, %1 : vector<16x16x16xf32>
    %c0_596 = arith.constant 0 : index
    %c0_597 = arith.constant 0 : index
    %c0_598 = arith.constant 0 : index
    %c0_599 = arith.constant 0 : index
    %559 = vector.load %arg8[%c0_596, %c0_597, %c0_598, %c0_599] : memref<1x16x16x16xf32, #tpu.memory_space<vmem>>, vector<1x16x16x16xf32>
    %560 = vector.shape_cast %559 : vector<1x16x16x16xf32> to vector<16x16x16xf32>
    %561 = vector.shape_cast %558 : vector<16x16x16xf32> to vector<1x16x16x16xf32>
    tpu.vector_store %arg8[%c0_596, %c0_597, %c0_598, %c0_599], %561 {strides = array<i32>} : memref<1x16x16x16xf32, #tpu.memory_space<vmem>>, vector<1x16x16x16xf32>,
    return
  }
  func.func @transform_0(%arg0: i32) -> (i32, i32, i32, i32) {
    %c0_i32 = arith.constant 0 : i32
    %c0_i32_0 = arith.constant 0 : i32
    %c0_i32_1 = arith.constant 0 : i32
    %c0_i32_2 = arith.constant 0 : i32
    return %arg0, %c0_i32, %c0_i32_0, %c0_i32_1 : i32, i32, i32, i32
  }
  func.func @transform_1(%arg0: i32) -> (i32, i32) {
    %c0_i32 = arith.constant 0 : i32
    %c0_i32_0 = arith.constant 0 : i32
    %c0_i32_1 = arith.constant 0 : i32
    return %c0_i32, %c0_i32_0 : i32, i32
  }
  func.func @transform_2(%arg0: i32) -> (i32, i32) {
    %c0_i32 = arith.constant 0 : i32
    %c0_i32_0 = arith.constant 0 : i32
    %c0_i32_1 = arith.constant 0 : i32
    return %c0_i32, %c0_i32_0 : i32, i32
  }
  func.func @transform_3(%arg0: i32) -> (i32, i32, i32, i32) {
    %c0_i32 = arith.constant 0 : i32
    %c0_i32_0 = arith.constant 0 : i32
    %c0_i32_1 = arith.constant 0 : i32
    %c0_i32_2 = arith.constant 0 : i32
    %c0_i32_3 = arith.constant 0 : i32
    return %c0_i32, %c0_i32_0, %c0_i32_1, %c0_i32_2 : i32, i32, i32, i32
  }
  func.func @transform_4(%arg0: i32) -> (i32, i32, i32, i32) {
    %c0_i32 = arith.constant 0 : i32
    %c0_i32_0 = arith.constant 0 : i32
    %c0_i32_1 = arith.constant 0 : i32
    %c0_i32_2 = arith.constant 0 : i32
    %c0_i32_3 = arith.constant 0 : i32
    return %c0_i32, %c0_i32_0, %c0_i32_1, %c0_i32_2 : i32, i32, i32, i32
  }
  func.func @transform_5(%arg0: i32) -> (i32, i32) {
    %c0_i32 = arith.constant 0 : i32
    %c0_i32_0 = arith.constant 0 : i32
    %c0_i32_1 = arith.constant 0 : i32
    return %c0_i32, %c0_i32_0 : i32, i32
  }
  func.func @transform_6(%arg0: i32) -> (i32, i32) {
    %c0_i32 = arith.constant 0 : i32
    %c0_i32_0 = arith.constant 0 : i32
    %c0_i32_1 = arith.constant 0 : i32
    return %c0_i32, %c0_i32_0 : i32, i32
  }
  func.func @transform_7(%arg0: i32) -> (i32, i32, i32, i32) {
    %c0_i32 = arith.constant 0 : i32
    %c0_i32_0 = arith.constant 0 : i32
    %c0_i32_1 = arith.constant 0 : i32
    %c0_i32_2 = arith.constant 0 : i32
    return %arg0, %c0_i32, %c0_i32_0, %c0_i32_1 : i32, i32, i32, i32
  }
}

module attributes {stable_mosaic.version = 11 : i64} {
  func.func @_cc_kernel(%arg0: i32, %arg1: memref<1x16x16x16xf32, #tpu.memory_space<vmem>>, %arg2: memref<1x16xf32, #tpu.memory_space<vmem>>, %arg3: memref<1x16xf32, #tpu.memory_space<vmem>>, %arg4: memref<9x16x32xbf16, #tpu.memory_space<vmem>>, %arg5: memref<1x32xf32, #tpu.memory_space<vmem>>, %arg6: memref<32x16xbf16, #tpu.memory_space<vmem>>, %arg7: memref<1x16xf32, #tpu.memory_space<vmem>>, %arg8: memref<1x16x16x16xf32, #tpu.memory_space<vmem>>, %arg9: memref<18x18x16xf32, #tpu.memory_space<vmem>>) attributes {dimension_semantics = [#tpu.dimension_semantics<parallel>], iteration_bounds = array<i64: 2>, scalar_prefetch = 0 : i64, scratch_operands = 1 : i64, tpu.core_type = #tpu.core_type<tc>, window_params = [{transform_indices = @transform_0, window_bounds = array<i64: 1, 16, 16, 16>}, {pipeline_mode = #tpu.pipeline_mode<synchronous>, transform_indices = @transform_1, window_bounds = array<i64: 1, 16>}, {pipeline_mode = #tpu.pipeline_mode<synchronous>, transform_indices = @transform_2, window_bounds = array<i64: 1, 16>}, {pipeline_mode = #tpu.pipeline_mode<synchronous>, transform_indices = @transform_3, window_bounds = array<i64: 9, 16, 32>}, {pipeline_mode = #tpu.pipeline_mode<synchronous>, transform_indices = @transform_4, window_bounds = array<i64: 1, 32>}, {pipeline_mode = #tpu.pipeline_mode<synchronous>, transform_indices = @transform_5, window_bounds = array<i64: 32, 16>}, {pipeline_mode = #tpu.pipeline_mode<synchronous>, transform_indices = @transform_6, window_bounds = array<i64: 1, 16>}, {transform_indices = @transform_7, window_bounds = array<i64: 1, 16, 16, 16>}]} {
    %c0 = arith.constant 0 : index
    %c0_0 = arith.constant 0 : index
    %c0_1 = arith.constant 0 : index
    %c0_2 = arith.constant 0 : index
    %0 = vector.load %arg1[%c0, %c0_0, %c0_1, %c0_2] : memref<1x16x16x16xf32, #tpu.memory_space<vmem>>, vector<1x16x16x16xf32>
    %1 = vector.shape_cast %0 : vector<1x16x16x16xf32> to vector<16x16x16xf32>
    %c0_3 = arith.constant 0 : index
    %c0_4 = arith.constant 0 : index
    %2 = vector.load %arg2[%c0_3, %c0_4] : memref<1x16xf32, #tpu.memory_space<vmem>>, vector<1x16xf32>
    %c0_5 = arith.constant 0 : index
    %c0_6 = arith.constant 0 : index
    %3 = vector.load %arg3[%c0_5, %c0_6] : memref<1x16xf32, #tpu.memory_space<vmem>>, vector<1x16xf32>
    %cst = arith.constant dense<0.000000e+00> : vector<16x16xf32>
    %4 = vector.multi_reduction <add>, %1, %cst [2] : vector<16x16x16xf32> to vector<16x16xf32>
    %5 = vector.shape_cast %4 : vector<16x16xf32> to vector<16x16x1xf32>
    %cst_7 = arith.constant 1.600000e+01 : f32
    %6 = vector.broadcast %cst_7 : f32 to vector<16x16x1xf32>
    %7 = arith.divf %5, %6 : vector<16x16x1xf32>
    %8 = vector.broadcast %7 : vector<16x16x1xf32> to vector<16x16x16xf32>
    %9 = arith.subf %1, %8 : vector<16x16x16xf32>
    %10 = arith.mulf %9, %9 : vector<16x16x16xf32>
    %cst_8 = arith.constant dense<0.000000e+00> : vector<16x16xf32>
    %11 = vector.multi_reduction <add>, %10, %cst_8 [2] : vector<16x16x16xf32> to vector<16x16xf32>
    %12 = vector.shape_cast %11 : vector<16x16xf32> to vector<16x16x1xf32>
    %cst_9 = arith.constant 1.600000e+01 : f32
    %13 = vector.broadcast %cst_9 : f32 to vector<16x16x1xf32>
    %14 = arith.divf %12, %13 : vector<16x16x1xf32>
    %cst_10 = arith.constant 9.99999997E-7 : f32
    %15 = vector.broadcast %cst_10 : f32 to vector<16x16x1xf32>
    %16 = arith.addf %14, %15 : vector<16x16x1xf32>
    %17 = math.rsqrt %16 : vector<16x16x1xf32>
    %18 = vector.broadcast %17 : vector<16x16x1xf32> to vector<16x16x16xf32>
    %19 = arith.mulf %9, %18 : vector<16x16x16xf32>
    %20 = vector.shape_cast %2 : vector<1x16xf32> to vector<1x1x16xf32>
    %21 = vector.broadcast %20 : vector<1x1x16xf32> to vector<16x16x16xf32>
    %22 = arith.mulf %19, %21 : vector<16x16x16xf32>
    %23 = vector.shape_cast %3 : vector<1x16xf32> to vector<1x1x16xf32>
    %24 = vector.broadcast %23 : vector<1x1x16xf32> to vector<16x16x16xf32>
    %25 = arith.addf %22, %24 : vector<16x16x16xf32>
    %cst_11 = arith.constant 0.000000e+00 : f32
    %26 = vector.broadcast %cst_11 : f32 to vector<1x18x16xf32>
    %c0_12 = arith.constant 0 : index
    %c0_13 = arith.constant 0 : index
    %c0_14 = arith.constant 0 : index
    %27 = vector.load %arg9[%c0_12, %c0_13, %c0_14] : memref<18x18x16xf32, #tpu.memory_space<vmem>>, vector<1x18x16xf32>
    tpu.vector_store %arg9[%c0_12, %c0_13, %c0_14], %26 {strides = array<i32>} : memref<18x18x16xf32, #tpu.memory_space<vmem>>, vector<1x18x16xf32>,
    %cst_15 = arith.constant 0.000000e+00 : f32
    %28 = vector.broadcast %cst_15 : f32 to vector<1x18x16xf32>
    %c17 = arith.constant 17 : index
    %c0_16 = arith.constant 0 : index
    %c0_17 = arith.constant 0 : index
    %29 = vector.load %arg9[%c17, %c0_16, %c0_17] : memref<18x18x16xf32, #tpu.memory_space<vmem>>, vector<1x18x16xf32>
    tpu.vector_store %arg9[%c17, %c0_16, %c0_17], %28 {strides = array<i32>} : memref<18x18x16xf32, #tpu.memory_space<vmem>>, vector<1x18x16xf32>,
    %cst_18 = arith.constant 0.000000e+00 : f32
    %30 = vector.broadcast %cst_18 : f32 to vector<18x1x16xf32>
    %c0_19 = arith.constant 0 : index
    %c0_20 = arith.constant 0 : index
    %c0_21 = arith.constant 0 : index
    %31 = vector.load %arg9[%c0_19, %c0_20, %c0_21] : memref<18x18x16xf32, #tpu.memory_space<vmem>>, vector<18x1x16xf32>
    tpu.vector_store %arg9[%c0_19, %c0_20, %c0_21], %30 {strides = array<i32>} : memref<18x18x16xf32, #tpu.memory_space<vmem>>, vector<18x1x16xf32>,
    %cst_22 = arith.constant 0.000000e+00 : f32
    %32 = vector.broadcast %cst_22 : f32 to vector<18x1x16xf32>
    %c0_23 = arith.constant 0 : index
    %c17_24 = arith.constant 17 : index
    %c0_25 = arith.constant 0 : index
    %33 = vector.load %arg9[%c0_23, %c17_24, %c0_25] : memref<18x18x16xf32, #tpu.memory_space<vmem>>, vector<18x1x16xf32>
    tpu.vector_store %arg9[%c0_23, %c17_24, %c0_25], %32 {strides = array<i32>} : memref<18x18x16xf32, #tpu.memory_space<vmem>>, vector<18x1x16xf32>,
    %c1 = arith.constant 1 : index
    %c1_26 = arith.constant 1 : index
    %c0_27 = arith.constant 0 : index
    %34 = vector.load %arg9[%c1, %c1_26, %c0_27] : memref<18x18x16xf32, #tpu.memory_space<vmem>>, vector<16x16x16xf32>
    tpu.vector_store %arg9[%c1, %c1_26, %c0_27], %25 {strides = array<i32>} : memref<18x18x16xf32, #tpu.memory_space<vmem>>, vector<16x16x16xf32>,
    %cst_28 = arith.constant 0.000000e+00 : f32
    %35 = vector.broadcast %cst_28 : f32 to vector<256x32xf32>
    %c0_29 = arith.constant 0 : index
    %c0_30 = arith.constant 0 : index
    %c0_31 = arith.constant 0 : index
    %36 = vector.load %arg9[%c0_29, %c0_30, %c0_31] : memref<18x18x16xf32, #tpu.memory_space<vmem>>, vector<16x16x16xf32>
    %37 = vector.shape_cast %36 : vector<16x16x16xf32> to vector<256x16xf32>
    %38 = arith.truncf %37 : vector<256x16xf32> to vector<256x16xbf16>
    %c0_32 = arith.constant 0 : index
    %c0_33 = arith.constant 0 : index
    %c0_34 = arith.constant 0 : index
    %39 = vector.load %arg4[%c0_32, %c0_33, %c0_34] : memref<9x16x32xbf16, #tpu.memory_space<vmem>>, vector<1x16x32xbf16>
    %40 = vector.shape_cast %39 : vector<1x16x32xbf16> to vector<16x32xbf16>
    %cst_35 = arith.constant dense<0.000000e+00> : vector<256x32xf32>
    %41 = tpu.matmul %38, %40, %cst_35 {dimension_numbers = #tpu.dot_dimension_numbers<[1], [0], [0], [1], [0, 0, 1, 1], [], []>} : vector<256x16xbf16>, vector<16x32xbf16>, vector<256x32xf32> -> vector<256x32xf32>
    %42 = arith.addf %35, %41 : vector<256x32xf32>
    %c0_36 = arith.constant 0 : index
    %c1_37 = arith.constant 1 : index
    %c0_38 = arith.constant 0 : index
    %43 = vector.load %arg9[%c0_36, %c1_37, %c0_38] : memref<18x18x16xf32, #tpu.memory_space<vmem>>, vector<16x16x16xf32>
    %44 = vector.shape_cast %43 : vector<16x16x16xf32> to vector<256x16xf32>
    %45 = arith.truncf %44 : vector<256x16xf32> to vector<256x16xbf16>
    %c1_39 = arith.constant 1 : index
    %c0_40 = arith.constant 0 : index
    %c0_41 = arith.constant 0 : index
    %46 = vector.load %arg4[%c1_39, %c0_40, %c0_41] : memref<9x16x32xbf16, #tpu.memory_space<vmem>>, vector<1x16x32xbf16>
    %47 = vector.shape_cast %46 : vector<1x16x32xbf16> to vector<16x32xbf16>
    %cst_42 = arith.constant dense<0.000000e+00> : vector<256x32xf32>
    %48 = tpu.matmul %45, %47, %cst_42 {dimension_numbers = #tpu.dot_dimension_numbers<[1], [0], [0], [1], [0, 0, 1, 1], [], []>} : vector<256x16xbf16>, vector<16x32xbf16>, vector<256x32xf32> -> vector<256x32xf32>
    %49 = arith.addf %42, %48 : vector<256x32xf32>
    %c0_43 = arith.constant 0 : index
    %c2 = arith.constant 2 : index
    %c0_44 = arith.constant 0 : index
    %50 = vector.load %arg9[%c0_43, %c2, %c0_44] : memref<18x18x16xf32, #tpu.memory_space<vmem>>, vector<16x16x16xf32>
    %51 = vector.shape_cast %50 : vector<16x16x16xf32> to vector<256x16xf32>
    %52 = arith.truncf %51 : vector<256x16xf32> to vector<256x16xbf16>
    %c2_45 = arith.constant 2 : index
    %c0_46 = arith.constant 0 : index
    %c0_47 = arith.constant 0 : index
    %53 = vector.load %arg4[%c2_45, %c0_46, %c0_47] : memref<9x16x32xbf16, #tpu.memory_space<vmem>>, vector<1x16x32xbf16>
    %54 = vector.shape_cast %53 : vector<1x16x32xbf16> to vector<16x32xbf16>
    %cst_48 = arith.constant dense<0.000000e+00> : vector<256x32xf32>
    %55 = tpu.matmul %52, %54, %cst_48 {dimension_numbers = #tpu.dot_dimension_numbers<[1], [0], [0], [1], [0, 0, 1, 1], [], []>} : vector<256x16xbf16>, vector<16x32xbf16>, vector<256x32xf32> -> vector<256x32xf32>
    %56 = arith.addf %49, %55 : vector<256x32xf32>
    %c1_49 = arith.constant 1 : index
    %c0_50 = arith.constant 0 : index
    %c0_51 = arith.constant 0 : index
    %57 = vector.load %arg9[%c1_49, %c0_50, %c0_51] : memref<18x18x16xf32, #tpu.memory_space<vmem>>, vector<16x16x16xf32>
    %58 = vector.shape_cast %57 : vector<16x16x16xf32> to vector<256x16xf32>
    %59 = arith.truncf %58 : vector<256x16xf32> to vector<256x16xbf16>
    %c3 = arith.constant 3 : index
    %c0_52 = arith.constant 0 : index
    %c0_53 = arith.constant 0 : index
    %60 = vector.load %arg4[%c3, %c0_52, %c0_53] : memref<9x16x32xbf16, #tpu.memory_space<vmem>>, vector<1x16x32xbf16>
    %61 = vector.shape_cast %60 : vector<1x16x32xbf16> to vector<16x32xbf16>
    %cst_54 = arith.constant dense<0.000000e+00> : vector<256x32xf32>
    %62 = tpu.matmul %59, %61, %cst_54 {dimension_numbers = #tpu.dot_dimension_numbers<[1], [0], [0], [1], [0, 0, 1, 1], [], []>} : vector<256x16xbf16>, vector<16x32xbf16>, vector<256x32xf32> -> vector<256x32xf32>
    %63 = arith.addf %56, %62 : vector<256x32xf32>
    %c1_55 = arith.constant 1 : index
    %c1_56 = arith.constant 1 : index
    %c0_57 = arith.constant 0 : index
    %64 = vector.load %arg9[%c1_55, %c1_56, %c0_57] : memref<18x18x16xf32, #tpu.memory_space<vmem>>, vector<16x16x16xf32>
    %65 = vector.shape_cast %64 : vector<16x16x16xf32> to vector<256x16xf32>
    %66 = arith.truncf %65 : vector<256x16xf32> to vector<256x16xbf16>
    %c4 = arith.constant 4 : index
    %c0_58 = arith.constant 0 : index
    %c0_59 = arith.constant 0 : index
    %67 = vector.load %arg4[%c4, %c0_58, %c0_59] : memref<9x16x32xbf16, #tpu.memory_space<vmem>>, vector<1x16x32xbf16>
    %68 = vector.shape_cast %67 : vector<1x16x32xbf16> to vector<16x32xbf16>
    %cst_60 = arith.constant dense<0.000000e+00> : vector<256x32xf32>
    %69 = tpu.matmul %66, %68, %cst_60 {dimension_numbers = #tpu.dot_dimension_numbers<[1], [0], [0], [1], [0, 0, 1, 1], [], []>} : vector<256x16xbf16>, vector<16x32xbf16>, vector<256x32xf32> -> vector<256x32xf32>
    %70 = arith.addf %63, %69 : vector<256x32xf32>
    %c1_61 = arith.constant 1 : index
    %c2_62 = arith.constant 2 : index
    %c0_63 = arith.constant 0 : index
    %71 = vector.load %arg9[%c1_61, %c2_62, %c0_63] : memref<18x18x16xf32, #tpu.memory_space<vmem>>, vector<16x16x16xf32>
    %72 = vector.shape_cast %71 : vector<16x16x16xf32> to vector<256x16xf32>
    %73 = arith.truncf %72 : vector<256x16xf32> to vector<256x16xbf16>
    %c5 = arith.constant 5 : index
    %c0_64 = arith.constant 0 : index
    %c0_65 = arith.constant 0 : index
    %74 = vector.load %arg4[%c5, %c0_64, %c0_65] : memref<9x16x32xbf16, #tpu.memory_space<vmem>>, vector<1x16x32xbf16>
    %75 = vector.shape_cast %74 : vector<1x16x32xbf16> to vector<16x32xbf16>
    %cst_66 = arith.constant dense<0.000000e+00> : vector<256x32xf32>
    %76 = tpu.matmul %73, %75, %cst_66 {dimension_numbers = #tpu.dot_dimension_numbers<[1], [0], [0], [1], [0, 0, 1, 1], [], []>} : vector<256x16xbf16>, vector<16x32xbf16>, vector<256x32xf32> -> vector<256x32xf32>
    %77 = arith.addf %70, %76 : vector<256x32xf32>
    %c2_67 = arith.constant 2 : index
    %c0_68 = arith.constant 0 : index
    %c0_69 = arith.constant 0 : index
    %78 = vector.load %arg9[%c2_67, %c0_68, %c0_69] : memref<18x18x16xf32, #tpu.memory_space<vmem>>, vector<16x16x16xf32>
    %79 = vector.shape_cast %78 : vector<16x16x16xf32> to vector<256x16xf32>
    %80 = arith.truncf %79 : vector<256x16xf32> to vector<256x16xbf16>
    %c6 = arith.constant 6 : index
    %c0_70 = arith.constant 0 : index
    %c0_71 = arith.constant 0 : index
    %81 = vector.load %arg4[%c6, %c0_70, %c0_71] : memref<9x16x32xbf16, #tpu.memory_space<vmem>>, vector<1x16x32xbf16>
    %82 = vector.shape_cast %81 : vector<1x16x32xbf16> to vector<16x32xbf16>
    %cst_72 = arith.constant dense<0.000000e+00> : vector<256x32xf32>
    %83 = tpu.matmul %80, %82, %cst_72 {dimension_numbers = #tpu.dot_dimension_numbers<[1], [0], [0], [1], [0, 0, 1, 1], [], []>} : vector<256x16xbf16>, vector<16x32xbf16>, vector<256x32xf32> -> vector<256x32xf32>
    %84 = arith.addf %77, %83 : vector<256x32xf32>
    %c2_73 = arith.constant 2 : index
    %c1_74 = arith.constant 1 : index
    %c0_75 = arith.constant 0 : index
    %85 = vector.load %arg9[%c2_73, %c1_74, %c0_75] : memref<18x18x16xf32, #tpu.memory_space<vmem>>, vector<16x16x16xf32>
    %86 = vector.shape_cast %85 : vector<16x16x16xf32> to vector<256x16xf32>
    %87 = arith.truncf %86 : vector<256x16xf32> to vector<256x16xbf16>
    %c7 = arith.constant 7 : index
    %c0_76 = arith.constant 0 : index
    %c0_77 = arith.constant 0 : index
    %88 = vector.load %arg4[%c7, %c0_76, %c0_77] : memref<9x16x32xbf16, #tpu.memory_space<vmem>>, vector<1x16x32xbf16>
    %89 = vector.shape_cast %88 : vector<1x16x32xbf16> to vector<16x32xbf16>
    %cst_78 = arith.constant dense<0.000000e+00> : vector<256x32xf32>
    %90 = tpu.matmul %87, %89, %cst_78 {dimension_numbers = #tpu.dot_dimension_numbers<[1], [0], [0], [1], [0, 0, 1, 1], [], []>} : vector<256x16xbf16>, vector<16x32xbf16>, vector<256x32xf32> -> vector<256x32xf32>
    %91 = arith.addf %84, %90 : vector<256x32xf32>
    %c2_79 = arith.constant 2 : index
    %c2_80 = arith.constant 2 : index
    %c0_81 = arith.constant 0 : index
    %92 = vector.load %arg9[%c2_79, %c2_80, %c0_81] : memref<18x18x16xf32, #tpu.memory_space<vmem>>, vector<16x16x16xf32>
    %93 = vector.shape_cast %92 : vector<16x16x16xf32> to vector<256x16xf32>
    %94 = arith.truncf %93 : vector<256x16xf32> to vector<256x16xbf16>
    %c8 = arith.constant 8 : index
    %c0_82 = arith.constant 0 : index
    %c0_83 = arith.constant 0 : index
    %95 = vector.load %arg4[%c8, %c0_82, %c0_83] : memref<9x16x32xbf16, #tpu.memory_space<vmem>>, vector<1x16x32xbf16>
    %96 = vector.shape_cast %95 : vector<1x16x32xbf16> to vector<16x32xbf16>
    %cst_84 = arith.constant dense<0.000000e+00> : vector<256x32xf32>
    %97 = tpu.matmul %94, %96, %cst_84 {dimension_numbers = #tpu.dot_dimension_numbers<[1], [0], [0], [1], [0, 0, 1, 1], [], []>} : vector<256x16xbf16>, vector<16x32xbf16>, vector<256x32xf32> -> vector<256x32xf32>
    %98 = arith.addf %91, %97 : vector<256x32xf32>
    %c0_85 = arith.constant 0 : index
    %c0_86 = arith.constant 0 : index
    %99 = vector.load %arg5[%c0_85, %c0_86] : memref<1x32xf32, #tpu.memory_space<vmem>>, vector<1x32xf32>
    %100 = vector.broadcast %99 : vector<1x32xf32> to vector<256x32xf32>
    %101 = arith.addf %98, %100 : vector<256x32xf32>
    %cst_87 = arith.constant 5.000000e-01 : f32
    %102 = vector.broadcast %cst_87 : f32 to vector<256x32xf32>
    %103 = arith.mulf %102, %101 : vector<256x32xf32>
    %cst_88 = arith.constant 0.707106769 : f32
    %104 = vector.broadcast %cst_88 : f32 to vector<256x32xf32>
    %105 = arith.mulf %101, %104 : vector<256x32xf32>
    %106 = math.erf %105 : vector<256x32xf32>
    %cst_89 = arith.constant 1.000000e+00 : f32
    %107 = vector.broadcast %cst_89 : f32 to vector<256x32xf32>
    %108 = arith.addf %107, %106 : vector<256x32xf32>
    %109 = arith.mulf %103, %108 : vector<256x32xf32>
    %110 = arith.truncf %109 : vector<256x32xf32> to vector<256x32xbf16>
    %c0_90 = arith.constant 0 : index
    %c0_91 = arith.constant 0 : index
    %111 = vector.load %arg6[%c0_90, %c0_91] : memref<32x16xbf16, #tpu.memory_space<vmem>>, vector<32x16xbf16>
    %cst_92 = arith.constant dense<0.000000e+00> : vector<256x16xf32>
    %112 = tpu.matmul %110, %111, %cst_92 {dimension_numbers = #tpu.dot_dimension_numbers<[1], [0], [0], [1], [0, 0, 1, 1], [], []>} : vector<256x32xbf16>, vector<32x16xbf16>, vector<256x16xf32> -> vector<256x16xf32>
    %c0_93 = arith.constant 0 : index
    %c0_94 = arith.constant 0 : index
    %113 = vector.load %arg7[%c0_93, %c0_94] : memref<1x16xf32, #tpu.memory_space<vmem>>, vector<1x16xf32>
    %114 = vector.broadcast %113 : vector<1x16xf32> to vector<256x16xf32>
    %115 = arith.addf %112, %114 : vector<256x16xf32>
    %116 = vector.shape_cast %115 : vector<256x16xf32> to vector<16x16x16xf32>
    %117 = arith.addf %116, %1 : vector<16x16x16xf32>
    %c0_95 = arith.constant 0 : index
    %c0_96 = arith.constant 0 : index
    %c0_97 = arith.constant 0 : index
    %c0_98 = arith.constant 0 : index
    %118 = vector.load %arg8[%c0_95, %c0_96, %c0_97, %c0_98] : memref<1x16x16x16xf32, #tpu.memory_space<vmem>>, vector<1x16x16x16xf32>
    %119 = vector.shape_cast %118 : vector<1x16x16x16xf32> to vector<16x16x16xf32>
    %120 = vector.shape_cast %117 : vector<16x16x16xf32> to vector<1x16x16x16xf32>
    tpu.vector_store %arg8[%c0_95, %c0_96, %c0_97, %c0_98], %120 {strides = array<i32>} : memref<1x16x16x16xf32, #tpu.memory_space<vmem>>, vector<1x16x16x16xf32>,
    return
  }
  func.func @transform_0(%arg0: i32) -> (i32, i32, i32, i32) {
    %c0_i32 = arith.constant 0 : i32
    %c0_i32_0 = arith.constant 0 : i32
    %c0_i32_1 = arith.constant 0 : i32
    %c0_i32_2 = arith.constant 0 : i32
    return %arg0, %c0_i32, %c0_i32_0, %c0_i32_1 : i32, i32, i32, i32
  }
  func.func @transform_1(%arg0: i32) -> (i32, i32) {
    %c0_i32 = arith.constant 0 : i32
    %c0_i32_0 = arith.constant 0 : i32
    %c0_i32_1 = arith.constant 0 : i32
    return %c0_i32, %c0_i32_0 : i32, i32
  }
  func.func @transform_2(%arg0: i32) -> (i32, i32) {
    %c0_i32 = arith.constant 0 : i32
    %c0_i32_0 = arith.constant 0 : i32
    %c0_i32_1 = arith.constant 0 : i32
    return %c0_i32, %c0_i32_0 : i32, i32
  }
  func.func @transform_3(%arg0: i32) -> (i32, i32, i32) {
    %c0_i32 = arith.constant 0 : i32
    %c0_i32_0 = arith.constant 0 : i32
    %c0_i32_1 = arith.constant 0 : i32
    %c0_i32_2 = arith.constant 0 : i32
    return %c0_i32, %c0_i32_0, %c0_i32_1 : i32, i32, i32
  }
  func.func @transform_4(%arg0: i32) -> (i32, i32) {
    %c0_i32 = arith.constant 0 : i32
    %c0_i32_0 = arith.constant 0 : i32
    %c0_i32_1 = arith.constant 0 : i32
    return %c0_i32, %c0_i32_0 : i32, i32
  }
  func.func @transform_5(%arg0: i32) -> (i32, i32) {
    %c0_i32 = arith.constant 0 : i32
    %c0_i32_0 = arith.constant 0 : i32
    %c0_i32_1 = arith.constant 0 : i32
    return %c0_i32, %c0_i32_0 : i32, i32
  }
  func.func @transform_6(%arg0: i32) -> (i32, i32) {
    %c0_i32 = arith.constant 0 : i32
    %c0_i32_0 = arith.constant 0 : i32
    %c0_i32_1 = arith.constant 0 : i32
    return %c0_i32, %c0_i32_0 : i32, i32
  }
  func.func @transform_7(%arg0: i32) -> (i32, i32, i32, i32) {
    %c0_i32 = arith.constant 0 : i32
    %c0_i32_0 = arith.constant 0 : i32
    %c0_i32_1 = arith.constant 0 : i32
    %c0_i32_2 = arith.constant 0 : i32
    return %arg0, %c0_i32, %c0_i32_0, %c0_i32_1 : i32, i32, i32, i32
  }
}

</mosaic_0001>

<bundles_post_ra>
// kernel: gmfe_forward.3
= control target key start
LH: loop header
LB: loop body
LE: loop exit
PB: predicated region body
PF: predicated region fallthrough
CT: control target
= control target key end

     0   :  { %s5273_s24 = smov 0   ;;  %s6600_s0 = inlined_call_operand.vmem [shape: f32[2,16,16,16], index: 0, kind: input, shape index: {}]   ;;  %s6601_s1 = inlined_call_operand.vmem [shape: f32[1,16], index: 1, kind: input, shape index: {}]   ;;  %s6602_s2 = inlined_call_operand.vmem [shape: f32[1,16], index: 2, kind: input, shape index: {}]   ;;  %s6603_s3 = inlined_call_operand.vmem [shape: bf16[9,16,32], index: 3, kind: input, shape index: {}]   ;;  %s6604_s4 = inlined_call_operand.vmem [shape: f32[1,32], index: 4, kind: input, shape index: {}]   ;;  %s6605_s5 = inlined_call_operand.vmem [shape: bf16[32,16], index: 5, kind: input, shape index: {}]   ;;  %s6606_s6 = inlined_call_operand.vmem [shape: f32[1,16], index: 6, kind: input, shape index: {}]   ;;  %s6607_s7 = inlined_call_operand.vmem [shape: f32[2,16,16,16], index: 7, kind: output, shape index: {}]  }
   0x1 LB: > { %s4071_s25 = sadd.s32 4294967295, %s5230_s24   ;;  %p4075_p0 = scmp.ge.s32.totalorder %s5230_s24, 1  ;;  %s5230_s24 = sphi %s5273_s24, %s17_s24  }
   0x2   : > { %p237_p1 = scmp.lt.s32.totalorder %s5230_s24, 3 }
   0x4   : > { %p238_p2 = pnand %p4075_p0, %p237_p1 }
   0x5   : > { %p269_p3 = scmp.lt.s32.totalorder (!%p238_p2), %s4071_s25, 1  ;;  %vm314_vm0 = vcmask (!%p238_p2), 130048   ;;  %vm816_vm1 = vcmask (!%p238_p2), 122880   ;;  %vm810_vm2 = vcmask (!%p238_p2), 123904   ;;  %vm3742_vm3 = vcmask (!%p238_p2), 261120  }
   0x6   : > { %241 = sbr.rel (%p238_p2) target bundleno = 1119 (0x45f), region = 48 }
   0xd   : > { %s6609_s25 = smov (!%p269_p3, %s4071_s25), 1 }
   0xe   : > { %s4273_s26 = sshll.u32 %s6609_s25, 8 }
   0xf   : > { %s5289_s29 = scalar_lea.vmem %s6600_s0, %s4273_s26  ;;  %s6468_s20 = scalar_lea.vmem %s6607_s7, %s4273_s26 }
  0x10   : > { %v5292_v0 = vld [vmem:[%s5289_s29] sm:$0xff]  ;;  %v5295_v1 = vld [vmem:[%s5289_s29 + $0x10] sm:$0xff]  ;;  %v5298_v2 = vld [vmem:[%s5289_s29 + $0x8] sm:$0xff] }
  0x11   : > { %v315_v3 = vsel %vm314_vm0, %v5292_v0, 0.0  ;;  %v321_v4 = vsel %vm314_vm0, %v5295_v1, 0.0  ;;  %v5305_v5 = vld [vmem:[%s5289_s29 + $0x18] sm:$0xff]  ;;  %v318_v6 = vsel %vm314_vm0, %v5298_v2, 0.0  ;;  %v5312_v8 = vld [vmem:[%s5289_s29 + $0x20] sm:$0xff]  ;;  %v5315_v9 = vld [vmem:[%s5289_s29 + $0x28] sm:$0xff] }
  0x12   : > { %316 = vadd.xlane.f32.xlu0 %v315_v3  ;;  %322 = vadd.xlane.f32.xlu1 %v321_v4  ;;  %v324_v7 = vsel %vm314_vm0, %v5305_v5, 0.0  ;;  %v327_v10 = vsel %vm314_vm0, %v5312_v8, 0.0  ;;  %v330_v11 = vsel %vm314_vm0, %v5315_v9, 0.0  ;;  %v5322_v12 = vld [vmem:[%s5289_s29 + $0x30] sm:$0xff]  ;;  %v5325_v13 = vld [vmem:[%s5289_s29 + $0x38] sm:$0xff]  ;;  %v5330_v15 = vld [vmem:[%s5289_s29 + $0x40] sm:$0xff] }
  0x13   : > { %v333_v14 = vsel %vm314_vm0, %v5322_v12, 0.0  ;;  %v336_v16 = vsel %vm314_vm0, %v5325_v13, 0.0  ;;  %v5335_v17 = vld [vmem:[%s5289_s29 + $0x48] sm:$0xff]  ;;  %v339_v18 = vsel %vm314_vm0, %v5330_v15, 0.0  ;;  %v5342_v20 = vld [vmem:[%s5289_s29 + $0x50] sm:$0xff]  ;;  %v5345_v21 = vld [vmem:[%s5289_s29 + $0x58] sm:$0xff] }
  0x14   : > { %v342_v19 = vsel %vm314_vm0, %v5335_v17, 0.0  ;;  %v345_v22 = vsel %vm314_vm0, %v5342_v20, 0.0  ;;  %v348_v23 = vsel %vm314_vm0, %v5345_v21, 0.0  ;;  %v5352_v24 = vld [vmem:[%s5289_s29 + $0x60] sm:$0xff]  ;;  %v5355_v25 = vld [vmem:[%s5289_s29 + $0x68] sm:$0xff]  ;;  %v5362_v28 = vld [vmem:[%s5289_s29 + $0x70] sm:$0xff] }
  0x15   : > { %v351_v26 = vsel %vm314_vm0, %v5352_v24, 0.0  ;;  %v354_v27 = vsel %vm314_vm0, %v5355_v25, 0.0  ;;  %v5365_v29 = vld [vmem:[%s5289_s29 + $0x78] sm:$0xff]  ;;  %v357_v30 = vsel %vm314_vm0, %v5362_v28, 0.0  ;;  %v5372_v32 = vld [vmem:[%s5289_s29 + $0x80] sm:$0xff]  ;;  %v5375_v33 = vld [vmem:[%s5289_s29 + $0x88] sm:$0xff] }
  0x16   : > { %319 = vadd.xlane.f32.xlu0 %v318_v6  ;;  %325 = vadd.xlane.f32.xlu1 %v324_v7  ;;  %v360_v31 = vsel %vm314_vm0, %v5365_v29, 0.0  ;;  %v363_v34 = vsel %vm314_vm0, %v5372_v32, 0.0  ;;  %v366_v35 = vsel %vm314_vm0, %v5375_v33, 0.0  ;;  %v5382_v36 = vld [vmem:[%s5289_s29 + $0x90] sm:$0xff]  ;;  %v5385_v37 = vld [vmem:[%s5289_s29 + $0x98] sm:$0xff]  ;;  %v5392_v40 = vld [vmem:[%s5289_s29 + $0xa0] sm:$0xff] }
  0x17   : > { %v369_v38 = vsel %vm314_vm0, %v5382_v36, 0.0  ;;  %v372_v39 = vsel %vm314_vm0, %v5385_v37, 0.0  ;;  %v5395_v41 = vld [vmem:[%s5289_s29 + $0xa8] sm:$0xff]  ;;  %v375_v42 = vsel %vm314_vm0, %v5392_v40, 0.0  ;;  %v5402_v44 = vld [vmem:[%s5289_s29 + $0xb0] sm:$0xff]  ;;  %v5405_v45 = vld [vmem:[%s5289_s29 + $0xb8] sm:$0xff] }
  0x18   : > { %v378_v43 = vsel %vm314_vm0, %v5395_v41, 0.0  ;;  %v381_v46 = vsel %vm314_vm0, %v5402_v44, 0.0  ;;  %v384_v47 = vsel %vm314_vm0, %v5405_v45, 0.0  ;;  %v5412_v48 = vld [vmem:[%s5289_s29 + $0xc0] sm:$0xff]  ;;  %v5415_v49 = vld [vmem:[%s5289_s29 + $0xc8] sm:$0xff]  ;;  %v5422_v52 = vld [vmem:[%s5289_s29 + $0xd0] sm:$0xff] }
  0x19   : > { %v387_v50 = vsel %vm314_vm0, %v5412_v48, 0.0  ;;  %v390_v51 = vsel %vm314_vm0, %v5415_v49, 0.0  ;;  %v5425_v53 = vld [vmem:[%s5289_s29 + $0xd8] sm:$0xff]  ;;  %v393_v54 = vsel %vm314_vm0, %v5422_v52, 0.0  ;;  %v5432_v56 = vld [vmem:[%s5289_s29 + $0xe0] sm:$0xff]  ;;  %v5435_v57 = vld [vmem:[%s5289_s29 + $0xe8] sm:$0xff] }
  0x1a   : > { %328 = vadd.xlane.f32.xlu0 %v327_v10  ;;  %331 = vadd.xlane.f32.xlu1 %v330_v11  ;;  %v396_v55 = vsel %vm314_vm0, %v5425_v53, 0.0  ;;  %v399_v58 = vsel %vm314_vm0, %v5432_v56, 0.0  ;;  %v402_v59 = vsel %vm314_vm0, %v5435_v57, 0.0  ;;  %v5442_v60 = vld [vmem:[%s5289_s29 + $0xf0] sm:$0xff]  ;;  %v5445_v61 = vld [vmem:[%s5289_s29 + $0xf8] sm:$0xff] }
  0x1b   : > { %v405_v62 = vsel %vm314_vm0, %v5442_v60, 0.0  ;;  %v408_v63 = vsel %vm314_vm0, %v5445_v61, 0.0 }
  0x1e   : > { %334 = vadd.xlane.f32.xlu0 %v333_v14  ;;  %337 = vadd.xlane.f32.xlu1 %v336_v16 }
  0x22   : > { %340 = vadd.xlane.f32.xlu0 %v339_v18  ;;  %343 = vadd.xlane.f32.xlu1 %v342_v19 }
  0x26   : > { %346 = vadd.xlane.f32.xlu0 %v345_v22  ;;  %349 = vadd.xlane.f32.xlu1 %v348_v23 }
  0x2a   : > { %352 = vadd.xlane.f32.xlu0 %v351_v26  ;;  %355 = vadd.xlane.f32.xlu1 %v354_v27 }
  0x2e   : > { %358 = vadd.xlane.f32.xlu0 %v357_v30  ;;  %361 = vadd.xlane.f32.xlu1 %v360_v31 }
  0x32   : > { %364 = vadd.xlane.f32.xlu0 %v363_v34  ;;  %367 = vadd.xlane.f32.xlu1 %v366_v35 }
  0x36   : > { %370 = vadd.xlane.f32.xlu0 %v369_v38  ;;  %373 = vadd.xlane.f32.xlu1 %v372_v39 }
  0x3a   : > { %376 = vadd.xlane.f32.xlu0 %v375_v42  ;;  %379 = vadd.xlane.f32.xlu1 %v378_v43 }
  0x3e   : > { %382 = vadd.xlane.f32.xlu0 %v381_v46  ;;  %385 = vadd.xlane.f32.xlu1 %v384_v47 }
  0x42   : > { %388 = vadd.xlane.f32.xlu0 %v387_v50  ;;  %391 = vadd.xlane.f32.xlu1 %v390_v51 }
  0x46   : > { %394 = vadd.xlane.f32.xlu0 %v393_v54  ;;  %397 = vadd.xlane.f32.xlu1 %v396_v55 }
  0x4a   : > { %400 = vadd.xlane.f32.xlu0 %v399_v58  ;;  %403 = vadd.xlane.f32.xlu1 %v402_v59 }
  0x4e   : > { %406 = vadd.xlane.f32.xlu0 %v405_v62  ;;  %409 = vadd.xlane.f32.xlu1 %v408_v63 }
  0x9f   : > { %v317_v3 = vpop.xlane.xlu0 %316  ;;  %v323_v4 = vpop.xlane.xlu1 %322 }
  0xa0   : > { %v412_v6 = vmul.f32 0.0625, %v317_v3  ;;  %v414_v7 = vmul.f32 0.0625, %v323_v4 }
  0xa2   : > { %v5452_v10 = vsub.f32 %v5292_v0, %v412_v6  ;;  %v5455_v11 = vsub.f32 %v5295_v1, %v414_v7 }
  0xa3   : > { %v320_v14 = vpop.xlane.xlu0 %319  ;;  %v326_v16 = vpop.xlane.xlu1 %325 }
  0xa4   : > { %v413_v18 = vmul.f32 0.0625, %v320_v14  ;;  %v415_v19 = vmul.f32 0.0625, %v326_v16  ;;  %v476_v22 = vmul.f32 %v5452_v10, %v5452_v10  ;;  %v478_v23 = vmul.f32 %v5455_v11, %v5455_v11 }
  0xa6   : > { %v5462_v26 = vsub.f32 %v5298_v2, %v413_v18  ;;  %v5465_v27 = vsub.f32 %v5305_v5, %v415_v19  ;;  %v508_v0 = vsel %vm314_vm0, %v476_v22, 0.0  ;;  %v514_v31 = vsel %vm314_vm0, %v478_v23, 0.0 }
  0xa7   : > { %509 = vadd.xlane.f32.xlu0 %v508_v0  ;;  %v329_v1 = vpop.xlane.xlu0 %328  ;;  %v332_v30 = vpop.xlane.xlu1 %331 }
  0xa8   : > { %v416_v34 = vmul.f32 0.0625, %v329_v1  ;;  %v417_v35 = vmul.f32 0.0625, %v332_v30  ;;  %v477_v38 = vmul.f32 %v5462_v26, %v5462_v26  ;;  %v479_v39 = vmul.f32 %v5465_v27, %v5465_v27 }
  0xaa   : > { %v5474_v2 = vsub.f32 %v5312_v8, %v416_v34  ;;  %v5477_v5 = vsub.f32 %v5315_v9, %v417_v35  ;;  %v511_v42 = vsel %vm314_vm0, %v477_v38, 0.0  ;;  %v517_v47 = vsel %vm314_vm0, %v479_v39, 0.0 }
  0xab   : > { %515 = vadd.xlane.f32.xlu0 %v514_v31  ;;  %512 = vadd.xlane.f32.xlu1 %v511_v42  ;;  %v335_v43 = vpop.xlane.xlu0 %334  ;;  %v338_v46 = vpop.xlane.xlu1 %337 }
  0xac   : > { %v418_v50 = vmul.f32 0.0625, %v335_v43  ;;  %v419_v51 = vmul.f32 0.0625, %v338_v46  ;;  %v480_v54 = vmul.f32 %v5474_v2, %v5474_v2  ;;  %v481_v8 = vmul.f32 %v5477_v5, %v5477_v5 }
  0xae   : > { %v5486_v55 = vsub.f32 %v5322_v12, %v418_v50  ;;  %v5489_v9 = vsub.f32 %v5325_v13, %v419_v51  ;;  %v520_v58 = vsel %vm314_vm0, %v480_v54, 0.0  ;;  %v523_v63 = vsel %vm314_vm0, %v481_v8, 0.0 }
  0xaf   : > { %518 = vadd.xlane.f32.xlu1 %v517_v47  ;;  %521 = vadd.xlane.f32.xlu0 %v520_v58  ;;  %v341_v59 = vpop.xlane.xlu0 %340  ;;  %v344_v62 = vpop.xlane.xlu1 %343 }
  0xb0   : > { %v420_v3 = vmul.f32 0.0625, %v341_v59  ;;  %v421_v4 = vmul.f32 0.0625, %v344_v62  ;;  %v482_v6 = vmul.f32 %v5486_v55, %v5486_v55  ;;  %v483_v12 = vmul.f32 %v5489_v9, %v5489_v9 }
  0xb2   : > { %v5498_v7 = vsub.f32 %v5330_v15, %v420_v3  ;;  %v5501_v13 = vsub.f32 %v5335_v17, %v421_v4  ;;  %v526_v14 = vsel %vm314_vm0, %v482_v6, 0.0  ;;  %v529_v19 = vsel %vm314_vm0, %v483_v12, 0.0 }
  0xb3   : > { %524 = vadd.xlane.f32.xlu1 %v523_v63  ;;  %527 = vadd.xlane.f32.xlu0 %v526_v14  ;;  %v347_v16 = vpop.xlane.xlu0 %346  ;;  %v350_v18 = vpop.xlane.xlu1 %349 }
  0xb4   : > { %v422_v22 = vmul.f32 0.0625, %v347_v16  ;;  %v423_v23 = vmul.f32 0.0625, %v350_v18  ;;  %v484_v0 = vmul.f32 %v5498_v7, %v5498_v7  ;;  %v485_v15 = vmul.f32 %v5501_v13, %v5501_v13 }
  0xb6   : > { %v5510_v1 = vsub.f32 %v5342_v20, %v422_v22  ;;  %v5513_v17 = vsub.f32 %v5345_v21, %v423_v23  ;;  %v532_v30 = vsel %vm314_vm0, %v484_v0, 0.0  ;;  %v535_v35 = vsel %vm314_vm0, %v485_v15, 0.0 }
  0xb7   : > { %530 = vadd.xlane.f32.xlu1 %v529_v19  ;;  %533 = vadd.xlane.f32.xlu0 %v532_v30  ;;  %v353_v31 = vpop.xlane.xlu0 %352  ;;  %v356_v34 = vpop.xlane.xlu1 %355 }
  0xb8   : > { %v424_v38 = vmul.f32 0.0625, %v353_v31  ;;  %v425_v39 = vmul.f32 0.0625, %v356_v34  ;;  %v486_v42 = vmul.f32 %v5510_v1, %v5510_v1  ;;  %v487_v20 = vmul.f32 %v5513_v17, %v5513_v17 }
  0xba   : > { %v5522_v43 = vsub.f32 %v5352_v24, %v424_v38  ;;  %v5525_v21 = vsub.f32 %v5355_v25, %v425_v39  ;;  %v538_v46 = vsel %vm314_vm0, %v486_v42, 0.0  ;;  %v541_v51 = vsel %vm314_vm0, %v487_v20, 0.0 }
  0xbb   : > { %536 = vadd.xlane.f32.xlu1 %v535_v35  ;;  %539 = vadd.xlane.f32.xlu0 %v538_v46  ;;  %v359_v47 = vpop.xlane.xlu0 %358  ;;  %v362_v50 = vpop.xlane.xlu1 %361 }
  0xbc   : > { %v426_v54 = vmul.f32 0.0625, %v359_v47  ;;  %v427_v8 = vmul.f32 0.0625, %v362_v50  ;;  %v488_v58 = vmul.f32 %v5522_v43, %v5522_v43  ;;  %v489_v24 = vmul.f32 %v5525_v21, %v5525_v21 }
  0xbe   : > { %v5534_v59 = vsub.f32 %v5362_v28, %v426_v54  ;;  %v5537_v25 = vsub.f32 %v5365_v29, %v427_v8  ;;  %v544_v62 = vsel %vm314_vm0, %v488_v58, 0.0  ;;  %v547_v4 = vsel %vm314_vm0, %v489_v24, 0.0 }
  0xbf   : > { %542 = vadd.xlane.f32.xlu1 %v541_v51  ;;  %545 = vadd.xlane.f32.xlu0 %v544_v62  ;;  %v365_v63 = vpop.xlane.xlu0 %364  ;;  %v368_v3 = vpop.xlane.xlu1 %367 }
  0xc0   : > { %v428_v6 = vmul.f32 0.0625, %v365_v63  ;;  %v429_v12 = vmul.f32 0.0625, %v368_v3  ;;  %v490_v14 = vmul.f32 %v5534_v59, %v5534_v59  ;;  %v491_v28 = vmul.f32 %v5537_v25, %v5537_v25 }
  0xc1   : > { %v5232_v63 = vmov 0.0  }
  0xc2   : > { %v5546_v16 = vsub.f32 %v5372_v32, %v428_v6  ;;  %v5549_v29 = vsub.f32 %v5375_v33, %v429_v12  ;;  %v550_v18 = vsel %vm314_vm0, %v490_v14, 0.0  ;;  %v553_v23 = vsel %vm314_vm0, %v491_v28, 0.0  ;;  %808 = vst.msk [vmem:[#allocation2] sm:$0xff] %vm314_vm0, %v5232_v63  ;;  %809 = vst.msk [vmem:[#allocation2 + $0x8] sm:$0xff] %vm314_vm0, %v5232_v63 }
  0xc3   : > { %548 = vadd.xlane.f32.xlu1 %v547_v4  ;;  %551 = vadd.xlane.f32.xlu0 %v550_v18  ;;  %v371_v19 = vpop.xlane.xlu0 %370  ;;  %v374_v22 = vpop.xlane.xlu1 %373  ;;  %813 = vst.msk [vmem:[#allocation2 + $0x198] sm:$0xff] %vm314_vm0, %v5232_v63  ;;  %814 = vst.msk [vmem:[#allocation2 + $0x1a0] sm:$0xff] %vm314_vm0, %v5232_v63 }
  0xc4   : > { %v430_v0 = vmul.f32 0.0625, %v371_v19  ;;  %v431_v15 = vmul.f32 0.0625, %v374_v22  ;;  %v492_v30 = vmul.f32 %v5546_v16, %v5546_v16  ;;  %v493_v32 = vmul.f32 %v5549_v29, %v5549_v29  ;;  %818 = vst.msk [vmem:[#allocation2 + $0x18] sm:$0x1] %vm816_vm1, %v5232_v63  ;;  %819 = vst.msk [vmem:[#allocation2 + $0x30] sm:$0x1] %vm816_vm1, %v5232_v63 }
  0xc5   : > { %820 = vst.msk [vmem:[#allocation2 + $0x48] sm:$0x1] %vm816_vm1, %v5232_v63  ;;  %821 = vst.msk [vmem:[#allocation2 + $0x60] sm:$0x1] %vm816_vm1, %v5232_v63 }
  0xc6   : > { %v5558_v31 = vsub.f32 %v5382_v36, %v430_v0  ;;  %v5561_v33 = vsub.f32 %v5385_v37, %v431_v15  ;;  %v556_v34 = vsel %vm314_vm0, %v492_v30, 0.0  ;;  %v559_v39 = vsel %vm314_vm0, %v493_v32, 0.0  ;;  %822 = vst.msk [vmem:[#allocation2 + $0x78] sm:$0x1] %vm816_vm1, %v5232_v63  ;;  %823 = vst.msk [vmem:[#allocation2 + $0x90] sm:$0x1] %vm816_vm1, %v5232_v63 }
  0xc7   : > { %554 = vadd.xlane.f32.xlu1 %v553_v23  ;;  %557 = vadd.xlane.f32.xlu0 %v556_v34  ;;  %v377_v35 = vpop.xlane.xlu0 %376  ;;  %v380_v38 = vpop.xlane.xlu1 %379  ;;  %824 = vst.msk [vmem:[#allocation2 + $0xa8] sm:$0x1] %vm816_vm1, %v5232_v63  ;;  %825 = vst.msk [vmem:[#allocation2 + $0xc0] sm:$0x1] %vm816_vm1, %v5232_v63  ;;  %v5053_v32 = vld [vmem:[%s6603_s3 + $0x8] sm:$0xff]  }
  0xc8   : > { %v432_v42 = vmul.f32 0.0625, %v377_v35  ;;  %v433_v20 = vmul.f32 0.0625, %v380_v38  ;;  %v494_v46 = vmul.f32 %v5558_v31, %v5558_v31  ;;  %v495_v36 = vmul.f32 %v5561_v33, %v5561_v33  ;;  %826 = vst.msk [vmem:[#allocation2 + $0xd8] sm:$0x1] %vm816_vm1, %v5232_v63  ;;  %827 = vst.msk [vmem:[#allocation2 + $0xf0] sm:$0x1] %vm816_vm1, %v5232_v63  ;;  %4446 = vmatprep.subr.bf16.mxu1 %v5053_v32 }
  0xc9   : > { %828 = vst.msk [vmem:[#allocation2 + $0x108] sm:$0x1] %vm816_vm1, %v5232_v63  ;;  %829 = vst.msk [vmem:[#allocation2 + $0x120] sm:$0x1] %vm816_vm1, %v5232_v63  ;;  %v936_v38 = vld [vmem:[#allocation2 + $0x1] sm:$0xff]  ;;  %4447 = vmatpush3.bf16.msra.mxu1 %v5053_v32 }
  0xca   : > { %v5570_v47 = vsub.f32 %v5392_v40, %v432_v42  ;;  %v5573_v37 = vsub.f32 %v5395_v41, %v433_v20  ;;  %v562_v50 = vsel %vm314_vm0, %v494_v46, 0.0  ;;  %v565_v8 = vsel %vm314_vm0, %v495_v36, 0.0  ;;  %830 = vst.msk [vmem:[#allocation2 + $0x138] sm:$0x1] %vm816_vm1, %v5232_v63  ;;  %831 = vst.msk [vmem:[#allocation2 + $0x150] sm:$0x1] %vm816_vm1, %v5232_v63 }
  0xcb   : > { %560 = vadd.xlane.f32.xlu1 %v559_v39  ;;  %563 = vadd.xlane.f32.xlu0 %v562_v50  ;;  %v383_v51 = vpop.xlane.xlu0 %382  ;;  %v386_v54 = vpop.xlane.xlu1 %385  ;;  %832 = vst.msk [vmem:[#allocation2 + $0x168] sm:$0x1] %vm816_vm1, %v5232_v63  ;;  %833 = vst.msk [vmem:[#allocation2 + $0x180] sm:$0x1] %vm816_vm1, %v5232_v63  ;;  %v5699_v32 = vld [vmem:[%s6603_s3] sm:$0xff]  }
  0xcc   : > { %v434_v58 = vmul.f32 0.0625, %v383_v51  ;;  %v435_v24 = vmul.f32 0.0625, %v386_v54  ;;  %v496_v62 = vmul.f32 %v5570_v47, %v5570_v47  ;;  %v497_v40 = vmul.f32 %v5573_v37, %v5573_v37  ;;  %836 = vst.msk [vmem:[#allocation2 + $0x29] sm:$0x1] %vm816_vm1, %v5232_v63  ;;  %837 = vst.msk [vmem:[#allocation2 + $0x41] sm:$0x1] %vm816_vm1, %v5232_v63  ;;  %4480 = vmatprep.subr.bf16.mxu1 %v5699_v32 }
  0xcd   : > { %838 = vst.msk [vmem:[#allocation2 + $0x59] sm:$0x1] %vm816_vm1, %v5232_v63  ;;  %839 = vst.msk [vmem:[#allocation2 + $0x71] sm:$0x1] %vm816_vm1, %v5232_v63 }
  0xce   : > { %840 = vst.msk [vmem:[#allocation2 + $0x89] sm:$0x1] %vm816_vm1, %v5232_v63  ;;  %841 = vst.msk [vmem:[#allocation2 + $0xa1] sm:$0x1] %vm816_vm1, %v5232_v63  ;;  %v5620_v41 = vsub.f32 %v5402_v44, %v434_v58  ;;  %v5623_v3 = vsub.f32 %v5405_v45, %v435_v24  ;;  %v568_v4 = vsel %vm314_vm0, %v496_v62, 0.0  ;;  %v571_v14 = vsel %vm314_vm0, %v497_v40, 0.0 }
  0xcf   : > { %842 = vst.msk [vmem:[#allocation2 + $0xb9] sm:$0x1] %vm816_vm1, %v5232_v63  ;;  %843 = vst.msk [vmem:[#allocation2 + $0xd1] sm:$0x1] %vm816_vm1, %v5232_v63  ;;  %566 = vadd.xlane.f32.xlu1 %v565_v8  ;;  %569 = vadd.xlane.f32.xlu0 %v568_v4  ;;  %v389_v6 = vpop.xlane.xlu0 %388  ;;  %v392_v12 = vpop.xlane.xlu1 %391  ;;  %v5054_v8 = vld [vmem:[%s6603_s3 + $0x20] sm:$0xff]  }
  0xd0   : > { %844 = vst.msk [vmem:[#allocation2 + $0xe9] sm:$0x1] %vm816_vm1, %v5232_v63  ;;  %845 = vst.msk [vmem:[#allocation2 + $0x101] sm:$0x1] %vm816_vm1, %v5232_v63  ;;  %v436_v28 = vmul.f32 0.0625, %v389_v6  ;;  %v437_v44 = vmul.f32 0.0625, %v392_v12  ;;  %v498_v45 = vmul.f32 %v5620_v41, %v5620_v41  ;;  %v499_v18 = vmul.f32 %v5623_v3, %v5623_v3  ;;  %4582 = vmatprep.subr.bf16.mxu0 %v5054_v8 }
  0xd1   : > { %846 = vst.msk [vmem:[#allocation2 + $0x119] sm:$0x1] %vm816_vm1, %v5232_v63  ;;  %847 = vst.msk [vmem:[#allocation2 + $0x131] sm:$0x1] %vm816_vm1, %v5232_v63  ;;  %4583 = vmatpush3.bf16.msra.mxu0 %v5054_v8 }
  0xd2   : > { %848 = vst.msk [vmem:[#allocation2 + $0x149] sm:$0x1] %vm816_vm1, %v5232_v63  ;;  %849 = vst.msk [vmem:[#allocation2 + $0x161] sm:$0x1] %vm816_vm1, %v5232_v63  ;;  %v5634_v19 = vsub.f32 %v5412_v48, %v436_v28  ;;  %v5637_v22 = vsub.f32 %v5415_v49, %v437_v44  ;;  %v574_v23 = vsel %vm314_vm0, %v498_v45, 0.0  ;;  %v577_v30 = vsel %vm314_vm0, %v499_v18, 0.0 }
  0xd3   : > { %850 = vst.msk [vmem:[#allocation2 + $0x179] sm:$0x1] %vm816_vm1, %v5232_v63  ;;  %851 = vst.msk [vmem:[#allocation2 + $0x191] sm:$0x1] %vm816_vm1, %v5232_v63  ;;  %572 = vadd.xlane.f32.xlu1 %v571_v14  ;;  %575 = vadd.xlane.f32.xlu0 %v574_v23  ;;  %v395_v0 = vpop.xlane.xlu0 %394  ;;  %v398_v15 = vpop.xlane.xlu1 %397 }
  0xd4   : > { %817 = vst.msk [vmem:[#allocation2] sm:$0x1] %vm816_vm1, %v5232_v63  ;;  %834 = vst.msk [vmem:[#allocation2 + $0x198] sm:$0x1] %vm816_vm1, %v5232_v63  ;;  %v438_v34 = vmul.f32 0.0625, %v395_v0  ;;  %v439_v35 = vmul.f32 0.0625, %v398_v15  ;;  %v500_v48 = vmul.f32 %v5634_v19, %v5634_v19  ;;  %v501_v49 = vmul.f32 %v5637_v22, %v5637_v22 }
  0xd5   : > { %811 = vst.msk [vmem:[#allocation2 + $0x10] sm:$0x3] %vm810_vm2, %v5232_v63  ;;  %815 = vst.msk [vmem:[#allocation2 + $0x1a8] sm:$0x3] %vm810_vm2, %v5232_v63 }
  0xd6   : > { %835 = vst.msk [vmem:[#allocation2 + $0x11] sm:$0x1] %vm816_vm1, %v5232_v63  ;;  %852 = vst.msk [vmem:[#allocation2 + $0x1a9] sm:$0x1] %vm816_vm1, %v5232_v63  ;;  %v5649_v42 = vsub.f32 %v5422_v52, %v438_v34  ;;  %v5652_v20 = vsub.f32 %v5425_v53, %v439_v35  ;;  %v580_v46 = vsel %vm314_vm0, %v500_v48, 0.0  ;;  %v583_v51 = vsel %vm314_vm0, %v501_v49, 0.0 }
  0xd7   : > { %578 = vadd.xlane.f32.xlu1 %v577_v30  ;;  %581 = vadd.xlane.f32.xlu0 %v580_v46  ;;  %v401_v36 = vpop.xlane.xlu0 %400  ;;  %v404_v50 = vpop.xlane.xlu1 %403 }
  0xd8   : > { %v440_v58 = vmul.f32 0.0625, %v401_v36  ;;  %v441_v52 = vmul.f32 0.0625, %v404_v50  ;;  %v502_v53 = vmul.f32 %v5649_v42, %v5649_v42  ;;  %v503_v24 = vmul.f32 %v5652_v20, %v5652_v20 }
  0xda   : > { %v5665_v62 = vsub.f32 %v5432_v56, %v440_v58  ;;  %v5668_v40 = vsub.f32 %v5435_v57, %v441_v52  ;;  %v586_v63 = vsel %vm314_vm0, %v502_v53, 0.0  ;;  %v589_v12 = vsel %vm314_vm0, %v503_v24, 0.0 }
  0xdb   : > { %584 = vadd.xlane.f32.xlu1 %v583_v51  ;;  %587 = vadd.xlane.f32.xlu0 %v586_v63  ;;  %v407_v4 = vpop.xlane.xlu0 %406  ;;  %v410_v6 = vpop.xlane.xlu1 %409 }
  0xdc   : > { %v937_v39 = vld [vmem:[#allocation2 + $0x9] sm:$0xff]  ;;  %v442_v14 = vmul.f32 0.0625, %v407_v4  ;;  %v443_v28 = vmul.f32 0.0625, %v410_v6  ;;  %v504_v44 = vmul.f32 %v5665_v62, %v5665_v62  ;;  %v505_v56 = vmul.f32 %v5668_v40, %v5668_v40 }
  0xdd   : > { %v968_v54 = vpack.c.bf16 %v937_v39, %v936_v38 }
  0xde   : > { %v5677_v57 = vsub.f32 %v5442_v60, %v442_v14  ;;  %v5680_v45 = vsub.f32 %v5445_v61, %v443_v28  ;;  %v592_v18 = vsel %vm314_vm0, %v504_v44, 0.0  ;;  %v595_v23 = vsel %vm314_vm0, %v505_v56, 0.0  ;;  %v5693_v61 = vld [vmem:[%s6603_s3 + $0x28] sm:$0xff]   ;;  %v5705_v14 = vld [vmem:[%s6601_s1] ss:$0 sm:$0xff] }
  0xdf   : > { %4448 = vmatprep.mubr.msk.bf16.mxu1 %vm314_vm0, %v968_v54  ;;  %590 = vadd.xlane.f32.xlu1 %v589_v12 }
  0xe0   : > { %593 = vadd.xlane.f32.xlu0 %v592_v18  ;;  %v506_v0 = vmul.f32 %v5677_v57, %v5677_v57  ;;  %v507_v15 = vmul.f32 %v5680_v45, %v5680_v45  ;;  %4616 = vmatprep.subr.bf16.mxu0 %v5693_v61 }
  0xe2   : > { %v598_v30 = vsel %vm314_vm0, %v506_v0, 0.0  ;;  %v601_v60 = vsel %vm314_vm0, %v507_v15, 0.0  ;;  %v5711_v0 = vld [vmem:[%s6602_s2] ss:$0 sm:$0xff] }
  0xe3   : > { %596 = vadd.xlane.f32.xlu1 %v595_v23 }
  0xe4   : > { %599 = vadd.xlane.f32.xlu0 %v598_v30 }
  0xe7   : > { %602 = vadd.xlane.f32.xlu1 %v601_v60 }
 0x134   : > { %v510_v34 = vpop.xlane.xlu0 %509 }
 0x135   : > { %v604_v35 = vmul.f32 0.0625, %v510_v34 }
 0x137   : > { %v636_v48 = vadd.f32 1e-06, %v604_v35 }
 0x138   : > { %v513_v49 = vpop.xlane.xlu1 %512  ;;  %v516_v38 = vpop.xlane.xlu0 %515 }
 0x139   : > { %5064 = vrsqrt.f32 %v636_v48  ;;  %v605_v39 = vmul.f32 0.0625, %v513_v49  ;;  %v606_v46 = vmul.f32 0.0625, %v516_v38 }
 0x13b   : > { %v637_v36 = vadd.f32 1e-06, %v605_v39  ;;  %v638_v50 = vadd.f32 1e-06, %v606_v46 }
 0x13c   : > { %v519_v51 = vpop.xlane.xlu1 %518  ;;  %v522_v54 = vpop.xlane.xlu0 %521 }
 0x13d   : > { %5066 = vrsqrt.f32 %v637_v36  ;;  %v607_v8 = vmul.f32 0.0625, %v519_v51  ;;  %v608_v58 = vmul.f32 0.0625, %v522_v54 }
 0x13e   : > { %5068 = vrsqrt.f32 %v638_v50 }
 0x13f   : > { %v639_v52 = vadd.f32 1e-06, %v607_v8  ;;  %v640_v53 = vadd.f32 1e-06, %v608_v58 }
 0x140   : > { %v525_v24 = vpop.xlane.xlu1 %524  ;;  %v528_v63 = vpop.xlane.xlu0 %527 }
 0x141   : > { %5070 = vrsqrt.f32 %v639_v52  ;;  %v609_v4 = vmul.f32 0.0625, %v525_v24  ;;  %v610_v6 = vmul.f32 0.0625, %v528_v63 }
 0x142   : > { %5072 = vrsqrt.f32 %v640_v53 }
 0x143   : > { %v5065_v12 = vpop.eup %5064  ;;  %v641_v28 = vadd.f32 1e-06, %v609_v4  ;;  %v642_v44 = vadd.f32 1e-06, %v610_v6 }
 0x144   : > { %v700_v56 = vmul.f32 %v5065_v12, %v5452_v10  ;;  %v531_v18 = vpop.xlane.xlu1 %530  ;;  %v534_v23 = vpop.xlane.xlu0 %533 }
 0x145   : > { %5074 = vrsqrt.f32 %v641_v28  ;;  %v611_v15 = vmul.f32 0.0625, %v531_v18  ;;  %v612_v30 = vmul.f32 0.0625, %v534_v23 }
 0x146   : > { %v738_v60 = vmul.f32 %v5705_v14, %v700_v56  ;;  %5076 = vrsqrt.f32 %v642_v44 }
 0x147   : > { %v5067_v34 = vpop.eup %5066  ;;  %v643_v35 = vadd.f32 1e-06, %v611_v15  ;;  %v644_v48 = vadd.f32 1e-06, %v612_v30 }
 0x148   : > { %v5069_v49 = vpop.eup %5068  ;;  %v776_v38 = vadd.f32 %v5711_v0, %v738_v60  ;;  %v701_v10 = vmul.f32 %v5067_v34, %v5462_v26  ;;  %v537_v39 = vpop.xlane.xlu1 %536 }
 0x149   : > { %v540_v46 = vpop.xlane.xlu0 %539  ;;  %v702_v36 = vmul.f32 %v5069_v49, %v5455_v11  ;;  %5078 = vrsqrt.f32 %v643_v35  ;;  %v613_v50 = vmul.f32 0.0625, %v537_v39 }
 0x14a   : > { %v614_v51 = vmul.f32 0.0625, %v540_v46  ;;  %854 = vst.msk [vmem:[#allocation2 + $0x19] sm:$0xff] %vm314_vm0, %v776_v38  ;;  %v739_v54 = vmul.f32 %v5705_v14, %v701_v10  ;;  %5080 = vrsqrt.f32 %v644_v48 }
 0x14b   : > { %v5071_v8 = vpop.eup %5070  ;;  %v740_v58 = vmul.f32 %v5705_v14, %v702_v36  ;;  %v645_v52 = vadd.f32 1e-06, %v613_v50 }
 0x14c   : > { %v646_v53 = vadd.f32 1e-06, %v614_v51  ;;  %v5073_v24 = vpop.eup %5072  ;;  %v777_v26 = vadd.f32 %v5711_v0, %v739_v54  ;;  %v703_v63 = vmul.f32 %v5071_v8, %v5465_v27  ;;  %v543_v4 = vpop.xlane.xlu1 %542 }
 0x14d   : > { %v546_v11 = vpop.xlane.xlu0 %545  ;;  %v778_v6 = vadd.f32 %v5711_v0, %v740_v58  ;;  %v704_v12 = vmul.f32 %v5073_v24, %v5474_v2  ;;  %5082 = vrsqrt.f32 %v645_v52  ;;  %v615_v28 = vmul.f32 0.0625, %v543_v4 }
 0x14e   : > { %855 = vst.msk [vmem:[#allocation2 + $0x21] sm:$0xff] %vm314_vm0, %v777_v26  ;;  %v741_v44 = vmul.f32 %v5705_v14, %v703_v63  ;;  %5084 = vrsqrt.f32 %v646_v53  ;;  %v616_v56 = vmul.f32 0.0625, %v546_v11 }
 0x14f   : > { %v5075_v18 = vpop.eup %5074  ;;  %856 = vst.msk [vmem:[#allocation2 + $0x31] sm:$0xff] %vm314_vm0, %v778_v6  ;;  %v742_v23 = vmul.f32 %v5705_v14, %v704_v12  ;;  %v647_v27 = vadd.f32 1e-06, %v615_v28 }
 0x150   : > { %v5077_v15 = vpop.eup %5076  ;;  %v779_v30 = vadd.f32 %v5711_v0, %v741_v44  ;;  %v705_v60 = vmul.f32 %v5075_v18, %v5477_v5  ;;  %v648_v2 = vadd.f32 1e-06, %v616_v56  ;;  %v549_v34 = vpop.xlane.xlu1 %548 }
 0x151   : > { %v552_v35 = vpop.xlane.xlu0 %551  ;;  %v780_v48 = vadd.f32 %v5711_v0, %v742_v23  ;;  %v706_v49 = vmul.f32 %v5077_v15, %v5486_v55  ;;  %5086 = vrsqrt.f32 %v647_v27  ;;  %v617_v38 = vmul.f32 0.0625, %v549_v34  ;;  %v938_v26 = vld [vmem:[#allocation2 + $0x19] sm:$0xff] }
 0x152   : > { %857 = vst.msk [vmem:[#allocation2 + $0x39] sm:$0xff] %vm314_vm0, %v779_v30  ;;  %v743_v10 = vmul.f32 %v5705_v14, %v705_v60  ;;  %5088 = vrsqrt.f32 %v648_v2  ;;  %v618_v39 = vmul.f32 0.0625, %v552_v35 }
 0x153   : > { %v5079_v46 = vpop.eup %5078  ;;  %858 = vst.msk [vmem:[#allocation2 + $0x49] sm:$0xff] %vm314_vm0, %v780_v48  ;;  %v744_v5 = vmul.f32 %v5705_v14, %v706_v49  ;;  %v649_v36 = vadd.f32 1e-06, %v617_v38  ;;  %v5763_v38 = vld [vmem:[%s6603_s3 + $0x30] sm:$0xff]  }
 0x154   : > { %v5081_v50 = vpop.eup %5080  ;;  %v781_v51 = vadd.f32 %v5711_v0, %v743_v10  ;;  %v707_v54 = vmul.f32 %v5079_v46, %v5489_v9  ;;  %v650_v55 = vadd.f32 1e-06, %v618_v39  ;;  %v555_v8 = vpop.xlane.xlu1 %554  ;;  %v5745_v9 = vld [vmem:[%s6603_s3 + $0x10] sm:$0xff]  }
 0x155   : > { %v558_v58 = vpop.xlane.xlu0 %557  ;;  %v782_v52 = vadd.f32 %v5711_v0, %v744_v5  ;;  %v708_v53 = vmul.f32 %v5081_v50, %v5498_v7  ;;  %5090 = vrsqrt.f32 %v649_v36  ;;  %v619_v24 = vmul.f32 0.0625, %v555_v8  ;;  %v939_v63 = vld [vmem:[#allocation2 + $0x21] sm:$0xff] }
 0x156   : > { %859 = vst.msk [vmem:[#allocation2 + $0x51] sm:$0xff] %vm314_vm0, %v781_v51  ;;  %v745_v4 = vmul.f32 %v5705_v14, %v707_v54  ;;  %5092 = vrsqrt.f32 %v650_v55  ;;  %v620_v11 = vmul.f32 0.0625, %v558_v58  ;;  %v969_v6 = vpack.c.bf16 %v939_v63, %v938_v26  ;;  %v940_v34 = vld [vmem:[#allocation2 + $0x31] sm:$0xff] }
 0x157   : > { %v5083_v12 = vpop.eup %5082  ;;  %860 = vst.msk [vmem:[#allocation2 + $0x61] sm:$0xff] %vm314_vm0, %v782_v52  ;;  %v746_v7 = vmul.f32 %v5705_v14, %v708_v53  ;;  %v651_v28 = vadd.f32 1e-06, %v619_v24 }
 0x158   : > { %v5085_v44 = vpop.eup %5084  ;;  %v783_v56 = vadd.f32 %v5711_v0, %v745_v4  ;;  %v709_v18 = vmul.f32 %v5083_v12, %v5501_v13  ;;  %v652_v23 = vadd.f32 1e-06, %v620_v11  ;;  %v561_v27 = vpop.xlane.xlu1 %560  ;;  %4449 = vmatmul.mubr.msk.bf16.vlgmr.msra.gmra.mrb[0].mxu1 %vm314_vm0, %v969_v6  ;;  %4584 = vmatprep.mubr.msk.bf16.mxu0 %vm314_vm0, %v969_v6 }
 0x159   : > { %v564_v15 = vpop.xlane.xlu0 %563  ;;  %v784_v30 = vadd.f32 %v5711_v0, %v746_v7  ;;  %v710_v60 = vmul.f32 %v5085_v44, %v5510_v1  ;;  %5094 = vrsqrt.f32 %v651_v28  ;;  %v621_v2 = vmul.f32 0.0625, %v561_v27  ;;  %v941_v35 = vld [vmem:[#allocation2 + $0x39] sm:$0xff]  ;;  %4481 = vmatpush3.bf16.msra.mxu1 %v5699_v32 }
 0x15a   : > { %861 = vst.msk [vmem:[#allocation2 + $0x69] sm:$0xff] %vm314_vm0, %v783_v56  ;;  %v747_v13 = vmul.f32 %v5705_v14, %v709_v18  ;;  %5096 = vrsqrt.f32 %v652_v23  ;;  %v622_v48 = vmul.f32 0.0625, %v564_v15  ;;  %v5758_v49 = vpack.c.bf16 %v941_v35, %v940_v34  ;;  %4514 = vmatprep.subr.bf16.mxu1 %v5745_v9  ;;  %v942_v58 = vld [vmem:[#allocation2 + $0x49] sm:$0xff] }
 0x15b   : > { %v5087_v1 = vpop.eup %5086  ;;  %862 = vst.msk [vmem:[#allocation2 + $0x79] sm:$0xff] %vm314_vm0, %v784_v30  ;;  %v748_v32 = vmul.f32 %v5705_v14, %v710_v60  ;;  %v653_v10 = vadd.f32 1e-06, %v621_v2 }
 0x15c   : > { %v5089_v39 = vpop.eup %5088  ;;  %v785_v46 = vadd.f32 %v5711_v0, %v747_v13  ;;  %v711_v5 = vmul.f32 %v5087_v1, %v5513_v17  ;;  %v654_v36 = vadd.f32 1e-06, %v622_v48  ;;  %v567_v50 = vpop.xlane.xlu1 %566  ;;  %4452 = vmatprep.mubr.msk.bf16.mxu1 %vm314_vm0, %v5758_v49  ;;  %4585 = vmatmul.mubr.msk.bf16.vlgmr.msra.gmra.mrb[0].mxu0 %vm314_vm0, %v5758_v49 }
 0x15d   : > { %v570_v51 = vpop.xlane.xlu0 %569  ;;  %v786_v54 = vadd.f32 %v5711_v0, %v748_v32  ;;  %v712_v55 = vmul.f32 %v5089_v39, %v5522_v43  ;;  %5098 = vrsqrt.f32 %v653_v10  ;;  %v623_v8 = vmul.f32 0.0625, %v567_v50  ;;  %4617 = vmatpush3.bf16.msra.mxu0 %v5693_v61  ;;  %v943_v52 = vld [vmem:[#allocation2 + $0x51] sm:$0xff] }
 0x15e   : > { %863 = vst.msk [vmem:[#allocation2 + $0x81] sm:$0xff] %vm314_vm0, %v785_v46  ;;  %v749_v17 = vmul.f32 %v5705_v14, %v711_v5  ;;  %5100 = vrsqrt.f32 %v654_v36  ;;  %v624_v53 = vmul.f32 0.0625, %v570_v51  ;;  %v5779_v24 = vpack.c.bf16 %v943_v52, %v942_v58  ;;  %4650 = vmatprep.subr.bf16.mxu0 %v5763_v38  ;;  %v944_v18 = vld [vmem:[#allocation2 + $0x61] sm:$0xff] }
 0x15f   : > { %v5091_v26 = vpop.eup %5090  ;;  %864 = vst.msk [vmem:[#allocation2 + $0x91] sm:$0xff] %vm314_vm0, %v786_v54  ;;  %v750_v43 = vmul.f32 %v5705_v14, %v712_v55  ;;  %v655_v63 = vadd.f32 1e-06, %v623_v8 }
 0x160   : > { %v5093_v4 = vpop.eup %5092  ;;  %v787_v61 = vadd.f32 %v5711_v0, %v749_v17  ;;  %v713_v11 = vmul.f32 %v5091_v26, %v5525_v21  ;;  %v656_v6 = vadd.f32 1e-06, %v624_v53  ;;  %v573_v12 = vpop.xlane.xlu1 %572  ;;  %4453 = vmatmul.mubr.msk.bf16.gmra.mrb[4].mxu1 %vm314_vm0, %v5779_v24  ;;  %4588 = vmatprep.mubr.msk.bf16.mxu0 %vm314_vm0, %v5779_v24 }
 0x161   : > { %v576_v7 = vpop.xlane.xlu0 %575  ;;  %v788_v28 = vadd.f32 %v5711_v0, %v750_v43  ;;  %v714_v44 = vmul.f32 %v5093_v4, %v5534_v59  ;;  %5102 = vrsqrt.f32 %v655_v63  ;;  %v625_v56 = vmul.f32 0.0625, %v573_v12  ;;  %v945_v23 = vld [vmem:[#allocation2 + $0x69] sm:$0xff] }
 0x162   : > { %865 = vst.msk [vmem:[#allocation2 + $0x99] sm:$0xff] %vm314_vm0, %v787_v61  ;;  %v751_v21 = vmul.f32 %v5705_v14, %v713_v11  ;;  %5104 = vrsqrt.f32 %v656_v6  ;;  %v626_v27 = vmul.f32 0.0625, %v576_v7  ;;  %v5794_v15 = vpack.c.bf16 %v945_v23, %v944_v18  ;;  %v946_v46 = vld [vmem:[#allocation2 + $0x79] sm:$0xff] }
 0x163   : > { %v5095_v30 = vpop.eup %5094  ;;  %866 = vst.msk [vmem:[#allocation2 + $0xa9] sm:$0xff] %vm314_vm0, %v788_v28  ;;  %v752_v60 = vmul.f32 %v5705_v14, %v714_v44  ;;  %v657_v2 = vadd.f32 1e-06, %v625_v56 }
 0x164   : > { %v5097_v34 = vpop.eup %5096  ;;  %v789_v59 = vadd.f32 %v5711_v0, %v751_v21  ;;  %v715_v35 = vmul.f32 %v5095_v30, %v5537_v25  ;;  %v658_v13 = vadd.f32 1e-06, %v626_v27  ;;  %v579_v48 = vpop.xlane.xlu1 %578  ;;  %4456 = vmatprep.mubr.msk.bf16.mxu1 %vm314_vm0, %v5794_v15  ;;  %4589 = vmatmul.mubr.msk.bf16.gmra.mrb[4].mxu0 %vm314_vm0, %v5794_v15 }
 0x165   : > { %v582_v1 = vpop.xlane.xlu0 %581  ;;  %v790_v32 = vadd.f32 %v5711_v0, %v752_v60  ;;  %v716_v10 = vmul.f32 %v5097_v34, %v5546_v16  ;;  %5106 = vrsqrt.f32 %v657_v2  ;;  %v627_v39 = vmul.f32 0.0625, %v579_v48  ;;  %v947_v5 = vld [vmem:[#allocation2 + $0x81] sm:$0xff] }
 0x166   : > { %867 = vst.msk [vmem:[#allocation2 + $0xb1] sm:$0xff] %vm314_vm0, %v789_v59  ;;  %v753_v25 = vmul.f32 %v5705_v14, %v715_v35  ;;  %5108 = vrsqrt.f32 %v658_v13  ;;  %v628_v36 = vmul.f32 0.0625, %v582_v1  ;;  %v5808_v50 = vpack.c.bf16 %v947_v5, %v946_v46  ;;  %v948_v4 = vld [vmem:[#allocation2 + $0x91] sm:$0xff] }
 0x167   : > { %v5099_v51 = vpop.eup %5098  ;;  %868 = vst.msk [vmem:[#allocation2 + $0xc1] sm:$0xff] %vm314_vm0, %v790_v32  ;;  %v754_v54 = vmul.f32 %v5705_v14, %v716_v10  ;;  %v659_v55 = vadd.f32 1e-06, %v627_v39 }
 0x168   : > { %v5101_v8 = vpop.eup %5100  ;;  %v791_v16 = vadd.f32 %v5711_v0, %v753_v25  ;;  %v717_v58 = vmul.f32 %v5099_v51, %v5549_v29  ;;  %v660_v52 = vadd.f32 1e-06, %v628_v36  ;;  %v585_v17 = vpop.xlane.xlu1 %584  ;;  %4457 = vmatmul.mubr.msk.bf16.gmra.mrb[8].mxu1 %vm314_vm0, %v5808_v50  ;;  %4592 = vmatprep.mubr.msk.bf16.mxu0 %vm314_vm0, %v5808_v50 }
 0x169   : > { %v588_v53 = vpop.xlane.xlu0 %587  ;;  %v792_v26 = vadd.f32 %v5711_v0, %v754_v54  ;;  %v718_v43 = vmul.f32 %v5101_v8, %v5558_v31  ;;  %5110 = vrsqrt.f32 %v659_v55  ;;  %v629_v63 = vmul.f32 0.0625, %v585_v17  ;;  %v949_v61 = vld [vmem:[#allocation2 + $0x99] sm:$0xff] }
 0x16a   : > { %869 = vst.msk [vmem:[#allocation2 + $0xc9] sm:$0xff] %vm314_vm0, %v791_v16  ;;  %v755_v29 = vmul.f32 %v5705_v14, %v717_v58  ;;  %5112 = vrsqrt.f32 %v660_v52  ;;  %v630_v11 = vmul.f32 0.0625, %v588_v53  ;;  %v5822_v6 = vpack.c.bf16 %v949_v61, %v948_v4  ;;  %v950_v2 = vld [vmem:[#allocation2 + $0xa9] sm:$0xff] }
 0x16b   : > { %v5103_v12 = vpop.eup %5102  ;;  %870 = vst.msk [vmem:[#allocation2 + $0xd9] sm:$0xff] %vm314_vm0, %v792_v26  ;;  %v756_v7 = vmul.f32 %v5705_v14, %v718_v43  ;;  %v661_v28 = vadd.f32 1e-06, %v629_v63 }
 0x16c   : > { %v5105_v44 = vpop.eup %5104  ;;  %v793_v31 = vadd.f32 %v5711_v0, %v755_v29  ;;  %v719_v56 = vmul.f32 %v5103_v12, %v5561_v33  ;;  %v662_v18 = vadd.f32 1e-06, %v630_v11  ;;  %v591_v23 = vpop.xlane.xlu1 %590  ;;  %4460 = vmatprep.mubr.msk.bf16.mxu1 %vm314_vm0, %v5822_v6  ;;  %4593 = vmatmul.mubr.msk.bf16.gmra.mrb[8].mxu0 %vm314_vm0, %v5822_v6 }
 0x16d   : > { %v594_v21 = vpop.xlane.xlu0 %593  ;;  %v794_v27 = vadd.f32 %v5711_v0, %v756_v7  ;;  %v720_v30 = vmul.f32 %v5105_v44, %v5570_v47  ;;  %5114 = vrsqrt.f32 %v661_v28  ;;  %v631_v60 = vmul.f32 0.0625, %v591_v23  ;;  %v951_v34 = vld [vmem:[#allocation2 + $0xb1] sm:$0xff] }
 0x16e   : > { %871 = vst.msk [vmem:[#allocation2 + $0xe1] sm:$0xff] %vm314_vm0, %v793_v31  ;;  %v757_v33 = vmul.f32 %v5705_v14, %v719_v56  ;;  %5116 = vrsqrt.f32 %v662_v18  ;;  %v632_v59 = vmul.f32 0.0625, %v594_v21  ;;  %v5836_v35 = vpack.c.bf16 %v951_v34, %v950_v2  ;;  %v952_v54 = vld [vmem:[#allocation2 + $0xc1] sm:$0xff] }
 0x16f   : > { %v5107_v13 = vpop.eup %5106  ;;  %872 = vst.msk [vmem:[#allocation2 + $0xf1] sm:$0xff] %vm314_vm0, %v794_v27  ;;  %v758_v48 = vmul.f32 %v5705_v14, %v720_v30  ;;  %v663_v1 = vadd.f32 1e-06, %v631_v60 }
 0x170   : > { %v5109_v32 = vpop.eup %5108  ;;  %v795_v47 = vadd.f32 %v5711_v0, %v757_v33  ;;  %v721_v10 = vmul.f32 %v5107_v13, %v5573_v37  ;;  %v664_v39 = vadd.f32 1e-06, %v632_v59  ;;  %v597_v46 = vpop.xlane.xlu1 %596  ;;  %4461 = vmatmul.mubr.msk.bf16.gmra.mrb[12].mxu1 %vm314_vm0, %v5836_v35  ;;  %4596 = vmatprep.mubr.msk.bf16.mxu0 %vm314_vm0, %v5836_v35 }
 0x171   : > { %v600_v5 = vpop.xlane.xlu0 %599  ;;  %v796_v25 = vadd.f32 %v5711_v0, %v758_v48  ;;  %v722_v36 = vmul.f32 %v5109_v32, %v5620_v41  ;;  %5118 = vrsqrt.f32 %v663_v1  ;;  %v633_v51 = vmul.f32 0.0625, %v597_v46  ;;  %v953_v55 = vld [vmem:[#allocation2 + $0xc9] sm:$0xff] }
 0x172   : > { %873 = vst.msk [vmem:[#allocation2 + $0xf9] sm:$0xff] %vm314_vm0, %v795_v47  ;;  %v759_v37 = vmul.f32 %v5705_v14, %v721_v10  ;;  %5120 = vrsqrt.f32 %v664_v39  ;;  %v634_v8 = vmul.f32 0.0625, %v600_v5  ;;  %v5850_v16 = vpack.c.bf16 %v953_v55, %v952_v54  ;;  %v954_v11 = vld [vmem:[#allocation2 + $0xd9] sm:$0xff] }
 0x173   : > { %v5111_v58 = vpop.eup %5110  ;;  %874 = vst.msk [vmem:[#allocation2 + $0x109] sm:$0xff] %vm314_vm0, %v796_v25  ;;  %v760_v52 = vmul.f32 %v5705_v14, %v722_v36  ;;  %v665_v17 = vadd.f32 1e-06, %v633_v51 }
 0x174   : > { %v5113_v53 = vpop.eup %5112  ;;  %v797_v41 = vadd.f32 %v5711_v0, %v759_v37  ;;  %v723_v26 = vmul.f32 %v5111_v58, %v5623_v3  ;;  %v666_v43 = vadd.f32 1e-06, %v634_v8  ;;  %v603_v63 = vpop.xlane.xlu1 %602  ;;  %4464 = vmatprep.mubr.msk.bf16.mxu1 %vm314_vm0, %v5850_v16  ;;  %4597 = vmatmul.mubr.msk.bf16.gmra.mrb[12].mxu0 %vm314_vm0, %v5850_v16 }
 0x175   : > { %v798_v4 = vadd.f32 %v5711_v0, %v760_v52  ;;  %v724_v61 = vmul.f32 %v5113_v53, %v5634_v19  ;;  %5122 = vrsqrt.f32 %v665_v17  ;;  %v635_v29 = vmul.f32 0.0625, %v603_v63  ;;  %v955_v12 = vld [vmem:[#allocation2 + $0xe1] sm:$0xff] }
 0x176   : > { %875 = vst.msk [vmem:[#allocation2 + $0x111] sm:$0xff] %vm314_vm0, %v797_v41  ;;  %v761_v3 = vmul.f32 %v5705_v14, %v723_v26  ;;  %5124 = vrsqrt.f32 %v666_v43  ;;  %v5864_v7 = vpack.c.bf16 %v955_v12, %v954_v11  ;;  %v956_v27 = vld [vmem:[#allocation2 + $0xf1] sm:$0xff] }
 0x177   : > { %v5115_v28 = vpop.eup %5114  ;;  %876 = vst.msk [vmem:[#allocation2 + $0x121] sm:$0xff] %vm314_vm0, %v798_v4  ;;  %v762_v44 = vmul.f32 %v5705_v14, %v724_v61  ;;  %v667_v31 = vadd.f32 1e-06, %v635_v29  ;;  %v886_v61 = vld [vmem:[#allocation2] sm:$0xff] }
 0x178   : > { %v5117_v56 = vpop.eup %5116  ;;  %v799_v19 = vadd.f32 %v5711_v0, %v761_v3  ;;  %v725_v18 = vmul.f32 %v5115_v28, %v5637_v22  ;;  %4465 = vmatmul.mubr.msk.bf16.gmra.mrb[16].mxu1 %vm314_vm0, %v5864_v7  ;;  %4600 = vmatprep.mubr.msk.bf16.mxu0 %vm314_vm0, %v5864_v7  ;;  %v2311_v3 = vld [vmem:[#allocation2 + $0x1a] sm:$0xff]  ;;  %v2312_v28 = vld [vmem:[#allocation2 + $0x22] sm:$0xff] }
 0x179   : > { %v800_v23 = vadd.f32 %v5711_v0, %v762_v44  ;;  %v726_v21 = vmul.f32 %v5117_v56, %v5649_v42  ;;  %5126 = vrsqrt.f32 %v667_v31  ;;  %v957_v30 = vld [vmem:[#allocation2 + $0xf9] sm:$0xff] }
 0x17a   : > { %877 = vst.msk [vmem:[#allocation2 + $0x129] sm:$0xff] %vm314_vm0, %v799_v19  ;;  %v763_v60 = vmul.f32 %v5705_v14, %v725_v18  ;;  %v5878_v2 = vpack.c.bf16 %v957_v30, %v956_v27  ;;  %v958_v1 = vld [vmem:[#allocation2 + $0x109] sm:$0xff]  ;;  %v5943_v19 = vpack.c.bf16 %v2312_v28, %v2311_v3  ;;  %v889_v18 = vld [vmem:[#allocation2 + $0x20] sm:$0xff] }
 0x17b   : > { %v5119_v22 = vpop.eup %5118  ;;  %878 = vst.msk [vmem:[#allocation2 + $0x139] sm:$0xff] %vm314_vm0, %v800_v23  ;;  %v764_v34 = vmul.f32 %v5705_v14, %v726_v21  ;;  %v891_v23 = vld [vmem:[#allocation2 + $0x38] sm:$0xff]  ;;  %v890_v30 = vld [vmem:[#allocation2 + $0x30] sm:$0xff]  ;;  %v2325_v3 = vld [vmem:[#allocation2 + $0xc2] sm:$0xff] }
 0x17c   : > { %v5121_v33 = vpop.eup %5120  ;;  %v801_v59 = vadd.f32 %v5711_v0, %v763_v60  ;;  %v727_v13 = vmul.f32 %v5119_v22, %v5652_v20  ;;  %4468 = vmatprep.mubr.msk.bf16.mxu1 %vm314_vm0, %v5878_v2  ;;  %4601 = vmatmul.mubr.msk.bf16.gmra.mrb[16].mxu0 %vm314_vm0, %v5878_v2  ;;  %v888_v21 = vld [vmem:[#allocation2 + $0x18] sm:$0xff]  ;;  %v5956_v22 = vpack.c.bf16 %v891_v23, %v890_v30  ;;  %v2326_v28 = vld [vmem:[#allocation2 + $0xca] sm:$0xff] }
 0x17d   : > { %v802_v42 = vadd.f32 %v5711_v0, %v764_v34  ;;  %v728_v48 = vmul.f32 %v5121_v33, %v5665_v62  ;;  %v959_v32 = vld [vmem:[#allocation2 + $0x111] sm:$0xff]  ;;  %v5949_v27 = vpack.c.bf16 %v889_v18, %v888_v21  ;;  %v2314_v33 = vld [vmem:[#allocation2 + $0x3a] sm:$0xff]  ;;  %v6019_v18 = vpack.c.bf16 %v2326_v28, %v2325_v3 }
 0x17e   : > { %879 = vst.msk [vmem:[#allocation2 + $0x141] sm:$0xff] %vm314_vm0, %v801_v59  ;;  %v765_v47 = vmul.f32 %v5705_v14, %v727_v13  ;;  %v5892_v10 = vpack.c.bf16 %v959_v32, %v958_v1  ;;  %v960_v51 = vld [vmem:[#allocation2 + $0x121] sm:$0xff]  ;;  %v5954_v60 = vld [vmem:[%s6603_s3 + $0x18] sm:$0xff]   ;;  %v2315_v59 = vld [vmem:[#allocation2 + $0x4a] sm:$0xff] }
 0x17f   : > { %v5123_v39 = vpop.eup %5122  ;;  %880 = vst.msk [vmem:[#allocation2 + $0x151] sm:$0xff] %vm314_vm0, %v802_v42  ;;  %v766_v20 = vmul.f32 %v5705_v14, %v728_v48  ;;  %v2313_v34 = vld [vmem:[#allocation2 + $0x32] sm:$0xff]  ;;  %v905_v21 = vld [vmem:[#allocation2 + $0xe0] sm:$0xff] }
 0x180   : > { %v5125_v46 = vpop.eup %5124  ;;  %v803_v5 = vadd.f32 %v5711_v0, %v765_v47  ;;  %v729_v25 = vmul.f32 %v5123_v39, %v5668_v40  ;;  %4469 = vmatmul.mubr.msk.bf16.gmra.mrb[20].mxu1 %vm314_vm0, %v5892_v10  ;;  %4604 = vmatprep.mubr.msk.bf16.mxu0 %vm314_vm0, %v5892_v10  ;;  %v2316_v13 = vld [vmem:[#allocation2 + $0x52] sm:$0xff]  ;;  %v5963_v42 = vpack.c.bf16 %v2314_v33, %v2313_v34  ;;  %v895_v47 = vld [vmem:[#allocation2 + $0x68] sm:$0xff] }
 0x181   : > { %v804_v62 = vadd.f32 %v5711_v0, %v766_v20  ;;  %v730_v36 = vmul.f32 %v5125_v46, %v5677_v57  ;;  %v961_v54 = vld [vmem:[#allocation2 + $0x129] sm:$0xff]  ;;  %v5968_v48 = vld [vmem:[%s6603_s3 + $0x38] sm:$0xff]   ;;  %v5971_v1 = vpack.c.bf16 %v2316_v13, %v2315_v59  ;;  %v894_v20 = vld [vmem:[#allocation2 + $0x60] sm:$0xff] }
 0x182   : > { %881 = vst.msk [vmem:[#allocation2 + $0x159] sm:$0xff] %vm314_vm0, %v803_v5  ;;  %v767_v55 = vmul.f32 %v5705_v14, %v729_v25  ;;  %v5906_v37 = vpack.c.bf16 %v961_v54, %v960_v51  ;;  %v962_v17 = vld [vmem:[#allocation2 + $0x139] sm:$0xff]  ;;  %v893_v32 = vld [vmem:[#allocation2 + $0x50] sm:$0xff]  ;;  %v5981_v46 = vpack.c.bf16 %v895_v47, %v894_v20  ;;  %v2317_v5 = vld [vmem:[#allocation2 + $0x62] sm:$0xff] }
 0x183   : > { %v5127_v8 = vpop.eup %5126  ;;  %882 = vst.msk [vmem:[#allocation2 + $0x169] sm:$0xff] %vm314_vm0, %v804_v62  ;;  %v768_v40 = vmul.f32 %v5705_v14, %v730_v36  ;;  %v2318_v25 = vld [vmem:[#allocation2 + $0x6a] sm:$0xff]  ;;  %v2319_v62 = vld [vmem:[#allocation2 + $0x7a] sm:$0xff]  ;;  %v2320_v36 = vld [vmem:[#allocation2 + $0x82] sm:$0xff] }
 0x184   : > { %v805_v58 = vadd.f32 %v5711_v0, %v767_v55  ;;  %v731_v52 = vmul.f32 %v5127_v8, %v5680_v45  ;;  %4472 = vmatprep.mubr.msk.bf16.mxu1 %vm314_vm0, %v5906_v37  ;;  %4605 = vmatmul.mubr.msk.bf16.gmra.mrb[20].mxu0 %vm314_vm0, %v5906_v37  ;;  %v5989_v51 = vpack.c.bf16 %v2320_v36, %v2319_v62  ;;  %v897_v54 = vld [vmem:[#allocation2 + $0x80] sm:$0xff]  ;;  %v899_v55 = vld [vmem:[#allocation2 + $0x98] sm:$0xff]  ;;  %v906_v59 = vld [vmem:[#allocation2 + $0xf0] sm:$0xff] }
 0x185   : > { %v806_v57 = vadd.f32 %v5711_v0, %v768_v40  ;;  %v963_v53 = vld [vmem:[#allocation2 + $0x141] sm:$0xff]  ;;  %v896_v8 = vld [vmem:[#allocation2 + $0x78] sm:$0xff]  ;;  %v909_v62 = vld [vmem:[#allocation2 + $0x110] sm:$0xff] }
 0x186   : > { %883 = vst.msk [vmem:[#allocation2 + $0x171] sm:$0xff] %vm314_vm0, %v805_v58  ;;  %v769_v41 = vmul.f32 %v5705_v14, %v731_v52  ;;  %v5919_v26 = vpack.c.bf16 %v963_v53, %v962_v17  ;;  %v964_v43 = vld [vmem:[#allocation2 + $0x151] sm:$0xff]  ;;  %v887_v14 = vld [vmem:[#allocation2 + $0x8] sm:$0xff]  ;;  %v5995_v40 = vpack.c.bf16 %v897_v54, %v896_v8  ;;  %v2322_v17 = vld [vmem:[#allocation2 + $0x9a] sm:$0xff] }
 0x187   : > { %884 = vst.msk [vmem:[#allocation2 + $0x181] sm:$0xff] %vm314_vm0, %v806_v57  ;;  %v918_v11 = vpack.c.bf16 %v887_v14, %v886_v61  ;;  %v898_v58 = vld [vmem:[#allocation2 + $0x90] sm:$0xff]  ;;  %v903_v61 = vld [vmem:[#allocation2 + $0xc8] sm:$0xff]  ;;  %v907_v30 = vld [vmem:[#allocation2 + $0xf8] sm:$0xff] }
 0x188   : > { %v807_v45 = vadd.f32 %v5711_v0, %v769_v41  ;;  %4473 = vmatmul.mubr.msk.bf16.gmra.mrb[24].mxu1 %vm314_vm0, %v5919_v26  ;;  %4608 = vmatprep.mubr.msk.bf16.mxu0 %vm314_vm0, %v5919_v26  ;;  %v5997_v52 = vpack.c.bf16 %v899_v55, %v898_v58  ;;  %v2321_v57 = vld [vmem:[#allocation2 + $0x92] sm:$0xff]  ;;  %v2323_v53 = vld [vmem:[#allocation2 + $0xaa] sm:$0xff]  ;;  %v6029_v13 = vpack.c.bf16 %v907_v30, %v906_v59  ;;  %v2330_v47 = vld [vmem:[#allocation2 + $0xfa] sm:$0xff] }
 0x189   : > { %v965_v63 = vld [vmem:[#allocation2 + $0x159] sm:$0xff]  ;;  %v900_v14 = vld [vmem:[#allocation2 + $0xa8] sm:$0xff] }
 0x18a   : > { %885 = vst.msk [vmem:[#allocation2 + $0x189] sm:$0xff] %vm314_vm0, %v807_v45  ;;  %v5928_v4 = vpack.c.bf16 %v965_v63, %v964_v43  ;;  %v966_v0 = vld [vmem:[#allocation2 + $0x169] sm:$0xff]  ;;  %v2324_v41 = vld [vmem:[#allocation2 + $0xb2] sm:$0xff]  ;;  %v6003_v45 = vpack.c.bf16 %v2322_v17, %v2321_v57  ;;  %v910_v8 = vld [vmem:[#allocation2 + $0x120] sm:$0xff] }
 0x18b   : > { %v6005_v43 = vpack.c.bf16 %v2324_v41, %v2323_v53  ;;  %v901_v63 = vld [vmem:[#allocation2 + $0xb0] sm:$0xff]  ;;  %v904_v34 = vld [vmem:[#allocation2 + $0xd8] sm:$0xff]  ;;  %v911_v36 = vld [vmem:[#allocation2 + $0x128] sm:$0xff] }
 0x18c   : > { %4476 = vmatprep.mubr.msk.bf16.mxu1 %vm314_vm0, %v5928_v4  ;;  %4609 = vmatmul.mubr.msk.bf16.gmra.mrb[24].mxu0 %vm314_vm0, %v5928_v4  ;;  %v6027_v33 = vpack.c.bf16 %v905_v21, %v904_v34  ;;  %v2332_v20 = vld [vmem:[#allocation2 + $0x112] sm:$0xff]  ;;  %v908_v54 = vld [vmem:[#allocation2 + $0x108] sm:$0xff]  ;;  %v6045_v58 = vpack.c.bf16 %v911_v36, %v910_v8  ;;  %v2335_v53 = vld [vmem:[#allocation2 + $0x13a] sm:$0xff] }
 0x18d   : > { %v967_v29 = vld [vmem:[#allocation2 + $0x171] sm:$0xff]  ;;  %v6043_v55 = vpack.c.bf16 %v909_v62, %v908_v54  ;;  %v2333_v57 = vld [vmem:[#allocation2 + $0x122] sm:$0xff]  ;;  %v2338_v30 = vld [vmem:[#allocation2 + $0x15a] sm:$0xff] }
 0x18e   : > { %v5934_v12 = vpack.c.bf16 %v967_v29, %v966_v0  ;;  %v2043_v44 = vld [vmem:[#allocation2 + $0x181] sm:$0xff]  ;;  %v6011_v0 = vpack.c.bf16 %v901_v63, %v900_v14  ;;  %v2334_v17 = vld [vmem:[#allocation2 + $0x12a] sm:$0xff]  ;;  %v912_v3 = vld [vmem:[#allocation2 + $0x138] sm:$0xff] }
 0x18f   : > { %v902_v29 = vld [vmem:[#allocation2 + $0xc0] sm:$0xff]  ;;  %v6051_v63 = vpack.c.bf16 %v2334_v17, %v2333_v57  ;;  %v2337_v21 = vld [vmem:[#allocation2 + $0x152] sm:$0xff]  ;;  %v2339_v34 = vld [vmem:[#allocation2 + $0x16a] sm:$0xff] }
 0x190   : > { %4477 = vmatmul.mubr.msk.bf16.gmra.mrb[28].mxu1 %vm314_vm0, %v5934_v12  ;;  %4612 = vmatprep.mubr.msk.bf16.mxu0 %vm314_vm0, %v5934_v12  ;;  %v2336_v41 = vld [vmem:[#allocation2 + $0x142] sm:$0xff]  ;;  %v2340_v59 = vld [vmem:[#allocation2 + $0x172] sm:$0xff] }
 0x191   : > { %v2044_v31 = vld [vmem:[#allocation2 + $0x189] sm:$0xff]  ;;  %4482 = vmatprep.mubr.msk.bf16.mxu1 %vm314_vm0, %v918_v11  ;;  %v6013_v11 = vpack.c.bf16 %v903_v61, %v902_v29  ;;  %v6053_v61 = vpack.c.bf16 %v2336_v41, %v2335_v53  ;;  %v913_v14 = vld [vmem:[#allocation2 + $0x140] sm:$0xff]  ;;  %v915_v29 = vld [vmem:[#allocation2 + $0x158] sm:$0xff] }
 0x192   : > { %v5941_v56 = vpack.c.bf16 %v2044_v31, %v2043_v44  ;;  %v2327_v44 = vld [vmem:[#allocation2 + $0xda] sm:$0xff]  ;;  %v2328_v31 = vld [vmem:[#allocation2 + $0xe2] sm:$0xff]  ;;  %v6059_v28 = vpack.c.bf16 %v913_v14, %v912_v3  ;;  %v917_v62 = vld [vmem:[#allocation2 + $0x170] sm:$0xff] }
 0x193   : > { %v6021_v23 = vpack.c.bf16 %v2328_v31, %v2327_v44  ;;  %v914_v44 = vld [vmem:[#allocation2 + $0x150] sm:$0xff]  ;;  %v916_v36 = vld [vmem:[#allocation2 + $0x168] sm:$0xff]  ;;  %v5061_v41 = vld [vmem:[%s6603_s3 + $0x40] sm:$0xff]  }
 0x194   : > { %4613 = vmatmul.mubr.msk.bf16.gmra.mrb[28].mxu0 %vm314_vm0, %v5941_v56  ;;  %v6061_v31 = vpack.c.bf16 %v915_v29, %v914_v44  ;;  %v6075_v8 = vpack.c.bf16 %v917_v62, %v916_v36  ;;  %v2341_v57 = vld [vmem:[#allocation2 + $0x182] sm:$0xff]  ;;  %v2342_v17 = vld [vmem:[#allocation2 + $0x18a] sm:$0xff]  ;;  %v2640_v14 = vld [vmem:[#allocation2 + $0x198] sm:$0xff] }
 0x195   : > { %4618 = vmatprep.mubr.msk.bf16.mxu0 %vm314_vm0, %v5943_v19  ;;  %v6080_v53 = vpack.c.bf16 %v2342_v17, %v2341_v57  ;;  %v2641_v29 = vld [vmem:[#allocation2 + $0x1a0] sm:$0xff] }
 0x196   : > { %v2657_v3 = vpack.c.bf16 %v2641_v29, %v2640_v14 }
 0x198   : > { %4483 = vmatmul.mubr.msk.bf16.vlgmr.msra.gmra.mrb[0].mxu1 %vm314_vm0, %v5949_v27 }
 0x199   : > { %4486 = vmatprep.mubr.msk.bf16.mxu1 %vm314_vm0, %v5956_v22  ;;  %4515 = vmatpush3.bf16.msra.mxu1 %v5745_v9  ;;  %v892_v9 = vld [vmem:[#allocation2 + $0x48] sm:$0xff] }
 0x19a   : > { %4548 = vmatprep.subr.bf16.mxu1 %v5954_v60  ;;  %v5978_v39 = vpack.c.bf16 %v893_v32, %v892_v9  ;;  %v2329_v32 = vld [vmem:[#allocation2 + $0xf2] sm:$0xff]  ;;  %v2331_v9 = vld [vmem:[#allocation2 + $0x10a] sm:$0xff] }
 0x19c   : > { %4619 = vmatmul.mubr.msk.bf16.vlgmr.msra.gmra.mrb[0].mxu0 %vm314_vm0, %v5963_v42 }
 0x19d   : > { %4651 = vmatpush3.bf16.msra.mxu0 %v5763_v38  ;;  %4622 = vmatprep.mubr.msk.bf16.mxu0 %vm314_vm0, %v5971_v1  ;;  %v5987_v38 = vpack.c.bf16 %v2318_v25, %v2317_v5  ;;  %v6035_v5 = vpack.c.bf16 %v2330_v47, %v2329_v32  ;;  %v6037_v25 = vpack.c.bf16 %v2332_v20, %v2331_v9  ;;  %v1417_v47 = vld [vmem:[#allocation2 + $0x2] sm:$0xff]  ;;  %v1418_v9 = vld [vmem:[#allocation2 + $0xa] sm:$0xff] }
 0x19e   : > { %4684 = vmatprep.subr.bf16.mxu0 %v5968_v48  ;;  %v6067_v32 = vpack.c.bf16 %v2338_v30, %v2337_v21  ;;  %v6069_v20 = vpack.c.bf16 %v2340_v59, %v2339_v34  ;;  %v1449_v54 = vpack.c.bf16 %v1418_v9, %v1417_v47 }
 0x1a0   : > { %4487 = vmatmul.mubr.msk.bf16.gmra.mrb[4].mxu1 %vm314_vm0, %v5978_v39 }
 0x1a1   : > { %4490 = vmatprep.mubr.msk.bf16.mxu1 %vm314_vm0, %v5981_v46 }
 0x1a4   : > { %4623 = vmatmul.mubr.msk.bf16.gmra.mrb[4].mxu0 %vm314_vm0, %v5987_v38 }
 0x1a5   : > { %4626 = vmatprep.mubr.msk.bf16.mxu0 %vm314_vm0, %v5989_v51 }
 0x1a8   : > { %4491 = vmatmul.mubr.msk.bf16.gmra.mrb[8].mxu1 %vm314_vm0, %v5995_v40 }
 0x1a9   : > { %4494 = vmatprep.mubr.msk.bf16.mxu1 %vm314_vm0, %v5997_v52 }
 0x1ac   : > { %4627 = vmatmul.mubr.msk.bf16.gmra.mrb[8].mxu0 %vm314_vm0, %v6003_v45 }
 0x1ad   : > { %4630 = vmatprep.mubr.msk.bf16.mxu0 %vm314_vm0, %v6005_v43 }
 0x1b0   : > { %4495 = vmatmul.mubr.msk.bf16.gmra.mrb[12].mxu1 %vm314_vm0, %v6011_v0 }
 0x1b1   : > { %4498 = vmatprep.mubr.msk.bf16.mxu1 %vm314_vm0, %v6013_v11 }
 0x1b4   : > { %4631 = vmatmul.mubr.msk.bf16.gmra.mrb[12].mxu0 %vm314_vm0, %v6019_v18 }
 0x1b5   : > { %4634 = vmatprep.mubr.msk.bf16.mxu0 %vm314_vm0, %v6021_v23 }
 0x1b8   : > { %4499 = vmatmul.mubr.msk.bf16.gmra.mrb[16].mxu1 %vm314_vm0, %v6027_v33 }
 0x1b9   : > { %4502 = vmatprep.mubr.msk.bf16.mxu1 %vm314_vm0, %v6029_v13 }
 0x1bc   : > { %4635 = vmatmul.mubr.msk.bf16.gmra.mrb[16].mxu0 %vm314_vm0, %v6035_v5 }
 0x1bd   : > { %4638 = vmatprep.mubr.msk.bf16.mxu0 %vm314_vm0, %v6037_v25 }
 0x1c0   : > { %4503 = vmatmul.mubr.msk.bf16.gmra.mrb[20].mxu1 %vm314_vm0, %v6043_v55 }
 0x1c1   : > { %4506 = vmatprep.mubr.msk.bf16.mxu1 %vm314_vm0, %v6045_v58 }
 0x1c4   : > { %4639 = vmatmul.mubr.msk.bf16.gmra.mrb[20].mxu0 %vm314_vm0, %v6051_v63 }
 0x1c5   : > { %4642 = vmatprep.mubr.msk.bf16.mxu0 %vm314_vm0, %v6053_v61 }
 0x1c8   : > { %4507 = vmatmul.mubr.msk.bf16.gmra.mrb[24].mxu1 %vm314_vm0, %v6059_v28 }
 0x1c9   : > { %4510 = vmatprep.mubr.msk.bf16.mxu1 %vm314_vm0, %v6061_v31 }
 0x1cc   : > { %4643 = vmatmul.mubr.msk.bf16.gmra.mrb[24].mxu0 %vm314_vm0, %v6067_v32 }
 0x1cd   : > { %4646 = vmatprep.mubr.msk.bf16.mxu0 %vm314_vm0, %v6069_v20 }
 0x1d0   : > { %4511 = vmatmul.mubr.msk.bf16.gmra.mrb[28].mxu1 %vm314_vm0, %v6075_v8 }
 0x1d1   : > { %4516 = vmatprep.mubr.msk.bf16.mxu1 %vm314_vm0, %v1449_v54 }
 0x1d4   : > { %4647 = vmatmul.mubr.msk.bf16.gmra.mrb[28].mxu0 %vm314_vm0, %v6080_v53 }
 0x1d5   : > { %4652 = vmatprep.mubr.msk.bf16.mxu0 %vm314_vm0, %v5956_v22 }
 0x1d8   : > { %4517 = vmatmul.mubr.msk.bf16.vlgmr.msra.gmra.mrb[0].mxu1 %vm314_vm0, %v5943_v19  ;;  %v2639_v19 = vld [vmem:[#allocation2 + $0x188] sm:$0xff] }
 0x1d9   : > { %4520 = vmatprep.mubr.msk.bf16.mxu1 %vm314_vm0, %v5963_v42  ;;  %4549 = vmatpush3.bf16.msra.mxu1 %v5954_v60  ;;  %v2638_v60 = vld [vmem:[#allocation2 + $0x180] sm:$0xff] }
 0x1dc   : > { %4653 = vmatmul.mubr.msk.bf16.vlgmr.msra.gmra.mrb[0].mxu0 %vm314_vm0, %v5978_v39 }
 0x1dd   : > { %4685 = vmatpush3.bf16.msra.mxu0 %v5968_v48  ;;  %4656 = vmatprep.mubr.msk.bf16.mxu0 %vm314_vm0, %v5981_v46  ;;  %v2656_v48 = vpack.c.bf16 %v2639_v19, %v2638_v60 }
 0x1de   : > { %4718 = vmatprep.subr.bf16.mxu0 %v5061_v41 }
 0x1e0   : > { %4521 = vmatmul.mubr.msk.bf16.gmra.mrb[4].mxu1 %vm314_vm0, %v5971_v1 }
 0x1e1   : > { %4524 = vmatprep.mubr.msk.bf16.mxu1 %vm314_vm0, %v5987_v38 }
 0x1e4   : > { %4657 = vmatmul.mubr.msk.bf16.gmra.mrb[4].mxu0 %vm314_vm0, %v5995_v40 }
 0x1e5   : > { %4660 = vmatprep.mubr.msk.bf16.mxu0 %vm314_vm0, %v5997_v52 }
 0x1e8   : > { %4525 = vmatmul.mubr.msk.bf16.gmra.mrb[8].mxu1 %vm314_vm0, %v5989_v51 }
 0x1e9   : > { %4528 = vmatprep.mubr.msk.bf16.mxu1 %vm314_vm0, %v6003_v45 }
 0x1ec   : > { %4661 = vmatmul.mubr.msk.bf16.gmra.mrb[8].mxu0 %vm314_vm0, %v6011_v0 }
 0x1ed   : > { %4664 = vmatprep.mubr.msk.bf16.mxu0 %vm314_vm0, %v6013_v11 }
 0x1f0   : > { %4529 = vmatmul.mubr.msk.bf16.gmra.mrb[12].mxu1 %vm314_vm0, %v6005_v43 }
 0x1f1   : > { %4532 = vmatprep.mubr.msk.bf16.mxu1 %vm314_vm0, %v6019_v18 }
 0x1f4   : > { %4665 = vmatmul.mubr.msk.bf16.gmra.mrb[12].mxu0 %vm314_vm0, %v6027_v33 }
 0x1f5   : > { %4668 = vmatprep.mubr.msk.bf16.mxu0 %vm314_vm0, %v6029_v13 }
 0x1f8   : > { %4533 = vmatmul.mubr.msk.bf16.gmra.mrb[16].mxu1 %vm314_vm0, %v6021_v23 }
 0x1f9   : > { %4536 = vmatprep.mubr.msk.bf16.mxu1 %vm314_vm0, %v6035_v5 }
 0x1fc   : > { %4669 = vmatmul.mubr.msk.bf16.gmra.mrb[16].mxu0 %vm314_vm0, %v6043_v55 }
 0x1fd   : > { %4672 = vmatprep.mubr.msk.bf16.mxu0 %vm314_vm0, %v6045_v58 }
 0x200   : > { %4537 = vmatmul.mubr.msk.bf16.gmra.mrb[20].mxu1 %vm314_vm0, %v6037_v25 }
 0x201   : > { %4540 = vmatprep.mubr.msk.bf16.mxu1 %vm314_vm0, %v6051_v63 }
 0x204   : > { %4673 = vmatmul.mubr.msk.bf16.gmra.mrb[20].mxu0 %vm314_vm0, %v6059_v28 }
 0x205   : > { %4676 = vmatprep.mubr.msk.bf16.mxu0 %vm314_vm0, %v6061_v31 }
 0x208   : > { %4541 = vmatmul.mubr.msk.bf16.gmra.mrb[24].mxu1 %vm314_vm0, %v6053_v61 }
 0x209   : > { %4544 = vmatprep.mubr.msk.bf16.mxu1 %vm314_vm0, %v6067_v32 }
 0x20c   : > { %4677 = vmatmul.mubr.msk.bf16.gmra.mrb[24].mxu0 %vm314_vm0, %v6075_v8 }
 0x20d   : > { %4680 = vmatprep.mubr.msk.bf16.mxu0 %vm314_vm0, %v2656_v48 }
 0x210   : > { %4545 = vmatmul.mubr.msk.bf16.gmra.mrb[28].mxu1 %vm314_vm0, %v6069_v20 }
 0x211   : > { %4550 = vmatprep.mubr.msk.bf16.mxu1 %vm314_vm0, %v5949_v27 }
 0x214   : > { %4681 = vmatmul.mubr.msk.bf16.gmra.mrb[28].mxu0 %vm314_vm0, %v2657_v3 }
 0x215   : > { %4686 = vmatprep.mubr.msk.bf16.mxu0 %vm314_vm0, %v5758_v49  ;;  %v2938_v49 = vld [vmem:[#allocation2 + $0x199] sm:$0xff] }
 0x218   : > { %4551 = vmatmul.mubr.msk.bf16.vlgmr.msra.gmra.mrb[0].mxu1 %vm314_vm0, %v5956_v22 }
 0x219   : > { %4554 = vmatprep.mubr.msk.bf16.mxu1 %vm314_vm0, %v5978_v39 }
 0x21c   : > { %4687 = vmatmul.mubr.msk.bf16.vlgmr.msra.gmra.mrb[0].mxu0 %vm314_vm0, %v5779_v24  ;;  %v2939_v24 = vld [vmem:[#allocation2 + $0x1a1] sm:$0xff] }
 0x21d   : > { %4719 = vmatpush3.bf16.msra.mxu0 %v5061_v41  ;;  %4690 = vmatprep.mubr.msk.bf16.mxu0 %vm314_vm0, %v5794_v15  ;;  %v2955_v15 = vpack.c.bf16 %v2939_v24, %v2938_v49 }
 0x220   : > { %4555 = vmatmul.mubr.msk.bf16.gmra.mrb[4].mxu1 %vm314_vm0, %v5981_v46 }
 0x221   : > { %4558 = vmatprep.mubr.msk.bf16.mxu1 %vm314_vm0, %v5995_v40 }
 0x224   : > { %4691 = vmatmul.mubr.msk.bf16.gmra.mrb[4].mxu0 %vm314_vm0, %v5808_v50  ;;  %v5062_v50 = vld [vmem:[%s6605_s5] sm:$0xff]  }
 0x225   : > { %4694 = vmatprep.mubr.msk.bf16.mxu0 %vm314_vm0, %v5822_v6  ;;  %4752 = vmatprep.subr.bf16.mxu1 %v5062_v50  ;;  %v3236_v6 = vld [vmem:[#allocation2 + $0x19a] sm:$0xff] }
 0x226   : > { %4753 = vmatpush3.bf16.msra.mxu1 %v5062_v50 }
 0x228   : > { %4559 = vmatmul.mubr.msk.bf16.gmra.mrb[8].mxu1 %vm314_vm0, %v5997_v52 }
 0x229   : > { %4562 = vmatprep.mubr.msk.bf16.mxu1 %vm314_vm0, %v6011_v0 }
 0x22c   : > { %4695 = vmatmul.mubr.msk.bf16.gmra.mrb[8].mxu0 %vm314_vm0, %v5836_v35  ;;  %v3237_v35 = vld [vmem:[#allocation2 + $0x1a2] sm:$0xff] }
 0x22d   : > { %4698 = vmatprep.mubr.msk.bf16.mxu0 %vm314_vm0, %v5850_v16  ;;  %v3253_v16 = vpack.c.bf16 %v3237_v35, %v3236_v6 }
 0x230   : > { %4563 = vmatmul.mubr.msk.bf16.gmra.mrb[12].mxu1 %vm314_vm0, %v6013_v11 }
 0x231   : > { %4566 = vmatprep.mubr.msk.bf16.mxu1 %vm314_vm0, %v6027_v33 }
 0x234   : > { %4699 = vmatmul.mubr.msk.bf16.gmra.mrb[12].mxu0 %vm314_vm0, %v5864_v7  ;;  %v5063_v7 = vld [vmem:[%s6605_s5 + $0x8] sm:$0xff]  }
 0x235   : > { %4702 = vmatprep.mubr.msk.bf16.mxu0 %vm314_vm0, %v5878_v2  ;;  %4754 = vmatprep.subr.bf16.mxu1 %v5063_v7 }
 0x236   : > { %4755 = vmatpush3.bf16.msra.mxu1 %v5063_v7 }
 0x238   : > { %4567 = vmatmul.mubr.msk.bf16.gmra.mrb[16].mxu1 %vm314_vm0, %v6029_v13 }
 0x239   : > { %4570 = vmatprep.mubr.msk.bf16.mxu1 %vm314_vm0, %v6043_v55 }
 0x23c   : > { %4703 = vmatmul.mubr.msk.bf16.gmra.mrb[16].mxu0 %vm314_vm0, %v5892_v10 }
 0x23d   : > { %4706 = vmatprep.mubr.msk.bf16.mxu0 %vm314_vm0, %v5906_v37 }
 0x240   : > { %4571 = vmatmul.mubr.msk.bf16.gmra.mrb[20].mxu1 %vm314_vm0, %v6045_v58 }
 0x241   : > { %4574 = vmatprep.mubr.msk.bf16.mxu1 %vm314_vm0, %v6059_v28 }
 0x244   : > { %4707 = vmatmul.mubr.msk.bf16.gmra.mrb[20].mxu0 %vm314_vm0, %v5919_v26 }
 0x245   : > { %4710 = vmatprep.mubr.msk.bf16.mxu0 %vm314_vm0, %v5928_v4 }
 0x248   : > { %4575 = vmatmul.mubr.msk.bf16.gmra.mrb[24].mxu1 %vm314_vm0, %v6061_v31  ;;  %v6299_v31 = vld [vmem:[%s6604_s4] ss:$0 sm:$0xff] }
 0x249   : > { %4578 = vmatprep.mubr.msk.bf16.mxu1 %vm314_vm0, %v6075_v8 }
 0x24c   : > { %4711 = vmatmul.mubr.msk.bf16.gmra.mrb[24].mxu0 %vm314_vm0, %v5934_v12 }
 0x24d   : > { %4714 = vmatprep.mubr.msk.bf16.mxu0 %vm314_vm0, %v5941_v56 }
 0x250   : > { %4579 = vmatmul.mubr.msk.bf16.gmra.mrb[28].mxu1 %vm314_vm0, %v2656_v48 }
 0x254   : > { %4715 = vmatmul.mubr.msk.bf16.gmra.mrb[28].mxu0 %vm314_vm0, %v2955_v15 }
 0x255   : > { %4720 = vmatprep.mubr.msk.bf16.mxu0 %vm314_vm0, %v5963_v42 }
 0x25c   : > { %4721 = vmatmul.mubr.msk.bf16.vlgmr.msra.gmra.mrb[0].mxu0 %vm314_vm0, %v5971_v1 }
 0x25d   : > { %4724 = vmatprep.mubr.msk.bf16.mxu0 %vm314_vm0, %v5987_v38 }
 0x264   : > { %4725 = vmatmul.mubr.msk.bf16.gmra.mrb[4].mxu0 %vm314_vm0, %v5989_v51 }
 0x265   : > { %4728 = vmatprep.mubr.msk.bf16.mxu0 %vm314_vm0, %v6003_v45 }
 0x26c   : > { %4729 = vmatmul.mubr.msk.bf16.gmra.mrb[8].mxu0 %vm314_vm0, %v6005_v43 }
 0x26d   : > { %4732 = vmatprep.mubr.msk.bf16.mxu0 %vm314_vm0, %v6019_v18 }
 0x274   : > { %4733 = vmatmul.mubr.msk.bf16.gmra.mrb[12].mxu0 %vm314_vm0, %v6021_v23 }
 0x275   : > { %4736 = vmatprep.mubr.msk.bf16.mxu0 %vm314_vm0, %v6035_v5 }
 0x27c   : > { %4737 = vmatmul.mubr.msk.bf16.gmra.mrb[16].mxu0 %vm314_vm0, %v6037_v25 }
 0x27d   : > { %4740 = vmatprep.mubr.msk.bf16.mxu0 %vm314_vm0, %v6051_v63 }
 0x284   : > { %4741 = vmatmul.mubr.msk.bf16.gmra.mrb[20].mxu0 %vm314_vm0, %v6053_v61 }
 0x285   : > { %4744 = vmatprep.mubr.msk.bf16.mxu0 %vm314_vm0, %v6067_v32 }
 0x28c   : > { %4745 = vmatmul.mubr.msk.bf16.gmra.mrb[24].mxu0 %vm314_vm0, %v6069_v20 }
 0x28d   : > { %4748 = vmatprep.mubr.msk.bf16.mxu0 %vm314_vm0, %v6080_v53 }
 0x294   : > { %4749 = vmatmul.mubr.msk.bf16.gmra.mrb[28].mxu0 %vm314_vm0, %v3253_v16 }
 0x2eb   : > { %v4552_v2 = vpop.f32.mrb[0].mxu1 }
 0x2ec   : > { %v1854_v10 = vpop.f32.mrb[1].mxu1 }
 0x2ed   : > { %v4553_v37 = vpop.f32.mrb[2].mxu1 }
 0x2ee   : > { %v1857_v26 = vpop.f32.mrb[3].mxu1 }
 0x2f3   : > { %v4556_v4 = vpop.f32.mrb[4].mxu1 }
 0x2f4   : > { %v1870_v12 = vpop.f32.mrb[5].mxu1 }
 0x2f5   : > { %v4557_v56 = vpop.f32.mrb[6].mxu1 }
 0x2f6   : > { %v1873_v27 = vpop.f32.mrb[7].mxu1 }
 0x2fb   : > { %v6248_v22 = vpop.f32.mrb[8].mxu1 }
 0x2fc   : > { %v6250_v42 = vpop.f32.mrb[9].mxu1 }
 0x2fd   : > { %v6252_v1 = vpop.f32.mrb[10].mxu1 }
 0x2fe   : > { %v6254_v39 = vpop.f32.mrb[11].mxu1 }
 0x303   : > { %v6256_v46 = vpop.f32.mrb[12].mxu1 }
 0x304   : > { %v6258_v38 = vpop.f32.mrb[13].mxu1 }
 0x305   : > { %v6260_v51 = vpop.f32.mrb[14].mxu1 }
 0x306   : > { %v6262_v40 = vpop.f32.mrb[15].mxu1 }
 0x30b   : > { %v6264_v52 = vpop.f32.mrb[16].mxu1 }
 0x30c   : > { %v6266_v45 = vpop.f32.mrb[17].mxu1 }
 0x30d   : > { %v6268_v43 = vpop.f32.mrb[18].mxu1 }
 0x30e   : > { %v6270_v0 = vpop.f32.mrb[19].mxu1 }
 0x313   : > { %v6272_v11 = vpop.f32.mrb[20].mxu1 }
 0x314   : > { %v6274_v18 = vpop.f32.mrb[21].mxu1 }
 0x315   : > { %v6276_v23 = vpop.f32.mrb[22].mxu1 }
 0x316   : > { %v6278_v33 = vpop.f32.mrb[23].mxu1 }
 0x31b   : > { %v6280_v13 = vpop.f32.mrb[24].mxu1 }
 0x31c   : > { %v6282_v5 = vpop.f32.mrb[25].mxu1 }
 0x31d   : > { %v6284_v25 = vpop.f32.mrb[26].mxu1 }
 0x31e   : > { %v6286_v55 = vpop.f32.mrb[27].mxu1 }
 0x323   : > { %v6288_v58 = vpop.f32.mrb[28].mxu1 }
 0x324   : > { %v6290_v63 = vpop.f32.mrb[29].mxu1 }
 0x325   : > { %v6292_v61 = vpop.f32.mrb[30].mxu1 }
 0x326   : > { %v6294_v28 = vpop.f32.mrb[31].mxu1 }
 0x32f   : > { %v4722_v44 = vpop.f32.mrb[0].mxu0 }
 0x330   : > { %v4788_v21 = vadd.f32 %v4722_v44, %v4552_v2  ;;  %v3345_v30 = vpop.f32.mrb[1].mxu0 }
 0x331   : > { %v4789_v34 = vadd.f32 %v3345_v30, %v1854_v10  ;;  %v4723_v59 = vpop.f32.mrb[2].mxu0 }
 0x332   : > { %v3513_v32 = vadd.f32 %v4788_v21, %v6299_v31  ;;  %v4790_v47 = vadd.f32 %v4723_v59, %v4553_v37  ;;  %v3348_v9 = vpop.f32.mrb[3].mxu0 }
 0x333   : > { %v3511_v20 = vadd.f32 %v4789_v34, %v6299_v31  ;;  %v4791_v62 = vadd.f32 %v3348_v9, %v1857_v26 }
 0x334   : > { %v3577_v36 = vmul.f32 0.70710677, %v3513_v32  ;;  %v3514_v54 = vadd.f32 %v4790_v47, %v6299_v31  ;;  %v3545_v30 = vmul.f32 0.5, %v3513_v32 }
 0x335   : > { %v3575_v8 = vmul.f32 0.70710677, %v3511_v20  ;;  %v3512_v57 = vadd.f32 %v4791_v62, %v6299_v31 }
 0x336   : > { %5128 = verf.f32 %v3577_v36  ;;  %v3578_v17 = vmul.f32 0.70710677, %v3514_v54  ;;  %v3546_v36 = vmul.f32 0.5, %v3514_v54 }
 0x337   : > { %5130 = verf.f32 %v3575_v8  ;;  %v3576_v53 = vmul.f32 0.70710677, %v3512_v57  ;;  %v4726_v41 = vpop.f32.mrb[4].mxu0 }
 0x338   : > { %5132 = verf.f32 %v3578_v17  ;;  %v4792_v19 = vadd.f32 %v4726_v41, %v4556_v4  ;;  %v3361_v60 = vpop.f32.mrb[5].mxu0 }
 0x339   : > { %5134 = verf.f32 %v3576_v53  ;;  %v4793_v48 = vadd.f32 %v3361_v60, %v1870_v12  ;;  %v4727_v14 = vpop.f32.mrb[6].mxu0  ;;  %v3543_v53 = vmul.f32 0.5, %v3511_v20 }
 0x33a   : > { %v3517_v29 = vadd.f32 %v4792_v19, %v6299_v31  ;;  %v4794_v3 = vadd.f32 %v4727_v14, %v4557_v56  ;;  %v3364_v49 = vpop.f32.mrb[7].mxu0 }
 0x33b   : > { %v6307_v24 = vadd.f32 %v4793_v48, %v6299_v31  ;;  %v4795_v15 = vadd.f32 %v3364_v49, %v1873_v27 }
 0x33c   : > { %v3581_v50 = vmul.f32 0.70710677, %v3517_v29  ;;  %v6310_v6 = vadd.f32 %v4794_v3, %v6299_v31 }
 0x33d   : > { %v3579_v35 = vmul.f32 0.70710677, %v6307_v24  ;;  %v6314_v16 = vadd.f32 %v4795_v15, %v6299_v31 }
 0x33e   : > { %5136 = verf.f32 %v3581_v50  ;;  %v3582_v7 = vmul.f32 0.70710677, %v6310_v6 }
 0x33f   : > { %5138 = verf.f32 %v3579_v35  ;;  %v3580_v2 = vmul.f32 0.70710677, %v6314_v16  ;;  %v4730_v10 = vpop.f32.mrb[8].mxu0 }
 0x340   : > { %v5129_v37 = vpop.eup %5128  ;;  %5140 = verf.f32 %v3582_v7  ;;  %v4796_v26 = vadd.f32 %v4730_v10, %v6248_v22  ;;  %v3377_v4 = vpop.f32.mrb[9].mxu0  ;;  %v3549_v10 = vmul.f32 0.5, %v3517_v29 }
 0x341   : > { %v5131_v12 = vpop.eup %5130  ;;  %v3641_v56 = vadd.f32 1.0, %v5129_v37  ;;  %5142 = verf.f32 %v3580_v2  ;;  %v4797_v27 = vadd.f32 %v3377_v4, %v6250_v42  ;;  %v4731_v44 = vpop.f32.mrb[10].mxu0  ;;  %v3544_v42 = vmul.f32 0.5, %v3512_v57 }
 0x342   : > { %v5133_v21 = vpop.eup %5132  ;;  %v3639_v34 = vadd.f32 1.0, %v5131_v12  ;;  %v6321_v59 = vadd.f32 %v4796_v26, %v6299_v31  ;;  %v4798_v47 = vadd.f32 %v4731_v44, %v6252_v1  ;;  %v3380_v9 = vpop.f32.mrb[11].mxu0 }
 0x343   : > { %v5135_v62 = vpop.eup %5134  ;;  %v3642_v8 = vadd.f32 1.0, %v5133_v21  ;;  %v6325_v22 = vadd.f32 %v4797_v27, %v6299_v31  ;;  %v4799_v17 = vadd.f32 %v3380_v9, %v6254_v39  ;;  %v3673_v19 = vmul.f32 %v3641_v56, %v3545_v30 }
 0x344   : > { %v3640_v41 = vadd.f32 1.0, %v5135_v62  ;;  %v3585_v32 = vmul.f32 0.70710677, %v6321_v59  ;;  %v6331_v1 = vadd.f32 %v4798_v47, %v6299_v31  ;;  %v3671_v14 = vmul.f32 %v3639_v34, %v3543_v53 }
 0x345   : > { %v3674_v60 = vmul.f32 %v3642_v8, %v3546_v36  ;;  %v3583_v48 = vmul.f32 0.70710677, %v6325_v22  ;;  %v6334_v3 = vadd.f32 %v4799_v17, %v6299_v31  ;;  %v3550_v30 = vmul.f32 0.5, %v6310_v6 }
 0x346   : > { %v3672_v54 = vmul.f32 %v3640_v41, %v3544_v42  ;;  %5144 = verf.f32 %v3585_v32  ;;  %v3586_v39 = vmul.f32 0.70710677, %v6331_v1  ;;  %v3547_v47 = vmul.f32 0.5, %v6307_v24 }
 0x347   : > { %v3704_v49 = vpack.c.bf16 %v3674_v60, %v3673_v19  ;;  %5146 = verf.f32 %v3583_v48  ;;  %v4734_v20 = vpop.f32.mrb[12].mxu0  ;;  %v3584_v15 = vmul.f32 0.70710677, %v6334_v3  ;;  %v3548_v9 = vmul.f32 0.5, %v6314_v16 }
 0x348   : > { %v5137_v57 = vpop.eup %5136  ;;  %v4800_v50 = vadd.f32 %v4734_v20, %v6256_v46  ;;  %v3393_v35 = vpop.f32.mrb[13].mxu0  ;;  %v3703_v7 = vpack.c.bf16 %v3672_v54, %v3671_v14  ;;  %5148 = verf.f32 %v3586_v39 }
 0x349   : > { %v5139_v2 = vpop.eup %5138  ;;  %v3645_v37 = vadd.f32 1.0, %v5137_v57  ;;  %v4801_v26 = vadd.f32 %v3393_v35, %v6258_v38  ;;  %v4735_v4 = vpop.f32.mrb[14].mxu0  ;;  %5150 = verf.f32 %v3584_v15 }
 0x34a   : > { %v5141_v12 = vpop.eup %5140  ;;  %v3643_v56 = vadd.f32 1.0, %v5139_v2  ;;  %v6341_v27 = vadd.f32 %v4800_v50, %v6299_v31  ;;  %v4802_v44 = vadd.f32 %v4735_v4, %v6260_v51  ;;  %v3396_v21 = vpop.f32.mrb[15].mxu0  ;;  %4756 = vmatprep.mubr.msk.bf16.mxu1 %vm3742_vm3, %v3703_v7 }
 0x34b   : > { %v5143_v46 = vpop.eup %5142  ;;  %v3646_v29 = vadd.f32 1.0, %v5141_v12  ;;  %v6347_v34 = vadd.f32 %v4801_v26, %v6299_v31  ;;  %v4803_v38 = vadd.f32 %v3396_v21, %v6262_v40  ;;  %4757 = vmatmul.mubr.msk.bf16.vlgmr.msra.gmra.mrb[32].mxu1 %vm3742_vm3, %v3704_v49  ;;  %v3677_v36 = vmul.f32 %v3645_v37, %v3549_v10 }
 0x34c   : > { %v3644_v62 = vadd.f32 1.0, %v5143_v46  ;;  %v3589_v51 = vmul.f32 0.70710677, %v6341_v27  ;;  %v6356_v6 = vadd.f32 %v4802_v44, %v6299_v31  ;;  %v3675_v53 = vmul.f32 %v3643_v56, %v3547_v47 }
 0x34d   : > { %v3678_v8 = vmul.f32 %v3646_v29, %v3550_v30  ;;  %v3587_v17 = vmul.f32 0.70710677, %v6347_v34  ;;  %v6359_v40 = vadd.f32 %v4803_v38, %v6299_v31  ;;  %v3551_v37 = vmul.f32 0.5, %v6325_v22 }
 0x34e   : > { %v3676_v42 = vmul.f32 %v3644_v62, %v3548_v9  ;;  %5152 = verf.f32 %v3589_v51  ;;  %v3590_v24 = vmul.f32 0.70710677, %v6356_v6  ;;  %v3554_v26 = vmul.f32 0.5, %v6331_v1 }
 0x34f   : > { %5154 = verf.f32 %v3587_v17  ;;  %v4738_v16 = vpop.f32.mrb[16].mxu0  ;;  %v3706_v41 = vpack.c.bf16 %v3678_v8, %v3677_v36  ;;  %v3588_v19 = vmul.f32 0.70710677, %v6359_v40  ;;  %v3552_v12 = vmul.f32 0.5, %v6334_v3 }
 0x350   : > { %v5145_v32 = vpop.eup %5144  ;;  %v4804_v60 = vadd.f32 %v4738_v16, %v6264_v52  ;;  %v3409_v48 = vpop.f32.mrb[17].mxu0  ;;  %v3705_v14 = vpack.c.bf16 %v3676_v42, %v3675_v53  ;;  %5156 = verf.f32 %v3590_v24  ;;  %v3553_v52 = vmul.f32 0.5, %v6321_v59 }
 0x351   : > { %v5147_v54 = vpop.eup %5146  ;;  %v4805_v49 = vadd.f32 %v3409_v48, %v6266_v45  ;;  %v4739_v39 = vpop.f32.mrb[18].mxu0  ;;  %v3649_v20 = vadd.f32 1.0, %v5145_v32  ;;  %5158 = verf.f32 %v3588_v19  ;;  %v3557_v32 = vmul.f32 0.5, %v6341_v27 }
 0x352   : > { %v6366_v57 = vadd.f32 %v4804_v60, %v6299_v31  ;;  %v4806_v15 = vadd.f32 %v4739_v39, %v6268_v43  ;;  %v3412_v50 = vpop.f32.mrb[19].mxu0  ;;  %4760 = vmatprep.mubr.msk.bf16.mxu1 %vm3742_vm3, %v3705_v14  ;;  %v5149_v35 = vpop.eup %5148  ;;  %v3647_v7 = vadd.f32 1.0, %v5147_v54  ;;  %v3555_v48 = vmul.f32 0.5, %v6347_v34 }
 0x353   : > { %v6372_v2 = vadd.f32 %v4805_v49, %v6299_v31  ;;  %v4807_v45 = vadd.f32 %v3412_v50, %v6270_v0  ;;  %4761 = vmatmul.mubr.msk.bf16.gmra.mrb[36].mxu1 %vm3742_vm3, %v3706_v41  ;;  %v5151_v10 = vpop.eup %5150  ;;  %v3650_v43 = vadd.f32 1.0, %v5149_v35  ;;  %v3681_v21 = vmul.f32 %v3649_v20, %v3553_v52 }
 0x354   : > { %v3593_v4 = vmul.f32 0.70710677, %v6366_v57  ;;  %v3648_v56 = vadd.f32 1.0, %v5151_v10  ;;  %v6382_v44 = vadd.f32 %v4806_v15, %v6299_v31  ;;  %v3679_v22 = vmul.f32 %v3647_v7, %v3551_v37 }
 0x355   : > { %v3591_v59 = vmul.f32 0.70710677, %v6372_v2  ;;  %v3682_v0 = vmul.f32 %v3650_v43, %v3554_v26  ;;  %v6385_v46 = vadd.f32 %v4807_v45, %v6299_v31  ;;  %v3558_v14 = vmul.f32 0.5, %v6356_v6 }
 0x356   : > { %5160 = verf.f32 %v3593_v4  ;;  %v3680_v30 = vmul.f32 %v3648_v56, %v3552_v12  ;;  %v3594_v1 = vmul.f32 0.70710677, %v6382_v44  ;;  %v3556_v27 = vmul.f32 0.5, %v6359_v40 }
 0x357   : > { %5162 = verf.f32 %v3591_v59  ;;  %v4742_v29 = vpop.f32.mrb[20].mxu0  ;;  %v3592_v3 = vmul.f32 0.70710677, %v6385_v46  ;;  %v3708_v62 = vpack.c.bf16 %v3682_v0, %v3681_v21 }
 0x358   : > { %v5153_v38 = vpop.eup %5152  ;;  %v4808_v47 = vadd.f32 %v4742_v29, %v6272_v11  ;;  %v3425_v9 = vpop.f32.mrb[21].mxu0  ;;  %5164 = verf.f32 %v3594_v1  ;;  %v3707_v17 = vpack.c.bf16 %v3680_v30, %v3679_v22  ;;  %v3561_v30 = vmul.f32 0.5, %v6366_v57 }
 0x359   : > { %v5155_v51 = vpop.eup %5154  ;;  %v4809_v36 = vadd.f32 %v3425_v9, %v6274_v18  ;;  %v4743_v8 = vpop.f32.mrb[22].mxu0  ;;  %v3653_v53 = vadd.f32 1.0, %v5153_v38  ;;  %5166 = verf.f32 %v3592_v3  ;;  %v3559_v38 = vmul.f32 0.5, %v6372_v2 }
 0x35a   : > { %v6392_v42 = vadd.f32 %v4808_v47, %v6299_v31  ;;  %v4810_v24 = vadd.f32 %v4743_v8, %v6276_v23  ;;  %v3428_v16 = vpop.f32.mrb[23].mxu0  ;;  %v5157_v41 = vpop.eup %5156  ;;  %v3651_v11 = vadd.f32 1.0, %v5155_v51  ;;  %4764 = vmatprep.mubr.msk.bf16.mxu1 %vm3742_vm3, %v3707_v17  ;;  %v3562_v3 = vmul.f32 0.5, %v6382_v44 }
 0x35b   : > { %v6397_v19 = vadd.f32 %v4809_v36, %v6299_v31  ;;  %v4811_v60 = vadd.f32 %v3428_v16, %v6278_v33  ;;  %v5159_v18 = vpop.eup %5158  ;;  %v3654_v54 = vadd.f32 1.0, %v5157_v41  ;;  %4765 = vmatmul.mubr.msk.bf16.gmra.mrb[40].mxu1 %vm3742_vm3, %v3708_v62  ;;  %v3685_v33 = vmul.f32 %v3653_v53, %v3557_v32 }
 0x35c   : > { %v3597_v23 = vmul.f32 0.70710677, %v6392_v42  ;;  %v3652_v49 = vadd.f32 1.0, %v5159_v18  ;;  %v6408_v20 = vadd.f32 %v4810_v24, %v6299_v31  ;;  %v3683_v6 = vmul.f32 %v3651_v11, %v3555_v48 }
 0x35d   : > { %v3595_v39 = vmul.f32 0.70710677, %v6397_v19  ;;  %v3686_v15 = vmul.f32 %v3654_v54, %v3558_v14  ;;  %v6411_v34 = vadd.f32 %v4811_v60, %v6299_v31  ;;  %v3560_v57 = vmul.f32 0.5, %v6385_v46 }
 0x35e   : > { %5168 = verf.f32 %v3597_v23  ;;  %v3684_v50 = vmul.f32 %v3652_v49, %v3556_v27  ;;  %v3598_v35 = vmul.f32 0.70710677, %v6408_v20 }
 0x35f   : > { %5170 = verf.f32 %v3595_v39  ;;  %v4746_v52 = vpop.f32.mrb[24].mxu0  ;;  %v3596_v40 = vmul.f32 0.70710677, %v6411_v34  ;;  %v3710_v37 = vpack.c.bf16 %v3686_v15, %v3685_v33  ;;  %v3565_v39 = vmul.f32 0.5, %v6392_v42 }
 0x360   : > { %v5161_v7 = vpop.eup %5160  ;;  %v4812_v45 = vadd.f32 %v4746_v52, %v6280_v13  ;;  %v3441_v10 = vpop.f32.mrb[25].mxu0  ;;  %5172 = verf.f32 %v3598_v35  ;;  %v3709_v12 = vpack.c.bf16 %v3684_v50, %v3683_v6  ;;  %v3563_v6 = vmul.f32 0.5, %v6397_v19 }
 0x361   : > { %v5163_v26 = vpop.eup %5162  ;;  %v4813_v43 = vadd.f32 %v3441_v10, %v6282_v5  ;;  %v4747_v4 = vpop.f32.mrb[26].mxu0  ;;  %v3657_v56 = vadd.f32 1.0, %v5161_v7  ;;  %5174 = verf.f32 %v3596_v40  ;;  %v3566_v50 = vmul.f32 0.5, %v6408_v20 }
 0x362   : > { %v6418_v59 = vadd.f32 %v4812_v45, %v6299_v31  ;;  %v4814_v21 = vadd.f32 %v4747_v4, %v6284_v25  ;;  %v3444_v0 = vpop.f32.mrb[27].mxu0  ;;  %v5165_v22 = vpop.eup %5164  ;;  %v3655_v13 = vadd.f32 1.0, %v5163_v26  ;;  %4768 = vmatprep.mubr.msk.bf16.mxu1 %vm3742_vm3, %v3709_v12 }
 0x363   : > { %v6423_v1 = vadd.f32 %v4813_v43, %v6299_v31  ;;  %v4815_v29 = vadd.f32 %v3444_v0, %v6286_v55  ;;  %v5167_v5 = vpop.eup %5166  ;;  %v3658_v47 = vadd.f32 1.0, %v5165_v22  ;;  %4769 = vmatmul.mubr.msk.bf16.gmra.mrb[44].mxu1 %vm3742_vm3, %v3710_v37  ;;  %v3689_v55 = vmul.f32 %v3657_v56, %v3561_v30 }
 0x364   : > { %v3601_v25 = vmul.f32 0.70710677, %v6418_v59  ;;  %v3656_v9 = vadd.f32 1.0, %v5167_v5  ;;  %v3538_v51 = vadd.f32 %v4814_v21, %v6299_v31  ;;  %v3687_v2 = vmul.f32 %v3655_v13, %v3559_v38 }
 0x365   : > { %v3599_v62 = vmul.f32 0.70710677, %v6423_v1  ;;  %v3690_v36 = vmul.f32 %v3658_v47, %v3562_v3  ;;  %v3536_v8 = vadd.f32 %v4815_v29, %v6299_v31  ;;  %v3569_v30 = vmul.f32 0.5, %v6418_v59 }
 0x366   : > { %5176 = verf.f32 %v3601_v25  ;;  %v3688_v17 = vmul.f32 %v3656_v9, %v3560_v57  ;;  %v3602_v44 = vmul.f32 0.70710677, %v3538_v51  ;;  %v3567_v29 = vmul.f32 0.5, %v6423_v1 }
 0x367   : > { %5178 = verf.f32 %v3599_v62  ;;  %v4750_v53 = vpop.f32.mrb[28].mxu0  ;;  %v3600_v16 = vmul.f32 0.70710677, %v3536_v8  ;;  %v3712_v32 = vpack.c.bf16 %v3690_v36, %v3689_v55  ;;  %v3568_v5 = vmul.f32 0.5, %v3536_v8 }
 0x368   : > { %v5169_v24 = vpop.eup %5168  ;;  %v4816_v41 = vadd.f32 %v4750_v53, %v6288_v58  ;;  %v3457_v46 = vpop.f32.mrb[29].mxu0  ;;  %5180 = verf.f32 %v3602_v44  ;;  %v3711_v48 = vpack.c.bf16 %v3688_v17, %v3687_v2 }
 0x369   : > { %v5171_v11 = vpop.eup %5170  ;;  %v4817_v60 = vadd.f32 %v3457_v46, %v6290_v63  ;;  %v4751_v18 = vpop.f32.mrb[30].mxu0  ;;  %v3661_v14 = vadd.f32 1.0, %v5169_v24  ;;  %5182 = verf.f32 %v3600_v16 }
 0x36a   : > { %v3541_v54 = vadd.f32 %v4816_v41, %v6299_v31  ;;  %v4818_v23 = vadd.f32 %v4751_v18, %v6292_v61  ;;  %v3460_v27 = vpop.f32.mrb[31].mxu0  ;;  %v5173_v49 = vpop.eup %5172  ;;  %v3659_v33 = vadd.f32 1.0, %v5171_v11  ;;  %4772 = vmatprep.mubr.msk.bf16.mxu1 %vm3742_vm3, %v3711_v48  ;;  %v3564_v61 = vmul.f32 0.5, %v6411_v34  ;;  %v6460_v48 = vld [vmem:[%s6606_s6] ss:$0 sm:$0xff] }
 0x36b   : > { %v3539_v58 = vadd.f32 %v4817_v60, %v6299_v31  ;;  %v4819_v15 = vadd.f32 %v3460_v27, %v6294_v28  ;;  %v5175_v63 = vpop.eup %5174  ;;  %v3662_v35 = vadd.f32 1.0, %v5173_v49  ;;  %4773 = vmatmul.mubr.msk.bf16.gmra.mrb[48].mxu1 %vm3742_vm3, %v3712_v32  ;;  %v3693_v45 = vmul.f32 %v3661_v14, %v3565_v39  ;;  %v5192_v39 = vld [vmem:[%s5289_s29 + $0x10] sm:$0xff] }
 0x36c   : > { %v3605_v52 = vmul.f32 0.70710677, %v3541_v54  ;;  %v3660_v7 = vadd.f32 1.0, %v5175_v63  ;;  %v3542_v40 = vadd.f32 %v4818_v23, %v6299_v31  ;;  %v3691_v37 = vmul.f32 %v3659_v33, %v3563_v6  ;;  %v5193_v63 = vld [vmem:[%s5289_s29] sm:$0xff] }
 0x36d   : > { %v3603_v42 = vmul.f32 0.70710677, %v3539_v58  ;;  %v3694_v10 = vmul.f32 %v3662_v35, %v3566_v50  ;;  %v3540_v28 = vadd.f32 %v4819_v15, %v6299_v31  ;;  %v3570_v31 = vmul.f32 0.5, %v3538_v51  ;;  %v5194_v35 = vld [vmem:[%s5289_s29 + $0x18] sm:$0xff] }
 0x36e   : > { %5184 = verf.f32 %v3605_v52  ;;  %v3692_v26 = vmul.f32 %v3660_v7, %v3564_v61  ;;  %v3606_v19 = vmul.f32 0.70710677, %v3542_v40  ;;  %v3573_v51 = vmul.f32 0.5, %v3541_v54  ;;  %v5195_v61 = vld [vmem:[%s5289_s29 + $0x8] sm:$0xff] }
 0x36f   : > { %5186 = verf.f32 %v3603_v42  ;;  %v3604_v43 = vmul.f32 0.70710677, %v3540_v28  ;;  %v3714_v4 = vpack.c.bf16 %v3694_v10, %v3693_v45  ;;  %v3574_v53 = vmul.f32 0.5, %v3542_v40 }
 0x370   : > { %v5177_v20 = vpop.eup %5176  ;;  %5188 = verf.f32 %v3606_v19  ;;  %v3713_v56 = vpack.c.bf16 %v3692_v26, %v3691_v37  ;;  %v3571_v1 = vmul.f32 0.5, %v3539_v58  ;;  %v3572_v8 = vmul.f32 0.5, %v3540_v28  ;;  %v5196_v37 = vld [vmem:[%s5289_s29 + $0x30] sm:$0xff] }
 0x371   : > { %v5179_v12 = vpop.eup %5178  ;;  %v3665_v34 = vadd.f32 1.0, %v5177_v20  ;;  %5190 = verf.f32 %v3604_v43  ;;  %v5197_v43 = vld [vmem:[%s5289_s29 + $0x20] sm:$0xff] }
 0x372   : > { %v5181_v21 = vpop.eup %5180  ;;  %v3663_v0 = vadd.f32 1.0, %v5179_v12  ;;  %4776 = vmatprep.mubr.msk.bf16.mxu1 %vm3742_vm3, %v3713_v56  ;;  %v5198_v56 = vld [vmem:[%s5289_s29 + $0x38] sm:$0xff] }
 0x373   : > { %v5183_v22 = vpop.eup %5182  ;;  %v3666_v13 = vadd.f32 1.0, %v5181_v21  ;;  %4777 = vmatmul.mubr.msk.bf16.gmra.mrb[52].mxu1 %vm3742_vm3, %v3714_v4  ;;  %v3697_v3 = vmul.f32 %v3665_v34, %v3569_v30  ;;  %v5199_v21 = vld [vmem:[%s5289_s29 + $0x28] sm:$0xff] }
 0x374   : > { %v3664_v38 = vadd.f32 1.0, %v5183_v22  ;;  %v3695_v25 = vmul.f32 %v3663_v0, %v3567_v29 }
 0x375   : > { %v3698_v47 = vmul.f32 %v3666_v13, %v3570_v31 }
 0x376   : > { %v3696_v57 = vmul.f32 %v3664_v38, %v3568_v5  ;;  %v5200_v5 = vld [vmem:[%s5289_s29 + $0x50] sm:$0xff] }
 0x377   : > { %v3716_v62 = vpack.c.bf16 %v3698_v47, %v3697_v3 }
 0x378   : > { %v5185_v9 = vpop.eup %5184  ;;  %v3715_v36 = vpack.c.bf16 %v3696_v57, %v3695_v25  ;;  %v5201_v25 = vld [vmem:[%s5289_s29 + $0x40] sm:$0xff] }
 0x379   : > { %v5187_v55 = vpop.eup %5186  ;;  %v3669_v2 = vadd.f32 1.0, %v5185_v9 }
 0x37a   : > { %v5189_v17 = vpop.eup %5188  ;;  %v3667_v44 = vadd.f32 1.0, %v5187_v55  ;;  %4780 = vmatprep.mubr.msk.bf16.mxu1 %vm3742_vm3, %v3715_v36  ;;  %v5203_v36 = vld [vmem:[%s5289_s29 + $0x48] sm:$0xff] }
 0x37b   : > { %v5191_v59 = vpop.eup %5190  ;;  %v3670_v24 = vadd.f32 1.0, %v5189_v17  ;;  %4781 = vmatmul.mubr.msk.bf16.gmra.mrb[56].mxu1 %vm3742_vm3, %v3716_v62  ;;  %v3701_v41 = vmul.f32 %v3669_v2, %v3573_v51  ;;  %v5202_v62 = vld [vmem:[%s5289_s29 + $0x58] sm:$0xff] }
 0x37c   : > { %v3668_v16 = vadd.f32 1.0, %v5191_v59  ;;  %v3699_v32 = vmul.f32 %v3667_v44, %v3571_v1 }
 0x37d   : > { %v3702_v46 = vmul.f32 %v3670_v24, %v3574_v53  ;;  %v5204_v24 = vld [vmem:[%s5289_s29 + $0x70] sm:$0xff] }
 0x37e   : > { %v3700_v11 = vmul.f32 %v3668_v16, %v3572_v8 }
 0x37f   : > { %v3718_v60 = vpack.c.bf16 %v3702_v46, %v3701_v41  ;;  %v5205_v41 = vld [vmem:[%s5289_s29 + $0x60] sm:$0xff] }
 0x380   : > { %v3717_v18 = vpack.c.bf16 %v3700_v11, %v3699_v32  ;;  %v5206_v11 = vld [vmem:[%s5289_s29 + $0x78] sm:$0xff] }
 0x382   : > { %4784 = vmatprep.mubr.msk.bf16.mxu1 %vm3742_vm3, %v3717_v18  ;;  %v5207_v18 = vld [vmem:[%s5289_s29 + $0x68] sm:$0xff] }
 0x383   : > { %4785 = vmatmul.mubr.msk.bf16.gmra.mrb[60].mxu1 %vm3742_vm3, %v3718_v60 }
 0x41e   : > { %v4758_v14 = vpop.f32.mrb[32].mxu1 }
 0x41f   : > { %v3834_v54 = vadd.f32 %v4758_v14, %v6460_v48  ;;  %v3825_v23 = vpop.f32.mrb[33].mxu1 }
 0x420   : > { %v3826_v27 = vadd.f32 %v6460_v48, %v3825_v23  ;;  %v4759_v49 = vpop.f32.mrb[34].mxu1 }
 0x421   : > { %v3954_v33 = vadd.f32 %v5192_v39, %v3834_v54  ;;  %v3837_v58 = vadd.f32 %v4759_v49, %v6460_v48  ;;  %v3828_v15 = vpop.f32.mrb[35].mxu1 }
 0x422   : > { %v3952_v6 = vadd.f32 %v5193_v63, %v3826_v27  ;;  %v3829_v50 = vadd.f32 %v6460_v48, %v3828_v15 }
 0x423   : > { %3986 = vst.msk [vmem:[%s6468_s20 + $0x10] sm:$0xff] %vm314_vm0, %v3954_v33  ;;  %v3955_v52 = vadd.f32 %v5194_v35, %v3837_v58  ;;  %v5208_v33 = vld [vmem:[%s5289_s29 + $0x90] sm:$0xff] }
 0x424   : > { %3984 = vst.msk [vmem:[%s6468_s20] sm:$0xff] %vm314_vm0, %v3952_v6  ;;  %v3953_v7 = vadd.f32 %v5195_v61, %v3829_v50  ;;  %v5209_v6 = vld [vmem:[%s5289_s29 + $0x80] sm:$0xff] }
 0x425   : > { %3987 = vst.msk [vmem:[%s6468_s20 + $0x18] sm:$0xff] %vm314_vm0, %v3955_v52  ;;  %v5210_v52 = vld [vmem:[%s5289_s29 + $0x98] sm:$0xff] }
 0x426   : > { %3985 = vst.msk [vmem:[%s6468_s20 + $0x8] sm:$0xff] %vm314_vm0, %v3953_v7  ;;  %v4762_v42 = vpop.f32.mrb[36].mxu1  ;;  %v5211_v7 = vld [vmem:[%s5289_s29 + $0x88] sm:$0xff] }
 0x427   : > { %v3850_v40 = vadd.f32 %v4762_v42, %v6460_v48  ;;  %v3841_v45 = vpop.f32.mrb[37].mxu1 }
 0x428   : > { %v3842_v10 = vadd.f32 %v6460_v48, %v3841_v45  ;;  %v4763_v28 = vpop.f32.mrb[38].mxu1 }
 0x429   : > { %v3958_v26 = vadd.f32 %v5196_v37, %v3850_v40  ;;  %v3853_v19 = vadd.f32 %v4763_v28, %v6460_v48  ;;  %v3844_v20 = vpop.f32.mrb[39].mxu1 }
 0x42a   : > { %v3956_v4 = vadd.f32 %v5197_v43, %v3842_v10  ;;  %v3845_v12 = vadd.f32 %v6460_v48, %v3844_v20 }
 0x42b   : > { %3990 = vst.msk [vmem:[%s6468_s20 + $0x30] sm:$0xff] %vm314_vm0, %v3958_v26  ;;  %v3959_v34 = vadd.f32 %v5198_v56, %v3853_v19  ;;  %v5212_v26 = vld [vmem:[%s5289_s29 + $0xb0] sm:$0xff] }
 0x42c   : > { %3988 = vst.msk [vmem:[%s6468_s20 + $0x20] sm:$0xff] %vm314_vm0, %v3956_v4  ;;  %v3957_v0 = vadd.f32 %v5199_v21, %v3845_v12  ;;  %v5213_v4 = vld [vmem:[%s5289_s29 + $0xa0] sm:$0xff] }
 0x42d   : > { %3991 = vst.msk [vmem:[%s6468_s20 + $0x38] sm:$0xff] %vm314_vm0, %v3959_v34  ;;  %v5214_v34 = vld [vmem:[%s5289_s29 + $0xb8] sm:$0xff] }
 0x42e   : > { %3989 = vst.msk [vmem:[%s6468_s20 + $0x28] sm:$0xff] %vm314_vm0, %v3957_v0  ;;  %v4766_v22 = vpop.f32.mrb[40].mxu1  ;;  %v5215_v0 = vld [vmem:[%s5289_s29 + $0xa8] sm:$0xff] }
 0x42f   : > { %v3866_v30 = vadd.f32 %v4766_v22, %v6460_v48  ;;  %v3857_v31 = vpop.f32.mrb[41].mxu1 }
 0x430   : > { %v3858_v13 = vadd.f32 %v6460_v48, %v3857_v31  ;;  %v4767_v29 = vpop.f32.mrb[42].mxu1 }
 0x431   : > { %v3962_v38 = vadd.f32 %v5200_v5, %v3866_v30  ;;  %v3869_v3 = vadd.f32 %v4767_v29, %v6460_v48  ;;  %v3860_v47 = vpop.f32.mrb[43].mxu1 }
 0x432   : > { %v3960_v57 = vadd.f32 %v5201_v25, %v3858_v13  ;;  %v3861_v9 = vadd.f32 %v6460_v48, %v3860_v47 }
 0x433   : > { %3994 = vst.msk [vmem:[%s6468_s20 + $0x50] sm:$0xff] %vm314_vm0, %v3962_v38  ;;  %v3963_v55 = vadd.f32 %v5202_v62, %v3869_v3  ;;  %v5216_v38 = vld [vmem:[%s5289_s29 + $0xd0] sm:$0xff] }
 0x434   : > { %3992 = vst.msk [vmem:[%s6468_s20 + $0x40] sm:$0xff] %vm314_vm0, %v3960_v57  ;;  %v3961_v2 = vadd.f32 %v5203_v36, %v3861_v9  ;;  %v5217_v57 = vld [vmem:[%s5289_s29 + $0xc0] sm:$0xff] }
 0x435   : > { %3995 = vst.msk [vmem:[%s6468_s20 + $0x58] sm:$0xff] %vm314_vm0, %v3963_v55  ;;  %v5218_v55 = vld [vmem:[%s5289_s29 + $0xd8] sm:$0xff] }
 0x436   : > { %3993 = vst.msk [vmem:[%s6468_s20 + $0x48] sm:$0xff] %vm314_vm0, %v3961_v2  ;;  %v4770_v17 = vpop.f32.mrb[44].mxu1  ;;  %v5219_v2 = vld [vmem:[%s5289_s29 + $0xc8] sm:$0xff] }
 0x437   : > { %v3882_v44 = vadd.f32 %v4770_v17, %v6460_v48  ;;  %v3873_v59 = vpop.f32.mrb[45].mxu1 }
 0x438   : > { %v3874_v51 = vadd.f32 %v6460_v48, %v3873_v59  ;;  %v4771_v53 = vpop.f32.mrb[46].mxu1 }
 0x439   : > { %v3966_v1 = vadd.f32 %v5204_v24, %v3882_v44  ;;  %v3885_v8 = vadd.f32 %v4771_v53, %v6460_v48  ;;  %v3876_v16 = vpop.f32.mrb[47].mxu1 }
 0x43a   : > { %v3964_v46 = vadd.f32 %v5205_v41, %v3874_v51  ;;  %v3877_v32 = vadd.f32 %v6460_v48, %v3876_v16 }
 0x43b   : > { %3998 = vst.msk [vmem:[%s6468_s20 + $0x70] sm:$0xff] %vm314_vm0, %v3966_v1  ;;  %v3967_v60 = vadd.f32 %v5206_v11, %v3885_v8  ;;  %v5220_v1 = vld [vmem:[%s5289_s29 + $0xf0] sm:$0xff] }
 0x43c   : > { %3996 = vst.msk [vmem:[%s6468_s20 + $0x60] sm:$0xff] %vm314_vm0, %v3964_v46  ;;  %v3965_v14 = vadd.f32 %v5207_v18, %v3877_v32  ;;  %v5221_v46 = vld [vmem:[%s5289_s29 + $0xe0] sm:$0xff] }
 0x43d   : > { %3999 = vst.msk [vmem:[%s6468_s20 + $0x78] sm:$0xff] %vm314_vm0, %v3967_v60  ;;  %v5222_v60 = vld [vmem:[%s5289_s29 + $0xf8] sm:$0xff] }
 0x43e   : > { %3997 = vst.msk [vmem:[%s6468_s20 + $0x68] sm:$0xff] %vm314_vm0, %v3965_v14  ;;  %v4774_v54 = vpop.f32.mrb[48].mxu1  ;;  %v5223_v14 = vld [vmem:[%s5289_s29 + $0xe8] sm:$0xff] }
 0x43f   : > { %v3898_v23 = vadd.f32 %v4774_v54, %v6460_v48  ;;  %v3889_v27 = vpop.f32.mrb[49].mxu1 }
 0x440   : > { %v3890_v49 = vadd.f32 %v6460_v48, %v3889_v27  ;;  %v4775_v39 = vpop.f32.mrb[50].mxu1 }
 0x441   : > { %v3970_v58 = vadd.f32 %v5208_v33, %v3898_v23  ;;  %v3901_v15 = vadd.f32 %v4775_v39, %v6460_v48  ;;  %v3892_v63 = vpop.f32.mrb[51].mxu1 }
 0x442   : > { %v3968_v50 = vadd.f32 %v5209_v6, %v3890_v49  ;;  %v3893_v35 = vadd.f32 %v6460_v48, %v3892_v63 }
 0x443   : > { %4002 = vst.msk [vmem:[%s6468_s20 + $0x90] sm:$0xff] %vm314_vm0, %v3970_v58  ;;  %v3971_v61 = vadd.f32 %v5210_v52, %v3901_v15 }
 0x444   : > { %4000 = vst.msk [vmem:[%s6468_s20 + $0x80] sm:$0xff] %vm314_vm0, %v3968_v50  ;;  %v3969_v42 = vadd.f32 %v5211_v7, %v3893_v35 }
 0x445   : > { %4003 = vst.msk [vmem:[%s6468_s20 + $0x98] sm:$0xff] %vm314_vm0, %v3971_v61 }
 0x446   : > { %4001 = vst.msk [vmem:[%s6468_s20 + $0x88] sm:$0xff] %vm314_vm0, %v3969_v42  ;;  %v4778_v40 = vpop.f32.mrb[52].mxu1 }
 0x447   : > { %v3914_v45 = vadd.f32 %v4778_v40, %v6460_v48  ;;  %v3905_v10 = vpop.f32.mrb[53].mxu1 }
 0x448   : > { %v3906_v28 = vadd.f32 %v6460_v48, %v3905_v10  ;;  %v4779_v37 = vpop.f32.mrb[54].mxu1 }
 0x449   : > { %v3974_v19 = vadd.f32 %v5212_v26, %v3914_v45  ;;  %v3917_v20 = vadd.f32 %v4779_v37, %v6460_v48  ;;  %v3908_v43 = vpop.f32.mrb[55].mxu1 }
 0x44a   : > { %v3972_v12 = vadd.f32 %v5213_v4, %v3906_v28  ;;  %v3909_v56 = vadd.f32 %v6460_v48, %v3908_v43 }
 0x44b   : > { %4006 = vst.msk [vmem:[%s6468_s20 + $0xb0] sm:$0xff] %vm314_vm0, %v3974_v19  ;;  %v3975_v21 = vadd.f32 %v5214_v34, %v3917_v20 }
 0x44c   : > { %4004 = vst.msk [vmem:[%s6468_s20 + $0xa0] sm:$0xff] %vm314_vm0, %v3972_v12  ;;  %v3973_v22 = vadd.f32 %v5215_v0, %v3909_v56 }
 0x44d   : > { %4007 = vst.msk [vmem:[%s6468_s20 + $0xb8] sm:$0xff] %vm314_vm0, %v3975_v21 }
 0x44e   : > { %4005 = vst.msk [vmem:[%s6468_s20 + $0xa8] sm:$0xff] %vm314_vm0, %v3973_v22  ;;  %v4782_v30 = vpop.f32.mrb[56].mxu1 }
 0x44f   : > { %v3930_v31 = vadd.f32 %v4782_v30, %v6460_v48  ;;  %v3921_v13 = vpop.f32.mrb[57].mxu1 }
 0x450   : > { %v3922_v29 = vadd.f32 %v6460_v48, %v3921_v13  ;;  %v4783_v5 = vpop.f32.mrb[58].mxu1 }
 0x451   : > { %v3978_v3 = vadd.f32 %v5216_v38, %v3930_v31  ;;  %v3933_v47 = vadd.f32 %v4783_v5, %v6460_v48  ;;  %v3924_v25 = vpop.f32.mrb[59].mxu1 }
 0x452   : > { %v3976_v9 = vadd.f32 %v5217_v57, %v3922_v29  ;;  %v3925_v62 = vadd.f32 %v6460_v48, %v3924_v25 }
 0x453   : > { %4010 = vst.msk [vmem:[%s6468_s20 + $0xd0] sm:$0xff] %vm314_vm0, %v3978_v3  ;;  %v3979_v36 = vadd.f32 %v5218_v55, %v3933_v47 }
 0x454   : > { %4008 = vst.msk [vmem:[%s6468_s20 + $0xc0] sm:$0xff] %vm314_vm0, %v3976_v9  ;;  %v3977_v17 = vadd.f32 %v5219_v2, %v3925_v62 }
 0x455   : > { %4011 = vst.msk [vmem:[%s6468_s20 + $0xd8] sm:$0xff] %vm314_vm0, %v3979_v36 }
 0x456   : > { %4009 = vst.msk [vmem:[%s6468_s20 + $0xc8] sm:$0xff] %vm314_vm0, %v3977_v17  ;;  %v4786_v44 = vpop.f32.mrb[60].mxu1 }
 0x457   : > { %v3946_v59 = vadd.f32 %v4786_v44, %v6460_v48  ;;  %v3937_v51 = vpop.f32.mrb[61].mxu1 }
 0x458   : > { %v3938_v53 = vadd.f32 %v6460_v48, %v3937_v51  ;;  %v4787_v24 = vpop.f32.mrb[62].mxu1 }
 0x459   : > { %v3982_v8 = vadd.f32 %v5220_v1, %v3946_v59  ;;  %v3949_v16 = vadd.f32 %v4787_v24, %v6460_v48  ;;  %v3940_v41 = vpop.f32.mrb[63].mxu1 }
 0x45a   : > { %v3980_v32 = vadd.f32 %v5221_v46, %v3938_v53  ;;  %v3941_v11 = vadd.f32 %v6460_v48, %v3940_v41 }
 0x45b   : > { %4014 = vst.msk [vmem:[%s6468_s20 + $0xf0] sm:$0xff] %vm314_vm0, %v3982_v8  ;;  %v3983_v18 = vadd.f32 %v5222_v60, %v3949_v16 }
 0x45c   : > { %4012 = vst.msk [vmem:[%s6468_s20 + $0xe0] sm:$0xff] %vm314_vm0, %v3980_v32  ;;  %v3981_v54 = vadd.f32 %v5223_v14, %v3941_v11 }
 0x45d   : > { %4015 = vst.msk [vmem:[%s6468_s20 + $0xf8] sm:$0xff] %vm314_vm0, %v3983_v18 }
 0x45e   : > { %4013 = vst.msk [vmem:[%s6468_s20 + $0xe8] sm:$0xff] %vm314_vm0, %v3981_v54 }
 0x45f PF: > { %s17_s24 = sadd.s32 1, %s5230_s24  }
 0x460   : > { %p14_p4 = scmp.ge.s32.totalorder %s17_s24, 4  }
 0x462   :  { %16 = sbr.rel (!%p14_p4) target bundleno = 1 (0x1), region = 89 }

// kernel: gmfe_forward.2
= control target key start
LH: loop header
LB: loop body
LE: loop exit
PB: predicated region body
PF: predicated region fallthrough
CT: control target
= control target key end

     0   :  { %s5578_s24 = smov 0   ;;  %s9283_s0 = inlined_call_operand.vmem [shape: f32[2,16,16,16], index: 0, kind: input, shape index: {}]   ;;  %s9284_s1 = inlined_call_operand.vmem [shape: f32[1,16], index: 1, kind: input, shape index: {}]   ;;  %s9285_s2 = inlined_call_operand.vmem [shape: f32[1,16], index: 2, kind: input, shape index: {}]   ;;  %s9286_s3 = inlined_call_operand.vmem [shape: f32[4,3,3,16], index: 3, kind: input, shape index: {}]   ;;  %s9287_s4 = inlined_call_operand.vmem [shape: f32[4,1,1,16], index: 4, kind: input, shape index: {}]   ;;  %s9288_s5 = inlined_call_operand.vmem [shape: bf16[16,16], index: 5, kind: input, shape index: {}]   ;;  %s9289_s6 = inlined_call_operand.vmem [shape: f32[1,16], index: 6, kind: input, shape index: {}]   ;;  %s9290_s7 = inlined_call_operand.vmem [shape: f32[2,16,16,16], index: 7, kind: output, shape index: {}]  }
   0x1 LB: > { %s5035_s25 = sadd.s32 4294967295, %s5535_s24   ;;  %p5039_p0 = scmp.ge.s32.totalorder %s5535_s24, 1  ;;  %s5535_s24 = sphi %s5578_s24, %s17_s24  }
   0x2   : > { %p237_p1 = scmp.lt.s32.totalorder %s5535_s24, 3 }
   0x4   : > { %p238_p2 = pnand %p5039_p0, %p237_p1 }
   0x6   : > { %241 = sbr.rel (%p238_p2) target bundleno = 1197 (0x4ad), region = 48 }
   0xd   : > { %p269_p3 = scmp.lt.s32.totalorder %s5035_s25, 1  ;;  %vm314_vm0 = vcmask 130048   ;;  %vm816_vm1 = vcmask 122880   ;;  %v9291_v52 = vmov 0.0   ;;  %vm810_vm2 = vcmask 123904  }
   0xe   : > { %818 = vst.msk [vmem:[#allocation3 + $0x18] sm:$0x1] %vm816_vm1, %v9291_v52  ;;  %819 = vst.msk [vmem:[#allocation3 + $0x30] sm:$0x1] %vm816_vm1, %v9291_v52  ;;  %vm3526_vm3 = vcmask 128000   ;;  %vm3570_vm4 = vcmask 125952  }
   0xf   : > { %s9782_s25 = smov (!%p269_p3, %s5035_s25), 1  ;;  %808 = vst.msk [vmem:[#allocation3] sm:$0xff] %vm314_vm0, %v9291_v52  ;;  %809 = vst.msk [vmem:[#allocation3 + $0x8] sm:$0xff] %vm314_vm0, %v9291_v52 }
  0x10   : > { %s5226_s26 = sshll.u32 %s9782_s25, 8  ;;  %813 = vst.msk [vmem:[#allocation3 + $0x198] sm:$0xff] %vm314_vm0, %v9291_v52  ;;  %814 = vst.msk [vmem:[#allocation3 + $0x1a0] sm:$0xff] %vm314_vm0, %v9291_v52 }
  0x11   : > { %s5594_s29 = scalar_lea.vmem %s9283_s0, %s5226_s26  ;;  %820 = vst.msk [vmem:[#allocation3 + $0x48] sm:$0x1] %vm816_vm1, %v9291_v52  ;;  %821 = vst.msk [vmem:[#allocation3 + $0x60] sm:$0x1] %vm816_vm1, %v9291_v52  ;;  %s9058_s13 = scalar_lea.vmem %s9290_s7, %s5226_s26 }
  0x12   : > { %v5597_v0 = vld [vmem:[%s5594_s29] sm:$0xff]  ;;  %v5600_v1 = vld [vmem:[%s5594_s29 + $0x10] sm:$0xff]  ;;  %v5603_v2 = vld [vmem:[%s5594_s29 + $0x8] sm:$0xff]  ;;  %822 = vst.msk [vmem:[#allocation3 + $0x78] sm:$0x1] %vm816_vm1, %v9291_v52 }
  0x13   : > { %v315_v3 = vsel %vm314_vm0, %v5597_v0, 0.0  ;;  %v321_v4 = vsel %vm314_vm0, %v5600_v1, 0.0  ;;  %v5610_v5 = vld [vmem:[%s5594_s29 + $0x18] sm:$0xff]  ;;  %v318_v6 = vsel %vm314_vm0, %v5603_v2, 0.0  ;;  %v5617_v8 = vld [vmem:[%s5594_s29 + $0x20] sm:$0xff]  ;;  %v5620_v9 = vld [vmem:[%s5594_s29 + $0x28] sm:$0xff] }
  0x14   : > { %316 = vadd.xlane.f32.xlu0 %v315_v3  ;;  %322 = vadd.xlane.f32.xlu1 %v321_v4  ;;  %v324_v7 = vsel %vm314_vm0, %v5610_v5, 0.0  ;;  %v327_v10 = vsel %vm314_vm0, %v5617_v8, 0.0  ;;  %v330_v11 = vsel %vm314_vm0, %v5620_v9, 0.0  ;;  %v5627_v12 = vld [vmem:[%s5594_s29 + $0x30] sm:$0xff]  ;;  %v5630_v13 = vld [vmem:[%s5594_s29 + $0x38] sm:$0xff]  ;;  %v5637_v16 = vld [vmem:[%s5594_s29 + $0x40] sm:$0xff] }
  0x15   : > { %v333_v14 = vsel %vm314_vm0, %v5627_v12, 0.0  ;;  %v336_v15 = vsel %vm314_vm0, %v5630_v13, 0.0  ;;  %v5640_v17 = vld [vmem:[%s5594_s29 + $0x48] sm:$0xff]  ;;  %v339_v18 = vsel %vm314_vm0, %v5637_v16, 0.0  ;;  %v5647_v20 = vld [vmem:[%s5594_s29 + $0x50] sm:$0xff]  ;;  %v5650_v21 = vld [vmem:[%s5594_s29 + $0x58] sm:$0xff] }
  0x16   : > { %v342_v19 = vsel %vm314_vm0, %v5640_v17, 0.0  ;;  %v345_v22 = vsel %vm314_vm0, %v5647_v20, 0.0  ;;  %v348_v23 = vsel %vm314_vm0, %v5650_v21, 0.0  ;;  %v5657_v24 = vld [vmem:[%s5594_s29 + $0x60] sm:$0xff]  ;;  %v5660_v25 = vld [vmem:[%s5594_s29 + $0x68] sm:$0xff]  ;;  %v5667_v28 = vld [vmem:[%s5594_s29 + $0x70] sm:$0xff] }
  0x17   : > { %v351_v26 = vsel %vm314_vm0, %v5657_v24, 0.0  ;;  %v354_v27 = vsel %vm314_vm0, %v5660_v25, 0.0  ;;  %v5670_v29 = vld [vmem:[%s5594_s29 + $0x78] sm:$0xff]  ;;  %v357_v30 = vsel %vm314_vm0, %v5667_v28, 0.0  ;;  %v5677_v32 = vld [vmem:[%s5594_s29 + $0x80] sm:$0xff]  ;;  %v5680_v33 = vld [vmem:[%s5594_s29 + $0x88] sm:$0xff] }
  0x18   : > { %319 = vadd.xlane.f32.xlu0 %v318_v6  ;;  %325 = vadd.xlane.f32.xlu1 %v324_v7  ;;  %v360_v31 = vsel %vm314_vm0, %v5670_v29, 0.0  ;;  %v363_v34 = vsel %vm314_vm0, %v5677_v32, 0.0  ;;  %v366_v35 = vsel %vm314_vm0, %v5680_v33, 0.0  ;;  %v5687_v36 = vld [vmem:[%s5594_s29 + $0x90] sm:$0xff]  ;;  %v5690_v37 = vld [vmem:[%s5594_s29 + $0x98] sm:$0xff]  ;;  %v5697_v40 = vld [vmem:[%s5594_s29 + $0xa0] sm:$0xff] }
  0x19   : > { %v369_v38 = vsel %vm314_vm0, %v5687_v36, 0.0  ;;  %v372_v39 = vsel %vm314_vm0, %v5690_v37, 0.0  ;;  %v5700_v41 = vld [vmem:[%s5594_s29 + $0xa8] sm:$0xff]  ;;  %v375_v42 = vsel %vm314_vm0, %v5697_v40, 0.0  ;;  %v5707_v44 = vld [vmem:[%s5594_s29 + $0xb0] sm:$0xff]  ;;  %v5710_v45 = vld [vmem:[%s5594_s29 + $0xb8] sm:$0xff] }
  0x1a   : > { %v378_v43 = vsel %vm314_vm0, %v5700_v41, 0.0  ;;  %v381_v46 = vsel %vm314_vm0, %v5707_v44, 0.0  ;;  %v384_v47 = vsel %vm314_vm0, %v5710_v45, 0.0  ;;  %v5717_v48 = vld [vmem:[%s5594_s29 + $0xc0] sm:$0xff]  ;;  %v5720_v49 = vld [vmem:[%s5594_s29 + $0xc8] sm:$0xff] }
  0x1b   : > { %v387_v50 = vsel %vm314_vm0, %v5717_v48, 0.0  ;;  %v390_v51 = vsel %vm314_vm0, %v5720_v49, 0.0  ;;  %823 = vst.msk [vmem:[#allocation3 + $0x90] sm:$0x1] %vm816_vm1, %v9291_v52  ;;  %824 = vst.msk [vmem:[#allocation3 + $0xa8] sm:$0x1] %vm816_vm1, %v9291_v52 }
  0x1c   : > { %328 = vadd.xlane.f32.xlu0 %v327_v10  ;;  %331 = vadd.xlane.f32.xlu1 %v330_v11  ;;  %825 = vst.msk [vmem:[#allocation3 + $0xc0] sm:$0x1] %vm816_vm1, %v9291_v52  ;;  %826 = vst.msk [vmem:[#allocation3 + $0xd8] sm:$0x1] %vm816_vm1, %v9291_v52 }
  0x1d   : > { %827 = vst.msk [vmem:[#allocation3 + $0xf0] sm:$0x1] %vm816_vm1, %v9291_v52  ;;  %828 = vst.msk [vmem:[#allocation3 + $0x108] sm:$0x1] %vm816_vm1, %v9291_v52 }
  0x1e   : > { %829 = vst.msk [vmem:[#allocation3 + $0x120] sm:$0x1] %vm816_vm1, %v9291_v52  ;;  %830 = vst.msk [vmem:[#allocation3 + $0x138] sm:$0x1] %vm816_vm1, %v9291_v52 }
  0x1f   : > { %831 = vst.msk [vmem:[#allocation3 + $0x150] sm:$0x1] %vm816_vm1, %v9291_v52  ;;  %832 = vst.msk [vmem:[#allocation3 + $0x168] sm:$0x1] %vm816_vm1, %v9291_v52 }
  0x20   : > { %334 = vadd.xlane.f32.xlu0 %v333_v14  ;;  %337 = vadd.xlane.f32.xlu1 %v336_v15  ;;  %833 = vst.msk [vmem:[#allocation3 + $0x180] sm:$0x1] %vm816_vm1, %v9291_v52  ;;  %836 = vst.msk [vmem:[#allocation3 + $0x29] sm:$0x1] %vm816_vm1, %v9291_v52 }
  0x21   : > { %837 = vst.msk [vmem:[#allocation3 + $0x41] sm:$0x1] %vm816_vm1, %v9291_v52  ;;  %838 = vst.msk [vmem:[#allocation3 + $0x59] sm:$0x1] %vm816_vm1, %v9291_v52 }
  0x22   : > { %839 = vst.msk [vmem:[#allocation3 + $0x71] sm:$0x1] %vm816_vm1, %v9291_v52  ;;  %840 = vst.msk [vmem:[#allocation3 + $0x89] sm:$0x1] %vm816_vm1, %v9291_v52 }
  0x23   : > { %841 = vst.msk [vmem:[#allocation3 + $0xa1] sm:$0x1] %vm816_vm1, %v9291_v52  ;;  %842 = vst.msk [vmem:[#allocation3 + $0xb9] sm:$0x1] %vm816_vm1, %v9291_v52 }
  0x24   : > { %340 = vadd.xlane.f32.xlu0 %v339_v18  ;;  %343 = vadd.xlane.f32.xlu1 %v342_v19  ;;  %843 = vst.msk [vmem:[#allocation3 + $0xd1] sm:$0x1] %vm816_vm1, %v9291_v52  ;;  %844 = vst.msk [vmem:[#allocation3 + $0xe9] sm:$0x1] %vm816_vm1, %v9291_v52 }
  0x25   : > { %845 = vst.msk [vmem:[#allocation3 + $0x101] sm:$0x1] %vm816_vm1, %v9291_v52  ;;  %846 = vst.msk [vmem:[#allocation3 + $0x119] sm:$0x1] %vm816_vm1, %v9291_v52 }
  0x26   : > { %847 = vst.msk [vmem:[#allocation3 + $0x131] sm:$0x1] %vm816_vm1, %v9291_v52  ;;  %848 = vst.msk [vmem:[#allocation3 + $0x149] sm:$0x1] %vm816_vm1, %v9291_v52 }
  0x27   : > { %849 = vst.msk [vmem:[#allocation3 + $0x161] sm:$0x1] %vm816_vm1, %v9291_v52  ;;  %850 = vst.msk [vmem:[#allocation3 + $0x179] sm:$0x1] %vm816_vm1, %v9291_v52 }
  0x28   : > { %346 = vadd.xlane.f32.xlu0 %v345_v22  ;;  %349 = vadd.xlane.f32.xlu1 %v348_v23  ;;  %851 = vst.msk [vmem:[#allocation3 + $0x191] sm:$0x1] %vm816_vm1, %v9291_v52  ;;  %817 = vst.msk [vmem:[#allocation3] sm:$0x1] %vm816_vm1, %v9291_v52 }
  0x29   : > { %834 = vst.msk [vmem:[#allocation3 + $0x198] sm:$0x1] %vm816_vm1, %v9291_v52 }
  0x2a   : > { %811 = vst.msk [vmem:[#allocation3 + $0x10] sm:$0x3] %vm810_vm2, %v9291_v52  ;;  %815 = vst.msk [vmem:[#allocation3 + $0x1a8] sm:$0x3] %vm810_vm2, %v9291_v52 }
  0x2b   : > { %835 = vst.msk [vmem:[#allocation3 + $0x11] sm:$0x1] %vm816_vm1, %v9291_v52  ;;  %852 = vst.msk [vmem:[#allocation3 + $0x1a9] sm:$0x1] %vm816_vm1, %v9291_v52 }
  0x2c   : > { %352 = vadd.xlane.f32.xlu0 %v351_v26  ;;  %355 = vadd.xlane.f32.xlu1 %v354_v27 }
  0x30   : > { %358 = vadd.xlane.f32.xlu0 %v357_v30  ;;  %361 = vadd.xlane.f32.xlu1 %v360_v31 }
  0x34   : > { %364 = vadd.xlane.f32.xlu0 %v363_v34  ;;  %367 = vadd.xlane.f32.xlu1 %v366_v35 }
  0x38   : > { %370 = vadd.xlane.f32.xlu0 %v369_v38  ;;  %373 = vadd.xlane.f32.xlu1 %v372_v39 }
  0x3c   : > { %376 = vadd.xlane.f32.xlu0 %v375_v42  ;;  %379 = vadd.xlane.f32.xlu1 %v378_v43 }
  0x40   : > { %382 = vadd.xlane.f32.xlu0 %v381_v46  ;;  %385 = vadd.xlane.f32.xlu1 %v384_v47 }
  0x44   : > { %388 = vadd.xlane.f32.xlu0 %v387_v50  ;;  %391 = vadd.xlane.f32.xlu1 %v390_v51 }
  0xa1   : > { %v317_v53 = vpop.xlane.xlu0 %316  ;;  %v323_v54 = vpop.xlane.xlu1 %322 }
  0xa2   : > { %v412_v55 = vmul.f32 0.0625, %v317_v53  ;;  %v414_v56 = vmul.f32 0.0625, %v323_v54 }
  0xa4   : > { %v5803_v57 = vsub.f32 %v5597_v0, %v412_v55  ;;  %v5806_v58 = vsub.f32 %v5600_v1, %v414_v56 }
  0xa5   : > { %v320_v59 = vpop.xlane.xlu0 %319  ;;  %v326_v60 = vpop.xlane.xlu1 %325 }
  0xa6   : > { %v413_v61 = vmul.f32 0.0625, %v320_v59  ;;  %v415_v62 = vmul.f32 0.0625, %v326_v60  ;;  %v476_v63 = vmul.f32 %v5803_v57, %v5803_v57  ;;  %v478_v3 = vmul.f32 %v5806_v58, %v5806_v58 }
  0xa8   : > { %v5813_v4 = vsub.f32 %v5603_v2, %v413_v61  ;;  %v5816_v6 = vsub.f32 %v5610_v5, %v415_v62  ;;  %v508_v0 = vsel %vm314_vm0, %v476_v63, 0.0  ;;  %v514_v10 = vsel %vm314_vm0, %v478_v3, 0.0 }
  0xa9   : > { %509 = vadd.xlane.f32.xlu0 %v508_v0  ;;  %v329_v1 = vpop.xlane.xlu0 %328  ;;  %v332_v7 = vpop.xlane.xlu1 %331 }
  0xaa   : > { %v416_v11 = vmul.f32 0.0625, %v329_v1  ;;  %v417_v14 = vmul.f32 0.0625, %v332_v7  ;;  %v477_v15 = vmul.f32 %v5813_v4, %v5813_v4  ;;  %v479_v18 = vmul.f32 %v5816_v6, %v5816_v6 }
  0xac   : > { %v5825_v2 = vsub.f32 %v5617_v8, %v416_v11  ;;  %v5828_v5 = vsub.f32 %v5620_v9, %v417_v14  ;;  %v511_v19 = vsel %vm314_vm0, %v477_v15, 0.0  ;;  %v517_v26 = vsel %vm314_vm0, %v479_v18, 0.0 }
  0xad   : > { %515 = vadd.xlane.f32.xlu0 %v514_v10  ;;  %512 = vadd.xlane.f32.xlu1 %v511_v19  ;;  %v335_v22 = vpop.xlane.xlu0 %334  ;;  %v338_v23 = vpop.xlane.xlu1 %337 }
  0xae   : > { %v418_v27 = vmul.f32 0.0625, %v335_v22  ;;  %v419_v30 = vmul.f32 0.0625, %v338_v23  ;;  %v480_v31 = vmul.f32 %v5825_v2, %v5825_v2  ;;  %v481_v8 = vmul.f32 %v5828_v5, %v5828_v5 }
  0xb0   : > { %v5837_v34 = vsub.f32 %v5627_v12, %v418_v27  ;;  %v5840_v9 = vsub.f32 %v5630_v13, %v419_v30  ;;  %v520_v35 = vsel %vm314_vm0, %v480_v31, 0.0  ;;  %v523_v42 = vsel %vm314_vm0, %v481_v8, 0.0 }
  0xb1   : > { %518 = vadd.xlane.f32.xlu1 %v517_v26  ;;  %521 = vadd.xlane.f32.xlu0 %v520_v35  ;;  %v341_v38 = vpop.xlane.xlu0 %340  ;;  %v344_v39 = vpop.xlane.xlu1 %343 }
  0xb2   : > { %v420_v43 = vmul.f32 0.0625, %v341_v38  ;;  %v421_v46 = vmul.f32 0.0625, %v344_v39  ;;  %v482_v47 = vmul.f32 %v5837_v34, %v5837_v34  ;;  %v483_v12 = vmul.f32 %v5840_v9, %v5840_v9  ;;  %v306_v39 = vld [vmem:[%s5594_s29 + $0xd0] sm:$0xff] }
  0xb4   : > { %v5849_v50 = vsub.f32 %v5637_v16, %v420_v43  ;;  %v5852_v13 = vsub.f32 %v5640_v17, %v421_v46  ;;  %v526_v51 = vsel %vm314_vm0, %v482_v47, 0.0  ;;  %v529_v55 = vsel %vm314_vm0, %v483_v12, 0.0  ;;  %v307_v12 = vld [vmem:[%s5594_s29 + $0xd8] sm:$0xff] }
  0xb5   : > { %524 = vadd.xlane.f32.xlu1 %v523_v42  ;;  %527 = vadd.xlane.f32.xlu0 %v526_v51  ;;  %v347_v53 = vpop.xlane.xlu0 %346  ;;  %v350_v54 = vpop.xlane.xlu1 %349  ;;  %v393_v47 = vsel %vm314_vm0, %v306_v39, 0.0 }
  0xb6   : > { %v422_v56 = vmul.f32 0.0625, %v347_v53  ;;  %v423_v59 = vmul.f32 0.0625, %v350_v54  ;;  %v484_v60 = vmul.f32 %v5849_v50, %v5849_v50  ;;  %v485_v16 = vmul.f32 %v5852_v13, %v5852_v13  ;;  %v308_v53 = vld [vmem:[%s5594_s29 + $0xe0] sm:$0xff] }
  0xb7   : > { %v396_v54 = vsel %vm314_vm0, %v307_v12, 0.0 }
  0xb8   : > { %v5861_v61 = vsub.f32 %v5647_v20, %v422_v56  ;;  %v5864_v17 = vsub.f32 %v5650_v21, %v423_v59  ;;  %v532_v62 = vsel %vm314_vm0, %v484_v60, 0.0  ;;  %v535_v0 = vsel %vm314_vm0, %v485_v16, 0.0  ;;  %v309_v16 = vld [vmem:[%s5594_s29 + $0xe8] sm:$0xff] }
  0xb9   : > { %530 = vadd.xlane.f32.xlu1 %v529_v55  ;;  %533 = vadd.xlane.f32.xlu0 %v532_v62  ;;  %v353_v63 = vpop.xlane.xlu0 %352  ;;  %v356_v3 = vpop.xlane.xlu1 %355  ;;  %v399_v56 = vsel %vm314_vm0, %v308_v53, 0.0 }
  0xba   : > { %v424_v1 = vmul.f32 0.0625, %v353_v63  ;;  %v425_v7 = vmul.f32 0.0625, %v356_v3  ;;  %v486_v10 = vmul.f32 %v5861_v61, %v5861_v61  ;;  %v487_v20 = vmul.f32 %v5864_v17, %v5864_v17  ;;  %v310_v63 = vld [vmem:[%s5594_s29 + $0xf0] sm:$0xff] }
  0xbc   : > { %v5873_v11 = vsub.f32 %v5657_v24, %v424_v1  ;;  %v5876_v21 = vsub.f32 %v5660_v25, %v425_v7  ;;  %v538_v14 = vsel %vm314_vm0, %v486_v10, 0.0  ;;  %v541_v19 = vsel %vm314_vm0, %v487_v20, 0.0 }
  0xbd   : > { %536 = vadd.xlane.f32.xlu1 %v535_v0  ;;  %539 = vadd.xlane.f32.xlu0 %v538_v14  ;;  %v359_v15 = vpop.xlane.xlu0 %358  ;;  %v362_v18 = vpop.xlane.xlu1 %361  ;;  %v402_v1 = vsel %vm314_vm0, %v309_v16, 0.0  ;;  %v405_v20 = vsel %vm314_vm0, %v310_v63, 0.0  ;;  %v5983_v16 = vld [vmem:[%s9286_s3 + $0xc] ss:$0 sm:$0xff] }
  0xbe   : > { %9433 = vst [vmem:[#allocation5_spill] sm:$0xff] %v5876_v21  ;;  %v426_v22 = vmul.f32 0.0625, %v359_v15  ;;  %v427_v23 = vmul.f32 0.0625, %v362_v18  ;;  %v488_v26 = vmul.f32 %v5873_v11, %v5873_v11  ;;  %v489_v24 = vmul.f32 %v5876_v21, %v5876_v21  ;;  %v311_v15 = vld [vmem:[%s5594_s29 + $0xf8] sm:$0xff] }
  0xc0   : > { %v5885_v25 = vsub.f32 %v5667_v28, %v426_v22  ;;  %v5888_v27 = vsub.f32 %v5670_v29, %v427_v23  ;;  %v544_v30 = vsel %vm314_vm0, %v488_v26, 0.0  ;;  %v547_v35 = vsel %vm314_vm0, %v489_v24, 0.0  ;;  %v5935_v24 = vld [vmem:[#allocation3] sm:$0xff] }
  0xc1   : > { %542 = vadd.xlane.f32.xlu1 %v541_v19  ;;  %545 = vadd.xlane.f32.xlu0 %v544_v30  ;;  %v365_v31 = vpop.xlane.xlu0 %364  ;;  %v368_v8 = vpop.xlane.xlu1 %367  ;;  %v408_v23 = vsel %vm314_vm0, %v311_v15, 0.0  ;;  %9441 = vst [vmem:[#allocation13_spill] sm:$0xff] %v5935_v24  ;;  %v5939_v30 = vld [vmem:[#allocation3 + $0x2] sm:$0xff] }
  0xc2   : > { %9434 = vst [vmem:[#allocation6_spill] sm:$0xff] %v5885_v25  ;;  %9435 = vst [vmem:[#allocation7_spill] sm:$0xff] %v5888_v27  ;;  %v490_v38 = vmul.f32 %v5885_v25, %v5885_v25  ;;  %v491_v28 = vmul.f32 %v5888_v27, %v5888_v27  ;;  %v428_v51 = vmul.f32 0.0625, %v365_v31  ;;  %v429_v60 = vmul.f32 0.0625, %v368_v8 }
  0xc3   : > { %9442 = vst [vmem:[#allocation14_spill] sm:$0xff] %v5939_v30 }
  0xc4   : > { %v550_v29 = vsel %vm314_vm0, %v490_v38, 0.0  ;;  %v553_v46 = vsel %vm314_vm0, %v491_v28, 0.0  ;;  %v5905_v59 = vsub.f32 %v5677_v32, %v428_v51  ;;  %v5919_v10 = vsub.f32 %v5680_v33, %v429_v60  ;;  %v887_v38 = vld [vmem:[#allocation3 + $0x8] sm:$0xff] }
  0xc5   : > { %548 = vadd.xlane.f32.xlu1 %v547_v35  ;;  %551 = vadd.xlane.f32.xlu0 %v550_v29  ;;  %v371_v42 = vpop.xlane.xlu0 %370  ;;  %v374_v43 = vpop.xlane.xlu1 %373  ;;  %v988_v28 = vld [vmem:[#allocation3 + $0x9] sm:$0xff] }
  0xc6   : > { %9436 = vst [vmem:[#allocation8_spill] sm:$0xff] %v5905_v59  ;;  %v430_v62 = vmul.f32 0.0625, %v371_v42  ;;  %v431_v0 = vmul.f32 0.0625, %v374_v43  ;;  %9437 = vst [vmem:[#allocation9_spill] sm:$0xff] %v5919_v10  ;;  %v492_v18 = vmul.f32 %v5905_v59, %v5905_v59  ;;  %v5958_v42 = vld [vmem:[%s9286_s3] ss:$0 sm:$0xff] }
  0xc7   : > { %v5963_v43 = vld [vmem:[%s9286_s3 + $0x1] ss:$0 sm:$0xff] }
  0xc8   : > { %v5923_v14 = vsub.f32 %v5687_v36, %v430_v62  ;;  %v5929_v19 = vsub.f32 %v5690_v37, %v431_v0  ;;  %v5937_v36 = vld [vmem:[#allocation3 + $0x1] sm:$0xff]  ;;  %v556_v31 = vsel %vm314_vm0, %v492_v18, 0.0  ;;  %v493_v37 = vmul.f32 %v5919_v10, %v5919_v10  ;;  %v5995_v0 = vld [vmem:[%s9286_s3 + $0xd] ss:$0 sm:$0xff] }
  0xc9   : > { %554 = vadd.xlane.f32.xlu1 %v553_v46  ;;  %394 = vadd.xlane.f32.xlu0 %v393_v47  ;;  %v377_v55 = vpop.xlane.xlu0 %376  ;;  %v380_v3 = vpop.xlane.xlu1 %379  ;;  %1869 = vst.msk [vmem:[#allocation3] sm:$0xff] %vm314_vm0, %v9291_v52  ;;  %v924_v47 = vmul.f32 %v5958_v42, %v887_v38  ;;  %v1025_v12 = vmul.f32 %v5963_v43, %v988_v28 }
  0xca   : > { %v432_v32 = vmul.f32 0.0625, %v377_v55  ;;  %9438 = vst [vmem:[#allocation10_spill] sm:$0xff] %v5923_v14  ;;  %9439 = vst [vmem:[#allocation11_spill] sm:$0xff] %v5929_v19  ;;  %v433_v22 = vmul.f32 0.0625, %v380_v3  ;;  %v494_v8 = vmul.f32 %v5923_v14, %v5923_v14  ;;  %v495_v29 = vmul.f32 %v5929_v19, %v5929_v19 }
  0xcb   : > { %1874 = vst.msk [vmem:[#allocation3] sm:$0x1] %vm816_vm1, %v9291_v52  ;;  %v559_v51 = vsel %vm314_vm0, %v493_v37, 0.0  ;;  %v5978_v60 = vadd.f32 %v1025_v12, %v924_v47 }
  0xcc   : > { %v5933_v33 = vsub.f32 %v5697_v40, %v432_v32  ;;  %v5951_v39 = vsub.f32 %v5700_v41, %v433_v22  ;;  %1870 = vst.msk [vmem:[#allocation3 + $0x8] sm:$0x3] %vm810_vm2, %v9291_v52  ;;  %v562_v53 = vsel %vm314_vm0, %v494_v8, 0.0  ;;  %v565_v63 = vsel %vm314_vm0, %v495_v29, 0.0 }
  0xcd   : > { %397 = vadd.xlane.f32.xlu1 %v396_v54  ;;  %400 = vadd.xlane.f32.xlu0 %v399_v56  ;;  %v383_v7 = vpop.xlane.xlu0 %382  ;;  %v386_v26 = vpop.xlane.xlu1 %385  ;;  %1884 = vst.msk [vmem:[#allocation3 + $0x9] sm:$0x1] %vm816_vm1, %v9291_v52 }
  0xce   : > { %9440 = vst [vmem:[#allocation12_spill] sm:$0xff] %v5933_v33  ;;  %v434_v35 = vmul.f32 0.0625, %v383_v7  ;;  %9443 = vst [vmem:[#allocation15_spill] sm:$0xff] %v5951_v39  ;;  %v435_v41 = vmul.f32 0.0625, %v386_v26  ;;  %v496_v46 = vmul.f32 %v5933_v33, %v5933_v33 }
  0xd0   : > { %v5976_v54 = vsub.f32 %v5707_v44, %v434_v35  ;;  %v5986_v62 = vsub.f32 %v5710_v45, %v435_v41  ;;  %v568_v3 = vsel %vm314_vm0, %v496_v46, 0.0  ;;  %v497_v44 = vmul.f32 %v5951_v39, %v5951_v39 }
  0xd1   : > { %403 = vadd.xlane.f32.xlu1 %v402_v1  ;;  %406 = vadd.xlane.f32.xlu0 %v405_v20  ;;  %v389_v40 = vpop.xlane.xlu0 %388  ;;  %v392_v56 = vpop.xlane.xlu1 %391  ;;  %v6005_v20 = vld [vmem:[%s9286_s3 + $0xe] ss:$0 sm:$0xff] }
  0xd2   : > { %9444 = vst [vmem:[#allocation16_spill] sm:$0xff] %v5976_v54  ;;  %v436_v55 = vmul.f32 0.0625, %v389_v40  ;;  %9445 = vst [vmem:[#allocation17_spill] sm:$0xff] %v5986_v62  ;;  %v437_v32 = vmul.f32 0.0625, %v392_v56  ;;  %v498_v45 = vmul.f32 %v5976_v54, %v5976_v54  ;;  %v2534_v7 = vld [vmem:[#allocation3] sm:$0xff]  ;;  %v499_v26 = vmul.f32 %v5986_v62, %v5986_v62 }
  0xd3   : > { %v2548_v15 = vmul.f32 %v5983_v16, %v2534_v7  ;;  %v2564_v18 = vld [vmem:[#allocation3 + $0x1] sm:$0xff] }
  0xd4   : > { %v5998_v1 = vsub.f32 %v5717_v48, %v436_v55  ;;  %v2577_v22 = vmul.f32 %v5995_v0, %v2564_v18  ;;  %v571_v48 = vsel %vm314_vm0, %v497_v44, 0.0  ;;  %v6016_v37 = vsub.f32 %v5720_v49, %v437_v32 }
  0xd5   : > { %409 = vadd.xlane.f32.xlu1 %v408_v23  ;;  %557 = vadd.xlane.f32.xlu0 %v556_v31  ;;  %v2593_v23 = vld [vmem:[#allocation3 + $0x2] sm:$0xff]  ;;  %v574_v8 = vsel %vm314_vm0, %v498_v45, 0.0  ;;  %v577_v28 = vsel %vm314_vm0, %v499_v26, 0.0 }
  0xd6   : > { %9446 = vst [vmem:[#allocation18_spill] sm:$0xff] %v5998_v1  ;;  %v2606_v31 = vmul.f32 %v6005_v20, %v2593_v23  ;;  %3527 = vst.msk [vmem:[#allocation3] sm:$0x3f] %vm3526_vm3, %v9291_v52  ;;  %v500_v35 = vmul.f32 %v5998_v1, %v5998_v1  ;;  %v2585_v40 = vadd.f32 %v2577_v22, %v2548_v15 }
  0xd7   : > { %9447 = vst [vmem:[#allocation19_spill] sm:$0xff] %v6016_v37  ;;  %3530 = vst.msk [vmem:[#allocation3] sm:$0x1] %vm816_vm1, %v9291_v52  ;;  %v501_v29 = vmul.f32 %v6016_v37, %v6016_v37 }
  0xd8   : > { %3536 = vst.msk [vmem:[#allocation3 + $0x5] sm:$0x1] %vm816_vm1, %v9291_v52  ;;  %v6025_v38 = vadd.f32 %v2606_v31, %v2585_v40  ;;  %v580_v49 = vsel %vm314_vm0, %v500_v35, 0.0 }
  0xd9   : > { %560 = vadd.xlane.f32.xlu1 %v559_v51  ;;  %563 = vadd.xlane.f32.xlu0 %v562_v53  ;;  %v583_v12 = vsel %vm314_vm0, %v501_v29, 0.0 }
  0xda   : > { %9448 = vst [vmem:[#allocation20_spill] sm:$0xff] %v6025_v38 }
  0xdd   : > { %566 = vadd.xlane.f32.xlu1 %v565_v63  ;;  %569 = vadd.xlane.f32.xlu0 %v568_v3  ;;  %v6033_v46 = vld [vmem:[#allocation3 + $0x1] sm:$0xf] }
  0xde   : > { %v6031_v41 = vld [vmem:[#allocation3] sm:$0xf]  ;;  %9450 = vst [vmem:[#allocation22_spill] sm:$0xff] %v6033_v46 }
  0xdf   : > { %9449 = vst [vmem:[#allocation21_spill] sm:$0xff] %v6031_v41  ;;  %v6035_v47 = vld [vmem:[#allocation3 + $0x2] sm:$0xf] }
  0xe0   : > { %9451 = vst [vmem:[#allocation23_spill] sm:$0xff] %v6035_v47  ;;  %4155 = vst.msk [vmem:[#allocation3] sm:$0xf] %vm3570_vm4, %v9291_v52 }
  0xe1   : > { %572 = vadd.xlane.f32.xlu1 %v571_v48  ;;  %575 = vadd.xlane.f32.xlu0 %v574_v8  ;;  %4158 = vst.msk [vmem:[#allocation3] sm:$0x1] %vm816_vm1, %v9291_v52  ;;  %4162 = vst.msk [vmem:[#allocation3 + $0x3] sm:$0x1] %vm816_vm1, %v9291_v52 }
  0xe5   : > { %578 = vadd.xlane.f32.xlu1 %v577_v28  ;;  %581 = vadd.xlane.f32.xlu0 %v580_v49  ;;  %v6047_v28 = vld [vmem:[%s9284_s1] ss:$0 sm:$0xff] }
  0xe9   : > { %584 = vadd.xlane.f32.xlu1 %v583_v12 }
 0x136   : > { %v510_v51 = vpop.xlane.xlu0 %509 }
 0x137   : > { %v604_v53 = vmul.f32 0.0625, %v510_v51 }
 0x139   : > { %v636_v55 = vadd.f32 1e-06, %v604_v53 }
 0x13a   : > { %v513_v56 = vpop.xlane.xlu1 %512  ;;  %v516_v63 = vpop.xlane.xlu0 %515 }
 0x13b   : > { %5291 = vrsqrt.f32 %v636_v55  ;;  %v605_v3 = vmul.f32 0.0625, %v513_v56  ;;  %v606_v44 = vmul.f32 0.0625, %v516_v63  ;;  %v6053_v55 = vld [vmem:[%s9285_s2] ss:$0 sm:$0xff] }
 0x13d   : > { %v637_v32 = vadd.f32 1e-06, %v605_v3  ;;  %v638_v45 = vadd.f32 1e-06, %v606_v44 }
 0x13e   : > { %v519_v7 = vpop.xlane.xlu1 %518  ;;  %v522_v15 = vpop.xlane.xlu0 %521 }
 0x13f   : > { %5293 = vrsqrt.f32 %v637_v32  ;;  %v607_v18 = vmul.f32 0.0625, %v519_v7  ;;  %v608_v22 = vmul.f32 0.0625, %v522_v15 }
 0x140   : > { %5295 = vrsqrt.f32 %v638_v45 }
 0x141   : > { %v639_v23 = vadd.f32 1e-06, %v607_v18  ;;  %v640_v48 = vadd.f32 1e-06, %v608_v22 }
 0x142   : > { %v525_v26 = vpop.xlane.xlu1 %524  ;;  %v528_v31 = vpop.xlane.xlu0 %527 }
 0x143   : > { %5297 = vrsqrt.f32 %v639_v23  ;;  %v609_v8 = vmul.f32 0.0625, %v525_v26  ;;  %v610_v35 = vmul.f32 0.0625, %v528_v31 }
 0x144   : > { %5299 = vrsqrt.f32 %v640_v48 }
 0x145   : > { %v5292_v40 = vpop.eup %5291  ;;  %v641_v49 = vadd.f32 1e-06, %v609_v8  ;;  %v642_v29 = vadd.f32 1e-06, %v610_v35  ;;  %v1089_v8 = vld [vmem:[#allocation3 + $0xa] sm:$0xff] }
 0x146   : > { %v700_v12 = vmul.f32 %v5292_v40, %v5803_v57  ;;  %v531_v51 = vpop.xlane.xlu1 %530  ;;  %v534_v53 = vpop.xlane.xlu0 %533 }
 0x147   : > { %5301 = vrsqrt.f32 %v641_v49  ;;  %v611_v56 = vmul.f32 0.0625, %v531_v51  ;;  %v612_v63 = vmul.f32 0.0625, %v534_v53  ;;  %v6071_v53 = vmul.f32 %v5963_v43, %v5937_v36 }
 0x148   : > { %v738_v3 = vmul.f32 %v6047_v28, %v700_v12  ;;  %5303 = vrsqrt.f32 %v642_v29 }
 0x149   : > { %v5294_v44 = vpop.eup %5293  ;;  %v643_v32 = vadd.f32 1e-06, %v611_v56  ;;  %v644_v45 = vadd.f32 1e-06, %v612_v63  ;;  %9454 = vst [vmem:[#allocation26_spill] sm:$0xff] %v6071_v53 }
 0x14a   : > { %v5296_v7 = vpop.eup %5295  ;;  %v6057_v15 = vadd.f32 %v6053_v55, %v738_v3  ;;  %v701_v57 = vmul.f32 %v5294_v44, %v5813_v4  ;;  %v537_v18 = vpop.xlane.xlu1 %536  ;;  %v6076_v56 = vld [vmem:[%s9286_s3 + $0x2] ss:$0 sm:$0xff] }
 0x14b   : > { %v540_v22 = vpop.xlane.xlu0 %539  ;;  %v702_v23 = vmul.f32 %v5296_v7, %v5806_v58  ;;  %5305 = vrsqrt.f32 %v643_v32  ;;  %v613_v48 = vmul.f32 0.0625, %v537_v18  ;;  %v1126_v32 = vmul.f32 %v6076_v56, %v1089_v8 }
 0x14c   : > { %9452 = vst [vmem:[#allocation24_spill] sm:$0xff] %v6057_v15  ;;  %854 = vst.msk [vmem:[#allocation3 + $0x19] sm:$0xff] %vm314_vm0, %v6057_v15  ;;  %v739_v26 = vmul.f32 %v6047_v28, %v701_v57  ;;  %5307 = vrsqrt.f32 %v644_v45  ;;  %v614_v49 = vmul.f32 0.0625, %v540_v22 }
 0x14d   : > { %v5298_v31 = vpop.eup %5297  ;;  %v740_v35 = vmul.f32 %v6047_v28, %v702_v23  ;;  %v645_v40 = vadd.f32 1e-06, %v613_v48 }
 0x14e   : > { %v5300_v29 = vpop.eup %5299  ;;  %v6066_v4 = vadd.f32 %v6053_v55, %v739_v26  ;;  %v703_v58 = vmul.f32 %v5298_v31, %v5816_v6  ;;  %v543_v12 = vpop.xlane.xlu1 %542  ;;  %v1894_v6 = vsel %vm314_vm0, %v6057_v15, -inf  ;;  %v646_v18 = vadd.f32 1e-06, %v614_v49 }
 0x14f   : > { %v546_v51 = vpop.xlane.xlu0 %545  ;;  %v6079_v63 = vadd.f32 %v6053_v55, %v740_v35  ;;  %v704_v3 = vmul.f32 %v5300_v29, %v5825_v2  ;;  %v615_v44 = vmul.f32 0.0625, %v543_v12  ;;  %5309 = vrsqrt.f32 %v645_v40 }
 0x150   : > { %9453 = vst [vmem:[#allocation25_spill] sm:$0xff] %v6066_v4  ;;  %855 = vst.msk [vmem:[#allocation3 + $0x21] sm:$0xff] %vm314_vm0, %v6066_v4  ;;  %v741_v36 = vmul.f32 %v6047_v28, %v703_v58  ;;  %v616_v45 = vmul.f32 0.0625, %v546_v51  ;;  %v1897_v51 = vsel %vm314_vm0, %v6066_v4, -inf  ;;  %5311 = vrsqrt.f32 %v646_v18 }
 0x151   : > { %9455 = vst [vmem:[#allocation27_spill] sm:$0xff] %v6079_v63  ;;  %v5302_v7 = vpop.eup %5301  ;;  %856 = vst.msk [vmem:[#allocation3 + $0x31] sm:$0xff] %vm314_vm0, %v6079_v63  ;;  %v1895_v57 = vsel %vm314_vm0, %v6079_v63, -inf  ;;  %v742_v2 = vmul.f32 %v6047_v28, %v704_v3  ;;  %v647_v31 = vadd.f32 1e-06, %v615_v44 }
 0x152   : > { %v5304_v22 = vpop.eup %5303  ;;  %v6093_v23 = vmax.f32 %v1894_v6, %v1895_v57  ;;  %v6096_v48 = vadd.f32 %v6053_v55, %v741_v36  ;;  %v705_v26 = vmul.f32 %v5302_v7, %v5828_v5  ;;  %v549_v8 = vpop.xlane.xlu1 %548  ;;  %v648_v40 = vadd.f32 1e-06, %v616_v45 }
 0x153   : > { %v552_v35 = vpop.xlane.xlu0 %551  ;;  %v6099_v29 = vld [vmem:[#allocation3 + $0x18] sm:$0xff]  ;;  %v6102_v58 = vadd.f32 %v6053_v55, %v742_v2  ;;  %v706_v12 = vmul.f32 %v5304_v22, %v5837_v34  ;;  %v617_v49 = vmul.f32 0.0625, %v549_v8  ;;  %v1158_v57 = vadd.f32 %v1126_v32, %v5978_v60  ;;  %v6127_v2 = vld [vmem:[%s9286_s3 + $0x4] ss:$0 sm:$0xff] }
 0x154   : > { %9456 = vst [vmem:[#allocation28_spill] sm:$0xff] %v6096_v48  ;;  %9457 = vst [vmem:[#allocation29_spill] sm:$0xff] %v6099_v29  ;;  %v1898_v5 = vsel %vm314_vm0, %v6096_v48, -inf  ;;  %v743_v3 = vmul.f32 %v6047_v28, %v705_v26  ;;  %v618_v34 = vmul.f32 0.0625, %v552_v35  ;;  %5313 = vrsqrt.f32 %v647_v31 }
 0x155   : > { %9458 = vst [vmem:[#allocation30_spill] sm:$0xff] %v6102_v58  ;;  %1875 = vst.msk [vmem:[#allocation3 + $0x18] sm:$0x1] %vm816_vm1, %v9291_v52  ;;  %v5306_v44 = vpop.eup %5305  ;;  %v6116_v6 = vmax.f32 %v1897_v51, %v1898_v5  ;;  %v1900_v36 = vsel %vm314_vm0, %v6102_v58, -inf  ;;  %v744_v45 = vmul.f32 %v6047_v28, %v706_v12  ;;  %5315 = vrsqrt.f32 %v648_v40  ;;  %v6160_v40 = vld [vmem:[%s9286_s3 + $0x5] ss:$0 sm:$0xff] }
 0x156   : > { %1942 = vst.msk [vmem:[#allocation4] sm:$0xff] %vm314_vm0, %v6093_v23  ;;  %857 = vst.msk [vmem:[#allocation3 + $0x39] sm:$0xff] %vm314_vm0, %v6096_v48  ;;  %v5308_v7 = vpop.eup %5307  ;;  %v3542_v22 = vmax.f32 %v6093_v23, %v1900_v36  ;;  %v6131_v26 = vadd.f32 %v6053_v55, %v743_v3  ;;  %v555_v8 = vpop.xlane.xlu1 %554  ;;  %v707_v32 = vmul.f32 %v5306_v44, %v5840_v9  ;;  %v649_v18 = vadd.f32 1e-06, %v617_v49  ;;  %v6144_v23 = vld [vmem:[%s9286_s3 + $0x6] ss:$0 sm:$0xff] }
 0x157   : > { %858 = vst.msk [vmem:[#allocation3 + $0x49] sm:$0xff] %vm314_vm0, %v6102_v58  ;;  %v889_v35 = vld [vmem:[#allocation3 + $0x20] sm:$0xff]  ;;  %1943 = vst.msk [vmem:[#allocation4 + $0x8] sm:$0xff] %vm314_vm0, %v6116_v6  ;;  %v6138_v60 = vadd.f32 %v6053_v55, %v744_v45  ;;  %v9462_v58 = vmov 0.0   ;;  %v6155_v9 = vadd.f32 1e-06, %v618_v34  ;;  %v708_v34 = vmul.f32 %v5308_v7, %v5849_v50 }
 0x158   : > { %9459 = vst [vmem:[#allocation31_spill] sm:$0xff] %v6131_v26  ;;  %v990_v51 = vld [vmem:[#allocation3 + $0x21] sm:$0xff]  ;;  %v926_v31 = vmul.f32 %v5958_v42, %v889_v35  ;;  %v1228_v52 = vmul.f32 %v6127_v2, %v889_v35  ;;  %v6151_v45 = vld [vmem:[#allocation3 + $0x30] sm:$0xff]  ;;  %859 = vst.msk [vmem:[#allocation3 + $0x51] sm:$0xff] %vm314_vm0, %v6131_v26  ;;  %v6166_v49 = vsel %vm314_vm0, %v6131_v26, -inf  ;;  %v6173_v35 = vmul.f32 0.0625, %v555_v8 }
 0x159   : > { %v6133_v5 = vld [vmem:[#allocation3 + $0x1a] sm:$0xff]  ;;  %9461 = vst [vmem:[#allocation33_spill] sm:$0xff] %v6138_v60  ;;  %v1027_v12 = vmul.f32 %v5963_v43, %v990_v51  ;;  %v1091_v3 = vld [vmem:[#allocation3 + $0x22] sm:$0xff]  ;;  %9463 = vst [vmem:[#allocation34_spill] sm:$0xff] %v6151_v45  ;;  %v1901_v44 = vsel %vm314_vm0, %v6138_v60, -inf  ;;  %v1329_v15 = vmul.f32 %v6160_v40, %v990_v51  ;;  %v5310_v47 = vpop.eup %5309  ;;  %5317 = vrsqrt.f32 %v649_v18 }
 0x15a   : > { %9460 = vst [vmem:[#allocation32_spill] sm:$0xff] %v6133_v5  ;;  %1885 = vst.msk [vmem:[#allocation3 + $0x21] sm:$0x1] %vm816_vm1, %v9462_v58  ;;  %v1260_v48 = vadd.f32 %v1228_v52, %v1158_v57  ;;  %v1902_v63 = vmax.f32 %v1900_v36, %v1901_v44  ;;  %v1128_v46 = vmul.f32 %v6076_v56, %v1091_v3 }
 0x15b   : > { %9464 = vst [vmem:[#allocation35_spill] sm:$0xff] %v6155_v9  ;;  %1876 = vst.msk [vmem:[#allocation3 + $0x30] sm:$0x1] %vm816_vm1, %v9462_v58  ;;  %v1059_v4 = vadd.f32 %v1027_v12, %v926_v31  ;;  %v1430_v26 = vmul.f32 %v6144_v23, %v1091_v3  ;;  %v6178_v37 = vmax.f32 %v3542_v22, %v1901_v44  ;;  %v6194_v3 = vpop.eup %5311 }
 0x15c   : > { %860 = vst.msk [vmem:[#allocation3 + $0x61] sm:$0xff] %vm314_vm0, %v6138_v60  ;;  %9465 = vst [vmem:[#allocation36_spill] sm:$0xff] %v6173_v35  ;;  %v1361_v60 = vadd.f32 %v1329_v15, %v1260_v48 }
 0x15d   : > { %v1958_v41 = vld [vmem:[#allocation4] sm:$0x3]  ;;  %v2030_v38 = vld [vmem:[#allocation4 + $0x2] sm:$0x3]  ;;  %v2102_v45 = vld [vmem:[#allocation4 + $0x4] sm:$0x3]  ;;  %v1160_v15 = vadd.f32 %v1128_v46, %v1059_v4 }
 0x15e   : > { %9466 = vst [vmem:[#allocation37_spill] sm:$0xff] %v6178_v37  ;;  %v1966_v50 = vsel %vm810_vm2, %v1958_v41, -inf  ;;  %v2038_v7 = vsel %vm810_vm2, %v2030_v38, -inf  ;;  %v2174_v52 = vld [vmem:[#allocation4 + $0x6] sm:$0x3]  ;;  %v891_v57 = vld [vmem:[#allocation3 + $0x38] sm:$0xff]  ;;  %v6192_v38 = vmul.f32 %v6047_v28, %v707_v32  ;;  %v1462_v46 = vadd.f32 %v1430_v26, %v1361_v60 }
 0x15f   : > { %v992_v8 = vld [vmem:[#allocation3 + $0x39] sm:$0xff]  ;;  %1944 = vst.msk [vmem:[#allocation4 + $0x10] sm:$0xff] %vm314_vm0, %v1902_v63  ;;  %v1967_v51 = vrot.slane %v1966_v50, 4  ;;  %v2039_v31 = vrot.slane %v2038_v7, 4  ;;  %v2110_v12 = vsel %vm810_vm2, %v2102_v45, -inf  ;;  %v2182_v22 = vsel %vm810_vm2, %v2174_v52, -inf }
 0x160   : > { %v6187_v18 = vld [vmem:[#allocation3 + $0x32] sm:$0xff]  ;;  %v2111_v41 = vrot.slane %v2110_v12, 4  ;;  %v2183_v48 = vrot.slane %v2182_v22, 4  ;;  %v928_v36 = vmul.f32 %v5958_v42, %v891_v57  ;;  %v1029_v45 = vmul.f32 %v5963_v43, %v992_v8  ;;  %v6198_v52 = vld [vmem:[#allocation3 + $0x48] sm:$0xff]  ;;  %v2462_v25 = vld [vmem:[#allocation4 + $0xe] sm:$0x3] }
 0x161   : > { %9467 = vst [vmem:[#allocation38_spill] sm:$0xff] %v6187_v18  ;;  %1886 = vst.msk [vmem:[#allocation3 + $0x39] sm:$0x1] %vm816_vm1, %v9462_v58  ;;  %v1968_v63 = vmax.f32 %v1966_v50, %v1967_v51  ;;  %v2040_v44 = vmax.f32 %v2038_v7, %v2039_v31  ;;  %v6200_v18 = vpop.eup %5313  ;;  %v6205_v32 = vld [vmem:[%s9286_s3 + $0x8] ss:$0 sm:$0xff]  ;;  %v1230_v62 = vmul.f32 %v6127_v2, %v891_v57  ;;  %v6210_v50 = vld [vmem:[#allocation3 + $0x50] sm:$0xff] }
 0x162   : > { %9468 = vst [vmem:[#allocation39_spill] sm:$0xff] %v6198_v52  ;;  %v2112_v4 = vmax.f32 %v2110_v12, %v2111_v41  ;;  %v2184_v1 = vmax.f32 %v2182_v22, %v2183_v48  ;;  %1877 = vst.msk [vmem:[#allocation3 + $0x48] sm:$0x1] %vm816_vm1, %v9462_v58  ;;  %v6212_v7 = vpop.eup %5315  ;;  %v6214_v5 = vld [vmem:[#allocation3 + $0x51] sm:$0xff]  ;;  %v6221_v12 = vmul.f32 %v6047_v28, %v708_v34  ;;  %v6234_v34 = vld [vmem:[%s9286_s3 + $0x9] ss:$0 sm:$0xff] }
 0x163   : > { %v1969_v51 = vrot.slane %v1968_v63, 2  ;;  %v2041_v31 = vrot.slane %v2040_v44, 2  ;;  %v6216_v26 = vld [vmem:[#allocation3 + $0x4a] sm:$0xff]  ;;  %v6218_v60 = vld [vmem:[#allocation3 + $0x60] sm:$0xff]  ;;  %v6224_v22 = vmul.f32 %v5310_v47, %v5852_v13  ;;  %v1262_v54 = vadd.f32 %v1230_v62, %v1160_v15  ;;  %v2246_v33 = vld [vmem:[#allocation4 + $0x8] sm:$0x3] }
 0x164   : > { %9469 = vst [vmem:[#allocation40_spill] sm:$0xff] %v6216_v26  ;;  %9470 = vst [vmem:[#allocation41_spill] sm:$0xff] %v6218_v60  ;;  %v2113_v41 = vrot.slane %v2112_v4, 2  ;;  %v2185_v48 = vrot.slane %v2184_v1, 2  ;;  %v1533_v39 = vmul.f32 %v6205_v32, %v891_v57  ;;  %v6239_v13 = vld [vmem:[%s9286_s3 + $0xa] ss:$0 sm:$0xff]  ;;  %v1061_v62 = vadd.f32 %v1029_v45, %v928_v36 }
 0x165   : > { %1887 = vst.msk [vmem:[#allocation3 + $0x51] sm:$0x1] %vm816_vm1, %v9462_v58  ;;  %1878 = vst.msk [vmem:[#allocation3 + $0x60] sm:$0x1] %vm816_vm1, %v9462_v58  ;;  %v1970_v19 = vmax.f32 %v1968_v63, %v1969_v51  ;;  %v2042_v14 = vmax.f32 %v2040_v44, %v2041_v31  ;;  %v1093_v47 = vld [vmem:[#allocation3 + $0x3a] sm:$0xff]  ;;  %v1331_v57 = vmul.f32 %v6160_v40, %v992_v8  ;;  %v6243_v51 = vpop.eup %5317  ;;  %v2254_v30 = vsel %vm810_vm2, %v2246_v33, -inf }
 0x166   : > { %v2114_v15 = vmax.f32 %v2112_v4, %v2113_v41  ;;  %v2186_v10 = vmax.f32 %v2184_v1, %v2185_v48  ;;  %v1565_v59 = vadd.f32 %v1533_v39, %v1462_v46  ;;  %v1634_v63 = vmul.f32 %v6234_v34, %v992_v8  ;;  %v2318_v44 = vld [vmem:[#allocation4 + $0xa] sm:$0x3]  ;;  %9471 = vst [vmem:[#allocation42_spill] sm:$0xff] %v6243_v51  ;;  %v2390_v45 = vld [vmem:[#allocation4 + $0xc] sm:$0x3] }
 0x167   : > { %v1971_v31 = vrot.slane %v1970_v19, 1  ;;  %v2043_v53 = vrot.slane %v2042_v14, 1  ;;  %v1363_v29 = vadd.f32 %v1331_v57, %v1262_v54  ;;  %v1735_v36 = vmul.f32 %v6239_v13, %v1093_v47  ;;  %v6248_v46 = vld [vmem:[#allocation3 + $0x19] sm:$0xff] }
 0x168   : > { %v2115_v24 = vrot.slane %v2114_v15, 1  ;;  %v2187_v27 = vrot.slane %v2186_v10, 1  ;;  %v1666_v35 = vadd.f32 %v1634_v63, %v1565_v59  ;;  %v2255_v39 = vrot.slane %v2254_v30, 4  ;;  %9472 = vst [vmem:[#allocation43_spill] sm:$0xff] %v6248_v46  ;;  %v6255_v59 = vld [vmem:[%s9287_s4] ss:$0 sm:$0xff] }
 0x169   : > { %v1972_v4 = vmax.f32 %v1970_v19, %v1971_v31  ;;  %v2044_v1 = vmax.f32 %v2042_v14, %v2043_v53  ;;  %v2326_v8 = vsel %vm810_vm2, %v2318_v44, -inf  ;;  %v1432_v14 = vmul.f32 %v6144_v23, %v1093_v47  ;;  %v6263_v57 = vld [vmem:[#allocation3 + $0x52] sm:$0xff] }
 0x16a   : > { %v2116_v41 = vmax.f32 %v2114_v15, %v2115_v24  ;;  %v2188_v48 = vmax.f32 %v2186_v10, %v2187_v27  ;;  %v1767_v9 = vadd.f32 %v1735_v36, %v1666_v35  ;;  %v2327_v54 = vrot.slane %v2326_v8, 4 }
 0x16b   : > { %2022 = vst.msk [vmem:[#allocation3 + $0x19] sm:$0x1] %vm816_vm1, %v1972_v4  ;;  %2094 = vst.msk [vmem:[#allocation3 + $0x1a] sm:$0x1] %vm816_vm1, %v2044_v1  ;;  %v2256_v19 = vmax.f32 %v2254_v30, %v2255_v39  ;;  %v2398_v33 = vsel %vm810_vm2, %v2390_v45, -inf  ;;  %v2470_v53 = vsel %vm810_vm2, %v2462_v25, -inf  ;;  %v1130_v15 = vmul.f32 %v6076_v56, %v1093_v47 }
 0x16c   : > { %2166 = vst.msk [vmem:[#allocation3 + $0x1b] sm:$0x1] %vm816_vm1, %v2116_v41  ;;  %2238 = vst.msk [vmem:[#allocation3 + $0x1c] sm:$0x1] %vm816_vm1, %v2188_v48  ;;  %v1806_v27 = vadd.f32 %v6255_v59, %v1767_v9  ;;  %v2328_v10 = vmax.f32 %v2326_v8, %v2327_v54  ;;  %v2399_v24 = vrot.slane %v2398_v33, 4  ;;  %v2471_v35 = vrot.slane %v2470_v53, 4 }
 0x16d   : > { %v2257_v63 = vrot.slane %v2256_v19, 2  ;;  %v930_v30 = vmul.f32 %v5958_v42, %v6210_v50  ;;  %v1031_v25 = vmul.f32 %v5963_v43, %v6214_v5  ;;  %v1464_v44 = vadd.f32 %v1432_v14, %v1363_v29  ;;  %v1959_v48 = vld [vmem:[#allocation4 + $0x10] sm:$0x3] }
 0x16e   : > { %1838 = vst.msk [vmem:[#allocation2 + $0x8] sm:$0xff] %vm314_vm0, %v1806_v27  ;;  %v2329_v31 = vrot.slane %v2328_v10, 2  ;;  %v2400_v36 = vmax.f32 %v2398_v33, %v2399_v24  ;;  %v2472_v9 = vmax.f32 %v2470_v53, %v2471_v35  ;;  %v1162_v45 = vadd.f32 %v1130_v15, %v1061_v62  ;;  %v2031_v33 = vld [vmem:[#allocation4 + $0x12] sm:$0x3]  ;;  %v2175_v15 = vld [vmem:[#allocation4 + $0x16] sm:$0x3] }
 0x16f   : > { %v2258_v4 = vmax.f32 %v2256_v19, %v2257_v63  ;;  %v6273_v1 = vmul.f32 %v6076_v56, %v6263_v57  ;;  %v1232_v47 = vmul.f32 %v6127_v2, %v6210_v50  ;;  %v1535_v29 = vmul.f32 %v6205_v32, %v6210_v50 }
 0x170   : > { %v2330_v39 = vmax.f32 %v2328_v10, %v2329_v31  ;;  %v2401_v8 = vrot.slane %v2400_v36, 2  ;;  %v2473_v41 = vrot.slane %v2472_v9, 2  ;;  %v1063_v14 = vadd.f32 %v1031_v25, %v930_v30  ;;  %v2103_v10 = vld [vmem:[#allocation4 + $0x14] sm:$0x3] }
 0x171   : > { %v2259_v54 = vrot.slane %v2258_v4, 1  ;;  %v1333_v62 = vmul.f32 %v6160_v40, %v6214_v5  ;;  %v1636_v19 = vmul.f32 %v6234_v34, %v6214_v5  ;;  %v1567_v35 = vadd.f32 %v1535_v29, %v1464_v44  ;;  %v6287_v5 = vld [vmem:[#allocation3 + $0x49] sm:$0xff] }
 0x172   : > { %v2331_v53 = vrot.slane %v2330_v39, 1  ;;  %v2402_v27 = vmax.f32 %v2400_v36, %v2401_v8  ;;  %v2474_v24 = vmax.f32 %v2472_v9, %v2473_v41  ;;  %v1264_v31 = vadd.f32 %v1232_v47, %v1162_v45  ;;  %9473 = vst [vmem:[#allocation44_spill] sm:$0xff] %v6287_v5 }
 0x173   : > { %v2260_v63 = vmax.f32 %v2258_v4, %v2259_v54  ;;  %v1737_v50 = vmul.f32 %v6239_v13, %v6263_v57  ;;  %v1973_v30 = vsel %vm810_vm2, %v1959_v48, -inf  ;;  %v1668_v21 = vadd.f32 %v1636_v19, %v1567_v35 }
 0x174   : > { %v2332_v25 = vmax.f32 %v2330_v39, %v2331_v53  ;;  %v2403_v46 = vrot.slane %v2402_v27, 1  ;;  %v2475_v51 = vrot.slane %v2474_v24, 1  ;;  %v1974_v36 = vrot.slane %v1973_v30, 4 }
 0x175   : > { %2310 = vst.msk [vmem:[#allocation3 + $0x1d] sm:$0x1] %vm816_vm1, %v2260_v63  ;;  %v2045_v44 = vsel %vm810_vm2, %v2031_v33, -inf  ;;  %v2117_v9 = vsel %vm810_vm2, %v2103_v10, -inf  ;;  %v2189_v45 = vsel %vm810_vm2, %v2175_v15, -inf  ;;  %v1769_v8 = vadd.f32 %v1737_v50, %v1668_v21 }
 0x176   : > { %2382 = vst.msk [vmem:[#allocation3 + $0x1e] sm:$0x1] %vm816_vm1, %v2332_v25  ;;  %v2404_v4 = vmax.f32 %v2402_v27, %v2403_v46  ;;  %v2476_v47 = vmax.f32 %v2474_v24, %v2475_v51  ;;  %v2046_v39 = vrot.slane %v2045_v44, 4  ;;  %v1975_v41 = vmax.f32 %v1973_v30, %v1974_v36 }
 0x177   : > { %v2118_v29 = vrot.slane %v2117_v9, 4  ;;  %v2190_v48 = vrot.slane %v2189_v45, 4  ;;  %v6295_v54 = vadd.f32 %v6053_v55, %v6192_v38  ;;  %v1808_v19 = vadd.f32 %v6255_v59, %v1769_v8  ;;  %v6329_v8 = vld [vmem:[#allocation3 + $0x31] sm:$0xff] }
 0x178   : > { %2454 = vst.msk [vmem:[#allocation3 + $0x1f] sm:$0x1] %vm816_vm1, %v2404_v4  ;;  %2526 = vst.msk [vmem:[#allocation3 + $0x20] sm:$0x1] %vm816_vm1, %v2476_v47  ;;  %v2047_v33 = vmax.f32 %v2045_v44, %v2046_v39  ;;  %v929_v46 = vmul.f32 %v5958_v42, %v6198_v52  ;;  %v1030_v21 = vmul.f32 %v5963_v43, %v6287_v5  ;;  %v1976_v51 = vrot.slane %v1975_v41, 2 }
 0x179   : > { %9474 = vst [vmem:[#allocation45_spill] sm:$0xff] %v6295_v54  ;;  %v2119_v53 = vmax.f32 %v2117_v9, %v2118_v29  ;;  %v2191_v27 = vmax.f32 %v2189_v45, %v2190_v48  ;;  %861 = vst.msk [vmem:[#allocation3 + $0x69] sm:$0xff] %vm314_vm0, %v6295_v54  ;;  %v1904_v38 = vsel %vm314_vm0, %v6295_v54, -inf  ;;  %v1365_v24 = vadd.f32 %v1333_v62, %v1264_v31  ;;  %v6319_v62 = vld [vmem:[#allocation3 + $0x61] sm:$0xff] }
 0x17a   : > { %1840 = vst.msk [vmem:[#allocation2 + $0x18] sm:$0xff] %vm314_vm0, %v1808_v19  ;;  %v2048_v35 = vrot.slane %v2047_v33, 2  ;;  %v1905_v10 = vmax.f32 %v6166_v49, %v1904_v38  ;;  %v9475_v15 = vmax.f32 %v6116_v6, %v6166_v49  ;;  %v1977_v50 = vmax.f32 %v1975_v41, %v1976_v51  ;;  %9476 = vst [vmem:[#allocation46_spill] sm:$0xff] %v6319_v62 }
 0x17b   : > { %v2120_v30 = vrot.slane %v2119_v53, 2  ;;  %v2192_v25 = vrot.slane %v2191_v27, 2  ;;  %v1131_v36 = vmul.f32 %v6076_v56, %v6216_v26  ;;  %v1434_v44 = vmul.f32 %v6144_v23, %v6263_v57  ;;  %9478 = vst [vmem:[#allocation48_spill] sm:$0xff] %v6329_v8 }
 0x17c   : > { %v6313_v63 = vmax.f32 %v9475_v15, %v1904_v38  ;;  %v2049_v31 = vmax.f32 %v2047_v33, %v2048_v35  ;;  %1945 = vst.msk [vmem:[#allocation4 + $0x18] sm:$0xff] %vm314_vm0, %v1905_v10  ;;  %v1062_v6 = vadd.f32 %v1030_v21, %v929_v46  ;;  %v6326_v49 = vadd.f32 %v6053_v55, %v6221_v12 }
 0x17d   : > { %v1164_v9 = vadd.f32 %v6273_v1, %v1063_v14  ;;  %v1978_v45 = vrot.slane %v1977_v50, 1  ;;  %v2121_v4 = vmax.f32 %v2119_v53, %v2120_v30  ;;  %v2193_v47 = vmax.f32 %v2191_v27, %v2192_v25 }
 0x17e   : > { %3559 = vst.msk [vmem:[#allocation4 + $0x8] sm:$0xff] %vm314_vm0, %v6313_v63  ;;  %9477 = vst [vmem:[#allocation47_spill] sm:$0xff] %v6326_v49  ;;  %v1466_v57 = vadd.f32 %v1434_v44, %v1365_v24  ;;  %v2050_v39 = vrot.slane %v2049_v31, 1  ;;  %v1163_v41 = vadd.f32 %v1131_v36, %v1062_v6  ;;  %v1233_v29 = vmul.f32 %v6127_v2, %v6218_v60 }
 0x17f   : > { %862 = vst.msk [vmem:[#allocation3 + $0x79] sm:$0xff] %vm314_vm0, %v6326_v49  ;;  %v6335_v48 = vld [vmem:[#allocation3 + $0x18] sm:$0xff]  ;;  %v1979_v1 = vmax.f32 %v1977_v50, %v1978_v45  ;;  %v2122_v14 = vrot.slane %v2121_v4, 1  ;;  %v2194_v33 = vrot.slane %v2193_v47, 1  ;;  %v1334_v46 = vmul.f32 %v6160_v40, %v6319_v62 }
 0x180   : > { %9479 = vst [vmem:[#allocation49_spill] sm:$0xff] %v6335_v48  ;;  %v6337_v12 = vld [vmem:[#allocation3 + $0x19] sm:$0xff]  ;;  %v2549_v21 = vmul.f32 %v5983_v16, %v6335_v48  ;;  %3531 = vst.msk [vmem:[#allocation3 + $0x18] sm:$0x1] %vm816_vm1, %v9462_v58  ;;  %v2051_v53 = vmax.f32 %v2049_v31, %v2050_v39  ;;  %v895_v27 = vld [vmem:[#allocation3 + $0x68] sm:$0xff]  ;;  %v6355_v35 = vsel %vm314_vm0, %v6326_v49, -inf  ;;  %v1265_v25 = vadd.f32 %v1233_v29, %v1163_v41 }
 0x181   : > { %9480 = vst [vmem:[#allocation50_spill] sm:$0xff] %v6337_v12  ;;  %v6339_v19 = vld [vmem:[#allocation3 + $0x1a] sm:$0xff]  ;;  %v2578_v51 = vmul.f32 %v5995_v0, %v6337_v12  ;;  %v996_v38 = vld [vmem:[#allocation3 + $0x69] sm:$0xff]  ;;  %2023 = vst.msk [vmem:[#allocation3 + $0x31] sm:$0x1] %vm816_vm1, %v1979_v1  ;;  %v2123_v16 = vmax.f32 %v2121_v4, %v2122_v14  ;;  %v2195_v10 = vmax.f32 %v2193_v47, %v2194_v33 }
 0x182   : > { %9481 = vst [vmem:[#allocation51_spill] sm:$0xff] %v6339_v19  ;;  %3537 = vst.msk [vmem:[#allocation3 + $0x1d] sm:$0x1] %vm816_vm1, %v9462_v58  ;;  %v6351_v24 = vld [vmem:[#allocation3 + $0x62] sm:$0xff]  ;;  %v932_v0 = vmul.f32 %v5958_v42, %v895_v27  ;;  %v1033_v15 = vmul.f32 %v5963_v43, %v996_v38  ;;  %v1097_v50 = vld [vmem:[#allocation3 + $0x6a] sm:$0xff]  ;;  %v1234_v30 = vmul.f32 %v6127_v2, %v895_v27 }
 0x183   : > { %1888 = vst.msk [vmem:[#allocation3 + $0x69] sm:$0x1] %vm816_vm1, %v9462_v58  ;;  %2095 = vst.msk [vmem:[#allocation3 + $0x32] sm:$0x1] %vm816_vm1, %v2051_v53  ;;  %v747_v36 = vmul.f32 %v6047_v28, %v6224_v22  ;;  %v6368_v44 = vmul.f32 %v5958_v42, %v6218_v60  ;;  %v2586_v31 = vadd.f32 %v2578_v51, %v2549_v21  ;;  %v2247_v47 = vld [vmem:[#allocation4 + $0x18] sm:$0x3] }
 0x184   : > { %v2607_v6 = vmul.f32 %v6005_v20, %v6339_v19  ;;  %2167 = vst.msk [vmem:[#allocation3 + $0x33] sm:$0x1] %vm816_vm1, %v2123_v16  ;;  %2239 = vst.msk [vmem:[#allocation3 + $0x34] sm:$0x1] %vm816_vm1, %v2195_v10  ;;  %v1134_v45 = vmul.f32 %v6076_v56, %v1097_v50  ;;  %v1537_v4 = vmul.f32 %v6205_v32, %v895_v27  ;;  %v2319_v39 = vld [vmem:[#allocation4 + $0x1a] sm:$0x3] }
 0x185   : > { %v2391_v41 = vld [vmem:[#allocation4 + $0x1c] sm:$0x3]  ;;  %v1065_v22 = vadd.f32 %v1033_v15, %v932_v0  ;;  %v1335_v29 = vmul.f32 %v6160_v40, %v996_v38  ;;  %v1436_v1 = vmul.f32 %v6144_v23, %v1097_v50  ;;  %v1638_v14 = vmul.f32 %v6234_v34, %v996_v38  ;;  %v2463_v33 = vld [vmem:[#allocation4 + $0x1e] sm:$0x3] }
 0x186   : > { %v1266_v20 = vadd.f32 %v1234_v30, %v1164_v9  ;;  %v1569_v21 = vadd.f32 %v1537_v4, %v1466_v57  ;;  %v2261_v51 = vsel %vm810_vm2, %v2247_v47, -inf  ;;  %v2333_v53 = vsel %vm810_vm2, %v2319_v39, -inf  ;;  %v6381_v16 = vld [vmem:[#allocation3 + $0x78] sm:$0xff] }
 0x187   : > { %v1739_v27 = vmul.f32 %v6239_v13, %v1097_v50  ;;  %v2262_v10 = vrot.slane %v2261_v51, 4  ;;  %v2334_v49 = vrot.slane %v2333_v53, 4  ;;  %v2405_v0 = vsel %vm810_vm2, %v2391_v41, -inf  ;;  %1879 = vst.msk [vmem:[#allocation3 + $0x78] sm:$0x1] %vm816_vm1, %v9462_v58 }
 0x188   : > { %v1670_v15 = vadd.f32 %v1638_v14, %v1569_v21  ;;  %v2406_v38 = vrot.slane %v2405_v0, 4  ;;  %v2477_v9 = vsel %vm810_vm2, %v2463_v33, -inf  ;;  %v1366_v57 = vadd.f32 %v1334_v46, %v1265_v25 }
 0x189   : > { %v6388_v30 = vadd.f32 %v2607_v6, %v2586_v31  ;;  %v2263_v4 = vmax.f32 %v2261_v51, %v2262_v10  ;;  %v2335_v47 = vmax.f32 %v2333_v53, %v2334_v49  ;;  %v2478_v39 = vrot.slane %v2477_v9, 4 }
 0x18a   : > { %v1367_v54 = vadd.f32 %v1335_v29, %v1266_v20  ;;  %v1771_v60 = vadd.f32 %v1739_v27, %v1670_v15  ;;  %v2407_v50 = vmax.f32 %v2405_v0, %v2406_v38  ;;  %v1435_v26 = vmul.f32 %v6144_v23, %v6351_v24  ;;  %v997_v20 = vld [vmem:[#allocation3 + $0x79] sm:$0xff] }
 0x18b   : > { %v6394_v41 = vmul.f32 %v6239_v13, %v6351_v24  ;;  %v2264_v14 = vrot.slane %v2263_v4, 2  ;;  %v2336_v21 = vrot.slane %v2335_v47, 2  ;;  %v2479_v5 = vmax.f32 %v2477_v9, %v2478_v39 }
 0x18c   : > { %v1810_v46 = vadd.f32 %v6255_v59, %v1771_v60  ;;  %v2408_v25 = vrot.slane %v2407_v50, 2  ;;  %v1467_v31 = vadd.f32 %v1435_v26, %v1366_v57  ;;  %v1538_v49 = vmul.f32 %v6205_v32, %v6381_v16 }
 0x18d   : > { %9482 = vst [vmem:[#allocation52_spill] sm:$0xff] %v6394_v41  ;;  %v2265_v6 = vmax.f32 %v2263_v4, %v2264_v14  ;;  %v2337_v29 = vmax.f32 %v2335_v47, %v2336_v21  ;;  %v2480_v33 = vrot.slane %v2479_v5, 2  ;;  %v6400_v51 = vadd.f32 %v6053_v55, %v747_v36  ;;  %v3639_v14 = vld [vmem:[#allocation4 + $0x8] sm:$0xf] }
 0x18e   : > { %v1166_v53 = vadd.f32 %v1134_v45, %v1065_v22  ;;  %v6402_v27 = vadd.f32 %v1436_v1, %v1367_v54  ;;  %1842 = vst.msk [vmem:[#allocation2 + $0x28] sm:$0xff] %vm314_vm0, %v1810_v46  ;;  %v2409_v10 = vmax.f32 %v2407_v50, %v2408_v25  ;;  %v1032_v60 = vmul.f32 %v5963_v43, %v6319_v62  ;;  %v3675_v25 = vld [vmem:[#allocation4 + $0xc] sm:$0xf] }
 0x18f   : > { %9483 = vst [vmem:[#allocation53_spill] sm:$0xff] %v6400_v51  ;;  %v2266_v26 = vrot.slane %v2265_v6, 1  ;;  %v2338_v0 = vrot.slane %v2337_v29, 1  ;;  %v2481_v15 = vmax.f32 %v2479_v5, %v2480_v33  ;;  %v1570_v38 = vadd.f32 %v1538_v49, %v1467_v31  ;;  %863 = vst.msk [vmem:[#allocation3 + $0x81] sm:$0xff] %vm314_vm0, %v6400_v51  ;;  %v9484_v49 = vld [vmem:[#allocation5_spill] sm:$0xff] }
 0x190   : > { %v2410_v9 = vrot.slane %v2409_v10, 1  ;;  %v1639_v36 = vmul.f32 %v6234_v34, %v997_v20  ;;  %v6412_v54 = vsel %vm314_vm0, %v6400_v51, -inf  ;;  %v933_v45 = vmul.f32 %v5958_v42, %v6381_v16 }
 0x191   : > { %v2267_v22 = vmax.f32 %v2265_v6, %v2266_v26  ;;  %v2339_v1 = vmax.f32 %v2337_v29, %v2338_v0  ;;  %v2482_v57 = vrot.slane %v2481_v15, 1  ;;  %v1034_v4 = vmul.f32 %v5963_v43, %v997_v20  ;;  %v9485_v6 = vld [vmem:[#allocation42_spill] sm:$0xff]  ;;  %v9486_v26 = vld [vmem:[#allocation35_spill] sm:$0xff] }
 0x192   : > { %v2411_v5 = vmax.f32 %v2409_v10, %v2410_v9  ;;  %v4166_v47 = vmax.f32 %v6178_v37, %v6355_v35  ;;  %v1064_v39 = vadd.f32 %v1032_v60, %v6368_v44  ;;  %v1133_v50 = vmul.f32 %v6076_v56, %v6351_v24 }
 0x193   : > { %2311 = vst.msk [vmem:[#allocation3 + $0x35] sm:$0x1] %vm816_vm1, %v2267_v22  ;;  %2383 = vst.msk [vmem:[#allocation3 + $0x36] sm:$0x1] %vm816_vm1, %v2339_v1  ;;  %v2483_v42 = vmax.f32 %v2481_v15, %v2482_v57  ;;  %v1671_v21 = vadd.f32 %v1639_v36, %v1570_v38  ;;  %v710_v46 = vmul.f32 %v6194_v3, %v5861_v61  ;;  %5319 = vrsqrt.f32 %v9486_v26  ;;  %v6459_v15 = vld [vmem:[%s9286_s3 + $0x1] ss:$0 sm:$0xff] }
 0x194   : > { %v711_v43 = vmul.f32 %v6200_v18, %v5864_v17  ;;  %2455 = vst.msk [vmem:[#allocation3 + $0x37] sm:$0x1] %vm816_vm1, %v2411_v5  ;;  %v4170_v44 = vmax.f32 %v6313_v63, %v6412_v54  ;;  %v1165_v24 = vadd.f32 %v1133_v50, %v1064_v39  ;;  %v712_v31 = vmul.f32 %v6212_v7, %v5873_v11 }
 0x195   : > { %v713_v29 = vmul.f32 %v9485_v6, %v9484_v49  ;;  %2527 = vst.msk [vmem:[#allocation3 + $0x38] sm:$0x1] %vm816_vm1, %v2483_v42  ;;  %v6436_v33 = vadd.f32 %v1034_v4, %v933_v45  ;;  %v1235_v61 = vmul.f32 %v6127_v2, %v6381_v16  ;;  %v1336_v17 = vmul.f32 %v6160_v40, %v997_v20  ;;  %v6453_v16 = vld [vmem:[%s9286_s3] ss:$0 sm:$0xff]  ;;  %v6483_v6 = vld [vmem:[%s9286_s3 + $0xc] ss:$0 sm:$0xff] }
 0x196   : > { %v6442_v18 = vsel %vm3570_vm4, %v3639_v14, -inf  ;;  %v897_v3 = vld [vmem:[#allocation3 + $0x80] sm:$0xff]  ;;  %v748_v11 = vmul.f32 %v6047_v28, %v710_v46  ;;  %v749_v7 = vmul.f32 %v6047_v28, %v711_v43  ;;  %v6448_v0 = vsel %vm3570_vm4, %v3675_v25, -inf  ;;  %9488 = vst [vmem:[#allocation42_spill] sm:$0xff] %v6483_v6 }
 0x197   : > { %v998_v10 = vld [vmem:[#allocation3 + $0x81] sm:$0xff]  ;;  %v934_v20 = vmul.f32 %v6453_v16, %v897_v3  ;;  %v1236_v36 = vmul.f32 %v6127_v2, %v897_v3  ;;  %v1267_v45 = vadd.f32 %v1235_v61, %v1165_v24  ;;  %v1539_v22 = vmul.f32 %v6205_v32, %v897_v3 }
 0x198   : > { %v1098_v60 = vld [vmem:[#allocation3 + $0x7a] sm:$0xff]  ;;  %v1035_v38 = vmul.f32 %v6459_v15, %v998_v10  ;;  %v1099_v9 = vld [vmem:[#allocation3 + $0x82] sm:$0xff]  ;;  %v750_v1 = vmul.f32 %v6047_v28, %v712_v31  ;;  %v751_v57 = vmul.f32 %v6047_v28, %v713_v29  ;;  %v3644_v4 = vrot.slane %v6442_v18, 4 }
 0x199   : > { %1889 = vst.msk [vmem:[#allocation3 + $0x81] sm:$0x1] %vm816_vm1, %v9462_v58  ;;  %v1268_v39 = vadd.f32 %v1236_v36, %v1166_v53  ;;  %v1337_v50 = vmul.f32 %v6160_v40, %v998_v10  ;;  %v1740_v14 = vmul.f32 %v6239_v13, %v1098_v60  ;;  %v1136_v42 = vmul.f32 %v6076_v56, %v1099_v9 }
 0x19a   : > { %v1067_v5 = vadd.f32 %v1035_v38, %v934_v20  ;;  %v1438_v46 = vmul.f32 %v6144_v23, %v1099_v9  ;;  %v1571_v43 = vadd.f32 %v1539_v22, %v6402_v27  ;;  %v1640_v25 = vmul.f32 %v6234_v34, %v998_v10 }
 0x19b   : > { %v2536_v24 = vld [vmem:[#allocation3 + $0x30] sm:$0xff]  ;;  %v1741_v31 = vmul.f32 %v6239_v13, %v1099_v9  ;;  %v1772_v28 = vadd.f32 %v1740_v14, %v1671_v21  ;;  %v1135_v49 = vmul.f32 %v6076_v56, %v1098_v60  ;;  %v6478_v53 = vadd.f32 %v6053_v55, %v748_v11  ;;  %v6490_v21 = vld [vmem:[%s9286_s3 + $0xd] ss:$0 sm:$0xff] }
 0x19c   : > { %v2550_v29 = vmul.f32 %v6483_v6, %v2536_v24  ;;  %v2566_v61 = vld [vmem:[#allocation3 + $0x31] sm:$0xff]  ;;  %v1672_v27 = vadd.f32 %v1640_v25, %v1571_v43  ;;  %v1368_v3 = vadd.f32 %v1336_v17, %v1267_v45  ;;  %v1437_v10 = vmul.f32 %v6144_v23, %v1098_v60 }
 0x19d   : > { %9487 = vst [vmem:[#allocation5_spill] sm:$0xff] %v6478_v53  ;;  %v2579_v11 = vmul.f32 %v6490_v21, %v2566_v61  ;;  %v6493_v26 = vadd.f32 %v1136_v42, %v1067_v5  ;;  %v1369_v20 = vadd.f32 %v1337_v50, %v1268_v39  ;;  %v1811_v38 = vadd.f32 %v6255_v59, %v1772_v28  ;;  %v2595_v9 = vld [vmem:[#allocation3 + $0x32] sm:$0xff] }
 0x19e   : > { %864 = vst.msk [vmem:[#allocation3 + $0x91] sm:$0xff] %vm314_vm0, %v6478_v53  ;;  %v1773_v36 = vadd.f32 %v1741_v31, %v1672_v27  ;;  %v1907_v17 = vsel %vm314_vm0, %v6478_v53, -inf  ;;  %v6501_v60 = vadd.f32 %v6053_v55, %v749_v7  ;;  %v6504_v45 = vadd.f32 %v6053_v55, %v750_v1  ;;  %v6521_v7 = vld [vmem:[%s9286_s3 + $0x10] ss:$0 sm:$0xff]  ;;  %v5320_v1 = vpop.eup %5319 }
 0x19f   : > { %v2587_v22 = vadd.f32 %v2579_v11, %v2550_v29  ;;  %1843 = vst.msk [vmem:[#allocation2 + $0x30] sm:$0xff] %vm314_vm0, %v1811_v38  ;;  %v6508_v5 = vmax.f32 %v6355_v35, %v1907_v17  ;;  %v6513_v39 = vmax.f32 %v4166_v47, %v1907_v17  ;;  %v6516_v50 = vadd.f32 %v6053_v55, %v751_v57  ;;  %v6538_v47 = vld [vmem:[%s9286_s3 + $0xe] ss:$0 sm:$0xff]  ;;  %v6565_v29 = vld [vmem:[%s9286_s3 + $0x11] ss:$0 sm:$0xff] }
 0x1a0   : > { %9489 = vst [vmem:[#allocation35_spill] sm:$0xff] %v6501_v60  ;;  %9490 = vst [vmem:[#allocation54_spill] sm:$0xff] %v6504_v45  ;;  %v1812_v14 = vadd.f32 %v6255_v59, %v1773_v36  ;;  %v1910_v42 = vsel %vm314_vm0, %v6501_v60, -inf  ;;  %v6532_v55 = vsel %vm314_vm0, %v6504_v45, -inf  ;;  %v2637_v35 = vmul.f32 %v6521_v7, %v2536_v24 }
 0x1a1   : > { %9491 = vst [vmem:[#allocation55_spill] sm:$0xff] %v6516_v50  ;;  %865 = vst.msk [vmem:[#allocation3 + $0x99] sm:$0xff] %vm314_vm0, %v6501_v60  ;;  %v2608_v57 = vmul.f32 %v6538_v47, %v2595_v9  ;;  %v1167_v43 = vadd.f32 %v1135_v49, %v6436_v33  ;;  %v1469_v25 = vadd.f32 %v1437_v10, %v1368_v3  ;;  %v6559_v28 = vsel %vm314_vm0, %v6516_v50, -inf }
 0x1a2   : > { %866 = vst.msk [vmem:[#allocation3 + $0xa9] sm:$0xff] %vm314_vm0, %v6504_v45  ;;  %1946 = vst.msk [vmem:[#allocation4 + $0x20] sm:$0xff] %vm314_vm0, %v6508_v5  ;;  %v6545_v31 = vmax.f32 %v6412_v54, %v1910_v42  ;;  %v6553_v24 = vmax.f32 %v4170_v44, %v1910_v42  ;;  %v2645_v49 = vadd.f32 %v2637_v35, %v6388_v30  ;;  %v6577_v54 = vld [vmem:[%s9286_s3 + $0x12] ss:$0 sm:$0xff]  ;;  %v9495_v30 = vld [vmem:[#allocation6_spill] sm:$0xff] }
 0x1a3   : > { %867 = vst.msk [vmem:[#allocation3 + $0xb1] sm:$0xff] %vm314_vm0, %v6516_v50  ;;  %1844 = vst.msk [vmem:[#allocation2 + $0x38] sm:$0xff] %vm314_vm0, %v1812_v14  ;;  %v6567_v27 = vadd.f32 %v2608_v57, %v2587_v22  ;;  %v6569_v3 = vadd.f32 %v1438_v46, %v1369_v20  ;;  %v2666_v63 = vmul.f32 %v6565_v29, %v2566_v61  ;;  %v9496_v35 = vld [vmem:[#allocation36_spill] sm:$0xff] }
 0x1a4   : > { %9492 = vst [vmem:[#allocation56_spill] sm:$0xff] %v6545_v31  ;;  %9493 = vst [vmem:[#allocation57_spill] sm:$0xff] %v6553_v24  ;;  %v714_v44 = vmul.f32 %v5320_v1, %v9495_v30  ;;  %v6587_v61 = vmul.f32 %v6577_v54, %v2595_v9  ;;  %v6600_v42 = vmax.f32 %v6442_v18, %v3644_v4  ;;  %v3680_v9 = vrot.slane %v6448_v0, 4 }
 0x1a5   : > { %9494 = vst [vmem:[#allocation58_spill] sm:$0xff] %v6559_v28  ;;  %1947 = vst.msk [vmem:[#allocation4 + $0x28] sm:$0xff] %vm314_vm0, %v6545_v31  ;;  %v898_v10 = vld [vmem:[#allocation3 + $0x90] sm:$0xff]  ;;  %v6594_v1 = vadd.f32 %v2666_v63, %v2645_v49  ;;  %v6604_v57 = vadd.f32 1e-06, %v9496_v35 }
 0x1a6   : > { %v999_v11 = vld [vmem:[#allocation3 + $0x91] sm:$0xff]  ;;  %v935_v36 = vmul.f32 %v6453_v16, %v898_v10  ;;  %v1237_v22 = vmul.f32 %v6127_v2, %v898_v10  ;;  %1880 = vst.msk [vmem:[#allocation3 + $0x90] sm:$0x1] %vm816_vm1, %v9462_v58  ;;  %v1540_v14 = vmul.f32 %v6205_v32, %v898_v10  ;;  %v6611_v10 = vld [vmem:[%s9284_s1] ss:$0 sm:$0xff] }
 0x1a7   : > { %v1036_v17 = vmul.f32 %v6459_v15, %v999_v11  ;;  %v1338_v20 = vmul.f32 %v6160_v40, %v999_v11  ;;  %v1641_v46 = vmul.f32 %v6234_v34, %v999_v11  ;;  %v6614_v18 = vmul.f32 %v6611_v10, %v714_v44 }
 0x1a8   : > { %v1269_v30 = vadd.f32 %v1237_v22, %v1167_v43  ;;  %v899_v38 = vld [vmem:[#allocation3 + $0x98] sm:$0xff]  ;;  %v1572_v33 = vadd.f32 %v1540_v14, %v1469_v25  ;;  %5321 = vrsqrt.f32 %v6604_v57  ;;  %v9501_v57 = vmax.f32 %v6513_v39, %v6532_v55 }
 0x1a9   : > { %v1000_v49 = vld [vmem:[#allocation3 + $0x99] sm:$0xff]  ;;  %v1068_v4 = vadd.f32 %v1036_v17, %v935_v36  ;;  %v1960_v35 = vld [vmem:[#allocation4 + $0x20] sm:$0x3]  ;;  %v2032_v50 = vld [vmem:[#allocation4 + $0x22] sm:$0x3]  ;;  %v936_v22 = vmul.f32 %v6453_v16, %v899_v38 }
 0x1aa   : > { %v1100_v63 = vld [vmem:[#allocation3 + $0x92] sm:$0xff]  ;;  %v1037_v11 = vmul.f32 %v6459_v15, %v1000_v49  ;;  %v1980_v45 = vsel %vm810_vm2, %v1960_v35, -inf  ;;  %v2052_v51 = vsel %vm810_vm2, %v2032_v50, -inf  ;;  %v1101_v53 = vld [vmem:[#allocation3 + $0x9a] sm:$0xff]  ;;  %v6624_v41 = vld [vmem:[#allocation3 + $0xa8] sm:$0xff]  ;;  %v1370_v37 = vadd.f32 %v1338_v20, %v1269_v30 }
 0x1ab   : > { %v2104_v43 = vld [vmem:[#allocation4 + $0x24] sm:$0x3]  ;;  %1890 = vst.msk [vmem:[#allocation3 + $0x99] sm:$0x1] %vm816_vm1, %v9462_v58  ;;  %v2176_v44 = vld [vmem:[#allocation4 + $0x26] sm:$0x3]  ;;  %v1137_v36 = vmul.f32 %v6076_v56, %v1100_v63  ;;  %v6631_v50 = vmax.f32 %v6448_v0, %v3680_v9  ;;  %v1673_v8 = vadd.f32 %v1641_v46, %v1572_v33  ;;  %v1138_v6 = vmul.f32 %v6076_v56, %v1101_v53 }
 0x1ac   : > { %v2124_v60 = vsel %vm810_vm2, %v2104_v43, -inf  ;;  %v1981_v25 = vrot.slane %v1980_v45, 4  ;;  %v2053_v17 = vrot.slane %v2052_v51, 4  ;;  %v2196_v52 = vsel %vm810_vm2, %v2176_v44, -inf  ;;  %1881 = vst.msk [vmem:[#allocation3 + $0xa8] sm:$0x1] %vm816_vm1, %v9462_v58 }
 0x1ad   : > { %v2125_v14 = vrot.slane %v2124_v60, 4  ;;  %v1069_v19 = vadd.f32 %v1037_v11, %v936_v22  ;;  %v2197_v48 = vrot.slane %v2196_v52, 4  ;;  %v6634_v24 = vadd.f32 %v1137_v36, %v1068_v4  ;;  %v6637_v30 = vld [vmem:[#allocation3 + $0xb0] sm:$0xff]  ;;  %v2320_v28 = vld [vmem:[#allocation4 + $0x2a] sm:$0x3] }
 0x1ae   : > { %v1982_v35 = vmax.f32 %v1980_v45, %v1981_v25  ;;  %v2054_v43 = vmax.f32 %v2052_v51, %v2053_v17  ;;  %v1238_v20 = vmul.f32 %v6127_v2, %v899_v38  ;;  %v6639_v22 = vld [vmem:[#allocation3 + $0xb1] sm:$0xff]  ;;  %v1339_v56 = vmul.f32 %v6160_v40, %v1000_v49 }
 0x1af   : > { %v2126_v12 = vmax.f32 %v2124_v60, %v2125_v14  ;;  %v6641_v11 = vld [vmem:[#allocation3 + $0xaa] sm:$0xff]  ;;  %v2198_v45 = vmax.f32 %v2196_v52, %v2197_v48  ;;  %v6645_v51 = vadd.f32 %v1138_v6, %v1069_v19  ;;  %v1439_v60 = vmul.f32 %v6144_v23, %v1100_v63  ;;  %v2248_v19 = vld [vmem:[#allocation4 + $0x28] sm:$0x3] }
 0x1b0   : > { %v1983_v44 = vrot.slane %v1982_v35, 2  ;;  %v2055_v0 = vrot.slane %v2054_v43, 2  ;;  %1891 = vst.msk [vmem:[#allocation3 + $0xb1] sm:$0x1] %vm816_vm1, %v9462_v58  ;;  %v1541_v2 = vmul.f32 %v6205_v32, %v899_v38  ;;  %v1270_v25 = vadd.f32 %v1238_v20, %v6493_v26 }
 0x1b1   : > { %v2127_v9 = vrot.slane %v2126_v12, 2  ;;  %v2199_v36 = vrot.slane %v2198_v45, 2  ;;  %v1642_v52 = vmul.f32 %v6234_v34, %v1000_v49  ;;  %v1742_v48 = vmul.f32 %v6239_v13, %v1100_v63  ;;  %v2464_v49 = vld [vmem:[#allocation4 + $0x2e] sm:$0x3] }
 0x1b2   : > { %v1984_v33 = vmax.f32 %v1982_v35, %v1983_v44  ;;  %v2056_v46 = vmax.f32 %v2054_v43, %v2055_v0  ;;  %v1573_v17 = vadd.f32 %v1541_v2, %v6569_v3  ;;  %v1440_v38 = vmul.f32 %v6144_v23, %v1101_v53  ;;  %v2392_v44 = vld [vmem:[#allocation4 + $0x2c] sm:$0x3] }
 0x1b3   : > { %v2128_v4 = vmax.f32 %v2126_v12, %v2127_v9  ;;  %v2200_v31 = vmax.f32 %v2198_v45, %v2199_v36  ;;  %v1743_v12 = vmul.f32 %v6239_v13, %v1101_v53  ;;  %v1774_v43 = vadd.f32 %v1742_v48, %v1673_v8 }
 0x1b4   : > { %v1985_v6 = vrot.slane %v1984_v33, 1  ;;  %v2057_v14 = vrot.slane %v2056_v46, 1  ;;  %v1674_v35 = vadd.f32 %v1642_v52, %v1573_v17  ;;  %v2268_v2 = vsel %vm810_vm2, %v2248_v19, -inf }
 0x1b5   : > { %v2129_v62 = vrot.slane %v2128_v4, 1  ;;  %v2201_v0 = vrot.slane %v2200_v31, 1  ;;  %v1813_v63 = vadd.f32 %v6255_v59, %v1774_v43  ;;  %v2340_v45 = vsel %vm810_vm2, %v2320_v28, -inf }
 0x1b6   : > { %v1986_v26 = vmax.f32 %v1984_v33, %v1985_v6  ;;  %v2058_v20 = vmax.f32 %v2056_v46, %v2057_v14  ;;  %v1775_v9 = vadd.f32 %v1743_v12, %v1674_v35  ;;  %v2269_v8 = vrot.slane %v2268_v2, 4  ;;  %v6663_v33 = vld [vmem:[#allocation3 + $0xa9] sm:$0xff] }
 0x1b7   : > { %v2130_v3 = vmax.f32 %v2128_v4, %v2129_v62  ;;  %v2202_v23 = vmax.f32 %v2200_v31, %v2201_v0  ;;  %v2341_v53 = vrot.slane %v2340_v45, 4  ;;  %v2412_v62 = vsel %vm810_vm2, %v2392_v44, -inf  ;;  %1845 = vst.msk [vmem:[#allocation2 + $0x40] sm:$0xff] %vm314_vm0, %v1813_v63  ;;  %v1103_v44 = vld [vmem:[#allocation3 + $0xb2] sm:$0xff] }
 0x1b8   : > { %2024 = vst.msk [vmem:[#allocation3 + $0x49] sm:$0x1] %vm816_vm1, %v1986_v26  ;;  %2096 = vst.msk [vmem:[#allocation3 + $0x4a] sm:$0x1] %vm816_vm1, %v2058_v20  ;;  %v1471_v46 = vadd.f32 %v1439_v60, %v1370_v37  ;;  %v1814_v4 = vadd.f32 %v6255_v59, %v1775_v9  ;;  %v2413_v36 = vrot.slane %v2412_v62, 4  ;;  %v2484_v28 = vsel %vm810_vm2, %v2464_v49, -inf }
 0x1b9   : > { %2168 = vst.msk [vmem:[#allocation3 + $0x4b] sm:$0x1] %vm816_vm1, %v2130_v3  ;;  %2240 = vst.msk [vmem:[#allocation3 + $0x4c] sm:$0x1] %vm816_vm1, %v2202_v23  ;;  %v1371_v17 = vadd.f32 %v1339_v56, %v1270_v25  ;;  %v2270_v52 = vmax.f32 %v2268_v2, %v2269_v8  ;;  %v2342_v48 = vmax.f32 %v2340_v45, %v2341_v53  ;;  %v2485_v31 = vrot.slane %v2484_v28, 4  ;;  %v395_v25 = vpop.xlane.xlu0 %394  ;;  %v398_v53 = vpop.xlane.xlu1 %397 }
 0x1ba   : > { %1846 = vst.msk [vmem:[#allocation2 + $0x48] sm:$0xff] %vm314_vm0, %v1814_v4  ;;  %v2414_v19 = vmax.f32 %v2412_v62, %v2413_v36  ;;  %v6673_v37 = vld [vmem:[%s9286_s3 + $0x4] ss:$0 sm:$0xff]  ;;  %v1340_v6 = vmul.f32 %v6160_v40, %v6663_v33  ;;  %v1542_v56 = vmul.f32 %v6205_v32, %v6624_v41  ;;  %v938_v43 = vmul.f32 %v6453_v16, %v6637_v30  ;;  %v6691_v23 = vld [vmem:[%s9286_s3 + $0x2] ss:$0 sm:$0xff] }
 0x1bb   : > { %9497 = vst [vmem:[#allocation6_spill] sm:$0xff] %v6673_v37  ;;  %v1239_v60 = vmul.f32 %v6673_v37, %v6624_v41  ;;  %v2271_v14 = vrot.slane %v2270_v52, 2  ;;  %v2343_v35 = vrot.slane %v2342_v48, 2  ;;  %v2486_v12 = vmax.f32 %v2484_v28, %v2485_v31 }
 0x1bc   : > { %v2415_v26 = vrot.slane %v2414_v19, 2  ;;  %v1574_v3 = vadd.f32 %v1542_v56, %v1471_v46  ;;  %v1039_v0 = vmul.f32 %v6459_v15, %v6639_v22  ;;  %v1643_v63 = vmul.f32 %v6234_v34, %v6663_v33 }
 0x1bd   : > { %v1271_v20 = vadd.f32 %v1239_v60, %v6634_v24  ;;  %v2272_v49 = vmax.f32 %v2270_v52, %v2271_v14  ;;  %v2344_v40 = vmax.f32 %v2342_v48, %v2343_v35  ;;  %v2487_v9 = vrot.slane %v2486_v12, 2  ;;  %v6701_v35 = vld [vmem:[%s9286_s3 + $0x5] ss:$0 sm:$0xff] }
 0x1be   : > { %v2416_v2 = vmax.f32 %v2414_v19, %v2415_v26  ;;  %v1071_v45 = vadd.f32 %v1039_v0, %v938_v43  ;;  %v1140_v8 = vmul.f32 %v6691_v23, %v1103_v44  ;;  %v1240_v24 = vmul.f32 %v6673_v37, %v6637_v30  ;;  %v401_v19 = vpop.xlane.xlu0 %400  ;;  %9498 = vst [vmem:[#allocation36_spill] sm:$0xff] %v6701_v35 }
 0x1bf   : > { %v1472_v62 = vadd.f32 %v1440_v38, %v1371_v17  ;;  %v2273_v46 = vrot.slane %v2272_v49, 1  ;;  %v2345_v4 = vrot.slane %v2344_v40, 1  ;;  %v2488_v36 = vmax.f32 %v2486_v12, %v2487_v9 }
 0x1c0   : > { %v2417_v28 = vrot.slane %v2416_v2, 1  ;;  %v1372_v52 = vadd.f32 %v1340_v6, %v1271_v20  ;;  %v1675_v48 = vadd.f32 %v1643_v63, %v1574_v3  ;;  %v6696_v31 = vadd.f32 %v1140_v8, %v1071_v45  ;;  %v6709_v6 = vld [vmem:[%s9286_s3 + $0x6] ss:$0 sm:$0xff] }
 0x1c1   : > { %v2274_v60 = vmax.f32 %v2272_v49, %v2273_v46  ;;  %v2346_v56 = vmax.f32 %v2344_v40, %v2345_v4  ;;  %v2489_v14 = vrot.slane %v2488_v36, 1  ;;  %v1341_v38 = vmul.f32 %v6701_v35, %v6639_v22 }
 0x1c2   : > { %v2418_v17 = vmax.f32 %v2416_v2, %v2417_v28  ;;  %v1272_v12 = vadd.f32 %v1240_v24, %v6645_v51  ;;  %v1441_v43 = vmul.f32 %v6709_v6, %v6641_v11  ;;  %v1543_v26 = vmul.f32 %v6205_v32, %v6637_v30  ;;  %v6727_v32 = vld [vmem:[%s9285_s2] ss:$0 sm:$0xff]  ;;  %v407_v8 = vpop.xlane.xlu0 %406 }
 0x1c3   : > { %2312 = vst.msk [vmem:[#allocation3 + $0x4d] sm:$0x1] %vm816_vm1, %v2274_v60  ;;  %2384 = vst.msk [vmem:[#allocation3 + $0x4e] sm:$0x1] %vm816_vm1, %v2346_v56  ;;  %v2490_v20 = vmax.f32 %v2488_v36, %v2489_v14  ;;  %v1442_v3 = vmul.f32 %v6709_v6, %v1103_v44  ;;  %v1644_v51 = vmul.f32 %v6234_v34, %v6639_v22  ;;  %v9500_v9 = vrot.slane %v6600_v42, 2  ;;  %v404_v22 = vpop.xlane.xlu1 %403 }
 0x1c4   : > { %v1744_v0 = vmul.f32 %v6239_v13, %v6641_v11  ;;  %2456 = vst.msk [vmem:[#allocation3 + $0x4f] sm:$0x1] %vm816_vm1, %v2418_v17  ;;  %v1575_v49 = vadd.f32 %v1543_v26, %v1472_v62  ;;  %v1745_v40 = vmul.f32 %v6239_v13, %v1103_v44  ;;  %v6731_v30 = vadd.f32 %v6727_v32, %v6614_v18 }
 0x1c5   : > { %v3647_v34 = vmax.f32 %v6600_v42, %v9500_v9  ;;  %2528 = vst.msk [vmem:[#allocation3 + $0x50] sm:$0x1] %vm816_vm1, %v2490_v20  ;;  %v3682_v2 = vrot.slane %v6631_v50, 2  ;;  %v438_v13 = vmul.f32 0.0625, %v395_v25  ;;  %v439_v42 = vmul.f32 0.0625, %v398_v53  ;;  %v5431_v53 = vld [vmem:[%s5594_s29 + $0xd8] sm:$0xff] }
 0x1c6   : > { %9499 = vst [vmem:[#allocation59_spill] sm:$0xff] %v6731_v30  ;;  %v1776_v63 = vadd.f32 %v1744_v0, %v1675_v48  ;;  %v1676_v44 = vadd.f32 %v1644_v51, %v1575_v49  ;;  %868 = vst.msk [vmem:[#allocation3 + $0xc1] sm:$0xff] %vm314_vm0, %v6731_v30  ;;  %v1913_v18 = vsel %vm314_vm0, %v6731_v30, -inf  ;;  %v1373_v24 = vadd.f32 %v1341_v38, %v1272_v12  ;;  %v5430_v48 = vld [vmem:[%s5594_s29 + $0xd0] sm:$0xff] }
 0x1c7   : > { %v3648_v45 = vrot.slane %v3647_v34, 1  ;;  %v1914_v46 = vmax.f32 %v6532_v55, %v1913_v18  ;;  %v6748_v25 = vmax.f32 %v9501_v57, %v1913_v18  ;;  %v3683_v28 = vmax.f32 %v6631_v50, %v3682_v2  ;;  %v410_v20 = vpop.xlane.xlu1 %409  ;;  %v6796_v9 = vld [vmem:[%s9286_s3 + $0x15] ss:$0 sm:$0xff]  ;;  %v6821_v57 = vld [vmem:[%s9286_s3 + $0x16] ss:$0 sm:$0xff] }
 0x1c8   : > { %v1815_v62 = vadd.f32 %v6255_v59, %v1776_v63  ;;  %v1777_v4 = vadd.f32 %v1745_v40, %v1676_v44  ;;  %v6752_v60 = vsub.f32 %v5430_v48, %v438_v13  ;;  %v6757_v56 = vsub.f32 %v5431_v53, %v439_v42  ;;  %v5432_v63 = vld [vmem:[%s5594_s29 + $0xe0] sm:$0xff]  ;;  %v5433_v13 = vld [vmem:[%s5594_s29 + $0xe8] sm:$0xff] }
 0x1c9   : > { %9502 = vst [vmem:[#allocation60_spill] sm:$0xff] %v6748_v25  ;;  %v3649_v36 = vmax.f32 %v3647_v34, %v3648_v45  ;;  %1948 = vst.msk [vmem:[#allocation4 + $0x30] sm:$0xff] %vm314_vm0, %v1914_v46  ;;  %v440_v14 = vmul.f32 0.0625, %v401_v19  ;;  %v441_v38 = vmul.f32 0.0625, %v404_v22  ;;  %v442_v17 = vmul.f32 0.0625, %v407_v8 }
 0x1ca   : > { %9503 = vst [vmem:[#allocation61_spill] sm:$0xff] %v6752_v60  ;;  %1847 = vst.msk [vmem:[#allocation2 + $0x50] sm:$0xff] %vm314_vm0, %v1815_v62  ;;  %v1816_v39 = vadd.f32 %v6255_v59, %v1777_v4  ;;  %v2703_v12 = vadd.f32 %v6587_v61, %v6594_v1  ;;  %v3684_v26 = vrot.slane %v3683_v28, 1  ;;  %v502_v50 = vmul.f32 %v6752_v60, %v6752_v60  ;;  %v6774_v59 = vld [vmem:[%s9286_s3 + $0x14] ss:$0 sm:$0xff]  ;;  %v5322_v4 = vpop.eup %5321 }
 0x1cb   : > { %9504 = vst [vmem:[#allocation62_spill] sm:$0xff] %v6757_v56  ;;  %3671 = vst.msk [vmem:[#allocation3 + $0x1b] sm:$0x1] %vm816_vm1, %v3649_v36  ;;  %v6765_v51 = vld [vmem:[#allocation3 + $0x48] sm:$0xff]  ;;  %v6767_v0 = vadd.f32 %v1441_v43, %v1372_v52  ;;  %v6769_v49 = vadd.f32 %v1442_v3, %v1373_v24  ;;  %v9505_v61 = vmax.f32 %v6508_v5, %v6532_v55  ;;  %v443_v42 = vmul.f32 0.0625, %v410_v20 }
 0x1cc   : > { %v503_v19 = vmul.f32 %v6757_v56, %v6757_v56  ;;  %v2567_v40 = vld [vmem:[#allocation3 + $0x49] sm:$0xff]  ;;  %3533 = vst.msk [vmem:[#allocation3 + $0x48] sm:$0x1] %vm816_vm1, %v9462_v58  ;;  %v2725_v43 = vmul.f32 %v6774_v59, %v6765_v51  ;;  %v3685_v3 = vmax.f32 %v3683_v28, %v3684_v26  ;;  %v2638_v5 = vmul.f32 %v6521_v7, %v6765_v51 }
 0x1cd   : > { %v6779_v1 = vmax.f32 %v9505_v61, %v1913_v18  ;;  %v2596_v52 = vld [vmem:[#allocation3 + $0x4a] sm:$0xff]  ;;  %1848 = vst.msk [vmem:[#allocation2 + $0x58] sm:$0xff] %vm314_vm0, %v1816_v39  ;;  %v586_v55 = vsel %vm314_vm0, %v502_v50, 0.0  ;;  %v6798_v34 = vld [vmem:[#allocation3 + $0xc0] sm:$0xff]  ;;  %v6803_v2 = vsub.f32 %v5432_v63, %v440_v14  ;;  %v6806_v44 = vsub.f32 %v5433_v13, %v441_v38  ;;  %v6837_v28 = vld [vmem:[%s9286_s3 + $0x9] ss:$0 sm:$0xff] }
 0x1ce   : > { %3539 = vst.msk [vmem:[#allocation3 + $0x4d] sm:$0x1] %vm816_vm1, %v9462_v58  ;;  %v6800_v22 = vld [vmem:[#allocation3 + $0xc1] sm:$0xff]  ;;  %587 = vadd.xlane.f32.xlu0 %v586_v55  ;;  %v5434_v18 = vld [vmem:[%s5594_s29 + $0xf0] sm:$0xff]  ;;  %v6812_v8 = vmul.f32 %v6490_v21, %v2567_v40  ;;  %v6815_v24 = vmul.f32 %v6538_v47, %v2596_v52  ;;  %v2733_v62 = vadd.f32 %v2725_v43, %v2703_v12  ;;  %1882 = vst.msk [vmem:[#allocation3 + $0xc0] sm:$0x1] %vm816_vm1, %v9462_v58 }
 0x1cf   : > { %9506 = vst [vmem:[#allocation63_spill] sm:$0xff] %v6803_v2  ;;  %9507 = vst [vmem:[#allocation64_spill] sm:$0xff] %v6806_v44  ;;  %v6809_v45 = vsub.f32 %v5434_v18, %v442_v17  ;;  %v2754_v46 = vmul.f32 %v6796_v9, %v2567_v40  ;;  %v2783_v21 = vmul.f32 %v6821_v57, %v2596_v52  ;;  %v6830_v47 = vld [vmem:[%s9286_s3 + $0x8] ss:$0 sm:$0xff]  ;;  %v589_v53 = vsel %vm314_vm0, %v503_v19, 0.0  ;;  %v9511_v12 = vld [vmem:[#allocation7_spill] sm:$0xff] }
 0x1d0   : > { %3707 = vst.msk [vmem:[#allocation3 + $0x1c] sm:$0x1] %vm816_vm1, %v3685_v3  ;;  %9509 = vst [vmem:[#allocation66_spill] sm:$0xff] %v6830_v47  ;;  %v1544_v36 = vmul.f32 %v6830_v47, %v6798_v34  ;;  %v1645_v48 = vmul.f32 %v6837_v28, %v6800_v22  ;;  %v1961_v38 = vld [vmem:[#allocation4 + $0x30] sm:$0x3]  ;;  %v715_v26 = vmul.f32 %v5322_v4, %v9511_v12  ;;  %590 = vadd.xlane.f32.xlu1 %v589_v53  ;;  %v5437_v4 = vld [vmem:[%s5594_s29 + $0xf8] sm:$0xff] }
 0x1d1   : > { %9508 = vst [vmem:[#allocation65_spill] sm:$0xff] %v6809_v45  ;;  %9510 = vst [vmem:[#allocation67_spill] sm:$0xff] %v6837_v28  ;;  %v2762_v14 = vadd.f32 %v2754_v46, %v2733_v62  ;;  %v2033_v17 = vld [vmem:[#allocation4 + $0x32] sm:$0x3]  ;;  %v2105_v39 = vld [vmem:[#allocation4 + $0x34] sm:$0x3]  ;;  %v2646_v50 = vadd.f32 %v2638_v5, %v6567_v27  ;;  %v2667_v20 = vmul.f32 %v6565_v29, %v2567_v40 }
 0x1d2   : > { %v1987_v61 = vsel %vm810_vm2, %v1961_v38, -inf  ;;  %v2059_v43 = vsel %vm810_vm2, %v2033_v17, -inf  ;;  %v2131_v3 = vsel %vm810_vm2, %v2105_v39, -inf  ;;  %v2177_v55 = vld [vmem:[#allocation4 + $0x36] sm:$0x3]  ;;  %v504_v19 = vmul.f32 %v6803_v2, %v6803_v2 }
 0x1d3   : > { %v2791_v63 = vadd.f32 %v2783_v21, %v2762_v14  ;;  %v1988_v13 = vrot.slane %v1987_v61, 4  ;;  %v2060_v18 = vrot.slane %v2059_v43, 4  ;;  %v2696_v62 = vmul.f32 %v6577_v54, %v2596_v52  ;;  %v6854_v27 = vld [vmem:[%s9287_s4 + $0x1] ss:$0 sm:$0xff] }
 0x1d4   : > { %v2132_v40 = vrot.slane %v2131_v3, 4  ;;  %v2203_v5 = vsel %vm810_vm2, %v2177_v55, -inf  ;;  %v753_v46 = vmul.f32 %v6611_v10, %v715_v26  ;;  %v6859_v53 = vsub.f32 %v5437_v4, %v443_v42 }
 0x1d5   : > { %v2807_v38 = vadd.f32 %v6854_v27, %v2791_v63  ;;  %v1989_v21 = vmax.f32 %v1987_v61, %v1988_v13  ;;  %v2061_v14 = vmax.f32 %v2059_v43, %v2060_v18  ;;  %v2204_v17 = vrot.slane %v2203_v5, 4  ;;  %v9514_v63 = vld [vmem:[#allocation58_spill] sm:$0xff] }
 0x1d6   : > { %9512 = vst [vmem:[#allocation7_spill] sm:$0xff] %v6859_v53  ;;  %v1576_v52 = vadd.f32 %v1544_v36, %v6767_v0  ;;  %v2133_v39 = vmax.f32 %v2131_v3, %v2132_v40  ;;  %v6864_v12 = vadd.f32 %v6727_v32, %v753_v46  ;;  %v592_v30 = vsel %vm314_vm0, %v504_v19, 0.0  ;;  %v9517_v40 = vld [vmem:[#allocation57_spill] sm:$0xff] }
 0x1d7   : > { %2815 = vst.msk [vmem:[#allocation4 + $0x10] sm:$0xff] %vm314_vm0, %v2807_v38  ;;  %v1990_v55 = vrot.slane %v1989_v21, 2  ;;  %v2062_v26 = vrot.slane %v2061_v14, 2  ;;  %v2205_v25 = vmax.f32 %v2203_v5, %v2204_v17  ;;  %v2675_v42 = vadd.f32 %v2667_v20, %v2646_v50  ;;  %593 = vadd.xlane.f32.xlu0 %v592_v30  ;;  %v9515_v30 = vld [vmem:[#allocation56_spill] sm:$0xff]  ;;  %v558_v38 = vpop.xlane.xlu0 %557 }
 0x1d8   : > { %9513 = vst [vmem:[#allocation68_spill] sm:$0xff] %v6864_v12  ;;  %v2134_v4 = vrot.slane %v2133_v39, 2  ;;  %869 = vst.msk [vmem:[#allocation3 + $0xc9] sm:$0xff] %vm314_vm0, %v6864_v12  ;;  %v1916_v0 = vsel %vm314_vm0, %v6864_v12, -inf  ;;  %v937_v36 = vmul.f32 %v6453_v16, %v6624_v41  ;;  %v1038_v61 = vmul.f32 %v6459_v15, %v6663_v33 }
 0x1d9   : > { %v1991_v43 = vmax.f32 %v1989_v21, %v1990_v55  ;;  %v2063_v3 = vmax.f32 %v2061_v14, %v2062_v26  ;;  %v2206_v19 = vrot.slane %v2205_v25, 2  ;;  %v1917_v13 = vmax.f32 %v9514_v63, %v1916_v0 }
 0x1da   : > { %v2135_v50 = vmax.f32 %v2133_v39, %v2134_v4  ;;  %v9516_v20 = vmax.f32 %v9515_v30, %v9514_v63  ;;  %v9518_v5 = vmax.f32 %v9517_v40, %v9514_v63  ;;  %v939_v41 = vmul.f32 %v6453_v16, %v6798_v34 }
 0x1db   : > { %v1992_v17 = vrot.slane %v1991_v43, 1  ;;  %v2064_v33 = vrot.slane %v2063_v3, 1  ;;  %v2207_v21 = vmax.f32 %v2205_v25, %v2206_v19  ;;  %1949 = vst.msk [vmem:[#allocation4 + $0x38] sm:$0xff] %vm314_vm0, %v1917_v13  ;;  %v1040_v14 = vmul.f32 %v6459_v15, %v6800_v22 }
 0x1dc   : > { %v3549_v18 = vmax.f32 %v9516_v20, %v1916_v0  ;;  %v4173_v46 = vmax.f32 %v9518_v5, %v1916_v0  ;;  %v6888_v39 = vadd.f32 %v1645_v48, %v1576_v52  ;;  %v2136_v55 = vrot.slane %v2135_v50, 1 }
 0x1dd   : > { %v1070_v26 = vadd.f32 %v1038_v61, %v937_v36  ;;  %v1139_v4 = vmul.f32 %v6691_v23, %v6641_v11  ;;  %v1993_v0 = vmax.f32 %v1991_v43, %v1992_v17  ;;  %v2065_v63 = vmax.f32 %v2063_v3, %v2064_v33 }
 0x1de   : > { %3561 = vst.msk [vmem:[#allocation4 + $0x18] sm:$0xff] %vm314_vm0, %v3549_v18  ;;  %4183 = vst.msk [vmem:[#allocation4 + $0x8] sm:$0xff] %vm314_vm0, %v4173_v46  ;;  %v2208_v30 = vrot.slane %v2207_v21, 1  ;;  %v620_v25 = vmul.f32 0.0625, %v558_v38  ;;  %v6894_v19 = vld [vmem:[#allocation4 + $0x10] ss:$0 sm:$0xff]  ;;  %v2137_v48 = vmax.f32 %v2135_v50, %v2136_v55  ;;  %v6900_v52 = vadd.f32 %v2696_v62, %v2675_v42  ;;  %v6920_v50 = vpop.xlane.xlu1 %560 }
 0x1df   : > { %9519 = vst [vmem:[#allocation58_spill] sm:$0xff] %v6894_v19  ;;  %v6896_v13 = vld [vmem:[#allocation4 + $0x11] ss:$0 sm:$0xff]  ;;  %v6898_v20 = vld [vmem:[#allocation4 + $0x12] ss:$0 sm:$0xff]  ;;  %v1171_v18 = vadd.f32 %v1139_v4, %v1070_v26  ;;  %v505_v36 = vmul.f32 %v6806_v44, %v6806_v44  ;;  %v6912_v40 = vadd.f32 %v1040_v14, %v939_v41  ;;  %v1241_v62 = vmul.f32 %v6673_v37, %v6798_v34  ;;  %v903_v38 = vld [vmem:[#allocation3 + $0xc8] sm:$0xff] }
 0x1e0   : > { %9520 = vst [vmem:[#allocation56_spill] sm:$0xff] %v6896_v13  ;;  %9521 = vst [vmem:[#allocation57_spill] sm:$0xff] %v6898_v20  ;;  %v6904_v61 = vld [vmem:[#allocation4 + $0x13] ss:$0 sm:$0xff]  ;;  %v6906_v11 = vld [vmem:[#allocation4 + $0x14] ss:$0 sm:$0xff]  ;;  %v2209_v3 = vmax.f32 %v2207_v21, %v2208_v30  ;;  %v6918_v42 = vmul.f32 %v6701_v35, %v6800_v22  ;;  %v6930_v41 = vmul.f32 %v6809_v45, %v6809_v45 }
 0x1e1   : > { %9522 = vst [vmem:[#allocation69_spill] sm:$0xff] %v6904_v61  ;;  %9523 = vst [vmem:[#allocation70_spill] sm:$0xff] %v6906_v11  ;;  %v6908_v43 = vld [vmem:[#allocation4 + $0x15] ss:$0 sm:$0xff]  ;;  %v6922_v5 = vld [vmem:[#allocation4 + $0x16] ss:$0 sm:$0xff]  ;;  %v6934_v34 = vmul.f32 %v6859_v53, %v6859_v53  ;;  %v1545_v26 = vmul.f32 %v6830_v47, %v903_v38  ;;  %v6946_v4 = vadd.f32 %v1241_v62, %v1171_v18 }
 0x1e2   : > { %9524 = vst [vmem:[#allocation71_spill] sm:$0xff] %v6908_v43  ;;  %2025 = vst.msk [vmem:[#allocation3 + $0x61] sm:$0x1] %vm816_vm1, %v1993_v0  ;;  %v6924_v46 = vld [vmem:[#allocation4 + $0x17] ss:$0 sm:$0xff]  ;;  %v595_v17 = vsel %vm314_vm0, %v505_v36, 0.0  ;;  %v6984_v43 = vpop.xlane.xlu1 %566 }
 0x1e3   : > { %2097 = vst.msk [vmem:[#allocation3 + $0x62] sm:$0x1] %vm816_vm1, %v2065_v63  ;;  %9525 = vst [vmem:[#allocation72_spill] sm:$0xff] %v6922_v5  ;;  %v9527_v22 = vld [vmem:[#allocation42_spill] sm:$0xff]  ;;  %v1004_v21 = vld [vmem:[#allocation3 + $0xc9] sm:$0xff]  ;;  %596 = vadd.xlane.f32.xlu1 %v595_v17 }
 0x1e4   : > { %9526 = vst [vmem:[#allocation73_spill] sm:$0xff] %v6924_v46  ;;  %2169 = vst.msk [vmem:[#allocation3 + $0x63] sm:$0x1] %vm816_vm1, %v2137_v48  ;;  %v6938_v33 = vmul.f32 %v9527_v22, %v6765_v51  ;;  %v6943_v14 = vld [vmem:[#allocation3 + $0xc2] sm:$0xff]  ;;  %v1105_v55 = vld [vmem:[#allocation3 + $0xca] sm:$0xff]  ;;  %v940_v48 = vmul.f32 %v6453_v16, %v903_v38  ;;  %v1041_v22 = vmul.f32 %v6459_v15, %v1004_v21 }
 0x1e5   : > { %2241 = vst.msk [vmem:[#allocation3 + $0x64] sm:$0x1] %vm816_vm1, %v2209_v3  ;;  %v9528_v0 = vld [vmem:[#allocation13_spill] sm:$0xff]  ;;  %v9529_v51 = vld [vmem:[#allocation14_spill] sm:$0xff]  ;;  %1892 = vst.msk [vmem:[#allocation3 + $0xc9] sm:$0x1] %vm816_vm1, %v9462_v58  ;;  %v1142_v61 = vmul.f32 %v6691_v23, %v1105_v55  ;;  %v1343_v20 = vmul.f32 %v6701_v35, %v1004_v21  ;;  %v1444_v11 = vmul.f32 %v6709_v6, %v1105_v55 }
 0x1e6   : > { %3560 = vst.msk [vmem:[#allocation4 + $0x10] sm:$0xff] %vm314_vm0, %v6779_v1  ;;  %v6950_v63 = vmul.f32 %v6453_v16, %v9528_v0  ;;  %v6954_v30 = vmul.f32 %v6691_v23, %v9529_v51  ;;  %v1242_v1 = vmul.f32 %v6673_v37, %v903_v38  ;;  %v2249_v36 = vld [vmem:[#allocation4 + $0x38] sm:$0x3]  ;;  %v2321_v3 = vld [vmem:[#allocation4 + $0x3a] sm:$0x3]  ;;  %v9530_v62 = vld [vmem:[#allocation29_spill] sm:$0xff]  ;;  %v1577_v0 = vadd.f32 %v1545_v26, %v6769_v49  ;;  %v6980_v26 = vpop.xlane.xlu0 %563 }
 0x1e7   : > { %v6960_v18 = vadd.f32 1e-06, %v620_v25  ;;  %v6964_v17 = vmul.f32 %v6673_v37, %v9530_v62  ;;  %v1646_v51 = vmul.f32 %v6837_v28, %v1004_v21  ;;  %v6972_v16 = vld [vmem:[%s9286_s3 + $0xa] ss:$0 sm:$0xff]  ;;  %v2393_v25 = vld [vmem:[#allocation4 + $0x3c] sm:$0x3] }
 0x1e8   : > { %9531 = vst [vmem:[#allocation42_spill] sm:$0xff] %v6972_v16  ;;  %v1746_v38 = vmul.f32 %v6972_v16, %v6943_v14  ;;  %v2465_v12 = vld [vmem:[#allocation4 + $0x3e] sm:$0x3]  ;;  %v2275_v15 = vsel %vm810_vm2, %v2249_v36, -inf  ;;  %v2347_v49 = vsel %vm810_vm2, %v2321_v3, -inf  ;;  %v1747_v19 = vmul.f32 %v6972_v16, %v1105_v55 }
 0x1e9   : > { %v1678_v13 = vadd.f32 %v1646_v51, %v1577_v0  ;;  %v2276_v5 = vrot.slane %v2275_v15, 4  ;;  %v2348_v53 = vrot.slane %v2347_v49, 4  ;;  %v2419_v45 = vsel %vm810_vm2, %v2393_v25, -inf  ;;  %v6993_v0 = vld [vmem:[%s9287_s4] ss:$0 sm:$0xff] }
 0x1ea   : > { %v1778_v46 = vadd.f32 %v1746_v38, %v6888_v39  ;;  %v2491_v21 = vsel %vm810_vm2, %v2465_v12, -inf  ;;  %v1274_v36 = vadd.f32 %v1242_v1, %v6696_v31  ;;  %9532 = vst [vmem:[#allocation13_spill] sm:$0xff] %v6993_v0  ;;  %v4204_v38 = vld [vmem:[#allocation4 + $0x8] sm:$0xff]  ;;  %v1073_v55 = vadd.f32 %v1041_v22, %v940_v48 }
 0x1eb   : > { %v1779_v3 = vadd.f32 %v1747_v19, %v1678_v13  ;;  %v2277_v51 = vmax.f32 %v2275_v15, %v2276_v5  ;;  %v2349_v2 = vmax.f32 %v2347_v49, %v2348_v53  ;;  %v2420_v56 = vrot.slane %v2419_v45, 4  ;;  %v570_v15 = vpop.xlane.xlu0 %569 }
 0x1ec   : > { %v1817_v39 = vadd.f32 %v6993_v0, %v1778_v46  ;;  %v2492_v25 = vrot.slane %v2491_v21, 4  ;;  %v1375_v16 = vadd.f32 %v1343_v20, %v1274_v36  ;;  %v4206_v22 = vsel %vm314_vm0, %v4204_v38, -inf }
 0x1ed   : > { %v3567_v44 = vld [vmem:[#allocation4 + $0x10] sm:$0xf]  ;;  %v3604_v62 = vld [vmem:[#allocation4 + $0x14] sm:$0xf]  ;;  %v1818_v19 = vadd.f32 %v6993_v0, %v1779_v3  ;;  %v2278_v13 = vrot.slane %v2277_v51, 2  ;;  %v2350_v46 = vrot.slane %v2349_v2, 2  ;;  %v2421_v5 = vmax.f32 %v2419_v45, %v2420_v56 }
 0x1ee   : > { %v3578_v12 = vsel %vm3570_vm4, %v3567_v44, -inf  ;;  %v3614_v31 = vsel %vm3570_vm4, %v3604_v62, -inf  ;;  %1849 = vst.msk [vmem:[#allocation2 + $0x60] sm:$0xff] %vm314_vm0, %v1817_v39  ;;  %v2493_v48 = vmax.f32 %v2491_v21, %v2492_v25  ;;  %v573_v44 = vpop.xlane.xlu1 %572  ;;  %v7002_v0 = vadd.f32 %v1142_v61, %v1073_v55 }
 0x1ef   : > { %v3579_v1 = vrot.slane %v3578_v12, 4  ;;  %v3615_v60 = vrot.slane %v3614_v31, 4  ;;  %1850 = vst.msk [vmem:[#allocation2 + $0x68] sm:$0xff] %vm314_vm0, %v1818_v19  ;;  %v2279_v53 = vmax.f32 %v2277_v51, %v2278_v13  ;;  %v2351_v28 = vmax.f32 %v2349_v2, %v2350_v46  ;;  %v576_v2 = vpop.xlane.xlu0 %575 }
 0x1f0   : > { %v2422_v3 = vrot.slane %v2421_v5, 2  ;;  %v2494_v47 = vrot.slane %v2493_v48, 2  ;;  %v4207_v37 = vrot.slane %v4206_v22, 4  ;;  %v7004_v36 = vadd.f32 %v1444_v11, %v1375_v16 }
 0x1f1   : > { %v3580_v49 = vmax.f32 %v3578_v12, %v3579_v1  ;;  %v3616_v62 = vmax.f32 %v3614_v31, %v3615_v60  ;;  %v2280_v39 = vrot.slane %v2279_v53, 1  ;;  %v2352_v45 = vrot.slane %v2351_v28, 1 }
 0x1f2   : > { %v2423_v20 = vmax.f32 %v2421_v5, %v2422_v3  ;;  %v2495_v21 = vmax.f32 %v2493_v48, %v2494_v47  ;;  %v4208_v25 = vmax.f32 %v4206_v22, %v4207_v37  ;;  %v1141_v60 = vmul.f32 %v6691_v23, %v6943_v14  ;;  %v579_v11 = vpop.xlane.xlu1 %578 }
 0x1f3   : > { %v3581_v35 = vrot.slane %v3580_v49, 2  ;;  %v3617_v56 = vrot.slane %v3616_v62, 2  ;;  %v2281_v51 = vmax.f32 %v2279_v53, %v2280_v39  ;;  %v2353_v19 = vmax.f32 %v2351_v28, %v2352_v45  ;;  %v582_v22 = vpop.xlane.xlu0 %581 }
 0x1f4   : > { %v2424_v12 = vrot.slane %v2423_v20, 1  ;;  %v2496_v61 = vrot.slane %v2495_v21, 1  ;;  %v4209_v55 = vrot.slane %v4208_v25, 2  ;;  %v1374_v31 = vadd.f32 %v6918_v42, %v6946_v4 }
 0x1f5   : > { %v3582_v38 = vmax.f32 %v3580_v49, %v3581_v35  ;;  %2313 = vst.msk [vmem:[#allocation3 + $0x65] sm:$0x1] %vm816_vm1, %v2281_v51  ;;  %5323 = vrsqrt.f32 %v6960_v18  ;;  %v3618_v16 = vmax.f32 %v3616_v62, %v3617_v56  ;;  %2385 = vst.msk [vmem:[#allocation3 + $0x66] sm:$0x1] %vm816_vm1, %v2353_v19  ;;  %v1443_v35 = vmul.f32 %v6709_v6, %v6943_v14  ;;  %v3640_v49 = vld [vmem:[#allocation4 + $0x18] sm:$0xf] }
 0x1f6   : > { %v2425_v37 = vmax.f32 %v2423_v20, %v2424_v12  ;;  %v621_v47 = vmul.f32 0.0625, %v6920_v50  ;;  %v2497_v28 = vmax.f32 %v2495_v21, %v2496_v61  ;;  %v4210_v13 = vmax.f32 %v4208_v25, %v4209_v55  ;;  %v585_v39 = vpop.xlane.xlu1 %584  ;;  %v3676_v56 = vld [vmem:[#allocation4 + $0x1c] sm:$0xf] }
 0x1f7   : > { %v598_v1 = vsel %vm314_vm0, %v6930_v41, 0.0  ;;  %v622_v46 = vmul.f32 0.0625, %v6980_v26  ;;  %v3583_v42 = vrot.slane %v3582_v38, 1  ;;  %v7021_v4 = vadd.f32 %v1141_v60, %v6912_v40 }
 0x1f8   : > { %2457 = vst.msk [vmem:[#allocation3 + $0x67] sm:$0x1] %vm816_vm1, %v2425_v37  ;;  %v653_v18 = vadd.f32 1e-06, %v621_v47  ;;  %599 = vadd.xlane.f32.xlu0 %v598_v1  ;;  %v601_v14 = vsel %vm314_vm0, %v6934_v34, 0.0  ;;  %v7026_v50 = vadd.f32 %v1443_v35, %v1374_v31  ;;  %v623_v41 = vmul.f32 0.0625, %v6984_v43 }
 0x1f9   : > { %2529 = vst.msk [vmem:[#allocation3 + $0x68] sm:$0x1] %vm816_vm1, %v2497_v28  ;;  %v654_v5 = vadd.f32 1e-06, %v622_v46  ;;  %602 = vadd.xlane.f32.xlu1 %v601_v14  ;;  %v2588_v26 = vadd.f32 %v6812_v8, %v6938_v33  ;;  %v624_v53 = vmul.f32 0.0625, %v570_v15  ;;  %v625_v40 = vmul.f32 0.0625, %v573_v44 }
 0x1fa   : > { %5325 = vrsqrt.f32 %v653_v18  ;;  %v626_v48 = vmul.f32 0.0625, %v576_v2  ;;  %v3619_v62 = vrot.slane %v3618_v16, 1  ;;  %v4211_v3 = vrot.slane %v4210_v13, 1  ;;  %v9533_v33 = vld [vmem:[#allocation26_spill] sm:$0xff] }
 0x1fb   : > { %5327 = vrsqrt.f32 %v654_v5  ;;  %v655_v34 = vadd.f32 1e-06, %v623_v41  ;;  %v7031_v45 = vmax.f32 %v3582_v38, %v3583_v42  ;;  %v656_v20 = vadd.f32 1e-06, %v624_v53  ;;  %v9540_v53 = vld [vmem:[#allocation9_spill] sm:$0xff] }
 0x1fc   : > { %v657_v51 = vadd.f32 1e-06, %v625_v40  ;;  %v658_v43 = vadd.f32 1e-06, %v626_v48  ;;  %v627_v21 = vmul.f32 0.0625, %v579_v11  ;;  %v628_v8 = vmul.f32 0.0625, %v582_v22 }
 0x1fd   : > { %5329 = vrsqrt.f32 %v655_v34  ;;  %v1056_v15 = vadd.f32 %v9533_v33, %v6950_v63  ;;  %v2617_v44 = vadd.f32 %v6815_v24, %v2588_v26  ;;  %v629_v25 = vmul.f32 0.0625, %v585_v39  ;;  %v9537_v11 = vld [vmem:[#allocation8_spill] sm:$0xff] }
 0x1fe   : > { %5331 = vrsqrt.f32 %v656_v20  ;;  %v3650_v19 = vsel %vm3570_vm4, %v3640_v49, -inf  ;;  %v659_v38 = vadd.f32 1e-06, %v627_v21  ;;  %v3686_v61 = vsel %vm3570_vm4, %v3676_v56, -inf  ;;  %v9541_v49 = vld [vmem:[#allocation10_spill] sm:$0xff]  ;;  %v9542_v21 = vld [vmem:[#allocation11_spill] sm:$0xff] }
 0x1ff   : > { %v5324_v12 = vpop.eup %5323  ;;  %v7037_v60 = vld [vmem:[#allocation3 + $0x60] sm:$0xff]  ;;  %5333 = vrsqrt.f32 %v657_v51  ;;  %v3651_v2 = vrot.slane %v3650_v19, 4  ;;  %v3620_v35 = vmax.f32 %v3618_v16, %v3619_v62  ;;  %v7051_v47 = vmax.f32 %v4210_v13, %v4211_v3 }
 0x200   : > { %9534 = vst [vmem:[#allocation14_spill] sm:$0xff] %v7037_v60  ;;  %v7040_v55 = vld [vmem:[#allocation3 + $0x61] sm:$0xff]  ;;  %v2639_v63 = vmul.f32 %v6521_v7, %v7037_v60  ;;  %v2726_v24 = vmul.f32 %v6774_v59, %v7037_v60  ;;  %3534 = vst.msk [vmem:[#allocation3 + $0x60] sm:$0x1] %vm816_vm1, %v9462_v58  ;;  %v716_v37 = vmul.f32 %v5324_v12, %v9537_v11  ;;  %5335 = vrsqrt.f32 %v658_v43 }
 0x201   : > { %9535 = vst [vmem:[#allocation26_spill] sm:$0xff] %v7040_v55  ;;  %v7042_v31 = vld [vmem:[#allocation3 + $0x62] sm:$0xff]  ;;  %9538 = vst [vmem:[#allocation8_spill] sm:$0xff] %v7051_v47  ;;  %v660_v28 = vadd.f32 1e-06, %v628_v8  ;;  %v1157_v1 = vadd.f32 %v6954_v30, %v1056_v15  ;;  %v2755_v59 = vmul.f32 %v6796_v9, %v7040_v55  ;;  %v2668_v18 = vmul.f32 %v6565_v29, %v7040_v55 }
 0x202   : > { %9536 = vst [vmem:[#allocation74_spill] sm:$0xff] %v7042_v31  ;;  %3540 = vst.msk [vmem:[#allocation3 + $0x65] sm:$0x1] %vm816_vm1, %v9462_v58  ;;  %v2734_v7 = vadd.f32 %v2726_v24, %v6900_v52  ;;  %v754_v46 = vmul.f32 %v6611_v10, %v716_v37  ;;  %v2647_v42 = vadd.f32 %v2639_v63, %v2617_v44  ;;  %5337 = vrsqrt.f32 %v659_v38  ;;  %v7084_v38 = vld [vmem:[#allocation3 + $0x30] sm:$0xff]  ;;  %v9546_v24 = vld [vmem:[#allocation15_spill] sm:$0xff] }
 0x203   : > { %v3652_v16 = vmax.f32 %v3650_v19, %v3651_v2  ;;  %v3687_v13 = vrot.slane %v3686_v61, 4  ;;  %v2784_v41 = vmul.f32 %v6821_v57, %v7042_v31  ;;  %v661_v52 = vadd.f32 1e-06, %v629_v25  ;;  %v9544_v25 = vld [vmem:[#allocation12_spill] sm:$0xff]  ;;  %3532 = vst.msk [vmem:[#allocation3 + $0x30] sm:$0x1] %vm816_vm1, %v9462_v58 }
 0x204   : > { %v5326_v14 = vpop.eup %5325  ;;  %v2763_v5 = vadd.f32 %v2755_v59, %v2734_v7  ;;  %v7065_v30 = vadd.f32 %v6727_v32, %v754_v46  ;;  %v2697_v9 = vmul.f32 %v6577_v54, %v7042_v31  ;;  %v2676_v3 = vadd.f32 %v2668_v18, %v2647_v42  ;;  %v9547_v7 = vld [vmem:[#allocation16_spill] sm:$0xff] }
 0x205   : > { %v5328_v26 = vpop.eup %5327  ;;  %v717_v40 = vmul.f32 %v5326_v14, %v9540_v53  ;;  %v3653_v48 = vrot.slane %v3652_v16, 2  ;;  %v3688_v29 = vmax.f32 %v3686_v61, %v3687_v13  ;;  %5339 = vrsqrt.f32 %v660_v28  ;;  %v9550_v18 = vld [vmem:[#allocation36_spill] sm:$0xff] }
 0x206   : > { %9539 = vst [vmem:[#allocation75_spill] sm:$0xff] %v7065_v30  ;;  %v2792_v22 = vadd.f32 %v2784_v41, %v2763_v5  ;;  %870 = vst.msk [vmem:[#allocation3 + $0xd9] sm:$0xff] %vm314_vm0, %v7065_v30  ;;  %v718_v62 = vmul.f32 %v5328_v26, %v9541_v49  ;;  %v1259_v20 = vadd.f32 %v6964_v17, %v1157_v1  ;;  %5341 = vrsqrt.f32 %v661_v52  ;;  %v7086_v17 = vld [vmem:[#allocation3 + $0x31] sm:$0xff]  ;;  %v9551_v13 = vld [vmem:[#allocation32_spill] sm:$0xff] }
 0x207   : > { %v5330_v57 = vpop.eup %5329  ;;  %v755_v34 = vmul.f32 %v6611_v10, %v717_v40  ;;  %v3654_v39 = vmax.f32 %v3652_v16, %v3653_v48  ;;  %v3689_v56 = vrot.slane %v3688_v29, 2  ;;  %v1918_v15 = vsel %vm314_vm0, %v7065_v30, -inf  ;;  %3600 = vst.msk [vmem:[#allocation3 + $0x31] sm:$0x1] %vm816_vm1, %v7031_v45  ;;  %v7138_v48 = vld [vmem:[%s9286_s3] ss:$0 sm:$0xff] }
 0x208   : > { %v5332_v54 = vpop.eup %5331  ;;  %v2808_v51 = vadd.f32 %v6854_v27, %v2792_v22  ;;  %v756_v43 = vmul.f32 %v6611_v10, %v718_v62  ;;  %v719_v8 = vmul.f32 %v5330_v57, %v9542_v21  ;;  %v7088_v27 = vld [vmem:[#allocation3 + $0x32] sm:$0xff]  ;;  %v7105_v28 = vadd.f32 %v2697_v9, %v2676_v3  ;;  %v7130_v9 = vld [vmem:[%s9284_s1] ss:$0 sm:$0xff]  ;;  %v7144_v22 = vld [vmem:[%s9286_s3 + $0x1] ss:$0 sm:$0xff] }
 0x209   : > { %v5334_v33 = vpop.eup %5333  ;;  %v7081_v44 = vadd.f32 %v6727_v32, %v755_v34  ;;  %v720_v19 = vmul.f32 %v5332_v54, %v9544_v25  ;;  %v3655_v12 = vrot.slane %v3654_v39, 1  ;;  %v3690_v37 = vmax.f32 %v3688_v29, %v3689_v56  ;;  %3538 = vst.msk [vmem:[#allocation3 + $0x35] sm:$0x1] %vm816_vm1, %v9462_v58  ;;  %3636 = vst.msk [vmem:[#allocation3 + $0x32] sm:$0x1] %vm816_vm1, %v3620_v35  ;;  %v9549_v35 = vld [vmem:[#allocation43_spill] sm:$0xff] }
 0x20a   : > { %v5336_v2 = vpop.eup %5335  ;;  %2816 = vst.msk [vmem:[#allocation4 + $0x20] sm:$0xff] %vm314_vm0, %v2808_v51  ;;  %v7092_v61 = vadd.f32 %v6727_v32, %v756_v43  ;;  %v757_v63 = vmul.f32 %v6611_v10, %v719_v8  ;;  %v721_v11 = vmul.f32 %v5334_v33, %v9546_v24  ;;  %v1328_v16 = vmul.f32 %v9550_v18, %v9549_v35  ;;  %v9553_v62 = vld [vmem:[#allocation6_spill] sm:$0xff]  ;;  %v9555_v33 = vld [vmem:[#allocation17_spill] sm:$0xff] }
 0x20b   : > { %9543 = vst [vmem:[#allocation9_spill] sm:$0xff] %v7081_v44  ;;  %871 = vst.msk [vmem:[#allocation3 + $0xe1] sm:$0xff] %vm314_vm0, %v7081_v44  ;;  %v758_v1 = vmul.f32 %v6611_v10, %v720_v19  ;;  %v722_v59 = vmul.f32 %v5336_v2, %v9547_v7  ;;  %v3656_v46 = vmax.f32 %v3654_v39, %v3655_v12  ;;  %v3691_v57 = vrot.slane %v3690_v37, 1  ;;  %v9554_v34 = vld [vmem:[#allocation66_spill] sm:$0xff] }
 0x20c   : > { %9545 = vst [vmem:[#allocation10_spill] sm:$0xff] %v7092_v61  ;;  %872 = vst.msk [vmem:[#allocation3 + $0xf1] sm:$0xff] %vm314_vm0, %v7092_v61  ;;  %v1919_v42 = vsel %vm314_vm0, %v7092_v61, -inf  ;;  %v7114_v45 = vadd.f32 %v6727_v32, %v757_v63  ;;  %v7120_v14 = vmul.f32 %v6709_v6, %v9551_v13  ;;  %v5338_v10 = vpop.eup %5337  ;;  %v759_v53 = vmul.f32 %v7130_v9, %v721_v11 }
 0x20d   : > { %v904_v5 = vld [vmem:[#allocation3 + $0xd8] sm:$0xff]  ;;  %v7122_v52 = vmax.f32 %v1918_v15, %v1919_v42  ;;  %v7125_v26 = vadd.f32 %v6727_v32, %v758_v1  ;;  %v760_v40 = vmul.f32 %v7130_v9, %v722_v59  ;;  %3672 = vst.msk [vmem:[#allocation3 + $0x33] sm:$0x1] %vm816_vm1, %v3656_v46  ;;  %v1921_v56 = vsel %vm314_vm0, %v7081_v44, -inf  ;;  %v9558_v1 = vld [vmem:[#allocation67_spill] sm:$0xff] }
 0x20e   : > { %9548 = vst [vmem:[#allocation11_spill] sm:$0xff] %v7114_v45  ;;  %v1005_v41 = vld [vmem:[#allocation3 + $0xd9] sm:$0xff]  ;;  %v941_v29 = vmul.f32 %v7138_v48, %v904_v5  ;;  %v1243_v3 = vmul.f32 %v9553_v62, %v904_v5  ;;  %873 = vst.msk [vmem:[#allocation3 + $0xf9] sm:$0xff] %vm314_vm0, %v7114_v45  ;;  %v1546_v39 = vmul.f32 %v9554_v34, %v904_v5  ;;  %v1922_v54 = vsel %vm314_vm0, %v7114_v45, -inf }
 0x20f   : > { %9552 = vst [vmem:[#allocation12_spill] sm:$0xff] %v7125_v26  ;;  %v1042_v49 = vmul.f32 %v7144_v22, %v1005_v41  ;;  %1950 = vst.msk [vmem:[#allocation4 + $0x40] sm:$0xff] %vm314_vm0, %v7122_v52  ;;  %v7161_v51 = vsel %vm314_vm0, %v7125_v26, -inf  ;;  %v5340_v43 = vpop.eup %5339  ;;  %v7164_v8 = vmax.f32 %v1921_v56, %v1922_v54  ;;  %v723_v15 = vmul.f32 %v5338_v10, %v9555_v33  ;;  %v9559_v56 = vld [vmem:[#allocation18_spill] sm:$0xff] }
 0x210   : > { %874 = vst.msk [vmem:[#allocation3 + $0x109] sm:$0xff] %vm314_vm0, %v7125_v26  ;;  %v1275_v21 = vadd.f32 %v1243_v3, %v7021_v4  ;;  %v7167_v25 = vadd.f32 %v1328_v16, %v1259_v20  ;;  %v1344_v19 = vmul.f32 %v9550_v18, %v1005_v41  ;;  %v1578_v12 = vadd.f32 %v1546_v39, %v7026_v50  ;;  %v5342_v24 = vpop.eup %5341 }
 0x211   : > { %v7172_v2 = vadd.f32 %v6727_v32, %v759_v53  ;;  %v7175_v63 = vadd.f32 %v6727_v32, %v760_v40  ;;  %v1074_v11 = vadd.f32 %v1042_v49, %v941_v29  ;;  %v1647_v4 = vmul.f32 %v9558_v1, %v1005_v41  ;;  %1951 = vst.msk [vmem:[#allocation4 + $0x48] sm:$0xff] %vm314_vm0, %v7164_v8 }
 0x212   : > { %v905_v7 = vld [vmem:[#allocation3 + $0xe0] sm:$0xff]  ;;  %v3692_v50 = vmax.f32 %v3690_v37, %v3691_v57  ;;  %v1376_v42 = vadd.f32 %v1344_v19, %v1275_v21  ;;  %v7200_v29 = vmul.f32 %v7130_v9, %v723_v15  ;;  %v7207_v54 = vmul.f32 %v5340_v43, %v9559_v56  ;;  %v9560_v19 = vld [vmem:[#allocation42_spill] sm:$0xff] }
 0x213   : > { %9556 = vst [vmem:[#allocation15_spill] sm:$0xff] %v7172_v2  ;;  %9557 = vst [vmem:[#allocation16_spill] sm:$0xff] %v7175_v63  ;;  %v1006_v59 = vld [vmem:[#allocation3 + $0xe1] sm:$0xff]  ;;  %v942_v16 = vmul.f32 %v7138_v48, %v905_v7  ;;  %v1679_v37 = vadd.f32 %v1647_v4, %v1578_v12  ;;  %v1244_v41 = vmul.f32 %v9553_v62, %v905_v7  ;;  %v906_v40 = vld [vmem:[#allocation3 + $0xf0] sm:$0xff] }
 0x214   : > { %v1106_v46 = vld [vmem:[#allocation3 + $0xda] sm:$0xff]  ;;  %v1043_v32 = vmul.f32 %v7144_v22, %v1006_v59  ;;  %v1107_v10 = vld [vmem:[#allocation3 + $0xe2] sm:$0xff]  ;;  %875 = vst.msk [vmem:[#allocation3 + $0x111] sm:$0xff] %vm314_vm0, %v7172_v2  ;;  %876 = vst.msk [vmem:[#allocation3 + $0x121] sm:$0xff] %vm314_vm0, %v7175_v63  ;;  %v1345_v3 = vmul.f32 %v9550_v18, %v1006_v59  ;;  %v1547_v57 = vmul.f32 %v9554_v34, %v905_v7 }
 0x215   : > { %v1143_v5 = vmul.f32 %v6691_v23, %v1106_v46  ;;  %1872 = vst.msk [vmem:[#allocation3 + $0xd8] sm:$0xff] %vm314_vm0, %v9462_v58  ;;  %v1445_v53 = vmul.f32 %v6709_v6, %v1106_v46  ;;  %v1144_v49 = vmul.f32 %v6691_v23, %v1107_v10  ;;  %v1007_v39 = vld [vmem:[#allocation3 + $0xf1] sm:$0xff]  ;;  %v1276_v33 = vadd.f32 %v1244_v41, %v7002_v0 }
 0x216   : > { %1873 = vst.msk [vmem:[#allocation3 + $0xe0] sm:$0x3] %vm810_vm2, %v9462_v58  ;;  %v1075_v21 = vadd.f32 %v1043_v32, %v942_v16  ;;  %v1748_v12 = vmul.f32 %v9560_v19, %v1106_v46  ;;  %v1579_v15 = vadd.f32 %v1547_v57, %v7004_v36  ;;  %v943_v26 = vmul.f32 %v7138_v48, %v906_v40  ;;  %v1962_v56 = vld [vmem:[#allocation4 + $0x40] sm:$0x3] }
 0x217   : > { %1883 = vst.msk [vmem:[#allocation3 + $0xd8] sm:$0x1] %vm816_vm1, %v9462_v58  ;;  %1893 = vst.msk [vmem:[#allocation3 + $0xe1] sm:$0x1] %vm816_vm1, %v9462_v58  ;;  %v1175_v4 = vadd.f32 %v1143_v5, %v1074_v11  ;;  %v1477_v20 = vadd.f32 %v1445_v53, %v1376_v42  ;;  %v1377_v44 = vadd.f32 %v1345_v3, %v1276_v33  ;;  %v9561_v11 = vld [vmem:[#allocation19_spill] sm:$0xff] }
 0x218   : > { %3708 = vst.msk [vmem:[#allocation3 + $0x34] sm:$0x1] %vm816_vm1, %v3692_v50  ;;  %v1648_v50 = vmul.f32 %v9558_v1, %v1006_v59  ;;  %v1780_v45 = vadd.f32 %v1748_v12, %v1679_v37  ;;  %v1044_v7 = vmul.f32 %v7144_v22, %v1007_v39  ;;  %v1245_v43 = vmul.f32 %v9553_v62, %v906_v40  ;;  %v9562_v59 = vld [vmem:[#allocation13_spill] sm:$0xff]  ;;  %v1008_v12 = vld [vmem:[#allocation3 + $0xf9] sm:$0xff] }
 0x219   : > { %v1446_v16 = vmul.f32 %v6709_v6, %v1107_v10  ;;  %v1749_v46 = vmul.f32 %v9560_v19, %v1107_v10  ;;  %v7219_v32 = vmul.f32 %v5342_v24, %v9561_v11  ;;  %v1176_v36 = vadd.f32 %v1144_v49, %v1075_v21  ;;  %v2034_v37 = vld [vmem:[#allocation4 + $0x42] sm:$0x3]  ;;  %v2106_v53 = vld [vmem:[#allocation4 + $0x44] sm:$0x3]  ;;  %v2178_v33 = vld [vmem:[#allocation4 + $0x46] sm:$0x3] }
 0x21a   : > { %v1680_v0 = vadd.f32 %v1648_v50, %v1579_v15  ;;  %v1819_v42 = vadd.f32 %v9562_v59, %v1780_v45  ;;  %v1277_v5 = vadd.f32 %v1245_v43, %v1175_v4  ;;  %v1548_v41 = vmul.f32 %v9554_v34, %v906_v40  ;;  %v907_v45 = vld [vmem:[#allocation3 + $0xf8] sm:$0xff] }
 0x21b   : > { %v1346_v62 = vmul.f32 %v9550_v18, %v1007_v39  ;;  %v1649_v57 = vmul.f32 %v9558_v1, %v1007_v39  ;;  %v1994_v6 = vsel %vm810_vm2, %v1962_v56, -inf  ;;  %v1478_v10 = vadd.f32 %v1446_v16, %v1377_v44  ;;  %v1108_v4 = vld [vmem:[#allocation3 + $0xf2] sm:$0xff]  ;;  %v1109_v16 = vld [vmem:[#allocation3 + $0xfa] sm:$0xff] }
 0x21c   : > { %v1781_v3 = vadd.f32 %v1749_v46, %v1680_v0  ;;  %1851 = vst.msk [vmem:[#allocation2 + $0x70] sm:$0xff] %vm314_vm0, %v1819_v42  ;;  %v1076_v24 = vadd.f32 %v1044_v7, %v943_v26  ;;  %v1580_v49 = vadd.f32 %v1548_v41, %v1477_v20  ;;  %v1995_v21 = vrot.slane %v1994_v6, 4  ;;  %v2394_v31 = vld [vmem:[#allocation4 + $0x4c] sm:$0x3]  ;;  %v2466_v55 = vld [vmem:[#allocation4 + $0x4e] sm:$0x3] }
 0x21d   : > { %v1378_v15 = vadd.f32 %v1346_v62, %v1277_v5  ;;  %v2066_v50 = vsel %vm810_vm2, %v2034_v37, -inf  ;;  %v2138_v18 = vsel %vm810_vm2, %v2106_v53, -inf  ;;  %v2210_v44 = vsel %vm810_vm2, %v2178_v33, -inf  ;;  %v7238_v53 = vld [vmem:[%s9286_s3 + $0x2] ss:$0 sm:$0xff] }
 0x21e   : > { %v1820_v40 = vadd.f32 %v9562_v59, %v1781_v3  ;;  %v1996_v39 = vmax.f32 %v1994_v6, %v1995_v21  ;;  %v2067_v43 = vrot.slane %v2066_v50, 4  ;;  %v2139_v56 = vrot.slane %v2138_v18, 4  ;;  %v7244_v62 = vld [vmem:[%s9286_s3 + $0x4] ss:$0 sm:$0xff] }
 0x21f   : > { %v2211_v26 = vrot.slane %v2210_v44, 4  ;;  %v944_v20 = vmul.f32 %v7138_v48, %v907_v45  ;;  %v1045_v7 = vmul.f32 %v7144_v22, %v1008_v12  ;;  %v1145_v0 = vmul.f32 %v6691_v23, %v1108_v4 }
 0x220   : > { %1852 = vst.msk [vmem:[#allocation2 + $0x78] sm:$0xff] %vm314_vm0, %v1820_v40  ;;  %v1681_v46 = vadd.f32 %v1649_v57, %v1580_v49  ;;  %v1997_v11 = vrot.slane %v1996_v39, 2  ;;  %v2068_v42 = vmax.f32 %v2066_v50, %v2067_v43  ;;  %v2140_v5 = vmax.f32 %v2138_v18, %v2139_v56  ;;  %v7252_v18 = vld [vmem:[%s9286_s3 + $0x5] ss:$0 sm:$0xff] }
 0x221   : > { %v2212_v41 = vmax.f32 %v2210_v44, %v2211_v26  ;;  %v1077_v37 = vadd.f32 %v1045_v7, %v944_v20  ;;  %v1146_v3 = vmul.f32 %v7238_v53, %v1109_v16  ;;  %v1246_v23 = vmul.f32 %v7244_v62, %v907_v45 }
 0x222   : > { %v1998_v57 = vmax.f32 %v1996_v39, %v1997_v11  ;;  %v2069_v6 = vrot.slane %v2068_v42, 2  ;;  %v2141_v33 = vrot.slane %v2140_v5, 2  ;;  %v1177_v49 = vadd.f32 %v1145_v0, %v1076_v24  ;;  %v7258_v39 = vld [vmem:[%s9286_s3 + $0x6] ss:$0 sm:$0xff]  ;;  %v2250_v11 = vld [vmem:[#allocation4 + $0x48] sm:$0x3] }
 0x223   : > { %v2213_v21 = vrot.slane %v2212_v41, 2  ;;  %v7247_v40 = vadd.f32 %v1146_v3, %v1077_v37  ;;  %v1278_v50 = vadd.f32 %v1246_v23, %v1176_v36  ;;  %v1347_v43 = vmul.f32 %v7252_v18, %v1008_v12 }
 0x224   : > { %v1999_v56 = vrot.slane %v1998_v57, 1  ;;  %v2070_v44 = vmax.f32 %v2068_v42, %v2069_v6  ;;  %v2142_v26 = vmax.f32 %v2140_v5, %v2141_v33  ;;  %v1447_v24 = vmul.f32 %v7258_v39, %v1108_v4  ;;  %v2322_v42 = vld [vmem:[#allocation4 + $0x4a] sm:$0x3] }
 0x225   : > { %v2214_v20 = vmax.f32 %v2212_v41, %v2213_v21  ;;  %v1379_v7 = vadd.f32 %v1347_v43, %v1278_v50  ;;  %v1448_v36 = vmul.f32 %v7258_v39, %v1109_v16  ;;  %v1549_v0 = vmul.f32 %v9554_v34, %v907_v45  ;;  %v908_v41 = vld [vmem:[#allocation3 + $0x108] sm:$0xff] }
 0x226   : > { %v2000_v37 = vmax.f32 %v1998_v57, %v1999_v56  ;;  %v2071_v3 = vrot.slane %v2070_v44, 1  ;;  %v2143_v23 = vrot.slane %v2142_v26, 1  ;;  %v1479_v30 = vadd.f32 %v1447_v24, %v1378_v15 }
 0x227   : > { %v2215_v5 = vrot.slane %v2214_v20, 1  ;;  %v1581_v6 = vadd.f32 %v1549_v0, %v1478_v10  ;;  %v1650_v33 = vmul.f32 %v9558_v1, %v1008_v12  ;;  %v1750_v61 = vmul.f32 %v9560_v19, %v1108_v4  ;;  %v1009_v10 = vld [vmem:[#allocation3 + $0x109] sm:$0xff] }
 0x228   : > { %2026 = vst.msk [vmem:[#allocation3 + $0x79] sm:$0x1] %vm816_vm1, %v2000_v37  ;;  %v2072_v21 = vmax.f32 %v2070_v44, %v2071_v3  ;;  %v2144_v50 = vmax.f32 %v2142_v26, %v2143_v23  ;;  %v1751_v45 = vmul.f32 %v9560_v19, %v1109_v16  ;;  %v2282_v57 = vsel %vm810_vm2, %v2250_v11, -inf }
 0x229   : > { %v2216_v43 = vmax.f32 %v2214_v20, %v2215_v5  ;;  %v1682_v15 = vadd.f32 %v1650_v33, %v1581_v6  ;;  %v1782_v56 = vadd.f32 %v1750_v61, %v1681_v46  ;;  %v2283_v24 = vrot.slane %v2282_v57, 4  ;;  %v909_v5 = vld [vmem:[#allocation3 + $0x110] sm:$0xff] }
 0x22a   : > { %2098 = vst.msk [vmem:[#allocation3 + $0x7a] sm:$0x1] %vm816_vm1, %v2072_v21  ;;  %2170 = vst.msk [vmem:[#allocation3 + $0x7b] sm:$0x1] %vm816_vm1, %v2144_v50  ;;  %v2354_v12 = vsel %vm810_vm2, %v2322_v42, -inf  ;;  %v2426_v4 = vsel %vm810_vm2, %v2394_v31, -inf  ;;  %v945_v26 = vmul.f32 %v7138_v48, %v908_v41  ;;  %v1046_v37 = vmul.f32 %v7144_v22, %v1009_v10 }
 0x22b   : > { %v2498_v44 = vsel %vm810_vm2, %v2466_v55, -inf  ;;  %2242 = vst.msk [vmem:[#allocation3 + $0x7c] sm:$0x1] %vm816_vm1, %v2216_v43  ;;  %v1783_v16 = vadd.f32 %v1751_v45, %v1682_v15  ;;  %v1821_v20 = vadd.f32 %v9562_v59, %v1782_v56  ;;  %v2284_v61 = vmax.f32 %v2282_v57, %v2283_v24  ;;  %v1010_v45 = vld [vmem:[#allocation3 + $0x111] sm:$0xff] }
 0x22c   : > { %v2355_v46 = vrot.slane %v2354_v12, 4  ;;  %v2427_v0 = vrot.slane %v2426_v4, 4  ;;  %v2499_v11 = vrot.slane %v2498_v44, 4  ;;  %v1247_v3 = vmul.f32 %v7244_v62, %v908_v41 }
 0x22d   : > { %v1480_v23 = vadd.f32 %v1448_v36, %v1379_v7  ;;  %v1822_v31 = vadd.f32 %v9562_v59, %v1783_v16  ;;  %1853 = vst.msk [vmem:[#allocation2 + $0x80] sm:$0xff] %vm314_vm0, %v1821_v20  ;;  %v2285_v55 = vrot.slane %v2284_v61, 2  ;;  %v1348_v50 = vmul.f32 %v7252_v18, %v1009_v10  ;;  %v1110_v36 = vld [vmem:[#allocation3 + $0x10a] sm:$0xff] }
 0x22e   : > { %v2356_v42 = vmax.f32 %v2354_v12, %v2355_v46  ;;  %v2428_v6 = vmax.f32 %v2426_v4, %v2427_v0  ;;  %v2500_v33 = vmax.f32 %v2498_v44, %v2499_v11  ;;  %v1279_v21 = vadd.f32 %v1247_v3, %v1177_v49  ;;  %v1111_v4 = vld [vmem:[#allocation3 + $0x112] sm:$0xff] }
 0x22f   : > { %1854 = vst.msk [vmem:[#allocation2 + $0x88] sm:$0xff] %vm314_vm0, %v1822_v31  ;;  %v2286_v57 = vmax.f32 %v2284_v61, %v2285_v55  ;;  %v1078_v15 = vadd.f32 %v1046_v37, %v945_v26  ;;  %v1550_v7 = vmul.f32 %v9554_v34, %v908_v41  ;;  %v1651_v16 = vmul.f32 %v9558_v1, %v1009_v10 }
 0x230   : > { %v2357_v43 = vrot.slane %v2356_v42, 2  ;;  %v2429_v56 = vrot.slane %v2428_v6, 2  ;;  %v2501_v24 = vrot.slane %v2500_v33, 2  ;;  %v946_v12 = vmul.f32 %v7138_v48, %v909_v5 }
 0x231   : > { %v2287_v44 = vrot.slane %v2286_v57, 1  ;;  %v1582_v20 = vadd.f32 %v1550_v7, %v1479_v30  ;;  %v1047_v46 = vmul.f32 %v7144_v22, %v1010_v45  ;;  %v1380_v61 = vadd.f32 %v1348_v50, %v1279_v21 }
 0x232   : > { %v2358_v49 = vmax.f32 %v2356_v42, %v2357_v43  ;;  %v2430_v0 = vmax.f32 %v2428_v6, %v2429_v56  ;;  %v2502_v11 = vmax.f32 %v2500_v33, %v2501_v24  ;;  %v1147_v26 = vmul.f32 %v7238_v53, %v1110_v36  ;;  %v910_v33 = vld [vmem:[#allocation3 + $0x120] sm:$0xff] }
 0x233   : > { %v2288_v37 = vmax.f32 %v2286_v57, %v2287_v44  ;;  %v1079_v41 = vadd.f32 %v1047_v46, %v946_v12  ;;  %v1148_v3 = vmul.f32 %v7238_v53, %v1111_v4  ;;  %v1683_v10 = vadd.f32 %v1651_v16, %v1582_v20  ;;  %v1011_v56 = vld [vmem:[#allocation3 + $0x121] sm:$0xff] }
 0x234   : > { %v2359_v34 = vrot.slane %v2358_v49, 1  ;;  %v2431_v31 = vrot.slane %v2430_v0, 1  ;;  %v2503_v1 = vrot.slane %v2502_v11, 1  ;;  %v1248_v55 = vmul.f32 %v7244_v62, %v909_v5 }
 0x235   : > { %2314 = vst.msk [vmem:[#allocation3 + $0x7d] sm:$0x1] %vm816_vm1, %v2288_v37  ;;  %v1179_v42 = vadd.f32 %v1147_v26, %v1078_v15  ;;  %v7290_v43 = vadd.f32 %v1148_v3, %v1079_v41  ;;  %v1449_v6 = vmul.f32 %v7258_v39, %v1110_v36  ;;  %v1349_v7 = vmul.f32 %v7252_v18, %v1010_v45  ;;  %v7300_v15 = vld [vmem:[%s9286_s3 + $0x8] ss:$0 sm:$0xff]  ;;  %v7322_v41 = vld [vmem:[#allocation4 + $0x21] ss:$0 sm:$0xff] }
 0x236   : > { %v2360_v30 = vmax.f32 %v2358_v49, %v2359_v34  ;;  %v2432_v21 = vmax.f32 %v2430_v0, %v2431_v31  ;;  %v2504_v50 = vmax.f32 %v2502_v11, %v2503_v1  ;;  %v1280_v57 = vadd.f32 %v1248_v55, %v7247_v40  ;;  %v7309_v49 = vld [vmem:[%s9286_s3 + $0x9] ss:$0 sm:$0xff]  ;;  %v7320_v34 = vld [vmem:[#allocation4 + $0x20] ss:$0 sm:$0xff]  ;;  %9564 = vst [vmem:[#allocation36_spill] sm:$0xff] %v7322_v41 }
 0x237   : > { %v1450_v24 = vmul.f32 %v7258_v39, %v1111_v4  ;;  %v1481_v16 = vadd.f32 %v1449_v6, %v1380_v61  ;;  %v1551_v12 = vmul.f32 %v7300_v15, %v909_v5  ;;  %v1752_v44 = vmul.f32 %v9560_v19, %v1110_v36  ;;  %9563 = vst [vmem:[#allocation43_spill] sm:$0xff] %v7320_v34  ;;  %v7329_v1 = vld [vmem:[#allocation4 + $0x23] ss:$0 sm:$0xff]  ;;  %v7333_v55 = vld [vmem:[#allocation4 + $0x25] ss:$0 sm:$0xff] }
 0x238   : > { %2386 = vst.msk [vmem:[#allocation3 + $0x7e] sm:$0x1] %vm816_vm1, %v2360_v30  ;;  %2458 = vst.msk [vmem:[#allocation3 + $0x7f] sm:$0x1] %vm816_vm1, %v2432_v21  ;;  %v1381_v40 = vadd.f32 %v1349_v7, %v1280_v57  ;;  %v1652_v20 = vmul.f32 %v7309_v49, %v1010_v45  ;;  %v1927_v46 = vsel %vm314_vm0, %v7172_v2, -inf  ;;  %v947_v0 = vmul.f32 %v7138_v48, %v910_v33 }
 0x239   : > { %2530 = vst.msk [vmem:[#allocation3 + $0x80] sm:$0x1] %vm816_vm1, %v2504_v50  ;;  %v1583_v5 = vadd.f32 %v1551_v12, %v1480_v23  ;;  %v1753_v36 = vmul.f32 %v9560_v19, %v1111_v4  ;;  %v1784_v11 = vadd.f32 %v1752_v44, %v1683_v10  ;;  %v1048_v61 = vmul.f32 %v7144_v22, %v1011_v56  ;;  %v7324_v45 = vld [vmem:[#allocation4 + $0x22] ss:$0 sm:$0xff]  ;;  %v7331_v10 = vld [vmem:[#allocation4 + $0x24] ss:$0 sm:$0xff] }
 0x23a   : > { %v7317_v26 = vadd.f32 %v1450_v24, %v1381_v40  ;;  %v3552_v37 = vmax.f32 %v7164_v8, %v1927_v46  ;;  %9565 = vst [vmem:[#allocation32_spill] sm:$0xff] %v7324_v45  ;;  %v1249_v3 = vmul.f32 %v7244_v62, %v910_v33  ;;  %v1552_v31 = vmul.f32 %v7300_v15, %v910_v33  ;;  %v7338_v6 = vld [vmem:[#allocation4 + $0x26] ss:$0 sm:$0xff]  ;;  %v7340_v21 = vld [vmem:[#allocation4 + $0x27] ss:$0 sm:$0xff] }
 0x23b   : > { %v1684_v23 = vadd.f32 %v1652_v20, %v1583_v5  ;;  %v1823_v4 = vadd.f32 %v9562_v59, %v1784_v11  ;;  %9566 = vst [vmem:[#allocation6_spill] sm:$0xff] %v7329_v1  ;;  %9567 = vst [vmem:[#allocation66_spill] sm:$0xff] %v7331_v10  ;;  %v7335_v8 = vadd.f32 %v1048_v61, %v947_v0  ;;  %v1925_v33 = vsel %vm314_vm0, %v7175_v63, -inf  ;;  %v7347_v7 = vld [vmem:[%s9285_s2] ss:$0 sm:$0xff] }
 0x23c   : > { %9568 = vst [vmem:[#allocation17_spill] sm:$0xff] %v7333_v55  ;;  %v1350_v30 = vmul.f32 %v7252_v18, %v1011_v56  ;;  %9569 = vst [vmem:[#allocation67_spill] sm:$0xff] %v7338_v6  ;;  %v1281_v50 = vadd.f32 %v1249_v3, %v1179_v42  ;;  %v1584_v57 = vadd.f32 %v1552_v31, %v1481_v16  ;;  %v5452_v31 = vld [vmem:[%s9286_s3 + $0x16] ss:$0 sm:$0xff] }
 0x23d   : > { %9570 = vst [vmem:[#allocation18_spill] sm:$0xff] %v7340_v21  ;;  %v7351_v24 = vadd.f32 %v7347_v7, %v7200_v29  ;;  %v1785_v12 = vadd.f32 %v1753_v36, %v1684_v23  ;;  %1855 = vst.msk [vmem:[#allocation2 + $0x90] sm:$0xff] %vm314_vm0, %v1823_v4  ;;  %v1926_v44 = vmax.f32 %v7161_v51, %v1925_v33 }
 0x23e   : > { %v9572_v42 = vmax.f32 %v7122_v52, %v7161_v51  ;;  %v762_v40 = vmul.f32 %v7130_v9, %v7207_v54  ;;  %v7362_v20 = vadd.f32 %v1350_v30, %v1281_v50  ;;  %v1653_v0 = vmul.f32 %v7309_v49, %v1011_v56  ;;  %v9581_v50 = vld [vmem:[#allocation34_spill] sm:$0xff] }
 0x23f   : > { %9571 = vst [vmem:[#allocation42_spill] sm:$0xff] %v7351_v24  ;;  %877 = vst.msk [vmem:[#allocation3 + $0x129] sm:$0xff] %vm314_vm0, %v7351_v24  ;;  %v1928_v29 = vsel %vm314_vm0, %v7351_v24, -inf  ;;  %v763_v5 = vmul.f32 %v7130_v9, %v7219_v32  ;;  %v7371_v36 = vld [vmem:[#allocation3 + $0x78] sm:$0xff]  ;;  %v1824_v54 = vadd.f32 %v9562_v59, %v1785_v12  ;;  %v5450_v9 = vld [vmem:[%s9286_s3 + $0x14] ss:$0 sm:$0xff]  ;;  %v1461_v30 = vadd.f32 %v7120_v14, %v7167_v25 }
 0x240   : > { %v7358_v16 = vmax.f32 %v9572_v42, %v1925_v33  ;;  %9574 = vst [vmem:[#allocation13_spill] sm:$0xff] %v7371_v36  ;;  %v7373_v52 = vld [vmem:[#allocation3 + $0x79] sm:$0xff]  ;;  %1952 = vst.msk [vmem:[#allocation4 + $0x50] sm:$0xff] %vm314_vm0, %v1926_v44  ;;  %v1929_v56 = vmax.f32 %v1927_v46, %v1928_v29  ;;  %v7381_v11 = vmax.f32 %v3552_v37, %v1928_v29  ;;  %v5451_v59 = vld [vmem:[%s9286_s3 + $0x15] ss:$0 sm:$0xff] }
 0x241   : > { %9575 = vst [vmem:[#allocation76_spill] sm:$0xff] %v7373_v52  ;;  %v7375_v51 = vld [vmem:[#allocation3 + $0x7a] sm:$0xff]  ;;  %v7384_v61 = vadd.f32 %v7347_v7, %v762_v40  ;;  %v2727_v32 = vmul.f32 %v5450_v9, %v7371_v36  ;;  %v2756_v3 = vmul.f32 %v5451_v59, %v7373_v52  ;;  %v7396_v46 = vadd.f32 %v1653_v0, %v1584_v57  ;;  %v9583_v42 = vld [vmem:[#allocation48_spill] sm:$0xff]  ;;  %v5453_v29 = vld [vmem:[%s9286_s3 + $0x10] ss:$0 sm:$0xff] }
 0x242   : > { %9573 = vst [vmem:[#allocation19_spill] sm:$0xff] %v7358_v16  ;;  %9576 = vst [vmem:[#allocation77_spill] sm:$0xff] %v7375_v51  ;;  %v7399_v37 = vadd.f32 %v7347_v7, %v763_v5  ;;  %v2785_v23 = vmul.f32 %v5452_v31, %v7375_v51  ;;  %v1532_v57 = vmul.f32 %v7300_v15, %v9581_v50  ;;  %v9584_v0 = vld [vmem:[#allocation38_spill] sm:$0xff]  ;;  %v9585_v5 = vld [vmem:[#allocation49_spill] sm:$0xff] }
 0x243   : > { %3562 = vst.msk [vmem:[#allocation4 + $0x20] sm:$0xff] %vm314_vm0, %v7358_v16  ;;  %9577 = vst [vmem:[#allocation78_spill] sm:$0xff] %v7381_v11  ;;  %v7417_v4 = vsel %vm314_vm0, %v7384_v61, -inf  ;;  %v2735_v33 = vadd.f32 %v2727_v32, %v7105_v28  ;;  %v1633_v40 = vmul.f32 %v7309_v49, %v9583_v42  ;;  %v7438_v28 = vmul.f32 %v9560_v19, %v9584_v0  ;;  %v5455_v19 = vld [vmem:[%s9286_s3 + $0x12] ss:$0 sm:$0xff]  ;;  %v9587_v12 = vld [vmem:[#allocation51_spill] sm:$0xff] }
 0x244   : > { %9578 = vst [vmem:[#allocation79_spill] sm:$0xff] %v7384_v61  ;;  %3529 = vst.msk [vmem:[#allocation3 + $0x78] sm:$0x3f] %vm3526_vm3, %v9462_v58  ;;  %v7430_v44 = vsel %vm314_vm0, %v7399_v37, -inf  ;;  %v1564_v25 = vadd.f32 %v1532_v57, %v1461_v30  ;;  %v5454_v30 = vld [vmem:[%s9286_s3 + $0x11] ss:$0 sm:$0xff]  ;;  %v7476_v2 = vmul.f32 %v5451_v59, %v7086_v17 }
 0x245   : > { %9579 = vst [vmem:[#allocation80_spill] sm:$0xff] %v7399_v37  ;;  %3535 = vst.msk [vmem:[#allocation3 + $0x78] sm:$0x1] %vm816_vm1, %v9462_v58  ;;  %v2764_v32 = vadd.f32 %v2756_v3, %v2735_v33  ;;  %v9586_v57 = vld [vmem:[#allocation50_spill] sm:$0xff] }
 0x246   : > { %3541 = vst.msk [vmem:[#allocation3 + $0x7d] sm:$0x1] %vm816_vm1, %v9462_v58  ;;  %9580 = vst [vmem:[#allocation81_spill] sm:$0xff] %v7417_v4  ;;  %v7453_v14 = vmul.f32 %v5454_v30, %v9586_v57  ;;  %v7466_v3 = vld [vmem:[#allocation3 + $0x129] sm:$0xff] }
 0x247   : > { %1856 = vst.msk [vmem:[#allocation2 + $0x98] sm:$0xff] %vm314_vm0, %v1824_v54  ;;  %1953 = vst.msk [vmem:[#allocation4 + $0x58] sm:$0xff] %vm314_vm0, %v1929_v56  ;;  %v2636_v54 = vmul.f32 %v5453_v29, %v9585_v5  ;;  %v7447_v56 = vld [vmem:[%s9286_s3 + $0x18] ss:$0 sm:$0xff]  ;;  %v7462_v29 = vmul.f32 %v5450_v9, %v7084_v38  ;;  %v7464_v5 = vld [vmem:[#allocation3 + $0x128] sm:$0xff] }
 0x248   : > { %3563 = vst.msk [vmem:[#allocation4 + $0x28] sm:$0xff] %vm314_vm0, %v7381_v11  ;;  %878 = vst.msk [vmem:[#allocation3 + $0x139] sm:$0xff] %vm314_vm0, %v7384_v61  ;;  %v7468_v33 = vld [vmem:[#allocation3 + $0x122] sm:$0xff]  ;;  %v7470_v61 = vadd.f32 %v1633_v40, %v1564_v25  ;;  %v1963_v38 = vld [vmem:[#allocation4 + $0x50] sm:$0x3]  ;;  %v948_v63 = vmul.f32 %v7138_v48, %v7464_v5  ;;  %v1049_v40 = vmul.f32 %v7144_v22, %v7466_v3 }
 0x249   : > { %879 = vst.msk [vmem:[#allocation3 + $0x141] sm:$0xff] %vm314_vm0, %v7399_v37  ;;  %9582 = vst [vmem:[#allocation34_spill] sm:$0xff] %v7430_v44  ;;  %v7459_v37 = vmul.f32 %v5455_v19, %v9587_v12  ;;  %v9588_v30 = vld [vmem:[#allocation20_spill] sm:$0xff]  ;;  %v7479_v12 = vmul.f32 %v5452_v31, %v7088_v27  ;;  %v2793_v19 = vadd.f32 %v2785_v23, %v2764_v32  ;;  %v2035_v9 = vld [vmem:[#allocation4 + $0x52] sm:$0x3]  ;;  %v2001_v17 = vsel %vm810_vm2, %v1963_v38, -inf }
 0x24a   : > { %v7473_v57 = vadd.f32 %v2636_v54, %v9588_v30  ;;  %v2107_v24 = vld [vmem:[#allocation4 + $0x54] sm:$0x3]  ;;  %v9589_v25 = vld [vmem:[#allocation21_spill] sm:$0xff]  ;;  %v2073_v59 = vsel %vm810_vm2, %v2035_v9, -inf  ;;  %v2179_v31 = vld [vmem:[#allocation4 + $0x56] sm:$0x3]  ;;  %v1149_v23 = vmul.f32 %v7238_v53, %v7468_v33  ;;  %v1081_v21 = vadd.f32 %v1049_v40, %v948_v63 }
 0x24b   : > { %v7487_v54 = vmul.f32 %v7447_v56, %v9589_v25  ;;  %v2145_v27 = vsel %vm810_vm2, %v2107_v24, -inf  ;;  %v7497_v32 = vld [vmem:[%s9287_s4 + $0x1] ss:$0 sm:$0xff]  ;;  %v2002_v51 = vrot.slane %v2001_v17, 4  ;;  %v2074_v25 = vrot.slane %v2073_v59, 4  ;;  %v1113_v38 = vld [vmem:[#allocation3 + $0x12a] sm:$0xff] }
 0x24c   : > { %v2809_v30 = vadd.f32 %v7497_v32, %v2793_v19  ;;  %v2146_v52 = vrot.slane %v2145_v27, 4  ;;  %v3568_v36 = vld [vmem:[#allocation4 + $0x20] sm:$0xf]  ;;  %v2217_v9 = vsel %vm810_vm2, %v2179_v31, -inf  ;;  %v3605_v60 = vld [vmem:[#allocation4 + $0x24] sm:$0xf]  ;;  %v1250_v6 = vmul.f32 %v7244_v62, %v7464_v5 }
 0x24d   : > { %v3585_v24 = vsel %vm3570_vm4, %v3568_v36, -inf  ;;  %v2003_v47 = vmax.f32 %v2001_v17, %v2002_v51  ;;  %v2075_v55 = vmax.f32 %v2073_v59, %v2074_v25  ;;  %v2218_v19 = vrot.slane %v2217_v9, 4 }
 0x24e   : > { %2817 = vst.msk [vmem:[#allocation4 + $0x30] sm:$0xff] %vm314_vm0, %v2809_v30  ;;  %v2147_v10 = vmax.f32 %v2145_v27, %v2146_v52  ;;  %v3586_v1 = vrot.slane %v3585_v24, 4  ;;  %v3621_v45 = vsel %vm3570_vm4, %v3605_v60, -inf  ;;  %v1150_v41 = vmul.f32 %v7238_v53, %v1113_v38 }
 0x24f   : > { %v7508_v31 = vadd.f32 %v1149_v23, %v7335_v8  ;;  %v2004_v36 = vrot.slane %v2003_v47, 2  ;;  %v2076_v34 = vrot.slane %v2075_v55, 2  ;;  %v2219_v40 = vmax.f32 %v2217_v9, %v2218_v19 }
 0x250   : > { %v2148_v63 = vrot.slane %v2147_v10, 2  ;;  %v3587_v11 = vmax.f32 %v3585_v24, %v3586_v1  ;;  %v3622_v44 = vrot.slane %v3621_v45, 4  ;;  %v1282_v30 = vadd.f32 %v1250_v6, %v7290_v43 }
 0x251   : > { %v1351_v52 = vmul.f32 %v7252_v18, %v7466_v3  ;;  %v2005_v51 = vmax.f32 %v2003_v47, %v2004_v36  ;;  %v2077_v17 = vmax.f32 %v2075_v55, %v2076_v34  ;;  %v2220_v60 = vrot.slane %v2219_v40, 2 }
 0x252   : > { %v2149_v59 = vmax.f32 %v2147_v10, %v2148_v63  ;;  %v3588_v27 = vrot.slane %v3587_v11, 2  ;;  %v3623_v25 = vmax.f32 %v3621_v45, %v3622_v44  ;;  %v7513_v16 = vadd.f32 %v1150_v41, %v1081_v21  ;;  %v2251_v45 = vld [vmem:[#allocation4 + $0x58] sm:$0x3]  ;;  %v2395_v63 = vld [vmem:[#allocation4 + $0x5c] sm:$0x3] }
 0x253   : > { %v7515_v8 = vadd.f32 %v1351_v52, %v1282_v30  ;;  %v2006_v23 = vrot.slane %v2005_v51, 1  ;;  %v2078_v4 = vrot.slane %v2077_v17, 1  ;;  %v2221_v1 = vmax.f32 %v2219_v40, %v2220_v60  ;;  %v2467_v60 = vld [vmem:[#allocation4 + $0x5e] sm:$0x3] }
 0x254   : > { %v2150_v9 = vrot.slane %v2149_v59, 1  ;;  %v3589_v24 = vmax.f32 %v3587_v11, %v3588_v27  ;;  %v3624_v19 = vrot.slane %v3623_v25, 2  ;;  %v1451_v43 = vmul.f32 %v7258_v39, %v7468_v33  ;;  %v2323_v11 = vld [vmem:[#allocation4 + $0x5a] sm:$0x3]  ;;  %v3641_v27 = vld [vmem:[#allocation4 + $0x28] sm:$0xf] }
 0x255   : > { %v1452_v47 = vmul.f32 %v7258_v39, %v1113_v38  ;;  %v2007_v34 = vmax.f32 %v2005_v51, %v2006_v23  ;;  %v2079_v10 = vmax.f32 %v2077_v17, %v2078_v4  ;;  %v2222_v6 = vrot.slane %v2221_v1, 1 }
 0x256   : > { %v2151_v55 = vmax.f32 %v2149_v59, %v2150_v9  ;;  %v3590_v41 = vrot.slane %v3589_v24, 1  ;;  %v3625_v21 = vmax.f32 %v3623_v25, %v3624_v19  ;;  %v7521_v44 = vadd.f32 %v1451_v43, %v7362_v20  ;;  %v7533_v20 = vld [vmem:[%s9286_s3 + $0xa] ss:$0 sm:$0xff]  ;;  %v912_v19 = vld [vmem:[#allocation3 + $0x138] sm:$0xff]  ;;  %v7548_v43 = vld [vmem:[%s9287_s4] ss:$0 sm:$0xff] }
 0x257   : > { %v1553_v36 = vmul.f32 %v7300_v15, %v7464_v5  ;;  %2027 = vst.msk [vmem:[#allocation3 + $0x91] sm:$0x1] %vm816_vm1, %v2007_v34  ;;  %2099 = vst.msk [vmem:[#allocation3 + $0x92] sm:$0x1] %vm816_vm1, %v2079_v10  ;;  %v2223_v4 = vmax.f32 %v2221_v1, %v2222_v6  ;;  %v1654_v40 = vmul.f32 %v7309_v49, %v7466_v3  ;;  %v2289_v59 = vsel %vm810_vm2, %v2251_v45, -inf }
 0x258   : > { %2171 = vst.msk [vmem:[#allocation3 + $0x93] sm:$0x1] %vm816_vm1, %v2151_v55  ;;  %v1754_v5 = vmul.f32 %v7533_v20, %v7468_v33  ;;  %v1755_v30 = vmul.f32 %v7533_v20, %v1113_v38  ;;  %v3591_v52 = vmax.f32 %v3589_v24, %v3590_v41  ;;  %v3626_v51 = vrot.slane %v3625_v21, 1 }
 0x259   : > { %v1585_v17 = vadd.f32 %v1553_v36, %v7317_v26  ;;  %2243 = vst.msk [vmem:[#allocation3 + $0x94] sm:$0x1] %vm816_vm1, %v2223_v4  ;;  %v2290_v25 = vrot.slane %v2289_v59, 4  ;;  %v2361_v23 = vsel %vm810_vm2, %v2323_v11, -inf  ;;  %v2433_v9 = vsel %vm810_vm2, %v2395_v63, -inf  ;;  %v1013_v36 = vld [vmem:[#allocation3 + $0x139] sm:$0xff] }
 0x25a   : > { %v1786_v3 = vadd.f32 %v1754_v5, %v7396_v46  ;;  %v3627_v33 = vmax.f32 %v3625_v21, %v3626_v51  ;;  %3601 = vst.msk [vmem:[#allocation3 + $0x49] sm:$0x1] %vm816_vm1, %v3591_v52  ;;  %v2362_v1 = vrot.slane %v2361_v23, 4  ;;  %v2434_v24 = vrot.slane %v2433_v9, 4  ;;  %v3677_v26 = vld [vmem:[#allocation4 + $0x2c] sm:$0xf] }
 0x25b   : > { %v1686_v38 = vadd.f32 %v1654_v40, %v1585_v17  ;;  %v2291_v34 = vmax.f32 %v2289_v59, %v2290_v25  ;;  %v2505_v10 = vsel %vm810_vm2, %v2467_v60, -inf  ;;  %v3657_v55 = vsel %vm3570_vm4, %v3641_v27, -inf }
 0x25c   : > { %v1825_v46 = vadd.f32 %v7548_v43, %v1786_v3  ;;  %3637 = vst.msk [vmem:[#allocation3 + $0x4a] sm:$0x1] %vm816_vm1, %v3627_v33  ;;  %v2363_v45 = vmax.f32 %v2361_v23, %v2362_v1  ;;  %v2435_v41 = vmax.f32 %v2433_v9, %v2434_v24  ;;  %v2506_v21 = vrot.slane %v2505_v10, 4 }
 0x25d   : > { %v1787_v6 = vadd.f32 %v1755_v30, %v1686_v38  ;;  %v2292_v11 = vrot.slane %v2291_v34, 2  ;;  %v3658_v63 = vrot.slane %v3657_v55, 4  ;;  %v3693_v4 = vsel %vm3570_vm4, %v3677_v26, -inf  ;;  %v5290_v26 = vld [vmem:[%s9288_s5] sm:$0xff]  }
 0x25e   : > { %1857 = vst.msk [vmem:[#allocation2 + $0xa0] sm:$0xff] %vm314_vm0, %v1825_v46  ;;  %v949_v40 = vmul.f32 %v7138_v48, %v912_v19  ;;  %v2364_v52 = vrot.slane %v2363_v45, 2  ;;  %v2436_v51 = vrot.slane %v2435_v41, 2  ;;  %v2507_v17 = vmax.f32 %v2505_v10, %v2506_v21  ;;  %5245 = vmatprep.subr.bf16.mxu0 %v5290_v26  ;;  %5279 = vmatprep.subr.bf16.mxu1 %v5290_v26 }
 0x25f   : > { %v1826_v5 = vadd.f32 %v7548_v43, %v1787_v6  ;;  %v2293_v59 = vmax.f32 %v2291_v34, %v2292_v11  ;;  %v3659_v60 = vmax.f32 %v3657_v55, %v3658_v63  ;;  %v3694_v30 = vrot.slane %v3693_v4, 4  ;;  %v1014_v11 = vld [vmem:[#allocation3 + $0x141] sm:$0xff]  ;;  %v7570_v63 = vld [vmem:[#allocation3 + $0x31] sm:$0xf]  ;;  %5246 = vmatpush3.bf16.msra.mxu0 %v5290_v26  ;;  %5280 = vmatpush3.bf16.msra.mxu1 %v5290_v26 }
 0x260   : > { %v1050_v27 = vmul.f32 %v7144_v22, %v1013_v36  ;;  %v7560_v3 = vadd.f32 %v1452_v47, %v7515_v8  ;;  %v2365_v25 = vmax.f32 %v2363_v45, %v2364_v52  ;;  %v2437_v23 = vmax.f32 %v2435_v41, %v2436_v51  ;;  %v913_v8 = vld [vmem:[#allocation3 + $0x140] sm:$0xff]  ;;  %v7567_v47 = vld [vmem:[#allocation3 + $0x30] sm:$0xf] }
 0x261   : > { %1858 = vst.msk [vmem:[#allocation2 + $0xa8] sm:$0xff] %vm314_vm0, %v1826_v5  ;;  %v2508_v9 = vrot.slane %v2507_v17, 2  ;;  %v2294_v33 = vrot.slane %v2293_v59, 1  ;;  %v3660_v38 = vrot.slane %v3659_v60, 2  ;;  %v3695_v1 = vmax.f32 %v3693_v4, %v3694_v30  ;;  %v7572_v4 = vld [vmem:[#allocation3 + $0x32] sm:$0xf] }
 0x262   : > { %v1251_v24 = vmul.f32 %v7244_v62, %v912_v19  ;;  %v2366_v46 = vrot.slane %v2365_v25, 1  ;;  %v2438_v34 = vrot.slane %v2437_v23, 1  ;;  %v1082_v55 = vadd.f32 %v1050_v27, %v949_v40  ;;  %v7574_v5 = vld [vmem:[#allocation3 + $0x30] sm:$0xf] }
 0x263   : > { %v2509_v10 = vmax.f32 %v2507_v17, %v2508_v9  ;;  %v2295_v6 = vmax.f32 %v2293_v59, %v2294_v33  ;;  %v3661_v45 = vmax.f32 %v3659_v60, %v3660_v38  ;;  %v3696_v41 = vrot.slane %v3695_v1, 2  ;;  %v7576_v52 = vld [vmem:[#allocation3 + $0x30] sm:$0xf]  ;;  %v1114_v60 = vld [vmem:[#allocation3 + $0x13a] sm:$0xff]  ;;  %v1115_v33 = vld [vmem:[#allocation3 + $0x142] sm:$0xff] }
 0x264   : > { %v1283_v21 = vadd.f32 %v1251_v24, %v7508_v31  ;;  %v2367_v40 = vmax.f32 %v2365_v25, %v2366_v46  ;;  %v2439_v51 = vmax.f32 %v2437_v23, %v2438_v34  ;;  %v1554_v59 = vmul.f32 %v7300_v15, %v912_v19  ;;  %v7579_v30 = vld [vmem:[#allocation3 + $0x31] sm:$0xf]  ;;  %4160 = vst.msk [vmem:[#allocation3 + $0x30] sm:$0x1] %vm816_vm1, %v9462_v58  ;;  %v588_v19 = vpop.xlane.xlu0 %587 }
 0x265   : > { %v2510_v17 = vrot.slane %v2509_v10, 1  ;;  %v7581_v31 = vld [vmem:[#allocation3 + $0x32] sm:$0xf]  ;;  %2315 = vst.msk [vmem:[#allocation3 + $0x95] sm:$0x1] %vm816_vm1, %v2295_v6  ;;  %v3662_v27 = vrot.slane %v3661_v45, 1  ;;  %v3697_v9 = vmax.f32 %v3695_v1, %v3696_v41  ;;  %v1352_v25 = vmul.f32 %v7252_v18, %v1013_v36 }
 0x266   : > { %v1655_v23 = vmul.f32 %v7309_v49, %v1013_v36  ;;  %v7588_v38 = vld [vmem:[#allocation3 + $0x31] sm:$0xf]  ;;  %2387 = vst.msk [vmem:[#allocation3 + $0x96] sm:$0x1] %vm816_vm1, %v2367_v40  ;;  %2459 = vst.msk [vmem:[#allocation3 + $0x97] sm:$0x1] %vm816_vm1, %v2439_v51  ;;  %v1586_v26 = vadd.f32 %v1554_v59, %v7521_v44  ;;  %v950_v34 = vmul.f32 %v7138_v48, %v913_v8 }
 0x267   : > { %v7590_v24 = vld [vmem:[#allocation3 + $0x32] sm:$0xf]  ;;  %v2511_v46 = vmax.f32 %v2509_v10, %v2510_v17  ;;  %v1051_v1 = vmul.f32 %v7144_v22, %v1014_v11  ;;  %v3663_v36 = vmax.f32 %v3661_v45, %v3662_v27  ;;  %v3698_v6 = vrot.slane %v3697_v9, 1 }
 0x268   : > { %4164 = vst.msk [vmem:[#allocation3 + $0x33] sm:$0x1] %vm816_vm1, %v9462_v58  ;;  %v1384_v41 = vadd.f32 %v1352_v25, %v1283_v21  ;;  %v1151_v0 = vmul.f32 %v7238_v53, %v1114_v60  ;;  %v1687_v40 = vadd.f32 %v1655_v23, %v1586_v26  ;;  %v1152_v10 = vmul.f32 %v7238_v53, %v1115_v33  ;;  %v591_v21 = vpop.xlane.xlu1 %590  ;;  %v1524_v23 = vld [vmem:[#allocation3 + $0x198] sm:$0xff]  ;;  %v594_v26 = vpop.xlane.xlu0 %593 }
 0x269   : > { %2531 = vst.msk [vmem:[#allocation3 + $0x98] sm:$0x1] %vm816_vm1, %v2511_v46  ;;  %v1083_v42 = vadd.f32 %v1051_v1, %v950_v34  ;;  %v1252_v44 = vmul.f32 %v7244_v62, %v913_v8  ;;  %v3699_v51 = vmax.f32 %v3697_v9, %v3698_v6  ;;  %3673 = vst.msk [vmem:[#allocation3 + $0x4b] sm:$0x1] %vm816_vm1, %v3663_v36  ;;  %v630_v46 = vmul.f32 0.0625, %v588_v19  ;;  %v1525_v34 = vld [vmem:[#allocation3 + $0x1a0] sm:$0xff] }
 0x26a   : > { %v7604_v48 = vadd.f32 %v1151_v0, %v1082_v55  ;;  %v1353_v22 = vmul.f32 %v7252_v18, %v1014_v11  ;;  %v1453_v45 = vmul.f32 %v7258_v39, %v1114_v60  ;;  %v1454_v27 = vmul.f32 %v7258_v39, %v1115_v33  ;;  %v1626_v6 = vld [vmem:[#allocation3 + $0x199] sm:$0xff] }
 0x26b   : > { %v7608_v17 = vadd.f32 %v1152_v10, %v1083_v42  ;;  %v1284_v59 = vadd.f32 %v1252_v44, %v7513_v16  ;;  %v1555_v25 = vmul.f32 %v7300_v15, %v913_v8  ;;  %3709 = vst.msk [vmem:[#allocation3 + $0x4c] sm:$0x1] %vm816_vm1, %v3699_v51  ;;  %v1656_v0 = vmul.f32 %v7309_v49, %v1014_v11  ;;  %v1627_v51 = vld [vmem:[#allocation3 + $0x1a1] sm:$0xff] }
 0x26c   : > { %v7614_v9 = vadd.f32 %v1453_v45, %v1384_v41  ;;  %v1756_v55 = vmul.f32 %v7533_v20, %v1114_v60  ;;  %v631_v16 = vmul.f32 0.0625, %v591_v21  ;;  %v632_v36 = vmul.f32 0.0625, %v594_v26  ;;  %v1727_v11 = vld [vmem:[#allocation3 + $0x19a] sm:$0xff] }
 0x26d   : > { %9590 = vst [vmem:[#allocation49_spill] sm:$0xff] %v7608_v17  ;;  %v1385_v42 = vadd.f32 %v1353_v22, %v1284_v59  ;;  %v1587_v1 = vadd.f32 %v1555_v25, %v7560_v3  ;;  %v1757_v8 = vmul.f32 %v7533_v20, %v1115_v33  ;;  %v662_v44 = vadd.f32 1e-06, %v630_v46 }
 0x26e   : > { %v1788_v10 = vadd.f32 %v1756_v55, %v1687_v40  ;;  %v7621_v41 = vmul.f32 %v7300_v15, %v1524_v23  ;;  %v663_v60 = vadd.f32 1e-06, %v631_v16  ;;  %v664_v19 = vadd.f32 1e-06, %v632_v36  ;;  %v7635_v40 = vld [vmem:[%s9286_s3 + $0x19] ss:$0 sm:$0xff] }
 0x26f   : > { %v1688_v45 = vadd.f32 %v1656_v0, %v1587_v1  ;;  %v7624_v17 = vmul.f32 %v7300_v15, %v1525_v34  ;;  %v7626_v22 = vadd.f32 %v1454_v27, %v1385_v42  ;;  %5343 = vrsqrt.f32 %v662_v44  ;;  %9594 = vst [vmem:[#allocation21_spill] sm:$0xff] %v7635_v40  ;;  %v7646_v23 = vld [vmem:[%s9286_s3 + $0x1a] ss:$0 sm:$0xff]  ;;  %v1728_v0 = vld [vmem:[#allocation3 + $0x1a2] sm:$0xff] }
 0x270   : > { %9591 = vst [vmem:[#allocation50_spill] sm:$0xff] %v7621_v41  ;;  %v1827_v3 = vadd.f32 %v7548_v43, %v1788_v10  ;;  %v7630_v33 = vmul.f32 %v7309_v49, %v1626_v6  ;;  %5345 = vrsqrt.f32 %v663_v60  ;;  %v7638_v59 = vmul.f32 %v7309_v49, %v1627_v51  ;;  %v3714_v27 = vld [vmem:[#allocation3 + $0x48] sm:$0xf]  ;;  %9597 = vst [vmem:[#allocation84_spill] sm:$0xff] %v7646_v23  ;;  %v9598_v6 = vld [vmem:[#allocation22_spill] sm:$0xff] }
 0x271   : > { %9592 = vst [vmem:[#allocation51_spill] sm:$0xff] %v7624_v17  ;;  %v1789_v21 = vadd.f32 %v1757_v8, %v1688_v45  ;;  %v7641_v25 = vmul.f32 %v7533_v20, %v1727_v11  ;;  %5347 = vrsqrt.f32 %v664_v19  ;;  %v1766_v55 = vadd.f32 %v7438_v28, %v7470_v61  ;;  %v3765_v34 = vld [vmem:[#allocation3 + $0x48] sm:$0xf]  ;;  %v9599_v44 = vld [vmem:[#allocation23_spill] sm:$0xff] }
 0x272   : > { %9593 = vst [vmem:[#allocation20_spill] sm:$0xff] %v7630_v33  ;;  %9595 = vst [vmem:[#allocation82_spill] sm:$0xff] %v7638_v59  ;;  %v2673_v46 = vadd.f32 %v7453_v14, %v7473_v57  ;;  %v3723_v26 = vmul.f32 %v7447_v56, %v7567_v47  ;;  %v3816_v42 = vld [vmem:[#allocation3 + $0x48] sm:$0xf]  ;;  %v3724_v16 = vmul.f32 %v7447_v56, %v3714_v27 }
 0x273   : > { %9596 = vst [vmem:[#allocation83_spill] sm:$0xff] %v7641_v25  ;;  %1859 = vst.msk [vmem:[#allocation2 + $0xb0] sm:$0xff] %vm314_vm0, %v1827_v3  ;;  %v1828_v1 = vadd.f32 %v7548_v43, %v1789_v21  ;;  %v3732_v36 = vld [vmem:[#allocation3 + $0x49] sm:$0xf]  ;;  %v3738_v8 = vmul.f32 %v7635_v40, %v9598_v6  ;;  %v3740_v10 = vmul.f32 %v7635_v40, %v7570_v63  ;;  %v597_v21 = vpop.xlane.xlu1 %596 }
 0x274   : > { %v3749_v61 = vld [vmem:[#allocation3 + $0x4a] sm:$0xf]  ;;  %v1805_v14 = vadd.f32 %v7548_v43, %v1766_v55  ;;  %v2702_v57 = vadd.f32 %v7459_v37, %v2673_v46  ;;  %v3741_v47 = vmul.f32 %v7635_v40, %v3732_v36  ;;  %v3755_v51 = vmul.f32 %v7646_v23, %v9599_v44  ;;  %v7676_v37 = vld [vmem:[%s9286_s3 + $0x1c] ss:$0 sm:$0xff] }
 0x275   : > { %v3783_v28 = vld [vmem:[#allocation3 + $0x49] sm:$0xf]  ;;  %1860 = vst.msk [vmem:[#allocation2 + $0xb8] sm:$0xff] %vm314_vm0, %v1828_v1  ;;  %v7668_v60 = vmul.f32 %v7533_v20, %v1728_v0  ;;  %v3742_v63 = vadd.f32 %v3738_v8, %v7487_v54  ;;  %v3744_v19 = vadd.f32 %v3740_v10, %v3723_v26  ;;  %v3757_v3 = vmul.f32 %v7646_v23, %v7572_v4  ;;  %v7687_v4 = vld [vmem:[%s9286_s3 + $0x1d] ss:$0 sm:$0xff] }
 0x276   : > { %v3800_v11 = vld [vmem:[#allocation3 + $0x4a] sm:$0xf]  ;;  %9601 = vst [vmem:[#allocation23_spill] sm:$0xff] %v7676_v37  ;;  %1837 = vst.msk [vmem:[#allocation2] sm:$0xff] %vm314_vm0, %v1805_v14  ;;  %v2732_v27 = vadd.f32 %v7462_v29, %v2702_v57  ;;  %v3745_v0 = vadd.f32 %v3741_v47, %v3724_v16  ;;  %v3758_v54 = vmul.f32 %v7646_v23, %v3749_v61  ;;  %v633_v46 = vmul.f32 0.0625, %v597_v21 }
 0x277   : > { %v3834_v56 = vld [vmem:[#allocation3 + $0x49] sm:$0xf]  ;;  %9600 = vst [vmem:[#allocation22_spill] sm:$0xff] %v7668_v60  ;;  %v3775_v55 = vmul.f32 %v7676_v37, %v3765_v34  ;;  %9602 = vst [vmem:[#allocation85_spill] sm:$0xff] %v7687_v4  ;;  %v7693_v26 = vadd.f32 %v3755_v51, %v3742_v63  ;;  %v3761_v29 = vadd.f32 %v3757_v3, %v3744_v19  ;;  %v3818_v34 = vld [vmem:[#allocation3 + $0x78] sm:$0xf] }
 0x278   : > { %v3851_v45 = vld [vmem:[#allocation3 + $0x4a] sm:$0xf]  ;;  %v7697_v1 = vmul.f32 %v7676_v37, %v7574_v5  ;;  %v5159_v16 = vld [vmem:[%s9286_s3 + $0x20] ss:$0 sm:$0xff]  ;;  %v2761_v36 = vadd.f32 %v7476_v2, %v2732_v27  ;;  %v7703_v6 = vadd.f32 %v3758_v54, %v3745_v0  ;;  %v7707_v8 = vmul.f32 %v7687_v4, %v7579_v30  ;;  %v5157_v5 = vld [vmem:[%s9286_s3 + $0x1e] ss:$0 sm:$0xff] }
 0x279   : > { %4157 = vst.msk [vmem:[#allocation3 + $0x48] sm:$0xf] %vm3570_vm4, %v9462_v58  ;;  %9603 = vst [vmem:[#allocation86_spill] sm:$0xff] %v7693_v26  ;;  %v3792_v10 = vmul.f32 %v7687_v4, %v3783_v28  ;;  %v5161_v61 = vld [vmem:[%s9286_s3 + $0x21] ss:$0 sm:$0xff]  ;;  %v3779_v57 = vadd.f32 %v3775_v55, %v3761_v29  ;;  %v7717_v2 = vmul.f32 %v5157_v5, %v7581_v31  ;;  %v5344_v51 = vpop.eup %5343  ;;  %v9611_v27 = vld [vmem:[#allocation61_spill] sm:$0xff] }
 0x27a   : > { %4161 = vst.msk [vmem:[#allocation3 + $0x48] sm:$0x1] %vm816_vm1, %v9462_v58  ;;  %4165 = vst.msk [vmem:[#allocation3 + $0x4b] sm:$0x1] %vm816_vm1, %v9462_v58  ;;  %v665_v14 = vadd.f32 1e-06, %v633_v46  ;;  %v3809_v47 = vmul.f32 %v5157_v5, %v3800_v11  ;;  %v2790_v30 = vadd.f32 %v7479_v12, %v2761_v36  ;;  %v7721_v28 = vmul.f32 %v5159_v16, %v7576_v52  ;;  %v5346_v21 = vpop.eup %5345 }
 0x27b   : > { %9604 = vst [vmem:[#allocation87_spill] sm:$0xff] %v7697_v1  ;;  %9605 = vst [vmem:[#allocation88_spill] sm:$0xff] %v7703_v6  ;;  %v3836_v44 = vld [vmem:[#allocation3 + $0x79] sm:$0xf]  ;;  %v7723_v63 = vmul.f32 %v5159_v16, %v3816_v42  ;;  %v7725_v19 = vmul.f32 %v5159_v16, %v3818_v34  ;;  %v5163_v3 = vld [vmem:[%s9286_s3 + $0x22] ss:$0 sm:$0xff]  ;;  %v726_v31 = vmul.f32 %v5344_v51, %v9611_v27  ;;  %v5348_v12 = vpop.eup %5347 }
 0x27c   : > { %9606 = vst [vmem:[#allocation89_spill] sm:$0xff] %v7707_v8  ;;  %9607 = vst [vmem:[#allocation90_spill] sm:$0xff] %v7717_v2  ;;  %5349 = vrsqrt.f32 %v665_v14  ;;  %v3796_v11 = vadd.f32 %v3792_v10, %v3779_v57  ;;  %v7732_v0 = vmul.f32 %v5161_v61, %v7588_v38  ;;  %v9613_v54 = vld [vmem:[#allocation62_spill] sm:$0xff]  ;;  %v2806_v42 = vadd.f32 %v7497_v32, %v2790_v30  ;;  %v7743_v34 = vld [vmem:[%s9284_s1] ss:$0 sm:$0xff] }
 0x27d   : > { %9608 = vst [vmem:[#allocation91_spill] sm:$0xff] %v7721_v28  ;;  %9609 = vst [vmem:[#allocation92_spill] sm:$0xff] %v7723_v63  ;;  %v727_v52 = vmul.f32 %v5346_v21, %v9613_v54  ;;  %v7736_v55 = vmul.f32 %v5161_v61, %v3834_v56  ;;  %v7738_v46 = vmul.f32 %v5161_v61, %v3836_v44  ;;  %v3853_v29 = vld [vmem:[#allocation3 + $0x7a] sm:$0xf]  ;;  %v9616_v36 = vld [vmem:[#allocation63_spill] sm:$0xff] }
 0x27e   : > { %9610 = vst [vmem:[#allocation93_spill] sm:$0xff] %v7725_v19  ;;  %9612 = vst [vmem:[#allocation61_spill] sm:$0xff] %v7732_v0  ;;  %v764_v16 = vmul.f32 %v7743_v34, %v726_v31  ;;  %v728_v38 = vmul.f32 %v5348_v12, %v9616_v36  ;;  %v7747_v10 = vadd.f32 %v3809_v47, %v3796_v11  ;;  %v7759_v61 = vld [vmem:[%s9286_s3] ss:$0 sm:$0xff]  ;;  %v9620_v14 = vld [vmem:[#allocation29_spill] sm:$0xff] }
 0x27f   : > { %9614 = vst [vmem:[#allocation62_spill] sm:$0xff] %v7736_v55  ;;  %9615 = vst [vmem:[#allocation94_spill] sm:$0xff] %v7738_v46  ;;  %v7750_v5 = vmul.f32 %v5163_v3, %v7590_v24  ;;  %v765_v32 = vmul.f32 %v7743_v34, %v727_v52  ;;  %v7754_v56 = vmul.f32 %v5163_v3, %v3851_v45  ;;  %v7766_v47 = vld [vmem:[%s9286_s3 + $0x1] ss:$0 sm:$0xff]  ;;  %v9624_v11 = vld [vmem:[#allocation48_spill] sm:$0xff] }
 0x280   : > { %9617 = vst [vmem:[#allocation63_spill] sm:$0xff] %v7747_v10  ;;  %2814 = vst.msk [vmem:[#allocation4] sm:$0xff] %vm314_vm0, %v2806_v42  ;;  %v925_v57 = vmul.f32 %v7759_v61, %v9620_v14  ;;  %v1026_v24 = vmul.f32 %v7766_v47, %v9549_v35  ;;  %v7771_v44 = vadd.f32 %v7347_v7, %v764_v16  ;;  %v9627_v54 = vld [vmem:[#allocation39_spill] sm:$0xff]  ;;  %v9628_v52 = vld [vmem:[#allocation81_spill] sm:$0xff] }
 0x281   : > { %9618 = vst [vmem:[#allocation95_spill] sm:$0xff] %v7750_v5  ;;  %9619 = vst [vmem:[#allocation96_spill] sm:$0xff] %v7754_v56  ;;  %v766_v45 = vmul.f32 %v7743_v34, %v728_v38  ;;  %v7774_v51 = vmul.f32 %v5163_v3, %v3853_v29  ;;  %v1127_v30 = vmul.f32 %v7238_v53, %v9551_v13  ;;  %v9626_v13 = vld [vmem:[#allocation38_spill] sm:$0xff]  ;;  %v9629_v42 = vld [vmem:[#allocation19_spill] sm:$0xff] }
 0x282   : > { %9621 = vst [vmem:[#allocation29_spill] sm:$0xff] %v7771_v44  ;;  %v7779_v21 = vadd.f32 %v7347_v7, %v765_v32  ;;  %v1058_v27 = vadd.f32 %v1026_v24, %v925_v57  ;;  %v1229_v31 = vmul.f32 %v7244_v62, %v9581_v50  ;;  %v7785_v35 = vmul.f32 %v7252_v18, %v9624_v11  ;;  %v9631_v36 = vld [vmem:[#allocation34_spill] sm:$0xff]  ;;  %v3478_v19 = vld [vmem:[#allocation2 + $0xe] sm:$0x3]  ;;  %v7870_v5 = vld [vmem:[%s9286_s3 + $0x4] ss:$0 sm:$0xff] }
 0x283   : > { %9622 = vst [vmem:[#allocation97_spill] sm:$0xff] %v7774_v51  ;;  %880 = vst.msk [vmem:[#allocation3 + $0x151] sm:$0xff] %vm314_vm0, %v7771_v44  ;;  %v1931_v3 = vsel %vm314_vm0, %v7771_v44, -inf  ;;  %v7792_v12 = vadd.f32 %v7347_v7, %v766_v45  ;;  %v7796_v53 = vmul.f32 %v7258_v39, %v9626_v13  ;;  %v7800_v62 = vmul.f32 %v7300_v15, %v9627_v54  ;;  %v9632_v32 = vld [vmem:[#allocation78_spill] sm:$0xff]  ;;  %v2862_v45 = vld [vmem:[#allocation2] sm:$0x3] }
 0x284   : > { %9623 = vst [vmem:[#allocation98_spill] sm:$0xff] %v7779_v21  ;;  %v7803_v18 = vmax.f32 %v9628_v52, %v1931_v3  ;;  %v9630_v29 = vmax.f32 %v9629_v42, %v9628_v52  ;;  %881 = vst.msk [vmem:[#allocation3 + $0x159] sm:$0xff] %vm314_vm0, %v7779_v21  ;;  %v1934_v7 = vsel %vm314_vm0, %v7779_v21, -inf  ;;  %v1159_v39 = vadd.f32 %v1127_v30, %v1058_v27  ;;  %v2950_v42 = vld [vmem:[#allocation2 + $0x2] sm:$0x3] }
 0x285   : > { %9625 = vst [vmem:[#allocation48_spill] sm:$0xff] %v7792_v12  ;;  %v7815_v38 = vmax.f32 %v9631_v36, %v1934_v7  ;;  %v9633_v14 = vmax.f32 %v9632_v32, %v9631_v36  ;;  %882 = vst.msk [vmem:[#allocation3 + $0x169] sm:$0xff] %vm314_vm0, %v7792_v12  ;;  %v7826_v24 = vsel %vm314_vm0, %v7792_v12, -inf  ;;  %v3214_v36 = vld [vmem:[#allocation2 + $0x8] sm:$0x3]  ;;  %v7852_v10 = vmul.f32 %v7759_v61, %v9581_v50 }
 0x286   : > { %v7808_v16 = vmax.f32 %v9630_v29, %v1931_v3  ;;  %v9634_v3 = vld [vmem:[#allocation44_spill] sm:$0xff]  ;;  %1954 = vst.msk [vmem:[#allocation4 + $0x60] sm:$0xff] %vm314_vm0, %v7803_v18  ;;  %v3038_v29 = vld [vmem:[#allocation2 + $0x4] sm:$0x3]  ;;  %v5350_v44 = vpop.eup %5349  ;;  %v7874_v50 = vmul.f32 %v7870_v5, %v9627_v54  ;;  %v7942_v37 = vld [vmem:[%s9286_s3 + $0x6] ss:$0 sm:$0xff] }
 0x287   : > { %v7820_v57 = vmax.f32 %v9633_v14, %v1934_v7  ;;  %v7830_v52 = vmul.f32 %v7309_v49, %v9634_v3  ;;  %v3126_v7 = vld [vmem:[#allocation2 + $0x6] sm:$0x3]  ;;  %v3302_v32 = vld [vmem:[#allocation2 + $0xa] sm:$0x3]  ;;  %v1261_v14 = vadd.f32 %v1229_v31, %v1159_v39  ;;  %1955 = vst.msk [vmem:[#allocation4 + $0x68] sm:$0xff] %vm314_vm0, %v7815_v38  ;;  %v7856_v31 = vmul.f32 %v7766_v47, %v9624_v11 }
 0x288   : > { %v9635_v12 = vld [vmem:[#allocation40_spill] sm:$0xff]  ;;  %v7844_v51 = vld [vmem:[#allocation4] ss:$0 sm:$0xff]  ;;  %v7846_v30 = vld [vmem:[#allocation4 + $0x1] ss:$0 sm:$0xff]  ;;  %9639 = vst [vmem:[#allocation19_spill] sm:$0xff] %v7874_v50 }
 0x289   : > { %v7840_v21 = vmul.f32 %v7533_v20, %v9635_v12  ;;  %9636 = vst [vmem:[#allocation38_spill] sm:$0xff] %v7844_v51  ;;  %9637 = vst [vmem:[#allocation39_spill] sm:$0xff] %v7846_v30  ;;  %v7848_v46 = vld [vmem:[#allocation4 + $0x2] ss:$0 sm:$0xff]  ;;  %v3390_v27 = vld [vmem:[#allocation2 + $0xc] sm:$0x3]  ;;  %v2878_v0 = vadd.f32 %v7844_v51, %v2862_v45  ;;  %v2966_v55 = vadd.f32 %v7846_v30, %v2950_v42 }
 0x28a   : > { %9638 = vst [vmem:[#allocation81_spill] sm:$0xff] %v7848_v46  ;;  %v7861_v39 = vld [vmem:[%s9286_s3 + $0x2] ss:$0 sm:$0xff]  ;;  %v9640_v11 = vld [vmem:[#allocation64_spill] sm:$0xff]  ;;  %v3054_v28 = vadd.f32 %v7848_v46, %v3038_v29  ;;  %v7880_v63 = vld [vmem:[#allocation4 + $0x3] ss:$0 sm:$0xff] }
 0x28b   : > { %v7865_v6 = vmul.f32 %v7861_v39, %v9626_v13  ;;  %v729_v56 = vmul.f32 %v5350_v44, %v9640_v11  ;;  %9641 = vst [vmem:[#allocation34_spill] sm:$0xff] %v7880_v63  ;;  %v5114_v13 = vld [vmem:[#allocation4 + $0x4] ss:$0 sm:$0xff]  ;;  %v7882_v2 = vld [vmem:[#allocation4 + $0x5] ss:$0 sm:$0xff]  ;;  %v3142_v8 = vadd.f32 %v7880_v63, %v3126_v7  ;;  %v7907_v63 = vadd.f32 %v7785_v35, %v1261_v14  ;;  %v1016_v51 = vld [vmem:[#allocation3 + $0x159] sm:$0xff] }
 0x28c   : > { %v3230_v1 = vadd.f32 %v5114_v13, %v3214_v36  ;;  %v3318_v26 = vadd.f32 %v7882_v2, %v3302_v32  ;;  %v7886_v54 = vld [vmem:[#allocation4 + $0x6] ss:$0 sm:$0xff]  ;;  %v7888_v60 = vld [vmem:[#allocation4 + $0x7] ss:$0 sm:$0xff]  ;;  %v3215_v44 = vld [vmem:[#allocation2 + $0x18] sm:$0x3] }
 0x28d   : > { %v7893_v45 = vld [vmem:[%s9286_s3 + $0x5] ss:$0 sm:$0xff]  ;;  %v914_v29 = vld [vmem:[#allocation3 + $0x150] sm:$0xff]  ;;  %2894 = vst.msk [vmem:[#allocation2] sm:$0x3] %vm810_vm2, %v2878_v0  ;;  %v3406_v7 = vadd.f32 %v7886_v54, %v3390_v27  ;;  %v3494_v36 = vadd.f32 %v7888_v60, %v3478_v19  ;;  %v7913_v27 = vmul.f32 %v7743_v34, %v729_v56 }
 0x28e   : > { %v7897_v42 = vmul.f32 %v7893_v45, %v9634_v3  ;;  %v1015_v11 = vld [vmem:[#allocation3 + $0x151] sm:$0xff]  ;;  %2982 = vst.msk [vmem:[#allocation2 + $0x2] sm:$0x3] %vm810_vm2, %v2966_v55  ;;  %3070 = vst.msk [vmem:[#allocation2 + $0x4] sm:$0x3] %vm810_vm2, %v3054_v28  ;;  %v3231_v3 = vadd.f32 %v5114_v13, %v3215_v44  ;;  %v951_v46 = vmul.f32 %v7759_v61, %v914_v29  ;;  %v1117_v44 = vld [vmem:[#allocation3 + $0x15a] sm:$0xff] }
 0x28f   : > { %v9643_v32 = vld [vmem:[#allocation37_spill] sm:$0xff]  ;;  %v1052_v30 = vmul.f32 %v7766_v47, %v1015_v11  ;;  %v1253_v0 = vmul.f32 %v7870_v5, %v914_v29  ;;  %v915_v55 = vld [vmem:[#allocation3 + $0x158] sm:$0xff]  ;;  %3158 = vst.msk [vmem:[#allocation2 + $0x6] sm:$0x3] %vm810_vm2, %v3142_v8  ;;  %3246 = vst.msk [vmem:[#allocation2 + $0x8] sm:$0x3] %vm810_vm2, %v3230_v1  ;;  %v1354_v19 = vmul.f32 %v7893_v45, %v1015_v11 }
 0x290   : > { %9642 = vst [vmem:[#allocation78_spill] sm:$0xff] %v7897_v42  ;;  %3558 = vst.msk [vmem:[#allocation4] sm:$0xff] %vm314_vm0, %v9643_v32  ;;  %v1116_v28 = vld [vmem:[#allocation3 + $0x152] sm:$0xff]  ;;  %v1556_v35 = vmul.f32 %v7300_v15, %v914_v29  ;;  %v952_v14 = vmul.f32 %v7759_v61, %v915_v55  ;;  %v1053_v13 = vmul.f32 %v7766_v47, %v1016_v51  ;;  %v1964_v56 = vld [vmem:[#allocation4 + $0x60] sm:$0x3] }
 0x291   : > { %3334 = vst.msk [vmem:[#allocation2 + $0xa] sm:$0x3] %vm810_vm2, %v3318_v26  ;;  %3422 = vst.msk [vmem:[#allocation2 + $0xc] sm:$0x3] %vm810_vm2, %v3406_v7  ;;  %v1084_v8 = vadd.f32 %v1052_v30, %v951_v46  ;;  %v1285_v1 = vadd.f32 %v1253_v0, %v7604_v48  ;;  %v1657_v26 = vmul.f32 %v7309_v49, %v1015_v11  ;;  %v2036_v32 = vld [vmem:[#allocation4 + $0x62] sm:$0x3] }
 0x292   : > { %3510 = vst.msk [vmem:[#allocation2 + $0xe] sm:$0x3] %vm810_vm2, %v3494_v36  ;;  %3247 = vst.msk [vmem:[#allocation2 + $0x18] sm:$0x3] %vm810_vm2, %v3231_v3  ;;  %v2108_v25 = vld [vmem:[#allocation4 + $0x64] sm:$0x3]  ;;  %v1153_v29 = vmul.f32 %v7861_v39, %v1116_v28  ;;  %v1588_v59 = vadd.f32 %v1556_v35, %v7614_v9  ;;  %v1154_v48 = vmul.f32 %v7861_v39, %v1117_v44 }
 0x293   : > { %v2008_v33 = vsel %vm810_vm2, %v1964_v56, -inf  ;;  %v2080_v7 = vsel %vm810_vm2, %v2036_v32, -inf  ;;  %v2152_v36 = vsel %vm810_vm2, %v2108_v25, -inf  ;;  %v2180_v17 = vld [vmem:[#allocation4 + $0x66] sm:$0x3]  ;;  %v1386_v49 = vadd.f32 %v1354_v19, %v1285_v1 }
 0x294   : > { %v2009_v3 = vrot.slane %v2008_v33, 4  ;;  %v2081_v46 = vrot.slane %v2080_v7, 4  ;;  %v2153_v30 = vrot.slane %v2152_v36, 4  ;;  %v1689_v11 = vadd.f32 %v1657_v26, %v1588_v59  ;;  %v2468_v40 = vld [vmem:[#allocation4 + $0x6e] sm:$0x3] }
 0x295   : > { %v2224_v0 = vsel %vm810_vm2, %v2180_v17, -inf  ;;  %v1085_v41 = vadd.f32 %v1053_v13, %v952_v14  ;;  %v7934_v56 = vadd.f32 %v1153_v29, %v1084_v8  ;;  %v1254_v25 = vmul.f32 %v7870_v5, %v915_v55  ;;  %v9644_v13 = vld [vmem:[#allocation49_spill] sm:$0xff] }
 0x296   : > { %v2010_v58 = vmax.f32 %v2008_v33, %v2009_v3  ;;  %v2082_v4 = vmax.f32 %v2080_v7, %v2081_v46  ;;  %v2154_v9 = vmax.f32 %v2152_v36, %v2153_v30  ;;  %v2225_v35 = vrot.slane %v2224_v0, 4 }
 0x297   : > { %v7936_v32 = vadd.f32 %v1154_v48, %v1085_v41  ;;  %v1455_v59 = vmul.f32 %v7942_v37, %v1116_v28  ;;  %v1286_v1 = vadd.f32 %v1254_v25, %v9644_v13  ;;  %v1355_v8 = vmul.f32 %v7893_v45, %v1016_v51  ;;  %v7953_v48 = vld [vmem:[%s9286_s3 + $0x9] ss:$0 sm:$0xff]  ;;  %v2252_v25 = vld [vmem:[#allocation4 + $0x68] sm:$0x3] }
 0x298   : > { %v2011_v19 = vrot.slane %v2010_v58, 2  ;;  %v2083_v17 = vrot.slane %v2082_v4, 2  ;;  %v2155_v14 = vrot.slane %v2154_v9, 2  ;;  %v2226_v33 = vmax.f32 %v2224_v0, %v2225_v35 }
 0x299   : > { %v1456_v41 = vmul.f32 %v7942_v37, %v1117_v44  ;;  %v1557_v26 = vmul.f32 %v7300_v15, %v915_v55  ;;  %v1487_v46 = vadd.f32 %v1455_v59, %v1386_v49  ;;  %v1658_v0 = vmul.f32 %v7953_v48, %v1016_v51  ;;  %v2396_v59 = vld [vmem:[#allocation4 + $0x6c] sm:$0x3]  ;;  %v916_v51 = vld [vmem:[#allocation3 + $0x168] sm:$0xff] }
 0x29a   : > { %v2012_v29 = vmax.f32 %v2010_v58, %v2011_v19  ;;  %v2084_v7 = vmax.f32 %v2082_v4, %v2083_v17  ;;  %v2156_v36 = vmax.f32 %v2154_v9, %v2155_v14  ;;  %v2227_v3 = vrot.slane %v2226_v33, 2  ;;  %v2324_v4 = vld [vmem:[#allocation4 + $0x6a] sm:$0x3] }
 0x29b   : > { %v1589_v30 = vadd.f32 %v1557_v26, %v7626_v22  ;;  %v1758_v35 = vmul.f32 %v7533_v20, %v1116_v28  ;;  %v1387_v55 = vadd.f32 %v1355_v8, %v1286_v1  ;;  %v1759_v49 = vmul.f32 %v7533_v20, %v1117_v44 }
 0x29c   : > { %v2013_v13 = vrot.slane %v2012_v29, 1  ;;  %v2085_v23 = vrot.slane %v2084_v7, 1  ;;  %v2157_v15 = vrot.slane %v2156_v36, 1  ;;  %v2228_v58 = vmax.f32 %v2226_v33, %v2227_v3  ;;  %v1017_v3 = vld [vmem:[#allocation3 + $0x169] sm:$0xff] }
 0x29d   : > { %v1690_v9 = vadd.f32 %v1658_v0, %v1589_v30  ;;  %v1790_v22 = vadd.f32 %v1758_v35, %v1689_v11  ;;  %v2296_v50 = vsel %vm810_vm2, %v2252_v25, -inf  ;;  %v2368_v33 = vsel %vm810_vm2, %v2324_v4, -inf }
 0x29e   : > { %v2014_v19 = vmax.f32 %v2012_v29, %v2013_v13  ;;  %v2086_v17 = vmax.f32 %v2084_v7, %v2085_v23  ;;  %v2158_v14 = vmax.f32 %v2156_v36, %v2157_v15  ;;  %v2229_v26 = vrot.slane %v2228_v58, 1 }
 0x29f   : > { %v1791_v42 = vadd.f32 %v1759_v49, %v1690_v9  ;;  %v1829_v28 = vadd.f32 %v7548_v43, %v1790_v22  ;;  %v2297_v23 = vrot.slane %v2296_v50, 4  ;;  %v2369_v11 = vrot.slane %v2368_v33, 4  ;;  %v600_v22 = vpop.xlane.xlu0 %599 }
 0x2a0   : > { %2028 = vst.msk [vmem:[#allocation3 + $0xa9] sm:$0x1] %vm816_vm1, %v2014_v19  ;;  %2100 = vst.msk [vmem:[#allocation3 + $0xaa] sm:$0x1] %vm816_vm1, %v2086_v17  ;;  %v2230_v44 = vmax.f32 %v2228_v58, %v2229_v26  ;;  %v2440_v1 = vsel %vm810_vm2, %v2396_v59, -inf  ;;  %v2512_v7 = vsel %vm810_vm2, %v2468_v40, -inf  ;;  %v953_v36 = vmul.f32 %v7759_v61, %v916_v51 }
 0x2a1   : > { %2172 = vst.msk [vmem:[#allocation3 + $0xab] sm:$0x1] %vm816_vm1, %v2158_v14  ;;  %v1830_v8 = vadd.f32 %v7548_v43, %v1791_v42  ;;  %v2441_v29 = vrot.slane %v2440_v1, 4  ;;  %v2298_v30 = vmax.f32 %v2296_v50, %v2297_v23  ;;  %v2370_v0 = vmax.f32 %v2368_v33, %v2369_v11  ;;  %v7978_v40 = vld [vmem:[%s9286_s3 + $0x8] ss:$0 sm:$0xff] }
 0x2a2   : > { %1861 = vst.msk [vmem:[#allocation2 + $0xc0] sm:$0xff] %vm314_vm0, %v1829_v28  ;;  %v2513_v35 = vrot.slane %v2512_v7, 4  ;;  %v1054_v25 = vmul.f32 %v7766_v47, %v1017_v3  ;;  %v7971_v13 = vadd.f32 %v1456_v41, %v1387_v55  ;;  %v1255_v42 = vmul.f32 %v7870_v5, %v916_v51  ;;  %v7988_v28 = vld [vmem:[%s9285_s2] ss:$0 sm:$0xff] }
 0x2a3   : > { %2244 = vst.msk [vmem:[#allocation3 + $0xac] sm:$0x1] %vm816_vm1, %v2230_v44  ;;  %v2442_v15 = vmax.f32 %v2440_v1, %v2441_v29  ;;  %v1558_v58 = vmul.f32 %v7978_v40, %v916_v51  ;;  %v2299_v4 = vrot.slane %v2298_v30, 2  ;;  %v2371_v50 = vrot.slane %v2370_v0, 2  ;;  %v3603_v1 = vld [vmem:[#allocation4 + $0x4] sm:$0xf] }
 0x2a4   : > { %1862 = vst.msk [vmem:[#allocation2 + $0xc8] sm:$0xff] %vm314_vm0, %v1830_v8  ;;  %v2514_v9 = vmax.f32 %v2512_v7, %v2513_v35  ;;  %v1356_v49 = vmul.f32 %v7893_v45, %v1017_v3  ;;  %v7982_v55 = vadd.f32 %v1054_v25, %v953_v36  ;;  %v1287_v59 = vadd.f32 %v1255_v42, %v7934_v56  ;;  %v603_v56 = vpop.xlane.xlu1 %602 }
 0x2a5   : > { %v2443_v41 = vrot.slane %v2442_v15, 2  ;;  %v1590_v19 = vadd.f32 %v1558_v58, %v1487_v46  ;;  %v2300_v17 = vmax.f32 %v2298_v30, %v2299_v4  ;;  %v2372_v14 = vmax.f32 %v2370_v0, %v2371_v50  ;;  %v3566_v46 = vld [vmem:[#allocation4] sm:$0xf]  ;;  %v5183_v30 = vld [vmem:[%s9286_s3 + $0x24] ss:$0 sm:$0xff] }
 0x2a6   : > { %v2515_v26 = vrot.slane %v2514_v9, 2  ;;  %v7992_v51 = vadd.f32 %v7988_v28, %v7913_v27  ;;  %v7994_v44 = vadd.f32 %v1356_v49, %v1287_v59  ;;  %v1659_v23 = vmul.f32 %v7953_v48, %v1017_v3  ;;  %v4222_v27 = vld [vmem:[#allocation3] sm:$0x3]  ;;  %v4245_v49 = vld [vmem:[#allocation3 + $0x2] sm:$0x3] }
 0x2a7   : > { %v2444_v33 = vmax.f32 %v2442_v15, %v2443_v41  ;;  %v634_v11 = vmul.f32 0.0625, %v600_v22  ;;  %v2301_v8 = vrot.slane %v2300_v17, 1  ;;  %v2373_v29 = vrot.slane %v2372_v14, 1  ;;  %v4234_v15 = vld [vmem:[#allocation3 + $0x1] sm:$0x3] }
 0x2a8   : > { %9645 = vst [vmem:[#allocation44_spill] sm:$0xff] %v7992_v51  ;;  %v2516_v7 = vmax.f32 %v2514_v9, %v2515_v26  ;;  %883 = vst.msk [vmem:[#allocation3 + $0x171] sm:$0xff] %vm314_vm0, %v7992_v51  ;;  %v8001_v36 = vsel %vm314_vm0, %v7992_v51, -inf  ;;  %v8006_v0 = vadd.f32 %v1659_v23, %v1590_v19  ;;  %v635_v50 = vmul.f32 0.0625, %v603_v56  ;;  %v5185_v9 = vld [vmem:[%s9286_s3 + $0x25] ss:$0 sm:$0xff] }
 0x2a9   : > { %v2445_v3 = vrot.slane %v2444_v33, 1  ;;  %v3556_v35 = vmax.f32 %v7815_v38, %v8001_v36  ;;  %v666_v25 = vadd.f32 1e-06, %v634_v11  ;;  %v2302_v42 = vmax.f32 %v2300_v17, %v2301_v8  ;;  %v8018_v19 = vld [vmem:[%s9286_s3 + $0x26] ss:$0 sm:$0xff]  ;;  %v9670_v38 = vld [vmem:[#allocation69_spill] sm:$0xff] }
 0x2aa   : > { %v2374_v58 = vmax.f32 %v2372_v14, %v2373_v29  ;;  %v2517_v4 = vrot.slane %v2516_v7, 1  ;;  %v3571_v41 = vsel %vm3570_vm4, %v3566_v46, -inf  ;;  %v3607_v59 = vsel %vm3570_vm4, %v3603_v1, -inf  ;;  %v4291_v17 = vld [vmem:[#allocation3 + $0x48] sm:$0x3] }
 0x2ab   : > { %v2446_v22 = vmax.f32 %v2444_v33, %v2445_v3  ;;  %5351 = vrsqrt.f32 %v666_v25  ;;  %2316 = vst.msk [vmem:[#allocation3 + $0xad] sm:$0x1] %vm816_vm1, %v2302_v42  ;;  %v667_v26 = vadd.f32 1e-06, %v635_v50  ;;  %v3572_v23 = vrot.slane %v3571_v41, 4 }
 0x2ac   : > { %2388 = vst.msk [vmem:[#allocation3 + $0xae] sm:$0x1] %vm816_vm1, %v2374_v58  ;;  %v2518_v14 = vmax.f32 %v2516_v7, %v2517_v4  ;;  %v3608_v11 = vrot.slane %v3607_v59, 4  ;;  %v4303_v33 = vld [vmem:[#allocation3 + $0x49] sm:$0x3]  ;;  %v4180_v56 = vmax.f32 %v7820_v57, %v8001_v36  ;;  %v4230_v46 = vmul.f32 %v5183_v30, %v4222_v27 }
 0x2ad   : > { %2460 = vst.msk [vmem:[#allocation3 + $0xaf] sm:$0x1] %vm816_vm1, %v2446_v22  ;;  %v4241_v1 = vmul.f32 %v5185_v9, %v4234_v15  ;;  %v4252_v8 = vmul.f32 %v8018_v19, %v4245_v49  ;;  %v5195_v29 = vld [vmem:[%s9286_s3 + $0x2c] ss:$0 sm:$0xff]  ;;  %5353 = vrsqrt.f32 %v667_v26  ;;  %v3573_v7 = vmax.f32 %v3571_v41, %v3572_v23  ;;  %v5197_v42 = vld [vmem:[%s9286_s3 + $0x2d] ss:$0 sm:$0xff] }
 0x2ae   : > { %2532 = vst.msk [vmem:[#allocation3 + $0xb0] sm:$0x1] %vm816_vm1, %v2518_v14  ;;  %v3609_v3 = vmax.f32 %v3607_v59, %v3608_v11  ;;  %v8030_v25 = vmul.f32 %v5195_v29, %v4291_v17  ;;  %v3303_v58 = vld [vmem:[#allocation2 + $0x1a] sm:$0x3]  ;;  %v8035_v50 = vmul.f32 %v5197_v42, %v4303_v33  ;;  %v1463_v9 = vadd.f32 %v7796_v53, %v7907_v63 }
 0x2af   : > { %v917_v27 = vld [vmem:[#allocation3 + $0x170] sm:$0xff]  ;;  %v4243_v4 = vadd.f32 %v4241_v1, %v4230_v46  ;;  %v3319_v49 = vadd.f32 %v7882_v2, %v3303_v58 }
 0x2b0   : > { %9646 = vst [vmem:[#allocation40_spill] sm:$0xff] %v8030_v25  ;;  %v1018_v30 = vld [vmem:[#allocation3 + $0x171] sm:$0xff]  ;;  %9647 = vst [vmem:[#allocation64_spill] sm:$0xff] %v8035_v50  ;;  %v954_v22 = vmul.f32 %v7759_v61, %v917_v27  ;;  %v1256_v14 = vmul.f32 %v7870_v5, %v917_v27 }
 0x2b1   : > { %v1118_v15 = vld [vmem:[#allocation3 + $0x16a] sm:$0xff]  ;;  %v1055_v41 = vmul.f32 %v7766_v47, %v1018_v30  ;;  %v1119_v59 = vld [vmem:[#allocation3 + $0x172] sm:$0xff]  ;;  %v1357_v23 = vmul.f32 %v7893_v45, %v1018_v30  ;;  %3335 = vst.msk [vmem:[#allocation2 + $0x1a] sm:$0x3] %vm810_vm2, %v3319_v49  ;;  %v1559_v47 = vmul.f32 %v7978_v40, %v917_v27  ;;  %v8064_v27 = vadd.f32 %v4252_v8, %v4243_v4 }
 0x2b2   : > { %v1155_v17 = vmul.f32 %v7861_v39, %v1118_v15  ;;  %v1156_v26 = vmul.f32 %v7861_v39, %v1119_v59  ;;  %v1457_v11 = vmul.f32 %v7942_v37, %v1118_v15  ;;  %v1458_v33 = vmul.f32 %v7942_v37, %v1119_v59 }
 0x2b3   : > { %v1087_v2 = vadd.f32 %v1055_v41, %v954_v22  ;;  %v1288_v61 = vadd.f32 %v1256_v14, %v7936_v32  ;;  %v1660_v39 = vmul.f32 %v7953_v48, %v1018_v30  ;;  %v1760_v46 = vmul.f32 %v7533_v20, %v1118_v15  ;;  %9648 = vst [vmem:[#allocation37_spill] sm:$0xff] %v8064_v27  ;;  %v9649_v15 = vld [vmem:[#allocation65_spill] sm:$0xff] }
 0x2b4   : > { %v8050_v63 = vadd.f32 %v1155_v17, %v7982_v55  ;;  %v8055_v53 = vadd.f32 %v1457_v11, %v7994_v44  ;;  %v1761_v1 = vmul.f32 %v7533_v20, %v1119_v59  ;;  %v1591_v58 = vadd.f32 %v1559_v47, %v7971_v13  ;;  %v3391_v59 = vld [vmem:[#allocation2 + $0x1c] sm:$0x3] }
 0x2b5   : > { %v8060_v29 = vadd.f32 %v1156_v26, %v1087_v2  ;;  %v1389_v42 = vadd.f32 %v1357_v23, %v1288_v61  ;;  %v3574_v55 = vrot.slane %v3573_v7, 2  ;;  %v5352_v49 = vpop.eup %5351  ;;  %v1792_v32 = vadd.f32 %v1760_v46, %v8006_v0  ;;  %v3479_v0 = vld [vmem:[#allocation2 + $0x1e] sm:$0x3] }
 0x2b6   : > { %v3610_v22 = vrot.slane %v3609_v3, 2  ;;  %v1566_v44 = vadd.f32 %v7800_v62, %v1463_v9  ;;  %v1692_v30 = vadd.f32 %v1660_v39, %v1591_v58  ;;  %v730_v17 = vmul.f32 %v5352_v49, %v9649_v15  ;;  %v8098_v58 = vld [vmem:[#allocation4 + $0x32] ss:$0 sm:$0xff]  ;;  %v8104_v49 = vld [vmem:[#allocation4 + $0x35] ss:$0 sm:$0xff]  ;;  %v9658_v15 = vld [vmem:[#allocation70_spill] sm:$0xff] }
 0x2b7   : > { %v8067_v41 = vadd.f32 %v1458_v33, %v1389_v42  ;;  %v3575_v20 = vmax.f32 %v3573_v7, %v3574_v55  ;;  %v1831_v14 = vadd.f32 %v7548_v43, %v1792_v32  ;;  %v3407_v23 = vadd.f32 %v7886_v54, %v3391_v59  ;;  %v5354_v11 = vpop.eup %5353  ;;  %v9650_v33 = vld [vmem:[#allocation7_spill] sm:$0xff]  ;;  %v9656_v32 = vld [vmem:[#allocation41_spill] sm:$0xff] }
 0x2b8   : > { %v3611_v26 = vmax.f32 %v3609_v3, %v3610_v22  ;;  %v1667_v13 = vadd.f32 %v7830_v52, %v1566_v44  ;;  %v1793_v8 = vadd.f32 %v1761_v1, %v1692_v30  ;;  %v768_v4 = vmul.f32 %v7743_v34, %v730_v17  ;;  %v8096_v42 = vld [vmem:[#allocation4 + $0x31] ss:$0 sm:$0xff]  ;;  %v8100_v55 = vld [vmem:[#allocation4 + $0x33] ss:$0 sm:$0xff]  ;;  %9653 = vst [vmem:[#allocation7_spill] sm:$0xff] %v8104_v49  ;;  %v9657_v44 = vld [vmem:[#allocation46_spill] sm:$0xff] }
 0x2b9   : > { %v3576_v62 = vrot.slane %v3575_v20, 1  ;;  %v3495_v9 = vadd.f32 %v7888_v60, %v3479_v0  ;;  %1863 = vst.msk [vmem:[#allocation2 + $0xd0] sm:$0xff] %vm314_vm0, %v1831_v14  ;;  %v731_v7 = vmul.f32 %v5354_v11, %v9650_v33  ;;  %v1060_v52 = vadd.f32 %v7856_v31, %v7852_v10  ;;  %v3216_v10 = vld [vmem:[#allocation2 + $0x28] sm:$0x3]  ;;  %v8094_v31 = vld [vmem:[#allocation4 + $0x30] ss:$0 sm:$0xff] }
 0x2ba   : > { %v3612_v2 = vrot.slane %v3611_v26, 1  ;;  %v1768_v61 = vadd.f32 %v7840_v21, %v1667_v13  ;;  %3423 = vst.msk [vmem:[#allocation2 + $0x1c] sm:$0x3] %vm810_vm2, %v3407_v23  ;;  %v1832_v54 = vadd.f32 %v7548_v43, %v1793_v8  ;;  %v8083_v3 = vadd.f32 %v7988_v28, %v768_v4  ;;  %v3304_v0 = vld [vmem:[#allocation2 + $0x2a] sm:$0x3]  ;;  %v9662_v4 = vld [vmem:[#allocation19_spill] sm:$0xff] }
 0x2bb   : > { %v3577_v47 = vmax.f32 %v3575_v20, %v3576_v62  ;;  %3511 = vst.msk [vmem:[#allocation2 + $0x1e] sm:$0x3] %vm810_vm2, %v3495_v9  ;;  %v8088_v60 = vmul.f32 %v7942_v37, %v9635_v12  ;;  %v769_v39 = vmul.f32 %v7743_v34, %v731_v7  ;;  %v1161_v1 = vadd.f32 %v7865_v6, %v1060_v52  ;;  %v8102_v12 = vld [vmem:[#allocation4 + $0x34] ss:$0 sm:$0xff]  ;;  %v8106_v34 = vld [vmem:[#allocation4 + $0x36] ss:$0 sm:$0xff] }
 0x2bc   : > { %9651 = vst [vmem:[#allocation49_spill] sm:$0xff] %v8083_v3  ;;  %v3613_v21 = vmax.f32 %v3611_v26, %v3612_v2  ;;  %v1807_v46 = vadd.f32 %v7548_v43, %v1768_v61  ;;  %1864 = vst.msk [vmem:[#allocation2 + $0xd8] sm:$0xff] %vm314_vm0, %v1832_v54  ;;  %v8108_v43 = vld [vmem:[#allocation4 + $0x37] ss:$0 sm:$0xff]  ;;  %v1937_v6 = vsel %vm314_vm0, %v8083_v3, -inf  ;;  %v8117_v22 = vmul.f32 %v7978_v40, %v9656_v32  ;;  %v9664_v33 = vld [vmem:[#allocation72_spill] sm:$0xff] }
 0x2bd   : > { %9652 = vst [vmem:[#allocation65_spill] sm:$0xff] %v8102_v12  ;;  %9654 = vst [vmem:[#allocation99_spill] sm:$0xff] %v8106_v34  ;;  %v8121_v30 = vmul.f32 %v7953_v48, %v9657_v44  ;;  %v3232_v17 = vadd.f32 %v9658_v15, %v3216_v10  ;;  %v1938_v20 = vmax.f32 %v7826_v24, %v1937_v6  ;;  %v3392_v11 = vld [vmem:[#allocation2 + $0x2c] sm:$0x3]  ;;  %v3480_v8 = vld [vmem:[#allocation2 + $0x2e] sm:$0x3] }
 0x2be   : > { %9655 = vst [vmem:[#allocation100_spill] sm:$0xff] %v8108_v43  ;;  %884 = vst.msk [vmem:[#allocation3 + $0x181] sm:$0xff] %vm314_vm0, %v8083_v3  ;;  %v9659_v59 = vmax.f32 %v7803_v18, %v7826_v24  ;;  %v9660_v26 = vmax.f32 %v7808_v16, %v7826_v24  ;;  %v8134_v23 = vadd.f32 %v7988_v28, %v769_v39  ;;  %v9663_v18 = vld [vmem:[#allocation71_spill] sm:$0xff]  ;;  %v9665_v24 = vld [vmem:[#allocation73_spill] sm:$0xff] }
 0x2bf   : > { %3599 = vst.msk [vmem:[#allocation3 + $0x19] sm:$0x1] %vm816_vm1, %v3577_v47  ;;  %3635 = vst.msk [vmem:[#allocation3 + $0x1a] sm:$0x1] %vm816_vm1, %v3613_v21  ;;  %v1263_v62 = vadd.f32 %v9662_v4, %v1161_v1  ;;  %v3320_v9 = vadd.f32 %v9663_v18, %v3304_v0  ;;  %v3408_v16 = vadd.f32 %v9664_v33, %v3392_v11  ;;  %v2865_v2 = vld [vmem:[#allocation2 + $0x30] sm:$0x3] }
 0x2c0   : > { %v3555_v14 = vmax.f32 %v9659_v59, %v1937_v6  ;;  %v8131_v13 = vmax.f32 %v9660_v26, %v1937_v6  ;;  %9661 = vst [vmem:[#allocation41_spill] sm:$0xff] %v8134_v23  ;;  %1839 = vst.msk [vmem:[#allocation2 + $0x10] sm:$0xff] %vm314_vm0, %v1807_v46  ;;  %v3496_v7 = vadd.f32 %v9665_v24, %v3480_v8  ;;  %v2953_v28 = vld [vmem:[#allocation2 + $0x32] sm:$0x3]  ;;  %v3041_v61 = vld [vmem:[#allocation2 + $0x34] sm:$0x3] }
 0x2c1   : > { %3248 = vst.msk [vmem:[#allocation2 + $0x28] sm:$0x3] %vm810_vm2, %v3232_v17  ;;  %v1940_v52 = vsel %vm314_vm0, %v8134_v23, -inf  ;;  %v9666_v54 = vld [vmem:[#allocation58_spill] sm:$0xff]  ;;  %v9667_v39 = vld [vmem:[#allocation56_spill] sm:$0xff]  ;;  %v9668_v46 = vld [vmem:[#allocation57_spill] sm:$0xff] }
 0x2c2   : > { %1956 = vst.msk [vmem:[#allocation4 + $0x70] sm:$0xff] %vm314_vm0, %v1938_v20  ;;  %3564 = vst.msk [vmem:[#allocation4 + $0x30] sm:$0xff] %vm314_vm0, %v3555_v14  ;;  %v2881_v47 = vadd.f32 %v9666_v54, %v2865_v2  ;;  %v2969_v21 = vadd.f32 %v9667_v39, %v2953_v28  ;;  %v3057_v1 = vadd.f32 %v9668_v46, %v3041_v61  ;;  %v3129_v10 = vld [vmem:[#allocation2 + $0x36] sm:$0x3]  ;;  %v3217_v6 = vld [vmem:[#allocation2 + $0x38] sm:$0x3] }
 0x2c3   : > { %885 = vst.msk [vmem:[#allocation3 + $0x189] sm:$0xff] %vm314_vm0, %v8134_v23  ;;  %v1941_v32 = vmax.f32 %v8001_v36, %v1940_v52  ;;  %v3557_v44 = vmax.f32 %v3556_v35, %v1940_v52  ;;  %v4181_v17 = vmax.f32 %v4180_v56, %v1940_v52  ;;  %v9669_v20 = vld [vmem:[#allocation78_spill] sm:$0xff]  ;;  %v3145_v57 = vadd.f32 %v9670_v38, %v3129_v10  ;;  %v2866_v11 = vld [vmem:[#allocation2 + $0x40] sm:$0x3]  ;;  %v2954_v8 = vld [vmem:[#allocation2 + $0x42] sm:$0x3] }
 0x2c4   : > { %v1364_v59 = vadd.f32 %v9669_v20, %v1263_v62  ;;  %3336 = vst.msk [vmem:[#allocation2 + $0x2a] sm:$0x3] %vm810_vm2, %v3320_v9  ;;  %3424 = vst.msk [vmem:[#allocation2 + $0x2c] sm:$0x3] %vm810_vm2, %v3408_v16  ;;  %v3305_v14 = vld [vmem:[#allocation2 + $0x3a] sm:$0x3]  ;;  %v3233_v36 = vadd.f32 %v9658_v15, %v3217_v6 }
 0x2c5   : > { %3512 = vst.msk [vmem:[#allocation2 + $0x2e] sm:$0x3] %vm810_vm2, %v3496_v7  ;;  %v3393_v26 = vld [vmem:[#allocation2 + $0x3c] sm:$0x3]  ;;  %v3481_v0 = vld [vmem:[#allocation2 + $0x3e] sm:$0x3]  ;;  %v3321_v35 = vadd.f32 %v9663_v18, %v3305_v14 }
 0x2c6   : > { %2897 = vst.msk [vmem:[#allocation2 + $0x30] sm:$0x3] %vm810_vm2, %v2881_v47  ;;  %2985 = vst.msk [vmem:[#allocation2 + $0x32] sm:$0x3] %vm810_vm2, %v2969_v21  ;;  %v3409_v56 = vadd.f32 %v9664_v33, %v3393_v26  ;;  %v3042_v4 = vld [vmem:[#allocation2 + $0x44] sm:$0x3]  ;;  %v1465_v62 = vadd.f32 %v8088_v60, %v1364_v59  ;;  %v3497_v9 = vadd.f32 %v9665_v24, %v3481_v0 }
 0x2c7   : > { %3073 = vst.msk [vmem:[#allocation2 + $0x34] sm:$0x3] %vm810_vm2, %v3057_v1  ;;  %v9671_v16 = vld [vmem:[#allocation43_spill] sm:$0xff]  ;;  %v9672_v15 = vld [vmem:[#allocation36_spill] sm:$0xff]  ;;  %3161 = vst.msk [vmem:[#allocation2 + $0x36] sm:$0x3] %vm810_vm2, %v3145_v57 }
 0x2c8   : > { %1957 = vst.msk [vmem:[#allocation4 + $0x78] sm:$0xff] %vm314_vm0, %v1941_v32  ;;  %3565 = vst.msk [vmem:[#allocation4 + $0x38] sm:$0xff] %vm314_vm0, %v3557_v44  ;;  %v2882_v7 = vadd.f32 %v9671_v16, %v2866_v11  ;;  %v2970_v2 = vadd.f32 %v9672_v15, %v2954_v8  ;;  %v3130_v18 = vld [vmem:[#allocation2 + $0x46] sm:$0x3]  ;;  %v3218_v28 = vld [vmem:[#allocation2 + $0x48] sm:$0x3] }
 0x2c9   : > { %4185 = vst.msk [vmem:[#allocation4 + $0x18] sm:$0xff] %vm314_vm0, %v4181_v17  ;;  %v3306_v33 = vld [vmem:[#allocation2 + $0x4a] sm:$0x3]  ;;  %v1219_v61 = vld [vmem:[#allocation3 + $0x180] sm:$0xff]  ;;  %v9674_v24 = vld [vmem:[#allocation6_spill] sm:$0xff] }
 0x2ca   : > { %v1321_v52 = vld [vmem:[#allocation3 + $0x181] sm:$0xff]  ;;  %3249 = vst.msk [vmem:[#allocation2 + $0x38] sm:$0x3] %vm810_vm2, %v3233_v36  ;;  %3337 = vst.msk [vmem:[#allocation2 + $0x3a] sm:$0x3] %vm810_vm2, %v3321_v35  ;;  %v3146_v21 = vadd.f32 %v9674_v24, %v3130_v18  ;;  %v9675_v1 = vld [vmem:[#allocation66_spill] sm:$0xff]  ;;  %v1257_v44 = vmul.f32 %v7870_v5, %v1219_v61  ;;  %v1560_v20 = vmul.f32 %v7978_v40, %v1219_v61 }
 0x2cb   : > { %3425 = vst.msk [vmem:[#allocation2 + $0x3c] sm:$0x3] %vm810_vm2, %v3409_v56  ;;  %v9673_v60 = vld [vmem:[#allocation32_spill] sm:$0xff]  ;;  %v3234_v10 = vadd.f32 %v9675_v1, %v3218_v28  ;;  %v9676_v6 = vld [vmem:[#allocation17_spill] sm:$0xff]  ;;  %v1358_v17 = vmul.f32 %v7893_v45, %v1321_v52  ;;  %v1661_v59 = vmul.f32 %v7953_v48, %v1321_v52  ;;  %v3712_v14 = vld [vmem:[#allocation3 + $0x18] sm:$0xf] }
 0x2cc   : > { %v3058_v47 = vadd.f32 %v9673_v60, %v3042_v4  ;;  %v3322_v32 = vadd.f32 %v9676_v6, %v3306_v33  ;;  %v3730_v26 = vld [vmem:[#allocation3 + $0x19] sm:$0xf]  ;;  %3513 = vst.msk [vmem:[#allocation2 + $0x3e] sm:$0x3] %vm810_vm2, %v3497_v9  ;;  %2898 = vst.msk [vmem:[#allocation2 + $0x40] sm:$0x3] %vm810_vm2, %v2882_v7  ;;  %v8202_v9 = vadd.f32 %v8117_v22, %v1465_v62 }
 0x2cd   : > { %v3747_v0 = vld [vmem:[#allocation3 + $0x1a] sm:$0xf]  ;;  %2986 = vst.msk [vmem:[#allocation2 + $0x42] sm:$0x3] %vm810_vm2, %v2970_v2  ;;  %v5469_v57 = vld [vmem:[%s9286_s3 + $0x18] ss:$0 sm:$0xff]  ;;  %v1289_v7 = vadd.f32 %v1257_v44, %v8050_v63  ;;  %v1592_v2 = vadd.f32 %v1560_v20, %v8055_v53 }
 0x2ce   : > { %v3722_v36 = vmul.f32 %v5469_v57, %v3712_v14  ;;  %v9677_v35 = vld [vmem:[#allocation21_spill] sm:$0xff]  ;;  %v9678_v11 = vld [vmem:[#allocation84_spill] sm:$0xff]  ;;  %v3763_v4 = vld [vmem:[#allocation3 + $0x18] sm:$0xf]  ;;  %3074 = vst.msk [vmem:[#allocation2 + $0x44] sm:$0x3] %vm810_vm2, %v3058_v47 }
 0x2cf   : > { %v3739_v56 = vmul.f32 %v9677_v35, %v3730_v26  ;;  %v8197_v8 = vmul.f32 %v9678_v11, %v3747_v0  ;;  %v3781_v18 = vld [vmem:[#allocation3 + $0x19] sm:$0xf]  ;;  %3162 = vst.msk [vmem:[#allocation2 + $0x46] sm:$0x3] %vm810_vm2, %v3146_v21  ;;  %3250 = vst.msk [vmem:[#allocation2 + $0x48] sm:$0x3] %vm810_vm2, %v3234_v10  ;;  %v1390_v0 = vadd.f32 %v1358_v17, %v1289_v7 }
 0x2d0   : > { %v8199_v28 = vld [vmem:[#allocation3 + $0x1a] sm:$0xf]  ;;  %3338 = vst.msk [vmem:[#allocation2 + $0x4a] sm:$0x3] %vm810_vm2, %v3322_v32  ;;  %v1965_v33 = vld [vmem:[#allocation4 + $0x70] sm:$0x3]  ;;  %v8227_v57 = vadd.f32 %v1661_v59, %v1592_v2 }
 0x2d1   : > { %v2037_v61 = vld [vmem:[#allocation4 + $0x72] sm:$0x3]  ;;  %v2109_v52 = vld [vmem:[#allocation4 + $0x74] sm:$0x3]  ;;  %v9680_v22 = vld [vmem:[#allocation85_spill] sm:$0xff]  ;;  %v9681_v47 = vmov 0.0   ;;  %v8225_v20 = vadd.f32 %v3739_v56, %v3722_v36 }
 0x2d2   : > { %v9679_v14 = vld [vmem:[#allocation23_spill] sm:$0xff]  ;;  %v8214_v62 = vmul.f32 %v9680_v22, %v3781_v18  ;;  %4159 = vst.msk [vmem:[#allocation3 + $0x18] sm:$0x1] %vm816_vm1, %v9681_v47  ;;  %4163 = vst.msk [vmem:[#allocation3 + $0x1b] sm:$0x1] %vm816_vm1, %v9681_v47  ;;  %v9682_v21 = vld [vmem:[#allocation8_spill] sm:$0xff] }
 0x2d3   : > { %v8211_v26 = vmul.f32 %v9679_v14, %v3763_v4  ;;  %4220 = vst.msk [vmem:[#allocation3 + $0x1a] sm:$0x1] %vm816_vm1, %v9682_v21  ;;  %v2015_v63 = vsel %vm810_vm2, %v1965_v33, -inf  ;;  %v2087_v53 = vsel %vm810_vm2, %v2037_v61, -inf  ;;  %v2159_v10 = vsel %vm810_vm2, %v2109_v52, -inf  ;;  %v1220_v44 = vld [vmem:[#allocation3 + $0x188] sm:$0xff] }
 0x2d4   : > { %v2181_v32 = vld [vmem:[#allocation4 + $0x76] sm:$0x3]  ;;  %v2016_v35 = vrot.slane %v2015_v63, 4  ;;  %v2088_v11 = vrot.slane %v2087_v53, 4  ;;  %v3569_v4 = vld [vmem:[#allocation4 + $0x30] sm:$0xf]  ;;  %v1258_v7 = vmul.f32 %v7870_v5, %v1220_v44 }
 0x2d5   : > { %v3606_v18 = vld [vmem:[#allocation4 + $0x34] sm:$0xf]  ;;  %v2160_v14 = vrot.slane %v2159_v10, 4  ;;  %v2231_v22 = vsel %vm810_vm2, %v2181_v32, -inf  ;;  %v3592_v33 = vsel %vm3570_vm4, %v3569_v4, -inf  ;;  %v1322_v47 = vld [vmem:[#allocation3 + $0x189] sm:$0xff] }
 0x2d6   : > { %v3628_v61 = vsel %vm3570_vm4, %v3606_v18, -inf  ;;  %v2017_v52 = vmax.f32 %v2015_v63, %v2016_v35  ;;  %v2089_v21 = vmax.f32 %v2087_v53, %v2088_v11  ;;  %v2232_v51 = vrot.slane %v2231_v22, 4  ;;  %v1422_v56 = vld [vmem:[#allocation3 + $0x182] sm:$0xff]  ;;  %v1423_v25 = vld [vmem:[#allocation3 + $0x18a] sm:$0xff] }
 0x2d7   : > { %v3593_v36 = vrot.slane %v3592_v33, 4  ;;  %v2161_v17 = vmax.f32 %v2159_v10, %v2160_v14  ;;  %v3629_v59 = vrot.slane %v3628_v61, 4  ;;  %v1359_v2 = vmul.f32 %v7893_v45, %v1322_v47 }
 0x2d8   : > { %v2018_v23 = vrot.slane %v2017_v52, 2  ;;  %v2090_v3 = vrot.slane %v2089_v21, 2  ;;  %v2233_v50 = vmax.f32 %v2231_v22, %v2232_v51  ;;  %v1290_v18 = vadd.f32 %v1258_v7, %v8060_v29 }
 0x2d9   : > { %v3594_v32 = vmax.f32 %v3592_v33, %v3593_v36  ;;  %v2162_v4 = vrot.slane %v2161_v17, 2  ;;  %v3630_v27 = vmax.f32 %v3628_v61, %v3629_v59  ;;  %v1459_v63 = vmul.f32 %v7942_v37, %v1422_v56 }
 0x2da   : > { %v2019_v53 = vmax.f32 %v2017_v52, %v2018_v23  ;;  %v2091_v35 = vmax.f32 %v2089_v21, %v2090_v3  ;;  %v2234_v11 = vrot.slane %v2233_v50, 2  ;;  %v1391_v5 = vadd.f32 %v1359_v2, %v1290_v18  ;;  %v5470_v18 = vld [vmem:[%s9286_s3 + $0xa] ss:$0 sm:$0xff] }
 0x2db   : > { %v3595_v10 = vrot.slane %v3594_v32, 2  ;;  %v2163_v14 = vmax.f32 %v2161_v17, %v2162_v4  ;;  %v3631_v43 = vrot.slane %v3630_v27, 2  ;;  %v1460_v45 = vmul.f32 %v7942_v37, %v1423_v25  ;;  %v9683_v17 = vld [vmem:[#allocation50_spill] sm:$0xff]  ;;  %v2253_v4 = vld [vmem:[#allocation4 + $0x78] sm:$0x3] }
 0x2dc   : > { %v2020_v34 = vrot.slane %v2019_v53, 1  ;;  %v2092_v49 = vrot.slane %v2091_v35, 1  ;;  %v2235_v51 = vmax.f32 %v2233_v50, %v2234_v11  ;;  %v1491_v61 = vadd.f32 %v1459_v63, %v1390_v0  ;;  %v2325_v37 = vld [vmem:[#allocation4 + $0x7a] sm:$0x3] }
 0x2dd   : > { %v3596_v22 = vmax.f32 %v3594_v32, %v3595_v10  ;;  %v2164_v33 = vrot.slane %v2163_v14, 1  ;;  %v3632_v36 = vmax.f32 %v3630_v27, %v3631_v43  ;;  %v1492_v59 = vadd.f32 %v1460_v45, %v1391_v5  ;;  %v9684_v43 = vld [vmem:[#allocation51_spill] sm:$0xff] }
 0x2de   : > { %v2021_v29 = vmax.f32 %v2019_v53, %v2020_v34  ;;  %v2093_v7 = vmax.f32 %v2091_v35, %v2092_v49  ;;  %v2236_v12 = vrot.slane %v2235_v51, 1  ;;  %v1561_v21 = vmul.f32 %v7978_v40, %v1220_v44  ;;  %v9685_v40 = vld [vmem:[#allocation20_spill] sm:$0xff]  ;;  %v9687_v5 = vld [vmem:[#allocation83_spill] sm:$0xff] }
 0x2df   : > { %v3597_v23 = vrot.slane %v3596_v22, 1  ;;  %v2165_v3 = vmax.f32 %v2163_v14, %v2164_v33  ;;  %v3633_v52 = vrot.slane %v3632_v36, 1  ;;  %v1594_v2 = vadd.f32 %v9683_v17, %v1491_v61  ;;  %v2397_v53 = vld [vmem:[#allocation4 + $0x7c] sm:$0x3]  ;;  %v2469_v35 = vld [vmem:[#allocation4 + $0x7e] sm:$0x3] }
 0x2e0   : > { %2029 = vst.msk [vmem:[#allocation3 + $0xc1] sm:$0x1] %vm816_vm1, %v2021_v29  ;;  %2101 = vst.msk [vmem:[#allocation3 + $0xc2] sm:$0x1] %vm816_vm1, %v2093_v7  ;;  %v2237_v50 = vmax.f32 %v2235_v51, %v2236_v12  ;;  %v1595_v0 = vadd.f32 %v9684_v43, %v1492_v59  ;;  %v1662_v49 = vmul.f32 %v7953_v48, %v1322_v47  ;;  %v9686_v12 = vld [vmem:[#allocation82_spill] sm:$0xff]  ;;  %v2303_v11 = vsel %vm810_vm2, %v2253_v4, -inf }
 0x2e1   : > { %v3598_v27 = vmax.f32 %v3596_v22, %v3597_v23  ;;  %2173 = vst.msk [vmem:[#allocation3 + $0xc3] sm:$0x1] %vm816_vm1, %v2165_v3  ;;  %v3634_v34 = vmax.f32 %v3632_v36, %v3633_v52  ;;  %v1593_v32 = vadd.f32 %v1561_v21, %v8067_v41  ;;  %v1695_v44 = vadd.f32 %v9685_v40, %v1594_v2  ;;  %v3642_v51 = vld [vmem:[#allocation4 + $0x38] sm:$0xf]  ;;  %v9688_v22 = vld [vmem:[#allocation22_spill] sm:$0xff] }
 0x2e2   : > { %v1762_v63 = vmul.f32 %v5470_v18, %v1422_v56  ;;  %2245 = vst.msk [vmem:[#allocation3 + $0xc4] sm:$0x1] %vm816_vm1, %v2237_v50  ;;  %v1696_v48 = vadd.f32 %v9686_v12, %v1595_v0  ;;  %v1763_v47 = vmul.f32 %v5470_v18, %v1423_v25  ;;  %v2375_v41 = vsel %vm810_vm2, %v2325_v37, -inf  ;;  %v3678_v59 = vld [vmem:[#allocation4 + $0x3c] sm:$0xf] }
 0x2e3   : > { %3602 = vst.msk [vmem:[#allocation3 + $0x61] sm:$0x1] %vm816_vm1, %v3598_v27  ;;  %3638 = vst.msk [vmem:[#allocation3 + $0x62] sm:$0x1] %vm816_vm1, %v3634_v34  ;;  %v1694_v10 = vadd.f32 %v1662_v49, %v1593_v32  ;;  %v1796_v56 = vadd.f32 %v9687_v5, %v1695_v44  ;;  %v2304_v45 = vrot.slane %v2303_v11, 4  ;;  %v2376_v36 = vrot.slane %v2375_v41, 4 }
 0x2e4   : > { %v1794_v14 = vadd.f32 %v1762_v63, %v8227_v57  ;;  %v1797_v33 = vadd.f32 %v9688_v22, %v1696_v48  ;;  %v2447_v61 = vsel %vm810_vm2, %v2397_v53, -inf  ;;  %v2519_v25 = vsel %vm810_vm2, %v2469_v35, -inf  ;;  %v8263_v7 = vld [vmem:[%s9287_s4] ss:$0 sm:$0xff]  ;;  %v4205_v4 = vld [vmem:[#allocation4 + $0x18] sm:$0xff] }
 0x2e5   : > { %v1795_v29 = vadd.f32 %v1763_v47, %v1694_v10  ;;  %v1835_v23 = vadd.f32 %v8263_v7, %v1796_v56  ;;  %v2305_v3 = vmax.f32 %v2303_v11, %v2304_v45  ;;  %v2377_v21 = vmax.f32 %v2375_v41, %v2376_v36  ;;  %v9689_v10 = vld [vmem:[#allocation86_spill] sm:$0xff] }
 0x2e6   : > { %v1833_v57 = vadd.f32 %v8263_v7, %v1794_v14  ;;  %v1836_v52 = vadd.f32 %v8263_v7, %v1797_v33  ;;  %v2448_v17 = vrot.slane %v2447_v61, 4  ;;  %v2520_v2 = vrot.slane %v2519_v25, 4 }
 0x2e7   : > { %v1834_v37 = vadd.f32 %v8263_v7, %v1795_v29  ;;  %1867 = vst.msk [vmem:[#allocation2 + $0xf0] sm:$0xff] %vm314_vm0, %v1835_v23  ;;  %v2306_v50 = vrot.slane %v2305_v3, 2  ;;  %v3664_v27 = vsel %vm3570_vm4, %v3642_v51, -inf  ;;  %v3700_v43 = vsel %vm3570_vm4, %v3678_v59, -inf }
 0x2e8   : > { %1865 = vst.msk [vmem:[#allocation2 + $0xe0] sm:$0xff] %vm314_vm0, %v1833_v57  ;;  %1868 = vst.msk [vmem:[#allocation2 + $0xf8] sm:$0xff] %vm314_vm0, %v1836_v52  ;;  %v2378_v0 = vrot.slane %v2377_v21, 2  ;;  %v2449_v49 = vmax.f32 %v2447_v61, %v2448_v17  ;;  %v2521_v34 = vmax.f32 %v2519_v25, %v2520_v2  ;;  %v3665_v32 = vrot.slane %v3664_v27, 4  ;;  %v9690_v61 = vld [vmem:[#allocation87_spill] sm:$0xff]  ;;  %v9691_v52 = vld [vmem:[#allocation89_spill] sm:$0xff] }
 0x2e9   : > { %1866 = vst.msk [vmem:[#allocation2 + $0xe8] sm:$0xff] %vm314_vm0, %v1834_v37  ;;  %v2307_v40 = vmax.f32 %v2305_v3, %v2306_v50  ;;  %v3701_v44 = vrot.slane %v3700_v43, 4  ;;  %v4213_v18 = vsel %vm314_vm0, %v4205_v4, -inf  ;;  %v3760_v63 = vadd.f32 %v8197_v8, %v8225_v20  ;;  %v4246_v57 = vld [vmem:[#allocation3 + $0x1a] sm:$0x3] }
 0x2ea   : > { %v2379_v53 = vmax.f32 %v2377_v21, %v2378_v0  ;;  %v2450_v35 = vrot.slane %v2449_v49, 2  ;;  %v2522_v12 = vrot.slane %v2521_v34, 2  ;;  %v3666_v48 = vmax.f32 %v3664_v27, %v3665_v32  ;;  %v4279_v17 = vld [vmem:[#allocation3 + $0x1a] sm:$0x3]  ;;  %v8287_v2 = vld [vmem:[%s9286_s3 + $0x2a] ss:$0 sm:$0xff] }
 0x2eb   : > { %v2308_v47 = vrot.slane %v2307_v40, 1  ;;  %v3702_v11 = vmax.f32 %v3700_v43, %v3701_v44  ;;  %v4214_v41 = vrot.slane %v4213_v18, 4  ;;  %v3777_v14 = vadd.f32 %v8211_v26, %v9689_v10  ;;  %v8293_v27 = vld [vmem:[%s9286_s3 + $0x1e] ss:$0 sm:$0xff]  ;;  %v3039_v10 = vld [vmem:[#allocation2 + $0x14] sm:$0x3] }
 0x2ec   : > { %v2380_v5 = vrot.slane %v2379_v53, 1  ;;  %v2451_v56 = vmax.f32 %v2449_v49, %v2450_v35  ;;  %v2523_v45 = vmax.f32 %v2521_v34, %v2522_v12  ;;  %v3667_v51 = vrot.slane %v3666_v48, 2  ;;  %v9692_v49 = vld [vmem:[#allocation90_spill] sm:$0xff] }
 0x2ed   : > { %v2309_v22 = vmax.f32 %v2307_v40, %v2308_v47  ;;  %v3703_v33 = vrot.slane %v3702_v11, 2  ;;  %v4215_v36 = vmax.f32 %v4213_v18, %v4214_v41  ;;  %v3778_v25 = vadd.f32 %v9690_v61, %v3760_v63  ;;  %v2863_v40 = vld [vmem:[#allocation2 + $0x10] sm:$0x3]  ;;  %v9696_v47 = vld [vmem:[#allocation92_spill] sm:$0xff]  ;;  %v9697_v41 = vld [vmem:[#allocation39_spill] sm:$0xff] }
 0x2ee   : > { %v2381_v8 = vmax.f32 %v2379_v53, %v2380_v5  ;;  %v2452_v20 = vrot.slane %v2451_v56, 1  ;;  %v2524_v59 = vrot.slane %v2523_v45, 1  ;;  %v3668_v29 = vmax.f32 %v3666_v48, %v3667_v51  ;;  %v9695_v53 = vld [vmem:[#allocation38_spill] sm:$0xff]  ;;  %v9698_v5 = vld [vmem:[#allocation91_spill] sm:$0xff]  ;;  %v3394_v61 = vld [vmem:[#allocation2 + $0x4c] sm:$0x3] }
 0x2ef   : > { %2317 = vst.msk [vmem:[#allocation3 + $0xc5] sm:$0x1] %vm816_vm1, %v2309_v22  ;;  %v3704_v23 = vmax.f32 %v3702_v11, %v3703_v33  ;;  %v4216_v3 = vrot.slane %v4215_v36, 2  ;;  %v3794_v26 = vadd.f32 %v8214_v62, %v3777_v14  ;;  %v3795_v21 = vadd.f32 %v9691_v52, %v3778_v25  ;;  %v3127_v14 = vld [vmem:[#allocation2 + $0x16] sm:$0x3]  ;;  %v9700_v22 = vld [vmem:[#allocation34_spill] sm:$0xff] }
 0x2f0   : > { %2389 = vst.msk [vmem:[#allocation3 + $0xc6] sm:$0x1] %vm816_vm1, %v2381_v8  ;;  %v2453_v4 = vmax.f32 %v2451_v56, %v2452_v20  ;;  %v2525_v37 = vmax.f32 %v2523_v45, %v2524_v59  ;;  %v3669_v50 = vrot.slane %v3668_v29, 1  ;;  %v3807_v62 = vmul.f32 %v8293_v27, %v8199_v28  ;;  %v2951_v28 = vld [vmem:[#allocation2 + $0x12] sm:$0x3]  ;;  %v9701_v20 = vld [vmem:[#allocation62_spill] sm:$0xff] }
 0x2f1   : > { %v3705_v43 = vrot.slane %v3704_v23, 1  ;;  %v4217_v0 = vmax.f32 %v4215_v36, %v4216_v3  ;;  %v3812_v34 = vadd.f32 %v9692_v49, %v3795_v21  ;;  %v8299_v32 = vmul.f32 %v8018_v19, %v4246_v57  ;;  %v9699_v45 = vld [vmem:[#allocation81_spill] sm:$0xff]  ;;  %v3482_v25 = vld [vmem:[#allocation2 + $0x4e] sm:$0x3]  ;;  %v8328_v21 = vld [vmem:[%s9286_s3 + $0xc] ss:$0 sm:$0xff] }
 0x2f2   : > { %2461 = vst.msk [vmem:[#allocation3 + $0xc7] sm:$0x1] %vm816_vm1, %v2453_v4  ;;  %2533 = vst.msk [vmem:[#allocation3 + $0xc8] sm:$0x1] %vm816_vm1, %v2525_v37  ;;  %v3670_v44 = vmax.f32 %v3668_v29, %v3669_v50  ;;  %v3811_v18 = vadd.f32 %v3807_v62, %v3794_v26  ;;  %v8304_v63 = vmul.f32 %v8287_v2, %v4279_v17  ;;  %v9702_v29 = vld [vmem:[#allocation67_spill] sm:$0xff]  ;;  %v9704_v26 = vld [vmem:[#allocation61_spill] sm:$0xff] }
 0x2f3   : > { %9693 = vst [vmem:[#allocation46_spill] sm:$0xff] %v8299_v32  ;;  %v2879_v35 = vadd.f32 %v9695_v53, %v2863_v40  ;;  %v3706_v12 = vmax.f32 %v3704_v23, %v3705_v43  ;;  %v4218_v48 = vrot.slane %v4217_v0, 1  ;;  %v3830_v11 = vadd.f32 %v9696_v47, %v3812_v34  ;;  %v9703_v23 = vld [vmem:[#allocation18_spill] sm:$0xff]  ;;  %v8335_v37 = vld [vmem:[%s9286_s3 + $0xd] ss:$0 sm:$0xff]  ;;  %v8339_v43 = vld [vmem:[#allocation3 + $0x90] sm:$0xff] }
 0x2f4   : > { %9694 = vst [vmem:[#allocation70_spill] sm:$0xff] %v8304_v63  ;;  %v2967_v19 = vadd.f32 %v9697_v41, %v2951_v28  ;;  %3674 = vst.msk [vmem:[#allocation3 + $0x63] sm:$0x1] %vm816_vm1, %v3670_v44  ;;  %v3829_v56 = vadd.f32 %v9698_v5, %v3811_v18  ;;  %v3055_v51 = vadd.f32 %v9699_v45, %v3039_v10  ;;  %v9706_v17 = vld [vmem:[#allocation14_spill] sm:$0xff]  ;;  %v9708_v34 = vld [vmem:[#allocation96_spill] sm:$0xff] }
 0x2f5   : > { %2895 = vst.msk [vmem:[#allocation2 + $0x10] sm:$0x3] %vm810_vm2, %v2879_v35  ;;  %v3143_v33 = vadd.f32 %v9700_v22, %v3127_v14  ;;  %v1669_v36 = vadd.f32 %v8121_v30, %v8202_v9  ;;  %v4219_v8 = vmax.f32 %v4217_v0, %v4218_v48  ;;  %v3847_v59 = vadd.f32 %v9701_v20, %v3830_v11  ;;  %v9705_v30 = vld [vmem:[#allocation52_spill] sm:$0xff]  ;;  %v9707_v50 = vld [vmem:[#allocation26_spill] sm:$0xff]  ;;  %v8349_v44 = vld [vmem:[%s9287_s4 + $0x2] ss:$0 sm:$0xff] }
 0x2f6   : > { %3710 = vst.msk [vmem:[#allocation3 + $0x64] sm:$0x1] %vm816_vm1, %v3706_v12  ;;  %v3410_v57 = vadd.f32 %v9702_v29, %v3394_v61  ;;  %v3498_v3 = vadd.f32 %v9703_v23, %v3482_v25  ;;  %v3846_v52 = vadd.f32 %v9704_v26, %v3829_v56  ;;  %v2552_v4 = vmul.f32 %v8328_v21, %v9706_v17  ;;  %v8341_v0 = vld [vmem:[#allocation3 + $0x91] sm:$0xff]  ;;  %v8357_v18 = vld [vmem:[%s9286_s3 + $0xe] ss:$0 sm:$0xff] }
 0x2f7   : > { %2983 = vst.msk [vmem:[#allocation2 + $0x12] sm:$0x3] %vm810_vm2, %v2967_v19  ;;  %3071 = vst.msk [vmem:[#allocation2 + $0x14] sm:$0x3] %vm810_vm2, %v3055_v51  ;;  %v1770_v9 = vadd.f32 %v9705_v30, %v1669_v36  ;;  %v2581_v62 = vmul.f32 %v8335_v37, %v9707_v50  ;;  %v8343_v49 = vld [vmem:[#allocation3 + $0x92] sm:$0xff]  ;;  %v3864_v40 = vadd.f32 %v9708_v34, %v3847_v59  ;;  %v9713_v11 = vld [vmem:[#allocation76_spill] sm:$0xff] }
 0x2f8   : > { %3159 = vst.msk [vmem:[#allocation2 + $0x16] sm:$0x3] %vm810_vm2, %v3143_v33  ;;  %3426 = vst.msk [vmem:[#allocation2 + $0x4c] sm:$0x3] %vm810_vm2, %v3410_v57  ;;  %v9709_v53 = vld [vmem:[#allocation74_spill] sm:$0xff]  ;;  %v9711_v12 = vld [vmem:[#allocation13_spill] sm:$0xff]  ;;  %v2582_v26 = vmul.f32 %v8335_v37, %v9713_v11 }
 0x2f9   : > { %4221 = vst.msk [vmem:[#allocation3 + $0x32] sm:$0x1] %vm816_vm1, %v4219_v8  ;;  %v2610_v35 = vmul.f32 %v8357_v18, %v9709_v53  ;;  %v8364_v28 = vld [vmem:[%s9286_s3 + $0x10] ss:$0 sm:$0xff]  ;;  %v8371_v47 = vld [vmem:[%s9286_s3 + $0x11] ss:$0 sm:$0xff]  ;;  %v1809_v14 = vadd.f32 %v8263_v7, %v1770_v9  ;;  %v2589_v5 = vadd.f32 %v2581_v62, %v2552_v4  ;;  %v3876_v22 = vadd.f32 %v8349_v44, %v3864_v40 }
 0x2fa   : > { %3514 = vst.msk [vmem:[#allocation2 + $0x4e] sm:$0x3] %vm810_vm2, %v3498_v3  ;;  %9710 = vst [vmem:[#allocation19_spill] sm:$0xff] %v8364_v28  ;;  %v2640_v48 = vmul.f32 %v8364_v28, %v9711_v12  ;;  %v2669_v41 = vmul.f32 %v8371_v47, %v9713_v11  ;;  %v9714_v19 = vld [vmem:[#allocation95_spill] sm:$0xff]  ;;  %v8380_v56 = vld [vmem:[%s9286_s3 + $0x12] ss:$0 sm:$0xff]  ;;  %v2553_v3 = vmul.f32 %v8328_v21, %v9711_v12 }
 0x2fb   : > { %9712 = vst [vmem:[#allocation71_spill] sm:$0xff] %v8371_v47  ;;  %v3863_v10 = vadd.f32 %v9714_v19, %v3846_v52  ;;  %9715 = vst [vmem:[#allocation72_spill] sm:$0xff] %v8380_v56  ;;  %v9716_v45 = vld [vmem:[#allocation77_spill] sm:$0xff]  ;;  %v8416_v59 = vld [vmem:[%s9286_s3 + $0x2e] ss:$0 sm:$0xff]  ;;  %v2618_v57 = vadd.f32 %v2610_v35, %v2589_v5  ;;  %v2641_v4 = vmul.f32 %v8364_v28, %v8339_v43 }
 0x2fc   : > { %v2698_v51 = vmul.f32 %v8380_v56, %v9716_v45  ;;  %v8388_v33 = vld [vmem:[%s9286_s3 + $0x14] ss:$0 sm:$0xff]  ;;  %v8397_v7 = vld [vmem:[%s9286_s3 + $0x15] ss:$0 sm:$0xff]  ;;  %v8406_v25 = vld [vmem:[%s9286_s3 + $0x16] ss:$0 sm:$0xff]  ;;  %v2611_v17 = vmul.f32 %v8357_v18, %v9716_v45  ;;  %v8432_v50 = vmul.f32 %v8371_v47, %v8341_v0  ;;  %v8436_v62 = vmul.f32 %v8380_v56, %v8343_v49 }
 0x2fd   : > { %9717 = vst [vmem:[#allocation73_spill] sm:$0xff] %v8388_v33  ;;  %v8392_v36 = vmul.f32 %v8388_v33, %v8339_v43  ;;  %9718 = vst [vmem:[#allocation58_spill] sm:$0xff] %v8397_v7  ;;  %v8401_v61 = vmul.f32 %v8397_v7, %v8341_v0  ;;  %v8410_v8 = vmul.f32 %v8406_v25, %v8343_v49  ;;  %v8423_v52 = vld [vmem:[#allocation3 + $0xa8] sm:$0xff]  ;;  %v3766_v30 = vld [vmem:[#allocation3 + $0x60] sm:$0xf] }
 0x2fe   : > { %9719 = vst [vmem:[#allocation56_spill] sm:$0xff] %v8406_v25  ;;  %v3875_v20 = vadd.f32 %v8349_v44, %v3863_v10  ;;  %9720 = vst [vmem:[#allocation57_spill] sm:$0xff] %v8416_v59  ;;  %v3817_v9 = vld [vmem:[#allocation3 + $0x60] sm:$0xf]  ;;  %v8438_v34 = vld [vmem:[#allocation3 + $0xa9] sm:$0xff]  ;;  %v2590_v5 = vadd.f32 %v2582_v26, %v2553_v3 }
 0x2ff   : > { %1841 = vst.msk [vmem:[#allocation2 + $0x20] sm:$0xff] %vm314_vm0, %v1809_v14  ;;  %v5482_v40 = vld [vmem:[%s9286_s3 + $0x1c] ss:$0 sm:$0xff]  ;;  %v3784_v35 = vld [vmem:[#allocation3 + $0x61] sm:$0xf]  ;;  %v2648_v14 = vadd.f32 %v2640_v48, %v2618_v57  ;;  %v9722_v48 = vld [vmem:[#allocation88_spill] sm:$0xff] }
 0x300   : > { %3880 = vst.msk [vmem:[#allocation4 + $0x10] sm:$0xf] %vm3570_vm4, %v3876_v22  ;;  %v3776_v53 = vmul.f32 %v5482_v40, %v3766_v30  ;;  %v3801_v12 = vld [vmem:[#allocation3 + $0x62] sm:$0xf]  ;;  %v5483_v11 = vld [vmem:[%s9286_s3 + $0x20] ss:$0 sm:$0xff] }
 0x301   : > { %v3827_v19 = vmul.f32 %v5483_v11, %v3817_v9  ;;  %v3835_v10 = vld [vmem:[#allocation3 + $0x61] sm:$0xf]  ;;  %3879 = vst.msk [vmem:[#allocation4] sm:$0xf] %vm3570_vm4, %v3875_v20  ;;  %v5484_v45 = vld [vmem:[%s9286_s3 + $0x1d] ss:$0 sm:$0xff]  ;;  %v3810_v63 = vmul.f32 %v8293_v27, %v3801_v12  ;;  %v8456_v9 = vmul.f32 %v8388_v33, %v8423_v52  ;;  %v2619_v33 = vadd.f32 %v2611_v17, %v2590_v5 }
 0x302   : > { %v3793_v22 = vmul.f32 %v5484_v45, %v3784_v35  ;;  %v5485_v30 = vld [vmem:[%s9286_s3 + $0x21] ss:$0 sm:$0xff]  ;;  %v3852_v32 = vld [vmem:[#allocation3 + $0x62] sm:$0xf]  ;;  %v8458_v20 = vld [vmem:[#allocation3 + $0xaa] sm:$0xff]  ;;  %v3780_v57 = vadd.f32 %v3776_v53, %v9722_v48  ;;  %v2677_v45 = vadd.f32 %v2669_v41, %v2648_v14  ;;  %v8473_v53 = vmul.f32 %v8397_v7, %v8438_v34 }
 0x303   : > { %v3844_v40 = vmul.f32 %v5485_v30, %v3835_v10  ;;  %9721 = vst [vmem:[#allocation78_spill] sm:$0xff] %v8458_v20  ;;  %v9723_v3 = vld [vmem:[#allocation63_spill] sm:$0xff]  ;;  %v4280_v12 = vld [vmem:[#allocation3 + $0x32] sm:$0x3]  ;;  %v4043_v28 = vld [vmem:[#allocation2 + $0x48] sm:$0xf] }
 0x304   : > { %v3831_v26 = vadd.f32 %v3827_v19, %v9723_v3  ;;  %v5486_v27 = vld [vmem:[%s9286_s3 + $0x22] ss:$0 sm:$0xff]  ;;  %v4313_v11 = vld [vmem:[#allocation3 + $0x32] sm:$0x3]  ;;  %v8466_v10 = vmul.f32 %v8287_v2, %v4280_v12  ;;  %v2867_v19 = vld [vmem:[#allocation2 + $0x50] sm:$0x3]  ;;  %v3797_v56 = vadd.f32 %v3793_v22, %v3780_v57  ;;  %v8475_v41 = vadd.f32 %v2698_v51, %v2677_v45 }
 0x305   : > { %v3861_v35 = vmul.f32 %v5486_v27, %v3852_v32  ;;  %v8469_v30 = vmul.f32 %v8416_v59, %v4313_v11  ;;  %v2955_v48 = vld [vmem:[#allocation2 + $0x52] sm:$0x3]  ;;  %v3043_v3 = vld [vmem:[#allocation2 + $0x54] sm:$0x3]  ;;  %v3907_v32 = vld [vmem:[#allocation2 + $0x40] sm:$0xf]  ;;  %v8479_v2 = vmul.f32 %v8406_v25, %v8458_v20  ;;  %v2883_v59 = vadd.f32 %v9671_v16, %v2867_v19 }
 0x306   : > { %9724 = vst [vmem:[#allocation69_spill] sm:$0xff] %v8466_v10  ;;  %v3848_v47 = vadd.f32 %v3844_v40, %v3831_v26  ;;  %v3975_v27 = vld [vmem:[#allocation2 + $0x44] sm:$0xf]  ;;  %v3903_v14 = vld [vmem:[#allocation2] sm:$0xf]  ;;  %v2971_v22 = vadd.f32 %v9672_v15, %v2955_v48  ;;  %v3059_v40 = vadd.f32 %v9673_v60, %v3043_v3  ;;  %v3814_v57 = vadd.f32 %v3810_v63, %v3797_v56 }
 0x307   : > { %9725 = vst [vmem:[#allocation43_spill] sm:$0xff] %v8469_v30  ;;  %v3971_v17 = vld [vmem:[#allocation2 + $0x4] sm:$0xf]  ;;  %v2864_v5 = vld [vmem:[#allocation2 + $0x20] sm:$0x3]  ;;  %v8481_v30 = vadd.f32 %v2641_v4, %v2619_v33 }
 0x308   : > { %v2952_v12 = vld [vmem:[#allocation2 + $0x22] sm:$0x3]  ;;  %v3040_v11 = vld [vmem:[#allocation2 + $0x24] sm:$0x3]  ;;  %v3865_v51 = vadd.f32 %v3861_v35, %v3848_v47  ;;  %v8486_v26 = vld [vmem:[#allocation4 + $0x10] ss:$0 sm:$0xff]  ;;  %v2880_v33 = vadd.f32 %v9666_v54, %v2864_v5 }
 0x309   : > { %v8488_v45 = vld [vmem:[#allocation4 + $0x11] ss:$0 sm:$0xff]  ;;  %v8490_v10 = vld [vmem:[#allocation4 + $0x12] ss:$0 sm:$0xff]  ;;  %v4039_v25 = vld [vmem:[#allocation2 + $0x8] sm:$0xf]  ;;  %v2968_v4 = vadd.f32 %v9667_v39, %v2952_v12  ;;  %v3056_v47 = vadd.f32 %v9668_v46, %v3040_v11  ;;  %v3923_v56 = vadd.f32 %v8486_v26, %v3907_v32 }
 0x30a   : > { %v4107_v7 = vld [vmem:[#allocation2 + $0xc] sm:$0xf]  ;;  %v3904_v20 = vld [vmem:[#allocation2 + $0x10] sm:$0xf]  ;;  %v4040_v63 = vld [vmem:[#allocation2 + $0x18] sm:$0xf]  ;;  %v3991_v35 = vadd.f32 %v8488_v45, %v3975_v27  ;;  %v4059_v19 = vadd.f32 %v8490_v10, %v4043_v28  ;;  %v3877_v48 = vadd.f32 %v8349_v44, %v3865_v51 }
 0x30b   : > { %v8494_v16 = vld [vmem:[#allocation4] ss:$0 sm:$0xff]  ;;  %v8496_v15 = vld [vmem:[#allocation4 + $0x1] ss:$0 sm:$0xff]  ;;  %v5174_v60 = vld [vmem:[#allocation4 + $0x2] ss:$0 sm:$0xff] }
 0x30c   : > { %2899 = vst.msk [vmem:[#allocation2 + $0x50] sm:$0x3] %vm810_vm2, %v2883_v59  ;;  %2987 = vst.msk [vmem:[#allocation2 + $0x52] sm:$0x3] %vm810_vm2, %v2971_v22  ;;  %v9726_v54 = vld [vmem:[#allocation93_spill] sm:$0xff]  ;;  %v3919_v3 = vadd.f32 %v8494_v16, %v3903_v14  ;;  %v3987_v46 = vadd.f32 %v8496_v15, %v3971_v17  ;;  %v4055_v28 = vadd.f32 %v5174_v60, %v4039_v25  ;;  %v9727_v12 = vld [vmem:[#allocation60_spill] sm:$0xff] }
 0x30d   : > { %3075 = vst.msk [vmem:[#allocation2 + $0x54] sm:$0x3] %vm810_vm2, %v3059_v40  ;;  %v3832_v39 = vadd.f32 %v9726_v54, %v3814_v57  ;;  %v5178_v5 = vld [vmem:[#allocation4 + $0x3] ss:$0 sm:$0xff]  ;;  %v8509_v32 = vld [vmem:[#allocation4 + $0x13] ss:$0 sm:$0xff]  ;;  %v3920_v14 = vadd.f32 %v8494_v16, %v3904_v20 }
 0x30e   : > { %v3972_v27 = vld [vmem:[#allocation2 + $0x14] sm:$0xf]  ;;  %2896 = vst.msk [vmem:[#allocation2 + $0x20] sm:$0x3] %vm810_vm2, %v2880_v33  ;;  %2984 = vst.msk [vmem:[#allocation2 + $0x22] sm:$0x3] %vm810_vm2, %v2968_v4  ;;  %v4123_v59 = vadd.f32 %v5178_v5, %v4107_v7 }
 0x30f   : > { %4182 = vst.msk [vmem:[#allocation4] sm:$0xff] %vm314_vm0, %v9727_v12  ;;  %4184 = vst.msk [vmem:[#allocation4 + $0x10] sm:$0xff] %vm314_vm0, %v8131_v13  ;;  %v3988_v17 = vadd.f32 %v8496_v15, %v3972_v27  ;;  %v4108_v11 = vld [vmem:[#allocation2 + $0x1c] sm:$0xf]  ;;  %v3128_v22 = vld [vmem:[#allocation2 + $0x26] sm:$0x3]  ;;  %v4056_v13 = vadd.f32 %v5174_v60, %v4040_v63  ;;  %v2736_v12 = vadd.f32 %v8392_v36, %v8475_v41 }
 0x310   : > { %3072 = vst.msk [vmem:[#allocation2 + $0x24] sm:$0x3] %vm810_vm2, %v3056_v47  ;;  %v4041_v40 = vld [vmem:[#allocation2 + $0x28] sm:$0xf]  ;;  %v9728_v7 = vld [vmem:[#allocation94_spill] sm:$0xff]  ;;  %v4124_v20 = vadd.f32 %v5178_v5, %v4108_v11  ;;  %v3144_v57 = vadd.f32 %v9670_v38, %v3128_v22 }
 0x311   : > { %3939 = vst.msk [vmem:[#allocation2 + $0x40] sm:$0xf] %vm3570_vm4, %v3923_v56  ;;  %4007 = vst.msk [vmem:[#allocation2 + $0x44] sm:$0xf] %vm3570_vm4, %v3991_v35  ;;  %v3849_v25 = vadd.f32 %v9728_v7, %v3832_v39  ;;  %v4109_v51 = vld [vmem:[#allocation2 + $0x2c] sm:$0xf]  ;;  %v4057_v47 = vadd.f32 %v5174_v60, %v4041_v40 }
 0x312   : > { %4075 = vst.msk [vmem:[#allocation2 + $0x48] sm:$0xf] %vm3570_vm4, %v4059_v19  ;;  %3935 = vst.msk [vmem:[#allocation2] sm:$0xf] %vm3570_vm4, %v3919_v3  ;;  %v3906_v33 = vld [vmem:[#allocation2 + $0x30] sm:$0xf]  ;;  %v4125_v56 = vadd.f32 %v5178_v5, %v4109_v51 }
 0x313   : > { %4003 = vst.msk [vmem:[#allocation2 + $0x4] sm:$0xf] %vm3570_vm4, %v3987_v46  ;;  %3881 = vst.msk [vmem:[#allocation4 + $0x20] sm:$0xf] %vm3570_vm4, %v3877_v48  ;;  %v3974_v4 = vld [vmem:[#allocation2 + $0x34] sm:$0xf]  ;;  %v3922_v35 = vadd.f32 %v8494_v16, %v3906_v33 }
 0x314   : > { %4071 = vst.msk [vmem:[#allocation2 + $0x8] sm:$0xf] %vm3570_vm4, %v4055_v28  ;;  %4139 = vst.msk [vmem:[#allocation2 + $0xc] sm:$0xf] %vm3570_vm4, %v4123_v59  ;;  %v3990_v63 = vadd.f32 %v8496_v15, %v3974_v4  ;;  %v4042_v19 = vld [vmem:[#allocation2 + $0x38] sm:$0xf] }
 0x315   : > { %3936 = vst.msk [vmem:[#allocation2 + $0x10] sm:$0xf] %vm3570_vm4, %v3920_v14  ;;  %4004 = vst.msk [vmem:[#allocation2 + $0x14] sm:$0xf] %vm3570_vm4, %v3988_v17  ;;  %v4110_v54 = vld [vmem:[#allocation2 + $0x3c] sm:$0xf]  ;;  %v4058_v3 = vadd.f32 %v5174_v60, %v4042_v19  ;;  %v2678_v14 = vadd.f32 %v8432_v50, %v8481_v30 }
 0x316   : > { %v4111_v38 = vld [vmem:[#allocation2 + $0x4c] sm:$0xf]  ;;  %v9729_v39 = vld [vmem:[#allocation97_spill] sm:$0xff]  ;;  %4072 = vst.msk [vmem:[#allocation2 + $0x18] sm:$0xf] %vm3570_vm4, %v4056_v13  ;;  %v4126_v46 = vadd.f32 %v5178_v5, %v4110_v54 }
 0x317   : > { %v3866_v48 = vadd.f32 %v9729_v39, %v3849_v25  ;;  %4140 = vst.msk [vmem:[#allocation2 + $0x1c] sm:$0xf] %vm3570_vm4, %v4124_v20  ;;  %v4127_v27 = vadd.f32 %v8509_v32, %v4111_v38  ;;  %v3131_v28 = vld [vmem:[#allocation2 + $0x56] sm:$0x3]  ;;  %v3219_v59 = vld [vmem:[#allocation2 + $0x58] sm:$0x3]  ;;  %v2765_v25 = vadd.f32 %v8401_v61, %v2736_v12 }
 0x318   : > { %3160 = vst.msk [vmem:[#allocation2 + $0x26] sm:$0x3] %vm810_vm2, %v3144_v57  ;;  %v3147_v60 = vadd.f32 %v9674_v24, %v3131_v28  ;;  %v3235_v5 = vadd.f32 %v9675_v1, %v3219_v59  ;;  %v3307_v17 = vld [vmem:[#allocation2 + $0x5a] sm:$0x3]  ;;  %v3395_v11 = vld [vmem:[#allocation2 + $0x5c] sm:$0x3] }
 0x319   : > { %4073 = vst.msk [vmem:[#allocation2 + $0x28] sm:$0xf] %vm3570_vm4, %v4057_v47  ;;  %4141 = vst.msk [vmem:[#allocation2 + $0x2c] sm:$0xf] %vm3570_vm4, %v4125_v56  ;;  %v3483_v22 = vld [vmem:[#allocation2 + $0x5e] sm:$0x3]  ;;  %v3878_v40 = vadd.f32 %v8349_v44, %v3866_v48  ;;  %v3323_v36 = vadd.f32 %v9676_v6, %v3307_v17  ;;  %v3411_v41 = vadd.f32 %v9702_v29, %v3395_v11 }
 0x31a   : > { %3938 = vst.msk [vmem:[#allocation2 + $0x30] sm:$0xf] %vm3570_vm4, %v3922_v35  ;;  %4006 = vst.msk [vmem:[#allocation2 + $0x34] sm:$0xf] %vm3570_vm4, %v3990_v63  ;;  %v3499_v50 = vadd.f32 %v9703_v23, %v3483_v22  ;;  %v3908_v24 = vld [vmem:[#allocation2 + $0x50] sm:$0xf]  ;;  %v2707_v44 = vadd.f32 %v8436_v62, %v2678_v14  ;;  %v2794_v56 = vadd.f32 %v8410_v8, %v2765_v25 }
 0x31b   : > { %4074 = vst.msk [vmem:[#allocation2 + $0x38] sm:$0xf] %vm3570_vm4, %v4058_v3  ;;  %4142 = vst.msk [vmem:[#allocation2 + $0x3c] sm:$0xf] %vm3570_vm4, %v4126_v46  ;;  %v2868_v30 = vld [vmem:[#allocation2 + $0x60] sm:$0x3]  ;;  %v3924_v13 = vadd.f32 %v8486_v26, %v3908_v24 }
 0x31c   : > { %4143 = vst.msk [vmem:[#allocation2 + $0x4c] sm:$0xf] %vm3570_vm4, %v4127_v27  ;;  %v2956_v1 = vld [vmem:[#allocation2 + $0x62] sm:$0x3]  ;;  %v2884_v6 = vadd.f32 %v8094_v31, %v2868_v30  ;;  %v3044_v20 = vld [vmem:[#allocation2 + $0x64] sm:$0x3] }
 0x31d   : > { %v3905_v7 = vld [vmem:[#allocation2 + $0x20] sm:$0xf]  ;;  %3163 = vst.msk [vmem:[#allocation2 + $0x56] sm:$0x3] %vm810_vm2, %v3147_v60  ;;  %3251 = vst.msk [vmem:[#allocation2 + $0x58] sm:$0x3] %vm810_vm2, %v3235_v5  ;;  %v2972_v61 = vadd.f32 %v8096_v42, %v2956_v1  ;;  %v3060_v62 = vadd.f32 %v8098_v58, %v3044_v20 }
 0x31e   : > { %v3132_v29 = vld [vmem:[#allocation2 + $0x66] sm:$0x3]  ;;  %v4186_v57 = vld [vmem:[#allocation4] sm:$0xff]  ;;  %3882 = vst.msk [vmem:[#allocation4 + $0x30] sm:$0xf] %vm3570_vm4, %v3878_v40  ;;  %v3921_v51 = vadd.f32 %v8494_v16, %v3905_v7  ;;  %v2737_v16 = vadd.f32 %v8456_v9, %v2707_v44  ;;  %v9733_v60 = vld [vmem:[#allocation100_spill] sm:$0xff]  ;;  %v2554_v40 = vmul.f32 %v8328_v21, %v8339_v43 }
 0x31f   : > { %v4187_v23 = vld [vmem:[#allocation4 + $0x10] sm:$0xff]  ;;  %3339 = vst.msk [vmem:[#allocation2 + $0x5a] sm:$0x3] %vm810_vm2, %v3323_v36  ;;  %3427 = vst.msk [vmem:[#allocation2 + $0x5c] sm:$0x3] %vm810_vm2, %v3411_v41  ;;  %v3148_v33 = vadd.f32 %v8100_v55, %v3132_v29  ;;  %v4188_v4 = vsel %vm314_vm0, %v4186_v57, -inf  ;;  %v2612_v41 = vmul.f32 %v8357_v18, %v8343_v49 }
 0x320   : > { %3515 = vst.msk [vmem:[#allocation2 + $0x5e] sm:$0x3] %vm810_vm2, %v3499_v50  ;;  %v4195_v47 = vsel %vm314_vm0, %v4187_v23, -inf  ;;  %2900 = vst.msk [vmem:[#allocation2 + $0x60] sm:$0x3] %vm810_vm2, %v2884_v6  ;;  %v4189_v19 = vrot.slane %v4188_v4, 4  ;;  %v2766_v59 = vadd.f32 %v8473_v53, %v2737_v16 }
 0x321   : > { %3940 = vst.msk [vmem:[#allocation2 + $0x50] sm:$0xf] %vm3570_vm4, %v3924_v13  ;;  %v3220_v35 = vld [vmem:[#allocation2 + $0x68] sm:$0x3]  ;;  %v3308_v63 = vld [vmem:[#allocation2 + $0x6a] sm:$0x3] }
 0x322   : > { %v4196_v54 = vrot.slane %v4195_v47, 4  ;;  %3937 = vst.msk [vmem:[#allocation2 + $0x20] sm:$0xf] %vm3570_vm4, %v3921_v51  ;;  %v9730_v38 = vld [vmem:[#allocation65_spill] sm:$0xff]  ;;  %v9731_v39 = vld [vmem:[#allocation7_spill] sm:$0xff]  ;;  %v4190_v17 = vmax.f32 %v4188_v4, %v4189_v19  ;;  %v2795_v53 = vadd.f32 %v8479_v2, %v2766_v59  ;;  %v9736_v25 = vld [vmem:[#allocation78_spill] sm:$0xff] }
 0x323   : > { %2988 = vst.msk [vmem:[#allocation2 + $0x62] sm:$0x3] %vm810_vm2, %v2972_v61  ;;  %3076 = vst.msk [vmem:[#allocation2 + $0x64] sm:$0x3] %vm810_vm2, %v3060_v62  ;;  %v3236_v8 = vadd.f32 %v9730_v38, %v3220_v35  ;;  %v3324_v9 = vadd.f32 %v9731_v39, %v3308_v63  ;;  %v3396_v48 = vld [vmem:[#allocation2 + $0x6c] sm:$0x3] }
 0x324   : > { %3164 = vst.msk [vmem:[#allocation2 + $0x66] sm:$0x3] %vm810_vm2, %v3148_v33  ;;  %v3484_v3 = vld [vmem:[#allocation2 + $0x6e] sm:$0x3]  ;;  %v3973_v46 = vld [vmem:[#allocation2 + $0x24] sm:$0xf]  ;;  %v4197_v11 = vmax.f32 %v4195_v47, %v4196_v54 }
 0x325   : > { %v8585_v27 = vld [vmem:[%s9287_s4 + $0x1] ss:$0 sm:$0xff]  ;;  %v3500_v5 = vadd.f32 %v9733_v60, %v3484_v3  ;;  %v3989_v22 = vadd.f32 %v8496_v15, %v3973_v46  ;;  %3252 = vst.msk [vmem:[#allocation2 + $0x68] sm:$0x3] %vm810_vm2, %v3236_v8  ;;  %3340 = vst.msk [vmem:[#allocation2 + $0x6a] sm:$0x3] %vm810_vm2, %v3324_v9  ;;  %v2583_v15 = vmul.f32 %v8335_v37, %v8341_v0 }
 0x326   : > { %v2810_v28 = vadd.f32 %v8585_v27, %v2794_v56  ;;  %v9732_v12 = vld [vmem:[#allocation99_spill] sm:$0xff]  ;;  %v4191_v43 = vrot.slane %v4190_v17, 2  ;;  %v4198_v30 = vrot.slane %v4197_v11, 2  ;;  %v3976_v1 = vld [vmem:[#allocation2 + $0x54] sm:$0xf]  ;;  %v9737_v44 = vld [vmem:[#allocation72_spill] sm:$0xff]  ;;  %v2811_v49 = vadd.f32 %v8585_v27, %v2795_v53 }
 0x327   : > { %v3412_v14 = vadd.f32 %v9732_v12, %v3396_v48  ;;  %v8596_v36 = vld [vmem:[#allocation3 + $0xc0] sm:$0xff]  ;;  %3516 = vst.msk [vmem:[#allocation2 + $0x6e] sm:$0x3] %vm810_vm2, %v3500_v5  ;;  %v8615_v13 = vmul.f32 %v9737_v44, %v9736_v25  ;;  %v3992_v20 = vadd.f32 %v8488_v45, %v3976_v1  ;;  %v4044_v29 = vld [vmem:[#allocation2 + $0x58] sm:$0xf]  ;;  %v2591_v23 = vadd.f32 %v2583_v15, %v2554_v40  ;;  %v9738_v51 = vld [vmem:[#allocation73_spill] sm:$0xff] }
 0x328   : > { %2818 = vst.msk [vmem:[#allocation4 + $0x40] sm:$0xff] %vm314_vm0, %v2810_v28  ;;  %v9734_v50 = vld [vmem:[#allocation19_spill] sm:$0xff]  ;;  %v4112_v57 = vld [vmem:[#allocation2 + $0x5c] sm:$0xf]  ;;  %v8625_v61 = vmul.f32 %v9738_v51, %v8596_v36  ;;  %v4192_v62 = vmax.f32 %v4190_v17, %v4191_v43  ;;  %v4199_v33 = vmax.f32 %v4197_v11, %v4198_v30  ;;  %v4060_v4 = vadd.f32 %v8490_v10, %v4044_v29  ;;  %v2869_v56 = vld [vmem:[#allocation2 + $0x70] sm:$0x3] }
 0x329   : > { %3428 = vst.msk [vmem:[#allocation2 + $0x6c] sm:$0x3] %vm810_vm2, %v3412_v14  ;;  %v2642_v24 = vmul.f32 %v9734_v50, %v8423_v52  ;;  %v9735_v2 = vld [vmem:[#allocation71_spill] sm:$0xff]  ;;  %v4128_v47 = vadd.f32 %v8509_v32, %v4112_v57  ;;  %v2620_v63 = vadd.f32 %v2612_v41, %v2591_v23  ;;  %v9739_v19 = vld [vmem:[#allocation58_spill] sm:$0xff]  ;;  %v9740_v8 = vld [vmem:[#allocation56_spill] sm:$0xff]  ;;  %v2885_v48 = vadd.f32 %v8094_v31, %v2869_v56 }
 0x32a   : > { %4005 = vst.msk [vmem:[#allocation2 + $0x24] sm:$0xf] %vm3570_vm4, %v3989_v22  ;;  %v8611_v7 = vmul.f32 %v9735_v2, %v8438_v34  ;;  %v8617_v0 = vld [vmem:[#allocation3 + $0xc1] sm:$0xff]  ;;  %4008 = vst.msk [vmem:[#allocation2 + $0x54] sm:$0xf] %vm3570_vm4, %v3992_v20  ;;  %v4193_v46 = vrot.slane %v4192_v62, 1 }
 0x32b   : > { %v8619_v6 = vld [vmem:[#allocation3 + $0xc2] sm:$0xff]  ;;  %2819 = vst.msk [vmem:[#allocation4 + $0x50] sm:$0xff] %vm314_vm0, %v2811_v49  ;;  %v8633_v54 = vmul.f32 %v9739_v19, %v8617_v0  ;;  %v2957_v3 = vld [vmem:[#allocation2 + $0x72] sm:$0x3]  ;;  %v4200_v28 = vrot.slane %v4199_v33, 1  ;;  %v8644_v1 = vadd.f32 %v2642_v24, %v2620_v63 }
 0x32c   : > { %v3909_v16 = vld [vmem:[#allocation2 + $0x60] sm:$0xf]  ;;  %v3977_v35 = vld [vmem:[#allocation2 + $0x64] sm:$0xf]  ;;  %v8637_v9 = vmul.f32 %v9740_v8, %v8619_v6  ;;  %v2871_v14 = vld [vmem:[#allocation2 + $0x90] sm:$0x3]  ;;  %v2973_v2 = vadd.f32 %v8096_v42, %v2957_v3  ;;  %v4194_v29 = vmax.f32 %v4192_v62, %v4193_v46 }
 0x32d   : > { %v2870_v59 = vld [vmem:[#allocation2 + $0x80] sm:$0x3]  ;;  %v2958_v5 = vld [vmem:[#allocation2 + $0x82] sm:$0x3]  ;;  %v2959_v17 = vld [vmem:[#allocation2 + $0x92] sm:$0x3]  ;;  %v3925_v11 = vadd.f32 %v8486_v26, %v3909_v16  ;;  %v3993_v22 = vadd.f32 %v8488_v45, %v3977_v35  ;;  %v4201_v57 = vmax.f32 %v4199_v33, %v4200_v28 }
 0x32e   : > { %4076 = vst.msk [vmem:[#allocation2 + $0x58] sm:$0xf] %vm3570_vm4, %v4060_v4  ;;  %4144 = vst.msk [vmem:[#allocation2 + $0x5c] sm:$0xf] %vm3570_vm4, %v4128_v47  ;;  %v3045_v40 = vld [vmem:[#allocation2 + $0x74] sm:$0x3] }
 0x32f   : > { %v3133_v53 = vld [vmem:[#allocation2 + $0x76] sm:$0x3]  ;;  %v3046_v15 = vld [vmem:[#allocation2 + $0x84] sm:$0x3]  ;;  %v3047_v41 = vld [vmem:[#allocation2 + $0x94] sm:$0x3]  ;;  %v3061_v44 = vadd.f32 %v8098_v58, %v3045_v40 }
 0x330   : > { %v3134_v31 = vld [vmem:[#allocation2 + $0x86] sm:$0x3]  ;;  %v3135_v43 = vld [vmem:[#allocation2 + $0x96] sm:$0x3]  ;;  %v4045_v30 = vld [vmem:[#allocation2 + $0x68] sm:$0xf]  ;;  %v3149_v49 = vadd.f32 %v8100_v55, %v3133_v53 }
 0x331   : > { %2901 = vst.msk [vmem:[#allocation2 + $0x70] sm:$0x3] %vm810_vm2, %v2885_v48  ;;  %v3221_v20 = vld [vmem:[#allocation2 + $0x78] sm:$0x3]  ;;  %v5086_v23 = vld [vmem:[#allocation4 + $0x40] ss:$0 sm:$0xff]  ;;  %v4061_v42 = vadd.f32 %v8490_v10, %v4045_v30 }
 0x332   : > { %v5094_v51 = vld [vmem:[#allocation4 + $0x41] ss:$0 sm:$0xff]  ;;  %v5102_v4 = vld [vmem:[#allocation4 + $0x42] ss:$0 sm:$0xff]  ;;  %v3222_v47 = vld [vmem:[#allocation2 + $0x88] sm:$0x3]  ;;  %v3237_v58 = vadd.f32 %v9730_v38, %v3221_v20  ;;  %v2886_v24 = vadd.f32 %v5086_v23, %v2870_v59  ;;  %v2887_v55 = vadd.f32 %v5086_v23, %v2871_v14 }
 0x333   : > { %v3223_v56 = vld [vmem:[#allocation2 + $0x98] sm:$0x3]  ;;  %v3310_v16 = vld [vmem:[#allocation2 + $0x8a] sm:$0x3]  ;;  %v3311_v35 = vld [vmem:[#allocation2 + $0x9a] sm:$0x3]  ;;  %v2974_v63 = vadd.f32 %v5094_v51, %v2958_v5  ;;  %v2975_v62 = vadd.f32 %v5094_v51, %v2959_v17  ;;  %v3062_v38 = vadd.f32 %v5102_v4, %v3046_v15  ;;  %v3063_v28 = vadd.f32 %v5102_v4, %v3047_v41 }
 0x334   : > { %3941 = vst.msk [vmem:[#allocation2 + $0x60] sm:$0xf] %vm3570_vm4, %v3925_v11  ;;  %4009 = vst.msk [vmem:[#allocation2 + $0x64] sm:$0xf] %vm3570_vm4, %v3993_v22  ;;  %v5110_v33 = vld [vmem:[#allocation4 + $0x43] ss:$0 sm:$0xff] }
 0x335   : > { %v5118_v19 = vld [vmem:[#allocation4 + $0x44] ss:$0 sm:$0xff]  ;;  %v3398_v8 = vld [vmem:[#allocation2 + $0x8c] sm:$0x3]  ;;  %v3399_v48 = vld [vmem:[#allocation2 + $0x9c] sm:$0x3]  ;;  %v3150_v59 = vadd.f32 %v5110_v33, %v3134_v31  ;;  %v3151_v14 = vadd.f32 %v5110_v33, %v3135_v43 }
 0x336   : > { %v3486_v3 = vld [vmem:[#allocation2 + $0x8e] sm:$0x3]  ;;  %v3487_v46 = vld [vmem:[#allocation2 + $0x9e] sm:$0x3]  ;;  %2989 = vst.msk [vmem:[#allocation2 + $0x72] sm:$0x3] %vm810_vm2, %v2973_v2  ;;  %v3238_v15 = vadd.f32 %v5118_v19, %v3222_v47  ;;  %v3239_v41 = vadd.f32 %v5118_v19, %v3223_v56 }
 0x337   : > { %3077 = vst.msk [vmem:[#allocation2 + $0x74] sm:$0x3] %vm810_vm2, %v3061_v44  ;;  %3165 = vst.msk [vmem:[#allocation2 + $0x76] sm:$0x3] %vm810_vm2, %v3149_v49  ;;  %v5126_v5 = vld [vmem:[#allocation4 + $0x45] ss:$0 sm:$0xff] }
 0x338   : > { %4202 = vst.msk [vmem:[#allocation3 + $0x19] sm:$0x1] %vm816_vm1, %v4194_v29  ;;  %4203 = vst.msk [vmem:[#allocation3 + $0x31] sm:$0x1] %vm816_vm1, %v4201_v57  ;;  %v5134_v17 = vld [vmem:[#allocation4 + $0x46] ss:$0 sm:$0xff]  ;;  %v3326_v31 = vadd.f32 %v5126_v5, %v3310_v16  ;;  %v3327_v43 = vadd.f32 %v5126_v5, %v3311_v35 }
 0x339   : > { %v5142_v11 = vld [vmem:[#allocation4 + $0x47] ss:$0 sm:$0xff]  ;;  %v2872_v22 = vld [vmem:[#allocation2 + $0xa0] sm:$0x3]  ;;  %v2960_v40 = vld [vmem:[#allocation2 + $0xa2] sm:$0x3]  ;;  %v3414_v29 = vadd.f32 %v5134_v17, %v3398_v8  ;;  %v3415_v57 = vadd.f32 %v5134_v17, %v3399_v48 }
 0x33a   : > { %v3048_v53 = vld [vmem:[#allocation2 + $0xa4] sm:$0x3]  ;;  %4077 = vst.msk [vmem:[#allocation2 + $0x68] sm:$0xf] %vm3570_vm4, %v4061_v42  ;;  %v3136_v30 = vld [vmem:[#allocation2 + $0xa6] sm:$0x3]  ;;  %v3502_v23 = vadd.f32 %v5142_v11, %v3486_v3  ;;  %v3503_v51 = vadd.f32 %v5142_v11, %v3487_v46 }
 0x33b   : > { %3253 = vst.msk [vmem:[#allocation2 + $0x78] sm:$0x3] %vm810_vm2, %v3237_v58  ;;  %2902 = vst.msk [vmem:[#allocation2 + $0x80] sm:$0x3] %vm810_vm2, %v2886_v24  ;;  %v3224_v2 = vld [vmem:[#allocation2 + $0xa8] sm:$0x3] }
 0x33c   : > { %2903 = vst.msk [vmem:[#allocation2 + $0x90] sm:$0x3] %vm810_vm2, %v2887_v55  ;;  %2990 = vst.msk [vmem:[#allocation2 + $0x82] sm:$0x3] %vm810_vm2, %v2974_v63  ;;  %v3312_v44 = vld [vmem:[#allocation2 + $0xaa] sm:$0x3] }
 0x33d   : > { %2991 = vst.msk [vmem:[#allocation2 + $0x92] sm:$0x3] %vm810_vm2, %v2975_v62  ;;  %v4113_v49 = vld [vmem:[#allocation2 + $0x6c] sm:$0xf]  ;;  %v2873_v20 = vld [vmem:[#allocation2 + $0xb0] sm:$0x3] }
 0x33e   : > { %3078 = vst.msk [vmem:[#allocation2 + $0x84] sm:$0x3] %vm810_vm2, %v3062_v38  ;;  %3079 = vst.msk [vmem:[#allocation2 + $0x94] sm:$0x3] %vm810_vm2, %v3063_v28  ;;  %v5087_v4 = vld [vmem:[#allocation4 + $0x50] ss:$0 sm:$0xff]  ;;  %v4129_v48 = vadd.f32 %v8509_v32, %v4113_v49 }
 0x33f   : > { %3166 = vst.msk [vmem:[#allocation2 + $0x86] sm:$0x3] %vm810_vm2, %v3150_v59  ;;  %3167 = vst.msk [vmem:[#allocation2 + $0x96] sm:$0x3] %vm810_vm2, %v3151_v14  ;;  %v5095_v47 = vld [vmem:[#allocation4 + $0x51] ss:$0 sm:$0xff]  ;;  %v2888_v55 = vadd.f32 %v5087_v4, %v2872_v22 }
 0x340   : > { %v5103_v56 = vld [vmem:[#allocation4 + $0x52] ss:$0 sm:$0xff]  ;;  %v3400_v16 = vld [vmem:[#allocation2 + $0xac] sm:$0x3]  ;;  %v3488_v35 = vld [vmem:[#allocation2 + $0xae] sm:$0x3]  ;;  %v2976_v63 = vadd.f32 %v5095_v47, %v2960_v40  ;;  %v2889_v40 = vadd.f32 %v5087_v4, %v2873_v20 }
 0x341   : > { %v2961_v42 = vld [vmem:[#allocation2 + $0xb2] sm:$0x3]  ;;  %v3049_v58 = vld [vmem:[#allocation2 + $0xb4] sm:$0x3]  ;;  %v8672_v24 = vld [vmem:[%s9286_s3 + $0x28] ss:$0 sm:$0xff]  ;;  %v3064_v62 = vadd.f32 %v5103_v56, %v3048_v53 }
 0x342   : > { %3254 = vst.msk [vmem:[#allocation2 + $0x88] sm:$0x3] %vm810_vm2, %v3238_v15  ;;  %3255 = vst.msk [vmem:[#allocation2 + $0x98] sm:$0x3] %vm810_vm2, %v3239_v41  ;;  %v5111_v33 = vld [vmem:[#allocation4 + $0x53] ss:$0 sm:$0xff] }
 0x343   : > { %3342 = vst.msk [vmem:[#allocation2 + $0x8a] sm:$0x3] %vm810_vm2, %v3326_v31  ;;  %3343 = vst.msk [vmem:[#allocation2 + $0x9a] sm:$0x3] %vm810_vm2, %v3327_v43  ;;  %v5119_v19 = vld [vmem:[#allocation4 + $0x54] ss:$0 sm:$0xff]  ;;  %v3152_v14 = vadd.f32 %v5111_v33, %v3136_v30  ;;  %v2977_v31 = vadd.f32 %v5095_v47, %v2961_v42  ;;  %v3065_v43 = vadd.f32 %v5103_v56, %v3049_v58 }
 0x344   : > { %v5127_v8 = vld [vmem:[#allocation4 + $0x55] ss:$0 sm:$0xff]  ;;  %v3137_v3 = vld [vmem:[#allocation2 + $0xb6] sm:$0x3]  ;;  %v3225_v46 = vld [vmem:[#allocation2 + $0xb8] sm:$0x3]  ;;  %v3240_v5 = vadd.f32 %v5119_v19, %v3224_v2  ;;  %v2679_v58 = vadd.f32 %v8611_v7, %v8644_v1 }
 0x345   : > { %v3313_v38 = vld [vmem:[#allocation2 + $0xba] sm:$0x3]  ;;  %v3401_v28 = vld [vmem:[#allocation2 + $0xbc] sm:$0x3]  ;;  %v5191_v59 = vld [vmem:[%s9286_s3 + $0x29] ss:$0 sm:$0xff]  ;;  %v3328_v17 = vadd.f32 %v5127_v8, %v3312_v44 }
 0x346   : > { %3430 = vst.msk [vmem:[#allocation2 + $0x8c] sm:$0x3] %vm810_vm2, %v3414_v29  ;;  %3431 = vst.msk [vmem:[#allocation2 + $0x9c] sm:$0x3] %vm810_vm2, %v3415_v57  ;;  %v5135_v11 = vld [vmem:[#allocation4 + $0x56] ss:$0 sm:$0xff]  ;;  %v3153_v57 = vadd.f32 %v5111_v33, %v3137_v3 }
 0x347   : > { %3518 = vst.msk [vmem:[#allocation2 + $0x8e] sm:$0x3] %vm810_vm2, %v3502_v23  ;;  %3519 = vst.msk [vmem:[#allocation2 + $0x9e] sm:$0x3] %vm810_vm2, %v3503_v51  ;;  %v5143_v22 = vld [vmem:[#allocation4 + $0x57] ss:$0 sm:$0xff]  ;;  %v3416_v15 = vadd.f32 %v5135_v11, %v3400_v16  ;;  %v3241_v23 = vadd.f32 %v5119_v19, %v3225_v46  ;;  %v3329_v51 = vadd.f32 %v5127_v8, %v3313_v38 }
 0x348   : > { %v3489_v53 = vld [vmem:[#allocation2 + $0xbe] sm:$0x3]  ;;  %2904 = vst.msk [vmem:[#allocation2 + $0xa0] sm:$0x3] %vm810_vm2, %v2888_v55  ;;  %2992 = vst.msk [vmem:[#allocation2 + $0xa2] sm:$0x3] %vm810_vm2, %v2976_v63  ;;  %v3504_v41 = vadd.f32 %v5143_v22, %v3488_v35  ;;  %v3417_v4 = vadd.f32 %v5135_v11, %v3401_v28 }
 0x349   : > { %3080 = vst.msk [vmem:[#allocation2 + $0xa4] sm:$0x3] %vm810_vm2, %v3064_v62  ;;  %v3309_v49 = vld [vmem:[#allocation2 + $0x7a] sm:$0x3]  ;;  %v3397_v30 = vld [vmem:[#allocation2 + $0x7c] sm:$0x3]  ;;  %v3505_v42 = vadd.f32 %v5143_v22, %v3489_v53 }
 0x34a   : > { %4145 = vst.msk [vmem:[#allocation2 + $0x6c] sm:$0xf] %vm3570_vm4, %v4129_v48  ;;  %v3485_v2 = vld [vmem:[#allocation2 + $0x7e] sm:$0x3]  ;;  %v8690_v44 = vld [vmem:[#allocation4 + $0x20] ss:$0 sm:$0xff]  ;;  %v3325_v55 = vadd.f32 %v9731_v39, %v3309_v49  ;;  %v3413_v63 = vadd.f32 %v9732_v12, %v3397_v30 }
 0x34b   : > { %v8692_v29 = vld [vmem:[#allocation4 + $0x21] ss:$0 sm:$0xff]  ;;  %v8694_v20 = vld [vmem:[#allocation4 + $0x22] ss:$0 sm:$0xff]  ;;  %3168 = vst.msk [vmem:[#allocation2 + $0xa6] sm:$0x3] %vm810_vm2, %v3152_v14  ;;  %v3501_v39 = vadd.f32 %v9733_v60, %v3485_v2 }
 0x34c   : > { %3256 = vst.msk [vmem:[#allocation2 + $0xa8] sm:$0x3] %vm810_vm2, %v3240_v5  ;;  %3344 = vst.msk [vmem:[#allocation2 + $0xaa] sm:$0x3] %vm810_vm2, %v3328_v17  ;;  %v4223_v47 = vld [vmem:[#allocation3 + $0x18] sm:$0x3]  ;;  %v2708_v17 = vadd.f32 %v8615_v13, %v2679_v58 }
 0x34d   : > { %2905 = vst.msk [vmem:[#allocation2 + $0xb0] sm:$0x3] %vm810_vm2, %v2889_v40  ;;  %v4235_v56 = vld [vmem:[#allocation3 + $0x19] sm:$0x3]  ;;  %v8700_v35 = vld [vmem:[#allocation4 + $0x23] ss:$0 sm:$0xff] }
 0x34e   : > { %v4256_v16 = vld [vmem:[#allocation3 + $0x18] sm:$0x3]  ;;  %3432 = vst.msk [vmem:[#allocation2 + $0xac] sm:$0x3] %vm810_vm2, %v3416_v15  ;;  %3520 = vst.msk [vmem:[#allocation2 + $0xae] sm:$0x3] %vm810_vm2, %v3504_v41 }
 0x34f   : > { %2993 = vst.msk [vmem:[#allocation2 + $0xb2] sm:$0x3] %vm810_vm2, %v2977_v31  ;;  %3081 = vst.msk [vmem:[#allocation2 + $0xb4] sm:$0x3] %vm810_vm2, %v3065_v43  ;;  %v5488_v62 = vld [vmem:[%s9286_s3 + $0x24] ss:$0 sm:$0xff]  ;;  %v4264_v3 = vmul.f32 %v8672_v24, %v4256_v16 }
 0x350   : > { %v4231_v33 = vmul.f32 %v5488_v62, %v4223_v47  ;;  %v5489_v19 = vld [vmem:[%s9286_s3 + $0x25] ss:$0 sm:$0xff]  ;;  %v4257_v48 = vld [vmem:[#allocation3 + $0x30] sm:$0x3]  ;;  %v4268_v46 = vld [vmem:[#allocation3 + $0x19] sm:$0x3] }
 0x351   : > { %v4242_v8 = vmul.f32 %v5489_v19, %v4235_v56  ;;  %v4269_v38 = vld [vmem:[#allocation3 + $0x31] sm:$0x3]  ;;  %3169 = vst.msk [vmem:[#allocation2 + $0xb6] sm:$0x3] %vm810_vm2, %v3153_v57  ;;  %3257 = vst.msk [vmem:[#allocation2 + $0xb8] sm:$0x3] %vm810_vm2, %v3241_v23  ;;  %v4265_v12 = vmul.f32 %v8672_v24, %v4257_v48  ;;  %v4275_v7 = vmul.f32 %v5191_v59, %v4268_v46 }
 0x352   : > { %3345 = vst.msk [vmem:[#allocation2 + $0xba] sm:$0x3] %vm810_vm2, %v3329_v51  ;;  %3433 = vst.msk [vmem:[#allocation2 + $0xbc] sm:$0x3] %vm810_vm2, %v3417_v4  ;;  %v4276_v1 = vmul.f32 %v5191_v59, %v4269_v38  ;;  %v4290_v28 = vld [vmem:[#allocation3 + $0x30] sm:$0x3] }
 0x353   : > { %v4302_v14 = vld [vmem:[#allocation3 + $0x31] sm:$0x3]  ;;  %v3911_v5 = vld [vmem:[#allocation2 + $0x80] sm:$0xf]  ;;  %3521 = vst.msk [vmem:[#allocation2 + $0xbe] sm:$0x3] %vm810_vm2, %v3505_v42  ;;  %v4244_v11 = vadd.f32 %v4242_v8, %v4231_v33  ;;  %v2738_v8 = vadd.f32 %v8625_v61, %v2708_v17 }
 0x354   : > { %3341 = vst.msk [vmem:[#allocation2 + $0x7a] sm:$0x3] %vm810_vm2, %v3325_v55  ;;  %3429 = vst.msk [vmem:[#allocation2 + $0x7c] sm:$0x3] %vm810_vm2, %v3413_v63  ;;  %v9741_v22 = vld [vmem:[#allocation37_spill] sm:$0xff]  ;;  %v3927_v31 = vadd.f32 %v8690_v44, %v3911_v5  ;;  %v9742_v23 = vld [vmem:[#allocation46_spill] sm:$0xff] }
 0x355   : > { %v4266_v40 = vadd.f32 %v4264_v3, %v9741_v22  ;;  %v5490_v60 = vld [vmem:[%s9286_s3 + $0x2c] ss:$0 sm:$0xff]  ;;  %v5491_v59 = vld [vmem:[%s9286_s3 + $0x2d] ss:$0 sm:$0xff]  ;;  %v3979_v15 = vld [vmem:[#allocation2 + $0x84] sm:$0xf]  ;;  %v4255_v51 = vadd.f32 %v9742_v23, %v4244_v11  ;;  %v2767_v11 = vadd.f32 %v8633_v54, %v2738_v8 }
 0x356   : > { %v4298_v24 = vmul.f32 %v5490_v60, %v4290_v28  ;;  %v8734_v53 = vmul.f32 %v5491_v59, %v4302_v14  ;;  %v4047_v13 = vld [vmem:[#allocation2 + $0x88] sm:$0xf]  ;;  %v3912_v41 = vld [vmem:[#allocation2 + $0x90] sm:$0xf]  ;;  %3517 = vst.msk [vmem:[#allocation2 + $0x7e] sm:$0x3] %vm810_vm2, %v3501_v39  ;;  %v3995_v43 = vadd.f32 %v8692_v29, %v3979_v15 }
 0x357   : > { %v4063_v49 = vadd.f32 %v8694_v20, %v4047_v13  ;;  %v4115_v30 = vld [vmem:[#allocation2 + $0x8c] sm:$0xf]  ;;  %v3928_v2 = vadd.f32 %v8690_v44, %v3912_v41  ;;  %v3980_v57 = vld [vmem:[#allocation2 + $0x94] sm:$0xf]  ;;  %v4277_v4 = vadd.f32 %v4275_v7, %v4266_v40  ;;  %v4048_v16 = vld [vmem:[#allocation2 + $0x98] sm:$0xf]  ;;  %v4267_v48 = vadd.f32 %v4265_v12, %v4255_v51 }
 0x358   : > { %v4131_v47 = vadd.f32 %v8700_v35, %v4115_v30  ;;  %v3996_v56 = vadd.f32 %v8692_v29, %v3980_v57  ;;  %v4116_v42 = vld [vmem:[#allocation2 + $0x9c] sm:$0xf]  ;;  %v3913_v58 = vld [vmem:[#allocation2 + $0xa0] sm:$0xf]  ;;  %3943 = vst.msk [vmem:[#allocation2 + $0x80] sm:$0xf] %vm3570_vm4, %v3927_v31  ;;  %v4064_v55 = vadd.f32 %v8694_v20, %v4048_v16  ;;  %v2796_v54 = vadd.f32 %v8637_v9, %v2767_v11 }
 0x359   : > { %4011 = vst.msk [vmem:[#allocation2 + $0x84] sm:$0xf] %vm3570_vm4, %v3995_v43  ;;  %4079 = vst.msk [vmem:[#allocation2 + $0x88] sm:$0xf] %vm3570_vm4, %v4063_v49  ;;  %v4132_v63 = vadd.f32 %v8700_v35, %v4116_v42  ;;  %v3929_v62 = vadd.f32 %v8690_v44, %v3913_v58  ;;  %v3981_v33 = vld [vmem:[#allocation2 + $0xa4] sm:$0xf]  ;;  %v4278_v40 = vadd.f32 %v4276_v1, %v4267_v48 }
 0x35a   : > { %3944 = vst.msk [vmem:[#allocation2 + $0x90] sm:$0xf] %vm3570_vm4, %v3928_v2  ;;  %v4049_v19 = vld [vmem:[#allocation2 + $0xa8] sm:$0xf]  ;;  %v9743_v3 = vld [vmem:[#allocation70_spill] sm:$0xff]  ;;  %v3997_v38 = vadd.f32 %v8692_v29, %v3981_v33  ;;  %v2555_v9 = vmul.f32 %v8328_v21, %v8423_v52  ;;  %v9746_v2 = vld [vmem:[#allocation57_spill] sm:$0xff]  ;;  %v2613_v51 = vmul.f32 %v8357_v18, %v9736_v25 }
 0x35b   : > { %v4288_v46 = vadd.f32 %v9743_v3, %v4277_v4  ;;  %4147 = vst.msk [vmem:[#allocation2 + $0x8c] sm:$0xf] %vm3570_vm4, %v4131_v47  ;;  %4012 = vst.msk [vmem:[#allocation2 + $0x94] sm:$0xf] %vm3570_vm4, %v3996_v56  ;;  %v4065_v39 = vadd.f32 %v8694_v20, %v4049_v19  ;;  %v4117_v7 = vld [vmem:[#allocation2 + $0xac] sm:$0xf]  ;;  %v2643_v4 = vmul.f32 %v9734_v50, %v8596_v36 }
 0x35c   : > { %v3914_v28 = vld [vmem:[#allocation2 + $0xb0] sm:$0xf]  ;;  %4080 = vst.msk [vmem:[#allocation2 + $0x98] sm:$0xf] %vm3570_vm4, %v4064_v55  ;;  %4148 = vst.msk [vmem:[#allocation2 + $0x9c] sm:$0xf] %vm3570_vm4, %v4132_v63  ;;  %v4133_v61 = vadd.f32 %v8700_v35, %v4117_v7 }
 0x35d   : > { %v3910_v14 = vld [vmem:[#allocation2 + $0x70] sm:$0xf]  ;;  %3945 = vst.msk [vmem:[#allocation2 + $0xa0] sm:$0xf] %vm3570_vm4, %v3929_v62  ;;  %v3930_v12 = vadd.f32 %v8690_v44, %v3914_v28  ;;  %v3982_v5 = vld [vmem:[#allocation2 + $0xb4] sm:$0xf]  ;;  %v4300_v60 = vadd.f32 %v4298_v24, %v4288_v46 }
 0x35e   : > { %v4050_v17 = vld [vmem:[#allocation2 + $0xb8] sm:$0xf]  ;;  %v3926_v22 = vadd.f32 %v8486_v26, %v3910_v14  ;;  %4013 = vst.msk [vmem:[#allocation2 + $0xa4] sm:$0xf] %vm3570_vm4, %v3997_v38  ;;  %4081 = vst.msk [vmem:[#allocation2 + $0xa8] sm:$0xf] %vm3570_vm4, %v4065_v39  ;;  %v3998_v59 = vadd.f32 %v8692_v29, %v3982_v5 }
 0x35f   : > { %v4066_v15 = vadd.f32 %v8694_v20, %v4050_v17  ;;  %v4118_v13 = vld [vmem:[#allocation2 + $0xbc] sm:$0xf]  ;;  %v3978_v41 = vld [vmem:[#allocation2 + $0x74] sm:$0xf]  ;;  %v4046_v31 = vld [vmem:[#allocation2 + $0x78] sm:$0xf]  ;;  %v4311_v49 = vadd.f32 %v8734_v53, %v4300_v60 }
 0x360   : > { %v4314_v44 = vld [vmem:[#allocation3 + $0x4a] sm:$0x3]  ;;  %4149 = vst.msk [vmem:[#allocation2 + $0xac] sm:$0xf] %vm3570_vm4, %v4133_v61  ;;  %3946 = vst.msk [vmem:[#allocation2 + $0xb0] sm:$0xf] %vm3570_vm4, %v3930_v12  ;;  %v4134_v26 = vadd.f32 %v8700_v35, %v4118_v13  ;;  %v3994_v1 = vadd.f32 %v8488_v45, %v3978_v41  ;;  %v4062_v29 = vadd.f32 %v8490_v10, %v4046_v31 }
 0x361   : > { %3942 = vst.msk [vmem:[#allocation2 + $0x70] sm:$0xf] %vm3570_vm4, %v3926_v22  ;;  %v4114_v24 = vld [vmem:[#allocation2 + $0x7c] sm:$0xf]  ;;  %v9744_v20 = vld [vmem:[#allocation69_spill] sm:$0xff]  ;;  %v2812_v10 = vadd.f32 %v8585_v27, %v2796_v54  ;;  %v2584_v35 = vmul.f32 %v8335_v37, %v8438_v34  ;;  %v9745_v53 = vld [vmem:[#allocation40_spill] sm:$0xff]  ;;  %v4321_v57 = vmul.f32 %v9746_v2, %v4314_v44 }
 0x362   : > { %v4289_v43 = vadd.f32 %v9744_v20, %v4278_v40  ;;  %4014 = vst.msk [vmem:[#allocation2 + $0xb4] sm:$0xf] %vm3570_vm4, %v3998_v59  ;;  %4082 = vst.msk [vmem:[#allocation2 + $0xb8] sm:$0xf] %vm3570_vm4, %v4066_v15  ;;  %v4130_v30 = vadd.f32 %v8509_v32, %v4114_v24  ;;  %v5201_v45 = vld [vmem:[%s9287_s4 + $0x3] ss:$0 sm:$0xff] }
 0x363   : > { %4150 = vst.msk [vmem:[#allocation2 + $0xbc] sm:$0xf] %vm3570_vm4, %v4134_v26  ;;  %4010 = vst.msk [vmem:[#allocation2 + $0x74] sm:$0xf] %vm3570_vm4, %v3994_v1  ;;  %v9747_v21 = vld [vmem:[#allocation43_spill] sm:$0xff]  ;;  %v2592_v23 = vadd.f32 %v2584_v35, %v2555_v9  ;;  %v9748_v47 = vld [vmem:[#allocation64_spill] sm:$0xff] }
 0x364   : > { %4078 = vst.msk [vmem:[#allocation2 + $0x78] sm:$0xf] %vm3570_vm4, %v4062_v29  ;;  %v4301_v32 = vadd.f32 %v9745_v53, %v4289_v43  ;;  %v4322_v52 = vadd.f32 %v9747_v21, %v4311_v49  ;;  %4146 = vst.msk [vmem:[#allocation2 + $0x7c] sm:$0xf] %vm3570_vm4, %v4130_v30  ;;  %v2717_v42 = vld [vmem:[#allocation3 + $0xd8] sm:$0xff]  ;;  %v4346_v11 = vld [vmem:[#allocation2] sm:$0xff] }
 0x365   : > { %2820 = vst.msk [vmem:[#allocation4 + $0x60] sm:$0xff] %vm314_vm0, %v2812_v10  ;;  %v2621_v34 = vadd.f32 %v2613_v51, %v2592_v23  ;;  %v2874_v63 = vld [vmem:[#allocation2 + $0xc0] sm:$0x3]  ;;  %v2962_v62 = vld [vmem:[#allocation2 + $0xc2] sm:$0x3]  ;;  %v4404_v22 = vld [vmem:[#allocation2 + $0x8] sm:$0xff] }
 0x366   : > { %v4312_v56 = vadd.f32 %v9748_v47, %v4301_v32  ;;  %v4332_v37 = vadd.f32 %v5201_v45, %v4322_v52  ;;  %v3050_v33 = vld [vmem:[#allocation2 + $0xc4] sm:$0x3]  ;;  %v5492_v18 = vld [vmem:[%s9286_s3 + $0x11] ss:$0 sm:$0xff]  ;;  %v3138_v36 = vld [vmem:[#allocation2 + $0xc6] sm:$0x3] }
 0x367   : > { %v2651_v58 = vadd.f32 %v2643_v4, %v2621_v34  ;;  %v2672_v25 = vmul.f32 %v5492_v18, %v8617_v0  ;;  %v3226_v50 = vld [vmem:[#allocation2 + $0xc8] sm:$0x3]  ;;  %v3314_v19 = vld [vmem:[#allocation2 + $0xca] sm:$0x3]  ;;  %v2875_v8 = vld [vmem:[#allocation2 + $0xd0] sm:$0x3] }
 0x368   : > { %v4323_v16 = vadd.f32 %v4321_v57, %v4312_v56  ;;  %4334 = vst.msk [vmem:[#allocation4] sm:$0x3] %vm810_vm2, %v4332_v37  ;;  %v2963_v48 = vld [vmem:[#allocation2 + $0xd2] sm:$0x3]  ;;  %v5493_v3 = vld [vmem:[%s9286_s3 + $0x14] ss:$0 sm:$0xff] }
 0x369   : > { %v8809_v46 = vmul.f32 %v5493_v3, %v2717_v42  ;;  %v3402_v28 = vld [vmem:[#allocation2 + $0xcc] sm:$0x3]  ;;  %v3490_v14 = vld [vmem:[#allocation2 + $0xce] sm:$0x3]  ;;  %v3051_v61 = vld [vmem:[#allocation2 + $0xd4] sm:$0x3]  ;;  %v8812_v12 = vadd.f32 %v2672_v25, %v2651_v58 }
 0x36a   : > { %v4333_v55 = vadd.f32 %v5201_v45, %v4323_v16  ;;  %v3139_v0 = vld [vmem:[#allocation2 + $0xd6] sm:$0x3]  ;;  %v5494_v5 = vld [vmem:[%s9286_s3 + $0x12] ss:$0 sm:$0xff]  ;;  %v4405_v60 = vld [vmem:[#allocation2 + $0x18] sm:$0xff] }
 0x36b   : > { %v8818_v17 = vmul.f32 %v5494_v5, %v8619_v6  ;;  %v4347_v40 = vld [vmem:[#allocation2 + $0x10] sm:$0xff]  ;;  %v4348_v54 = vld [vmem:[#allocation2 + $0x20] sm:$0xff]  ;;  %v4406_v1 = vld [vmem:[#allocation2 + $0x28] sm:$0xff] }
 0x36c   : > { %4335 = vst.msk [vmem:[#allocation4 + $0x10] sm:$0x3] %vm810_vm2, %v4333_v55  ;;  %v5088_v38 = vld [vmem:[#allocation4 + $0x60] ss:$0 sm:$0xff]  ;;  %v5096_v39 = vld [vmem:[#allocation4 + $0x61] ss:$0 sm:$0xff] }
 0x36d   : > { %v5104_v7 = vld [vmem:[#allocation4 + $0x62] ss:$0 sm:$0xff]  ;;  %v2890_v59 = vadd.f32 %v5088_v38, %v2874_v63  ;;  %v2978_v15 = vadd.f32 %v5096_v39, %v2962_v62  ;;  %v5112_v41 = vld [vmem:[#allocation4 + $0x63] ss:$0 sm:$0xff]  ;;  %v8820_v31 = vld [vmem:[#allocation4 + $0x64] ss:$0 sm:$0xff]  ;;  %v2891_v26 = vadd.f32 %v5088_v38, %v2875_v8  ;;  %v2979_v9 = vadd.f32 %v5096_v39, %v2963_v48 }
 0x36e   : > { %v3066_v13 = vadd.f32 %v5104_v7, %v3050_v33  ;;  %v8822_v44 = vld [vmem:[#allocation4 + $0x65] ss:$0 sm:$0xff]  ;;  %v4407_v24 = vld [vmem:[#allocation2 + $0x38] sm:$0xff]  ;;  %v3154_v20 = vadd.f32 %v5112_v41, %v3138_v36  ;;  %v3242_v6 = vadd.f32 %v8820_v31, %v3226_v50  ;;  %v8826_v49 = vld [vmem:[#allocation4 + $0x66] ss:$0 sm:$0xff]  ;;  %v3067_v23 = vadd.f32 %v5104_v7, %v3051_v61 }
 0x36f   : > { %v4349_v29 = vld [vmem:[#allocation2 + $0x30] sm:$0xff]  ;;  %v3330_v43 = vadd.f32 %v8822_v44, %v3314_v19  ;;  %v4350_v35 = vld [vmem:[#allocation2 + $0x40] sm:$0xff]  ;;  %v4408_v53 = vld [vmem:[#allocation2 + $0x48] sm:$0xff]  ;;  %2906 = vst.msk [vmem:[#allocation2 + $0xc0] sm:$0x3] %vm810_vm2, %v2890_v59  ;;  %v3418_v21 = vadd.f32 %v8826_v49, %v3402_v28  ;;  %v3155_v51 = vadd.f32 %v5112_v41, %v3139_v0 }
 0x370   : > { %v8828_v30 = vld [vmem:[#allocation4 + $0x67] ss:$0 sm:$0xff]  ;;  %v5202_v45 = vld [vmem:[#allocation4] ss:$0 sm:$0xff]  ;;  %v5204_v10 = vld [vmem:[#allocation4 + $0x1] ss:$0 sm:$0xff] }
 0x371   : > { %v4354_v32 = vld [vmem:[#allocation2 + $0x80] sm:$0xff]  ;;  %v4351_v2 = vld [vmem:[#allocation2 + $0x50] sm:$0xff]  ;;  %v4409_v57 = vld [vmem:[#allocation2 + $0x58] sm:$0xff]  ;;  %2994 = vst.msk [vmem:[#allocation2 + $0xc2] sm:$0x3] %vm810_vm2, %v2978_v15  ;;  %v3506_v52 = vadd.f32 %v8828_v30, %v3490_v14  ;;  %v4362_v4 = vadd.f32 %v5202_v45, %v4346_v11  ;;  %v4420_v47 = vadd.f32 %v5204_v10, %v4404_v22  ;;  %v4363_v56 = vadd.f32 %v5202_v45, %v4347_v40 }
 0x372   : > { %3082 = vst.msk [vmem:[#allocation2 + $0xc4] sm:$0x3] %vm810_vm2, %v3066_v13  ;;  %2907 = vst.msk [vmem:[#allocation2 + $0xd0] sm:$0x3] %vm810_vm2, %v2891_v26  ;;  %v4421_v37 = vadd.f32 %v5204_v10, %v4405_v60  ;;  %v4412_v34 = vld [vmem:[#allocation2 + $0x88] sm:$0xff]  ;;  %v4355_v16 = vld [vmem:[#allocation2 + $0x90] sm:$0xff]  ;;  %v4364_v63 = vadd.f32 %v5202_v45, %v4348_v54  ;;  %v4422_v62 = vadd.f32 %v5204_v10, %v4406_v1 }
 0x373   : > { %v4413_v42 = vld [vmem:[#allocation2 + $0x98] sm:$0xff]  ;;  %v4352_v58 = vld [vmem:[#allocation2 + $0x60] sm:$0xff]  ;;  %v4410_v55 = vld [vmem:[#allocation2 + $0x68] sm:$0xff]  ;;  %3170 = vst.msk [vmem:[#allocation2 + $0xc6] sm:$0x3] %vm810_vm2, %v3154_v20  ;;  %v4365_v33 = vadd.f32 %v5202_v45, %v4349_v29  ;;  %v4423_v18 = vadd.f32 %v5204_v10, %v4407_v24  ;;  %v4366_v19 = vadd.f32 %v5202_v45, %v4350_v35  ;;  %v4424_v8 = vadd.f32 %v5204_v10, %v4408_v53 }
 0x374   : > { %3258 = vst.msk [vmem:[#allocation2 + $0xc8] sm:$0x3] %vm810_vm2, %v3242_v6  ;;  %3346 = vst.msk [vmem:[#allocation2 + $0xca] sm:$0x3] %vm810_vm2, %v3330_v43  ;;  %v4356_v25 = vld [vmem:[#allocation2 + $0xa0] sm:$0xff]  ;;  %v4414_v36 = vld [vmem:[#allocation2 + $0xa8] sm:$0xff]  ;;  %v4367_v48 = vadd.f32 %v5202_v45, %v4351_v2  ;;  %v4425_v3 = vadd.f32 %v5204_v10, %v4409_v57  ;;  %v4368_v0 = vadd.f32 %v5202_v45, %v4352_v58 }
 0x375   : > { %2995 = vst.msk [vmem:[#allocation2 + $0xd2] sm:$0x3] %vm810_vm2, %v2979_v9  ;;  %v4357_v50 = vld [vmem:[#allocation2 + $0xb0] sm:$0xff]  ;;  %3434 = vst.msk [vmem:[#allocation2 + $0xcc] sm:$0x3] %vm810_vm2, %v3418_v21  ;;  %v4415_v38 = vld [vmem:[#allocation2 + $0xb8] sm:$0xff]  ;;  %v4426_v5 = vadd.f32 %v5204_v10, %v4410_v55 }
 0x376   : > { %3522 = vst.msk [vmem:[#allocation2 + $0xce] sm:$0x3] %vm810_vm2, %v3506_v52  ;;  %3083 = vst.msk [vmem:[#allocation2 + $0xd4] sm:$0x3] %vm810_vm2, %v3067_v23  ;;  %v4353_v39 = vld [vmem:[#allocation2 + $0x70] sm:$0xff]  ;;  %v4411_v7 = vld [vmem:[#allocation2 + $0x78] sm:$0xff] }
 0x377   : > { %3171 = vst.msk [vmem:[#allocation2 + $0xd6] sm:$0x3] %vm810_vm2, %v3155_v51  ;;  %v2747_v28 = vld [vmem:[#allocation3 + $0xd9] sm:$0xff]  ;;  %v8854_v61 = vld [vmem:[#allocation4 + $0x11] ss:$0 sm:$0xff]  ;;  %v4369_v11 = vadd.f32 %v5202_v45, %v4353_v39  ;;  %v4427_v22 = vadd.f32 %v5204_v10, %v4411_v7 }
 0x378   : > { %4378 = vst.msk [vmem:[#allocation2] sm:$0xff] %vm314_vm0, %v4362_v4  ;;  %4436 = vst.msk [vmem:[#allocation2 + $0x8] sm:$0xff] %vm314_vm0, %v4420_v47  ;;  %v8852_v14 = vld [vmem:[#allocation4 + $0x10] ss:$0 sm:$0xff]  ;;  %v4428_v59 = vadd.f32 %v8854_v61, %v4412_v34  ;;  %v4429_v13 = vadd.f32 %v8854_v61, %v4413_v42  ;;  %v3227_v41 = vld [vmem:[#allocation2 + $0xd8] sm:$0x3]  ;;  %v4430_v1 = vadd.f32 %v8854_v61, %v4414_v36 }
 0x379   : > { %4379 = vst.msk [vmem:[#allocation2 + $0x10] sm:$0xff] %vm314_vm0, %v4363_v56  ;;  %4437 = vst.msk [vmem:[#allocation2 + $0x18] sm:$0xff] %vm314_vm0, %v4421_v37  ;;  %v2776_v40 = vld [vmem:[#allocation3 + $0xda] sm:$0xff]  ;;  %v4370_v60 = vadd.f32 %v8852_v14, %v4354_v32  ;;  %v4371_v15 = vadd.f32 %v8852_v14, %v4355_v16  ;;  %v4372_v54 = vadd.f32 %v8852_v14, %v4356_v25  ;;  %v8880_v10 = vld [vmem:[#allocation4 + $0x32] ss:$0 sm:$0xff] }
 0x37a   : > { %4380 = vst.msk [vmem:[#allocation2 + $0x20] sm:$0xff] %vm314_vm0, %v4364_v63  ;;  %4438 = vst.msk [vmem:[#allocation2 + $0x28] sm:$0xff] %vm314_vm0, %v4422_v62  ;;  %v3315_v26 = vld [vmem:[#allocation2 + $0xda] sm:$0x3]  ;;  %v4373_v29 = vadd.f32 %v8852_v14, %v4357_v50  ;;  %v4431_v24 = vadd.f32 %v8854_v61, %v4415_v38  ;;  %v8870_v20 = vld [vmem:[#allocation4 + $0x30] ss:$0 sm:$0xff]  ;;  %v3243_v35 = vadd.f32 %v8820_v31, %v3227_v41 }
 0x37b   : > { %4381 = vst.msk [vmem:[#allocation2 + $0x30] sm:$0xff] %vm314_vm0, %v4365_v33  ;;  %4439 = vst.msk [vmem:[#allocation2 + $0x38] sm:$0xff] %vm314_vm0, %v4423_v18  ;;  %v3403_v6 = vld [vmem:[#allocation2 + $0xdc] sm:$0x3]  ;;  %v3491_v43 = vld [vmem:[#allocation2 + $0xde] sm:$0x3]  ;;  %v3331_v53 = vadd.f32 %v8822_v44, %v3315_v26 }
 0x37c   : > { %4382 = vst.msk [vmem:[#allocation2 + $0x40] sm:$0xff] %vm314_vm0, %v4366_v19  ;;  %4440 = vst.msk [vmem:[#allocation2 + $0x48] sm:$0xff] %vm314_vm0, %v4424_v8  ;;  %v3915_v9 = vld [vmem:[#allocation2 + $0xc0] sm:$0xf]  ;;  %v3419_v32 = vadd.f32 %v8826_v49, %v3403_v6  ;;  %v3507_v2 = vadd.f32 %v8828_v30, %v3491_v43  ;;  %v5495_v57 = vld [vmem:[%s9286_s3 + $0x15] ss:$0 sm:$0xff]  ;;  %v2709_v30 = vadd.f32 %v8818_v17, %v8812_v12 }
 0x37d   : > { %4383 = vst.msk [vmem:[#allocation2 + $0x50] sm:$0xff] %vm314_vm0, %v4367_v48  ;;  %4441 = vst.msk [vmem:[#allocation2 + $0x58] sm:$0xff] %vm314_vm0, %v4425_v3  ;;  %v8878_v45 = vld [vmem:[#allocation4 + $0x31] ss:$0 sm:$0xff]  ;;  %v2760_v21 = vmul.f32 %v5495_v57, %v2747_v28  ;;  %v3931_v31 = vadd.f32 %v8870_v20, %v3915_v9  ;;  %v3983_v44 = vld [vmem:[#allocation2 + $0xc4] sm:$0xf] }
 0x37e   : > { %4384 = vst.msk [vmem:[#allocation2 + $0x60] sm:$0xff] %vm314_vm0, %v4368_v0  ;;  %4442 = vst.msk [vmem:[#allocation2 + $0x68] sm:$0xff] %vm314_vm0, %v4426_v5  ;;  %v4051_v52 = vld [vmem:[#allocation2 + $0xc8] sm:$0xf]  ;;  %v3916_v49 = vld [vmem:[#allocation2 + $0xd0] sm:$0xf]  ;;  %v3999_v23 = vadd.f32 %v8878_v45, %v3983_v44  ;;  %v2739_v63 = vadd.f32 %v8809_v46, %v2709_v30 }
 0x37f   : > { %4385 = vst.msk [vmem:[#allocation2 + $0x70] sm:$0xff] %vm314_vm0, %v4369_v11  ;;  %4443 = vst.msk [vmem:[#allocation2 + $0x78] sm:$0xff] %vm314_vm0, %v4427_v22  ;;  %v4067_v51 = vadd.f32 %v8880_v10, %v4051_v52  ;;  %v8898_v4 = vld [vmem:[#allocation4 + $0x33] ss:$0 sm:$0xff]  ;;  %v4119_v47 = vld [vmem:[#allocation2 + $0xcc] sm:$0xf]  ;;  %v3932_v56 = vadd.f32 %v8870_v20, %v3916_v49 }
 0x380   : > { %4386 = vst.msk [vmem:[#allocation2 + $0x80] sm:$0xff] %vm314_vm0, %v4370_v60  ;;  %4444 = vst.msk [vmem:[#allocation2 + $0x88] sm:$0xff] %vm314_vm0, %v4428_v59  ;;  %v3984_v37 = vld [vmem:[#allocation2 + $0xd4] sm:$0xf]  ;;  %v4452_v34 = vld [vmem:[#allocation2] sm:$0xff]  ;;  %v4135_v58 = vadd.f32 %v8898_v4, %v4119_v47  ;;  %v2768_v50 = vadd.f32 %v2760_v21, %v2739_v63 }
 0x381   : > { %4387 = vst.msk [vmem:[#allocation2 + $0x90] sm:$0xff] %vm314_vm0, %v4371_v15  ;;  %4445 = vst.msk [vmem:[#allocation2 + $0x98] sm:$0xff] %vm314_vm0, %v4429_v13  ;;  %v5496_v12 = vld [vmem:[%s9286_s3 + $0x16] ss:$0 sm:$0xff]  ;;  %v4453_v16 = vld [vmem:[#allocation2 + $0x8] sm:$0xff]  ;;  %v4000_v55 = vadd.f32 %v8878_v45, %v3984_v37 }
 0x382   : > { %4388 = vst.msk [vmem:[#allocation2 + $0xa0] sm:$0xff] %vm314_vm0, %v4372_v54  ;;  %4446 = vst.msk [vmem:[#allocation2 + $0xa8] sm:$0xff] %vm314_vm0, %v4430_v1  ;;  %v2789_v17 = vmul.f32 %v5496_v12, %v2776_v40  ;;  %v4454_v42 = vld [vmem:[#allocation2 + $0x10] sm:$0xff]  ;;  %v4484_v62 = vpack.c.bf16 %v4453_v16, %v4452_v34  ;;  %v4455_v33 = vld [vmem:[#allocation2 + $0x18] sm:$0xff] }
 0x383   : > { %4389 = vst.msk [vmem:[#allocation2 + $0xb0] sm:$0xff] %vm314_vm0, %v4373_v29  ;;  %4447 = vst.msk [vmem:[#allocation2 + $0xb8] sm:$0xff] %vm314_vm0, %v4431_v24  ;;  %v4456_v18 = vld [vmem:[#allocation2 + $0x20] sm:$0xff]  ;;  %v4457_v25 = vld [vmem:[#allocation2 + $0x28] sm:$0xff]  ;;  %v4485_v36 = vpack.c.bf16 %v4455_v33, %v4454_v42 }
 0x384   : > { %3259 = vst.msk [vmem:[#allocation2 + $0xd8] sm:$0x3] %vm810_vm2, %v3243_v35  ;;  %3347 = vst.msk [vmem:[#allocation2 + $0xda] sm:$0x3] %vm810_vm2, %v3331_v53  ;;  %5247 = vmatprep.mubr.msk.bf16.mxu0 %vm314_vm0, %v4484_v62  ;;  %v4486_v19 = vpack.c.bf16 %v4457_v25, %v4456_v18  ;;  %v2797_v3 = vadd.f32 %v2789_v17, %v2768_v50  ;;  %v4458_v0 = vld [vmem:[#allocation2 + $0x30] sm:$0xff]  ;;  %v4459_v40 = vld [vmem:[#allocation2 + $0x38] sm:$0xff] }
 0x385   : > { %3435 = vst.msk [vmem:[#allocation2 + $0xdc] sm:$0x3] %vm810_vm2, %v3419_v32  ;;  %3523 = vst.msk [vmem:[#allocation2 + $0xde] sm:$0x3] %vm810_vm2, %v3507_v2  ;;  %5248 = vmatmul.mubr.msk.bf16.vlgmr.msra.gmra.mrb[0].mxu0 %vm314_vm0, %v4485_v36  ;;  %v4460_v60 = vld [vmem:[#allocation2 + $0x40] sm:$0xff]  ;;  %v4461_v59 = vld [vmem:[#allocation2 + $0x48] sm:$0xff]  ;;  %v4487_v24 = vpack.c.bf16 %v4459_v40, %v4458_v0 }
 0x386   : > { %3947 = vst.msk [vmem:[#allocation2 + $0xc0] sm:$0xf] %vm3570_vm4, %v3931_v31  ;;  %4015 = vst.msk [vmem:[#allocation2 + $0xc4] sm:$0xf] %vm3570_vm4, %v3999_v23  ;;  %5251 = vmatprep.mubr.msk.bf16.mxu0 %vm314_vm0, %v4486_v19  ;;  %v2813_v22 = vadd.f32 %v8585_v27, %v2797_v3  ;;  %v4488_v9 = vpack.c.bf16 %v4461_v59, %v4460_v60  ;;  %v8930_v35 = vld [vmem:[#allocation2 + $0x50] sm:$0xff]  ;;  %v4463_v2 = vld [vmem:[#allocation2 + $0x58] sm:$0xff] }
 0x387   : > { %4083 = vst.msk [vmem:[#allocation2 + $0xc8] sm:$0xf] %vm3570_vm4, %v4067_v51  ;;  %3948 = vst.msk [vmem:[#allocation2 + $0xd0] sm:$0xf] %vm3570_vm4, %v3932_v56  ;;  %v4468_v46 = vld [vmem:[#allocation2 + $0x80] sm:$0xff]  ;;  %v4469_v8 = vld [vmem:[#allocation2 + $0x88] sm:$0xff]  ;;  %v4489_v37 = vpack.c.bf16 %v4463_v2, %v8930_v35 }
 0x388   : > { %4151 = vst.msk [vmem:[#allocation2 + $0xcc] sm:$0xf] %vm3570_vm4, %v4135_v58  ;;  %4016 = vst.msk [vmem:[#allocation2 + $0xd4] sm:$0xf] %vm3570_vm4, %v4000_v55  ;;  %v4470_v48 = vld [vmem:[#allocation2 + $0x90] sm:$0xff]  ;;  %v4492_v38 = vpack.c.bf16 %v4469_v8, %v4468_v46  ;;  %v4471_v39 = vld [vmem:[#allocation2 + $0x98] sm:$0xff] }
 0x389   : > { %v4472_v7 = vld [vmem:[#allocation2 + $0xa0] sm:$0xff]  ;;  %v4473_v28 = vld [vmem:[#allocation2 + $0xa8] sm:$0xff]  ;;  %v4493_v5 = vpack.c.bf16 %v4471_v39, %v4470_v48  ;;  %2821 = vst.msk [vmem:[#allocation4 + $0x70] sm:$0xff] %vm314_vm0, %v2813_v22  ;;  %v2877_v47 = vld [vmem:[#allocation2 + $0xf0] sm:$0x3] }
 0x38a   : > { %v4494_v11 = vpack.c.bf16 %v4473_v28, %v4472_v7  ;;  %5263 = vmatprep.mubr.msk.bf16.mxu1 %vm314_vm0, %v4492_v38  ;;  %v4474_v53 = vld [vmem:[#allocation2 + $0xb0] sm:$0xff]  ;;  %v4475_v32 = vld [vmem:[#allocation2 + $0xb8] sm:$0xff]  ;;  %v8936_v57 = vld [vmem:[#allocation2 + $0x60] sm:$0xff] }
 0x38b   : > { %5264 = vmatmul.mubr.msk.bf16.vlgmr.msra.gmra.mrb[0].mxu1 %vm314_vm0, %v4493_v5  ;;  %v4052_v13 = vld [vmem:[#allocation2 + $0xd8] sm:$0xf]  ;;  %v8938_v21 = vld [vmem:[#allocation2 + $0x68] sm:$0xff]  ;;  %v2876_v31 = vld [vmem:[#allocation2 + $0xe0] sm:$0x3]  ;;  %v4495_v49 = vpack.c.bf16 %v4475_v32, %v4474_v53 }
 0x38c   : > { %v4120_v41 = vld [vmem:[#allocation2 + $0xdc] sm:$0xf]  ;;  %5267 = vmatprep.mubr.msk.bf16.mxu1 %vm314_vm0, %v4494_v11  ;;  %v4068_v1 = vadd.f32 %v8880_v10, %v4052_v13  ;;  %v2964_v44 = vld [vmem:[#allocation2 + $0xe2] sm:$0x3]  ;;  %v3052_v52 = vld [vmem:[#allocation2 + $0xe4] sm:$0x3]  ;;  %v4490_v12 = vpack.c.bf16 %v8938_v21, %v8936_v57 }
 0x38d   : > { %v4358_v15 = vld [vmem:[#allocation2 + $0xc0] sm:$0xff]  ;;  %v4136_v27 = vadd.f32 %v8898_v4, %v4120_v41  ;;  %5252 = vmatmul.mubr.msk.bf16.gmra.mrb[4].mxu0 %vm314_vm0, %v4487_v24  ;;  %v3228_v23 = vld [vmem:[#allocation2 + $0xe8] sm:$0x3]  ;;  %v3316_v51 = vld [vmem:[#allocation2 + $0xea] sm:$0x3] }
 0x38e   : > { %v4374_v26 = vadd.f32 %v8852_v14, %v4358_v15  ;;  %4084 = vst.msk [vmem:[#allocation2 + $0xd8] sm:$0xf] %vm3570_vm4, %v4068_v1  ;;  %5255 = vmatprep.mubr.msk.bf16.mxu0 %vm314_vm0, %v4488_v9  ;;  %v3140_v30 = vld [vmem:[#allocation2 + $0xe6] sm:$0x3]  ;;  %v2965_v56 = vld [vmem:[#allocation2 + $0xf2] sm:$0x3] }
 0x38f   : > { %v4416_v54 = vld [vmem:[#allocation2 + $0xc8] sm:$0xff]  ;;  %v4359_v29 = vld [vmem:[#allocation2 + $0xd0] sm:$0xff]  ;;  %4152 = vst.msk [vmem:[#allocation2 + $0xdc] sm:$0xf] %vm3570_vm4, %v4136_v27  ;;  %v3229_v46 = vld [vmem:[#allocation2 + $0xf8] sm:$0x3] }
 0x390   : > { %v4432_v6 = vadd.f32 %v8854_v61, %v4416_v54  ;;  %v4375_v43 = vadd.f32 %v8852_v14, %v4359_v29  ;;  %4390 = vst.msk [vmem:[#allocation2 + $0xc0] sm:$0xff] %vm314_vm0, %v4374_v26  ;;  %v5089_v17 = vld [vmem:[#allocation4 + $0x70] ss:$0 sm:$0xff]  ;;  %v5097_v34 = vld [vmem:[#allocation4 + $0x71] ss:$0 sm:$0xff]  ;;  %v4466_v24 = vld [vmem:[#allocation2 + $0x70] sm:$0xff] }
 0x391   : > { %v5105_v16 = vld [vmem:[#allocation4 + $0x72] ss:$0 sm:$0xff]  ;;  %v3404_v42 = vld [vmem:[#allocation2 + $0xec] sm:$0x3]  ;;  %v3492_v58 = vld [vmem:[#allocation2 + $0xee] sm:$0x3]  ;;  %v2892_v62 = vadd.f32 %v5089_v17, %v2876_v31  ;;  %v2980_v33 = vadd.f32 %v5097_v34, %v2964_v44  ;;  %v2893_v19 = vadd.f32 %v5089_v17, %v2877_v47  ;;  %v2981_v7 = vadd.f32 %v5097_v34, %v2965_v56 }
 0x392   : > { %4448 = vst.msk [vmem:[#allocation2 + $0xc8] sm:$0xff] %vm314_vm0, %v4432_v6  ;;  %4391 = vst.msk [vmem:[#allocation2 + $0xd0] sm:$0xff] %vm314_vm0, %v4375_v43  ;;  %v3053_v55 = vld [vmem:[#allocation2 + $0xf4] sm:$0x3]  ;;  %v3141_v63 = vld [vmem:[#allocation2 + $0xf6] sm:$0x3]  ;;  %v3068_v18 = vadd.f32 %v5105_v16, %v3052_v52 }
 0x393   : > { %5268 = vmatmul.mubr.msk.bf16.gmra.mrb[4].mxu1 %vm314_vm0, %v4495_v49  ;;  %v5113_v25 = vld [vmem:[#allocation4 + $0x73] ss:$0 sm:$0xff]  ;;  %v5121_v36 = vld [vmem:[#allocation4 + $0x74] ss:$0 sm:$0xff]  ;;  %v5129_v50 = vld [vmem:[#allocation4 + $0x75] ss:$0 sm:$0xff]  ;;  %v3069_v40 = vadd.f32 %v5105_v16, %v3053_v55 }
 0x394   : > { %v3156_v8 = vadd.f32 %v5113_v25, %v3140_v30  ;;  %v3244_v48 = vadd.f32 %v5121_v36, %v3228_v23  ;;  %v3332_v3 = vadd.f32 %v5129_v50, %v3316_v51  ;;  %v5137_v38 = vld [vmem:[#allocation4 + $0x76] ss:$0 sm:$0xff]  ;;  %v5145_v39 = vld [vmem:[#allocation4 + $0x77] ss:$0 sm:$0xff]  ;;  %v3317_v28 = vld [vmem:[#allocation2 + $0xfa] sm:$0x3]  ;;  %v3157_v60 = vadd.f32 %v5113_v25, %v3141_v63 }
 0x395   : > { %2908 = vst.msk [vmem:[#allocation2 + $0xe0] sm:$0x3] %vm810_vm2, %v2892_v62  ;;  %2996 = vst.msk [vmem:[#allocation2 + $0xe2] sm:$0x3] %vm810_vm2, %v2980_v33  ;;  %v3420_v11 = vadd.f32 %v5137_v38, %v3404_v42  ;;  %v3508_v22 = vadd.f32 %v5145_v39, %v3492_v58  ;;  %v3405_v59 = vld [vmem:[#allocation2 + $0xfc] sm:$0x3]  ;;  %v3245_v41 = vadd.f32 %v5121_v36, %v3229_v46  ;;  %5256 = vmatmul.mubr.msk.bf16.gmra.mrb[8].mxu0 %vm314_vm0, %v4489_v37 }
 0x396   : > { %v4417_v5 = vld [vmem:[#allocation2 + $0xd8] sm:$0xff]  ;;  %3084 = vst.msk [vmem:[#allocation2 + $0xe4] sm:$0x3] %vm810_vm2, %v3068_v18  ;;  %2909 = vst.msk [vmem:[#allocation2 + $0xf0] sm:$0x3] %vm810_vm2, %v2893_v19  ;;  %v3333_v26 = vadd.f32 %v5129_v50, %v3317_v28  ;;  %v3421_v54 = vadd.f32 %v5137_v38, %v3405_v59  ;;  %5259 = vmatprep.mubr.msk.bf16.mxu0 %vm314_vm0, %v4490_v12 }
 0x397   : > { %v4476_v0 = vld [vmem:[#allocation2 + $0xc0] sm:$0xff]  ;;  %v4433_v13 = vadd.f32 %v8854_v61, %v4417_v5  ;;  %3172 = vst.msk [vmem:[#allocation2 + $0xe6] sm:$0x3] %vm810_vm2, %v3156_v8  ;;  %3260 = vst.msk [vmem:[#allocation2 + $0xe8] sm:$0x3] %vm810_vm2, %v3244_v48  ;;  %v4467_v6 = vld [vmem:[#allocation2 + $0x78] sm:$0xff] }
 0x398   : > { %3348 = vst.msk [vmem:[#allocation2 + $0xea] sm:$0x3] %vm810_vm2, %v3332_v3  ;;  %2997 = vst.msk [vmem:[#allocation2 + $0xf2] sm:$0x3] %vm810_vm2, %v2981_v7  ;;  %v3493_v1 = vld [vmem:[#allocation2 + $0xfe] sm:$0x3]  ;;  %v4491_v35 = vpack.c.bf16 %v4467_v6, %v4466_v24 }
 0x399   : > { %v4477_v15 = vld [vmem:[#allocation2 + $0xc8] sm:$0xff]  ;;  %3436 = vst.msk [vmem:[#allocation2 + $0xec] sm:$0x3] %vm810_vm2, %v3420_v11  ;;  %3524 = vst.msk [vmem:[#allocation2 + $0xee] sm:$0x3] %vm810_vm2, %v3508_v22  ;;  %v3509_v29 = vadd.f32 %v5145_v39, %v3493_v1  ;;  %v4478_v43 = vld [vmem:[#allocation2 + $0xd0] sm:$0xff] }
 0x39a   : > { %v4496_v27 = vpack.c.bf16 %v4477_v15, %v4476_v0  ;;  %3085 = vst.msk [vmem:[#allocation2 + $0xf4] sm:$0x3] %vm810_vm2, %v3069_v40  ;;  %3173 = vst.msk [vmem:[#allocation2 + $0xf6] sm:$0x3] %vm810_vm2, %v3157_v60 }
 0x39b   : > { %4449 = vst.msk [vmem:[#allocation2 + $0xd8] sm:$0xff] %vm314_vm0, %v4433_v13 }
 0x39c   : > { %3261 = vst.msk [vmem:[#allocation2 + $0xf8] sm:$0x3] %vm810_vm2, %v3245_v41  ;;  %3349 = vst.msk [vmem:[#allocation2 + $0xfa] sm:$0x3] %vm810_vm2, %v3333_v26  ;;  %5271 = vmatprep.mubr.msk.bf16.mxu1 %vm314_vm0, %v4496_v27  ;;  %v3917_v9 = vld [vmem:[#allocation2 + $0xe0] sm:$0xf] }
 0x39d   : > { %3437 = vst.msk [vmem:[#allocation2 + $0xfc] sm:$0x3] %vm810_vm2, %v3421_v54  ;;  %3525 = vst.msk [vmem:[#allocation2 + $0xfe] sm:$0x3] %vm810_vm2, %v3509_v29  ;;  %v3933_v53 = vadd.f32 %v8870_v20, %v3917_v9  ;;  %5260 = vmatmul.mubr.msk.bf16.gmra.mrb[12].mxu0 %vm314_vm0, %v4491_v35 }
 0x39e   : > { %v3985_v32 = vld [vmem:[#allocation2 + $0xe4] sm:$0xf] }
 0x39f   : > { %v4053_v2 = vld [vmem:[#allocation2 + $0xe8] sm:$0xf]  ;;  %v3918_v57 = vld [vmem:[#allocation2 + $0xf0] sm:$0xf]  ;;  %v4001_v21 = vadd.f32 %v8878_v45, %v3985_v32  ;;  %3949 = vst.msk [vmem:[#allocation2 + $0xe0] sm:$0xf] %vm3570_vm4, %v3933_v53 }
 0x3a0   : > { %v4069_v31 = vadd.f32 %v8880_v10, %v4053_v2  ;;  %v4121_v44 = vld [vmem:[#allocation2 + $0xec] sm:$0xf]  ;;  %v3934_v52 = vadd.f32 %v8870_v20, %v3918_v57 }
 0x3a1   : > { %v3986_v49 = vld [vmem:[#allocation2 + $0xf4] sm:$0xf]  ;;  %v4137_v23 = vadd.f32 %v8898_v4, %v4121_v44  ;;  %4017 = vst.msk [vmem:[#allocation2 + $0xe4] sm:$0xf] %vm3570_vm4, %v4001_v21 }
 0x3a2   : > { %v4479_v30 = vld [vmem:[#allocation2 + $0xd8] sm:$0xff]  ;;  %v4002_v51 = vadd.f32 %v8878_v45, %v3986_v49  ;;  %4085 = vst.msk [vmem:[#allocation2 + $0xe8] sm:$0xf] %vm3570_vm4, %v4069_v31  ;;  %3950 = vst.msk [vmem:[#allocation2 + $0xf0] sm:$0xf] %vm3570_vm4, %v3934_v52 }
 0x3a3   : > { %v4054_v47 = vld [vmem:[#allocation2 + $0xf8] sm:$0xf]  ;;  %v4497_v56 = vpack.c.bf16 %v4479_v30, %v4478_v43  ;;  %4153 = vst.msk [vmem:[#allocation2 + $0xec] sm:$0xf] %vm3570_vm4, %v4137_v23 }
 0x3a4   : > { %v4070_v20 = vadd.f32 %v8880_v10, %v4054_v47  ;;  %v4122_v37 = vld [vmem:[#allocation2 + $0xfc] sm:$0xf]  ;;  %4018 = vst.msk [vmem:[#allocation2 + $0xf4] sm:$0xf] %vm3570_vm4, %v4002_v51 }
 0x3a5   : > { %v4138_v12 = vadd.f32 %v8898_v4, %v4122_v37  ;;  %5272 = vmatmul.mubr.msk.bf16.gmra.mrb[8].mxu1 %vm314_vm0, %v4497_v56 }
 0x3a6   : > { %4086 = vst.msk [vmem:[#allocation2 + $0xf8] sm:$0xf] %vm3570_vm4, %v4070_v20 }
 0x3a7   : > { %4154 = vst.msk [vmem:[#allocation2 + $0xfc] sm:$0xf] %vm3570_vm4, %v4138_v12 }
 0x3a8   : > { %v4360_v45 = vld [vmem:[#allocation2 + $0xe0] sm:$0xff] }
 0x3a9   : > { %v4376_v17 = vadd.f32 %v8852_v14, %v4360_v45 }
 0x3aa   : > { %v4418_v34 = vld [vmem:[#allocation2 + $0xe8] sm:$0xff] }
 0x3ab   : > { %v4361_v16 = vld [vmem:[#allocation2 + $0xf0] sm:$0xff]  ;;  %v4434_v10 = vadd.f32 %v8854_v61, %v4418_v34  ;;  %4392 = vst.msk [vmem:[#allocation2 + $0xe0] sm:$0xff] %vm314_vm0, %v4376_v17 }
 0x3ac   : > { %v4377_v42 = vadd.f32 %v8852_v14, %v4361_v16  ;;  %v8999_v14 = vld [vmem:[%s9289_s6] ss:$0 sm:$0xff] }
 0x3ad   : > { %4450 = vst.msk [vmem:[#allocation2 + $0xe8] sm:$0xff] %vm314_vm0, %v4434_v10 }
 0x3ae   : > { %v4419_v58 = vld [vmem:[#allocation2 + $0xf8] sm:$0xff]  ;;  %4393 = vst.msk [vmem:[#allocation2 + $0xf0] sm:$0xff] %vm314_vm0, %v4377_v42 }
 0x3af   : > { %v4435_v4 = vadd.f32 %v8854_v61, %v4419_v58 }
 0x3b1   : > { %4451 = vst.msk [vmem:[#allocation2 + $0xf8] sm:$0xff] %vm314_vm0, %v4435_v4 }
 0x3b2   : > { %v4480_v55 = vld [vmem:[#allocation2 + $0xe0] sm:$0xff] }
 0x3b4   : > { %v4481_v63 = vld [vmem:[#allocation2 + $0xe8] sm:$0xff] }
 0x3b5   : > { %v4482_v62 = vld [vmem:[#allocation2 + $0xf0] sm:$0xff]  ;;  %v4498_v33 = vpack.c.bf16 %v4481_v63, %v4480_v55 }
 0x3b7   : > { %5275 = vmatprep.mubr.msk.bf16.mxu1 %vm314_vm0, %v4498_v33 }
 0x3b8   : > { %v4483_v18 = vld [vmem:[#allocation2 + $0xf8] sm:$0xff] }
 0x3b9   : > { %v4499_v25 = vpack.c.bf16 %v4483_v18, %v4482_v62 }
 0x3bb   : > { %5276 = vmatmul.mubr.msk.bf16.gmra.mrb[12].mxu1 %vm314_vm0, %v4499_v25 }
 0x458   : > { %v5249_v36 = vpop.f32.mrb[0].mxu0 }
 0x459   : > { %v4606_v61 = vadd.f32 %v5249_v36, %v8999_v14  ;;  %v4597_v50 = vpop.f32.mrb[1].mxu0 }
 0x45a   : > { %v4598_v19 = vadd.f32 %v8999_v14, %v4597_v50  ;;  %v5250_v46 = vpop.f32.mrb[2].mxu0 }
 0x45b   : > { %v4758_v8 = vmul.f32 0.70710677, %v4606_v61  ;;  %v4609_v48 = vadd.f32 %v5250_v46, %v8999_v14  ;;  %v4600_v3 = vpop.f32.mrb[3].mxu0  ;;  %v4726_v60 = vmul.f32 0.5, %v4606_v61 }
 0x45c   : > { %v4756_v38 = vmul.f32 0.70710677, %v4598_v19  ;;  %v4601_v39 = vadd.f32 %v8999_v14, %v4600_v3  ;;  %v4724_v41 = vmul.f32 0.5, %v4598_v19 }
 0x45d   : > { %5355 = verf.f32 %v4758_v8  ;;  %v4759_v28 = vmul.f32 0.70710677, %v4609_v48  ;;  %v4727_v27 = vmul.f32 0.5, %v4609_v48 }
 0x45e   : > { %v5265_v7 = vpop.f32.mrb[0].mxu1  ;;  %5357 = verf.f32 %v4756_v38  ;;  %v4757_v11 = vmul.f32 0.70710677, %v4601_v39  ;;  %v9010_v43 = vmul.f32 0.5, %v4601_v39 }
 0x45f   : > { %v4670_v0 = vadd.f32 %v5265_v7, %v8999_v14  ;;  %v4661_v5 = vpop.f32.mrb[1].mxu1  ;;  %5359 = verf.f32 %v4759_v28 }
 0x460   : > { %v4662_v22 = vadd.f32 %v8999_v14, %v4661_v5  ;;  %v5266_v40 = vpop.f32.mrb[2].mxu1  ;;  %5361 = verf.f32 %v4757_v11  ;;  %v5253_v26 = vpop.f32.mrb[4].mxu0  ;;  %v9749_v11 = vld [vmem:[#allocation27_spill] sm:$0xff] }
 0x461   : > { %v4774_v59 = vmul.f32 0.70710677, %v4670_v0  ;;  %v4673_v15 = vadd.f32 %v5266_v40, %v8999_v14  ;;  %v4664_v13 = vpop.f32.mrb[3].mxu1  ;;  %v4622_v29 = vadd.f32 %v5253_v26, %v8999_v14  ;;  %v4613_v24 = vpop.f32.mrb[5].mxu0  ;;  %v4742_v21 = vmul.f32 0.5, %v4670_v0 }
 0x462   : > { %v4772_v54 = vmul.f32 0.70710677, %v4662_v22  ;;  %v4665_v1 = vadd.f32 %v8999_v14, %v4664_v13  ;;  %v4614_v9 = vadd.f32 %v8999_v14, %v4613_v24  ;;  %v5254_v35 = vpop.f32.mrb[6].mxu0  ;;  %v9015_v52 = vmul.f32 0.5, %v4662_v22 }
 0x463   : > { %5363 = verf.f32 %v4774_v59  ;;  %v4775_v6 = vmul.f32 0.70710677, %v4673_v15  ;;  %v4762_v32 = vmul.f32 0.70710677, %v4622_v29  ;;  %v4625_v2 = vadd.f32 %v5254_v35, %v8999_v14  ;;  %v4616_v57 = vpop.f32.mrb[7].mxu0 }
 0x464   : > { %5365 = verf.f32 %v4772_v54  ;;  %v4773_v53 = vmul.f32 0.70710677, %v4665_v1  ;;  %v4760_v31 = vmul.f32 0.70710677, %v4614_v9  ;;  %v4617_v44 = vadd.f32 %v8999_v14, %v4616_v57 }
 0x465   : > { %5367 = verf.f32 %v4775_v6  ;;  %v4763_v30 = vmul.f32 0.70710677, %v4625_v2  ;;  %v9017_v23 = vmul.f32 0.5, %v4673_v15  ;;  %v9020_v20 = vmul.f32 0.5, %v4665_v1  ;;  %v9750_v15 = vld [vmem:[#allocation24_spill] sm:$0xff]  ;;  %v5497_v1 = vld [vmem:[%s5594_s29 + $0x10] sm:$0xff] }
 0x466   : > { %5369 = verf.f32 %v4773_v53  ;;  %v5269_v49 = vpop.f32.mrb[4].mxu1  ;;  %v4761_v56 = vmul.f32 0.70710677, %v4617_v44  ;;  %v9025_v17 = vmul.f32 0.5, %v4622_v29  ;;  %v9027_v34 = vmul.f32 0.5, %v4614_v9  ;;  %v9751_v29 = vld [vmem:[#allocation28_spill] sm:$0xff] }
 0x467   : > { %5371 = verf.f32 %v4762_v32  ;;  %v4686_v51 = vadd.f32 %v5269_v49, %v8999_v14  ;;  %v4677_v47 = vpop.f32.mrb[5].mxu1  ;;  %v5356_v45 = vpop.eup %5355  ;;  %v9031_v4 = vmul.f32 0.5, %v4625_v2  ;;  %v9034_v18 = vmul.f32 0.5, %v4617_v44  ;;  %v5498_v53 = vld [vmem:[%s5594_s29] sm:$0xff]  ;;  %v9752_v2 = vld [vmem:[#allocation25_spill] sm:$0xff]  ;;  %v5499_v49 = vld [vmem:[%s5594_s29 + $0x18] sm:$0xff] }
 0x468   : > { %5373 = verf.f32 %v4760_v31  ;;  %v9023_v37 = vadd.f32 %v8999_v14, %v4677_v47  ;;  %v5270_v12 = vpop.f32.mrb[6].mxu1  ;;  %v5358_v42 = vpop.eup %5357  ;;  %v4822_v58 = vadd.f32 1.0, %v5356_v45  ;;  %v9753_v47 = vld [vmem:[#allocation10_spill] sm:$0xff] }
 0x469   : > { %5375 = verf.f32 %v4763_v30  ;;  %v4778_v16 = vmul.f32 0.70710677, %v4686_v51  ;;  %v9029_v10 = vpop.f32.mrb[7].mxu1  ;;  %v5257_v55 = vpop.f32.mrb[8].mxu0  ;;  %v4820_v33 = vadd.f32 1.0, %v5358_v42  ;;  %v9039_v61 = vmul.f32 0.5, %v4686_v51 }
 0x46a   : > { %5377 = verf.f32 %v4761_v56  ;;  %v4776_v63 = vmul.f32 0.70710677, %v9023_v37  ;;  %v5360_v62 = vpop.eup %5359  ;;  %v9037_v25 = vadd.f32 %v5257_v55, %v8999_v14  ;;  %v4629_v36 = vpop.f32.mrb[9].mxu0  ;;  %v4854_v19 = vmul.f32 %v4822_v58, %v4726_v60  ;;  %v9754_v58 = vld [vmem:[#allocation75_spill] sm:$0xff] }
 0x46b   : > { %v5362_v50 = vpop.eup %5361  ;;  %v4823_v46 = vadd.f32 1.0, %v5360_v62  ;;  %v9041_v8 = vpop.f32.mrb[10].mxu0  ;;  %5379 = verf.f32 %v4778_v16  ;;  %v9044_v48 = vadd.f32 %v5270_v12, %v8999_v14  ;;  %v4852_v38 = vmul.f32 %v4820_v33, %v4724_v41 }
 0x46c   : > { %v4821_v39 = vadd.f32 1.0, %v5362_v50  ;;  %v4766_v7 = vmul.f32 0.70710677, %v9037_v25  ;;  %v9048_v28 = vadd.f32 %v8999_v14, %v4629_v36  ;;  %v9050_v0 = vpop.f32.mrb[11].mxu0  ;;  %v4886_v22 = vmul.f32 %v4854_v19, %v9749_v11  ;;  %v5501_v50 = vld [vmem:[%s5594_s29 + $0x90] sm:$0xff] }
 0x46d   : > { %v5364_v3 = vpop.eup %5363  ;;  %v4855_v40 = vmul.f32 %v4823_v46, %v4727_v27  ;;  %5381 = verf.f32 %v4776_v63  ;;  %v4884_v13 = vmul.f32 %v4852_v38, %v9750_v15  ;;  %v9755_v46 = vld [vmem:[#allocation11_spill] sm:$0xff]  ;;  %v9756_v11 = vld [vmem:[#allocation9_spill] sm:$0xff] }
 0x46e   : > { %v5366_v5 = vpop.eup %5365  ;;  %v4838_v60 = vadd.f32 1.0, %v5364_v3  ;;  %v4853_v41 = vmul.f32 %v4821_v39, %v9010_v43  ;;  %5383 = verf.f32 %v4766_v7  ;;  %v4918_v27 = vadd.f32 %v5497_v1, %v4886_v22  ;;  %v5502_v7 = vld [vmem:[%s5594_s29 + $0x80] sm:$0xff]  ;;  %v9758_v1 = vld [vmem:[#allocation30_spill] sm:$0xff] }
 0x46f   : > { %v5368_v59 = vpop.eup %5367  ;;  %v4836_v26 = vadd.f32 1.0, %v5366_v5  ;;  %v4887_v24 = vmul.f32 %v4855_v40, %v9751_v29  ;;  %v4916_v32 = vadd.f32 %v5498_v53, %v4884_v13  ;;  %v5505_v53 = vld [vmem:[%s5594_s29 + $0x30] sm:$0xff] }
 0x470   : > { %v5370_v54 = vpop.eup %5369  ;;  %v4870_v6 = vmul.f32 %v4838_v60, %v4742_v21  ;;  %v4839_v9 = vadd.f32 1.0, %v5368_v59  ;;  %v4885_v57 = vmul.f32 %v4853_v41, %v9752_v2  ;;  %4950 = vst.msk [vmem:[%s9058_s13 + $0x10] sm:$0xff] %vm314_vm0, %v4918_v27  ;;  %v9072_v12 = vpop.f32.mrb[12].mxu0  ;;  %v9757_v59 = vld [vmem:[#allocation33_spill] sm:$0xff] }
 0x471   : > { %v5372_v35 = vpop.eup %5371  ;;  %v4868_v43 = vmul.f32 %v4836_v26, %v9015_v52  ;;  %v4837_v31 = vadd.f32 1.0, %v5370_v54  ;;  %v4919_v30 = vadd.f32 %v5499_v49, %v4887_v24  ;;  %4948 = vst.msk [vmem:[%s9058_s13] sm:$0xff] %vm314_vm0, %v4916_v32  ;;  %v5500_v52 = vld [vmem:[%s5594_s29 + $0x8] sm:$0xff]  ;;  %v9079_v62 = vpop.f32.mrb[13].mxu0  ;;  %v4764_v26 = vmul.f32 0.70710677, %v9048_v28 }
 0x472   : > { %v5374_v44 = vpop.eup %5373  ;;  %v4826_v51 = vadd.f32 1.0, %v5372_v35  ;;  %v4902_v21 = vmul.f32 %v4870_v6, %v9753_v47  ;;  %v4871_v56 = vmul.f32 %v4839_v9, %v9017_v23  ;;  %v4917_v16 = vadd.f32 %v5500_v52, %v4885_v57  ;;  %v9086_v38 = vpop.f32.mrb[14].mxu0  ;;  %v5504_v24 = vld [vmem:[%s5594_s29 + $0x88] sm:$0xff]  ;;  %v9759_v2 = vld [vmem:[#allocation45_spill] sm:$0xff]  ;;  %v9760_v49 = vld [vmem:[#allocation31_spill] sm:$0xff] }
 0x473   : > { %v5376_v45 = vpop.eup %5375  ;;  %v4824_v42 = vadd.f32 1.0, %v5374_v44  ;;  %v4900_v55 = vmul.f32 %v4868_v43, %v9754_v58  ;;  %v4869_v63 = vmul.f32 %v4837_v31, %v9020_v20  ;;  %4951 = vst.msk [vmem:[%s9058_s13 + $0x18] sm:$0xff] %vm314_vm0, %v4919_v30  ;;  %v9093_v22 = vpop.f32.mrb[15].mxu0  ;;  %5385 = verf.f32 %v4764_v26  ;;  %v5506_v31 = vld [vmem:[%s5594_s29 + $0x20] sm:$0xff] }
 0x474   : > { %v5378_v33 = vpop.eup %5377  ;;  %v4858_v23 = vmul.f32 %v4826_v51, %v9025_v17  ;;  %v4827_v36 = vadd.f32 1.0, %v5376_v45  ;;  %v4934_v19 = vadd.f32 %v5501_v50, %v4902_v21  ;;  %v4903_v3 = vmul.f32 %v4871_v56, %v9755_v46  ;;  %4949 = vst.msk [vmem:[%s9058_s13 + $0x8] sm:$0xff] %vm314_vm0, %v4917_v16  ;;  %v5507_v21 = vld [vmem:[%s5594_s29 + $0x38] sm:$0xff]  ;;  %v5508_v16 = vld [vmem:[%s5594_s29 + $0x28] sm:$0xff] }
 0x475   : > { %v4856_v20 = vmul.f32 %v4824_v42, %v9027_v34  ;;  %v4825_v39 = vadd.f32 1.0, %v5378_v33  ;;  %v4932_v5 = vadd.f32 %v5502_v7, %v4900_v55  ;;  %v4901_v17 = vmul.f32 %v4869_v63, %v9756_v11  ;;  %v5380_v60 = vpop.eup %5379  ;;  %v5503_v34 = vld [vmem:[%s5594_s29 + $0x98] sm:$0xff]  ;;  %v5509_v11 = vld [vmem:[%s5594_s29 + $0x50] sm:$0xff] }
 0x476   : > { %v4890_v15 = vmul.f32 %v4858_v23, %v9757_v59  ;;  %v4859_v13 = vmul.f32 %v4827_v36, %v9031_v4  ;;  %4966 = vst.msk [vmem:[%s9058_s13 + $0x90] sm:$0xff] %vm314_vm0, %v4934_v19  ;;  %v4935_v41 = vadd.f32 %v5503_v34, %v4903_v3  ;;  %v9112_v4 = vadd.f32 %v9041_v8, %v8999_v14  ;;  %v9761_v19 = vld [vmem:[#allocation5_spill] sm:$0xff]  ;;  %v5511_v59 = vld [vmem:[%s5594_s29 + $0xa0] sm:$0xff] }
 0x477   : > { %v4888_v27 = vmul.f32 %v4856_v20, %v9758_v1  ;;  %v4857_v29 = vmul.f32 %v4825_v39, %v9034_v18  ;;  %4964 = vst.msk [vmem:[%s9058_s13 + $0x80] sm:$0xff] %vm314_vm0, %v4932_v5  ;;  %v4933_v6 = vadd.f32 %v5504_v24, %v4901_v17  ;;  %v5382_v35 = vpop.eup %5381  ;;  %v9122_v18 = vadd.f32 %v8999_v14, %v9050_v0  ;;  %v9762_v20 = vld [vmem:[#allocation16_spill] sm:$0xff] }
 0x478   : > { %v9095_v40 = vpop.f32.mrb[8].mxu1  ;;  %v4922_v32 = vadd.f32 %v5505_v53, %v4890_v15  ;;  %v4891_v57 = vmul.f32 %v4859_v13, %v9759_v2  ;;  %4967 = vst.msk [vmem:[%s9058_s13 + $0x98] sm:$0xff] %vm314_vm0, %v4935_v41  ;;  %v5384_v43 = vpop.eup %5383  ;;  %v4767_v51 = vmul.f32 0.70710677, %v9112_v4  ;;  %v4744_v47 = vmul.f32 0.5, %v9023_v37  ;;  %v9763_v39 = vld [vmem:[#allocation12_spill] sm:$0xff] }
 0x479   : > { %v9103_v54 = vpop.f32.mrb[9].mxu1  ;;  %v4920_v44 = vadd.f32 %v5506_v31, %v4888_v27  ;;  %v4889_v30 = vmul.f32 %v4857_v29, %v9760_v49  ;;  %4965 = vst.msk [vmem:[%s9058_s13 + $0x88] sm:$0xff] %vm314_vm0, %v4933_v6  ;;  %v4734_v56 = vmul.f32 0.5, %v9037_v25  ;;  %v4830_v45 = vadd.f32 1.0, %v5384_v43 }
 0x47a   : > { %v9114_v9 = vpop.f32.mrb[10].mxu1  ;;  %4954 = vst.msk [vmem:[%s9058_s13 + $0x30] sm:$0xff] %vm314_vm0, %v4922_v32  ;;  %v4923_v0 = vadd.f32 %v5507_v21, %v4891_v57  ;;  %v4765_v52 = vmul.f32 0.70710677, %v9122_v18  ;;  %5387 = verf.f32 %v4767_v51  ;;  %v4842_v58 = vadd.f32 1.0, %v5380_v60  ;;  %v5512_v51 = vld [vmem:[%s5594_s29 + $0x40] sm:$0xff] }
 0x47b   : > { %v9124_v8 = vpop.f32.mrb[11].mxu1  ;;  %4952 = vst.msk [vmem:[%s9058_s13 + $0x20] sm:$0xff] %vm314_vm0, %v4920_v44  ;;  %v4921_v42 = vadd.f32 %v5508_v16, %v4889_v30  ;;  %v4840_v55 = vadd.f32 1.0, %v5382_v35  ;;  %v4862_v37 = vmul.f32 %v4830_v45, %v4734_v56  ;;  %v4779_v63 = vmul.f32 0.70710677, %v9044_v48  ;;  %v9765_v45 = vld [vmem:[#allocation35_spill] sm:$0xff] }
 0x47c   : > { %4955 = vst.msk [vmem:[%s9058_s13 + $0x38] sm:$0xff] %vm314_vm0, %v4923_v0  ;;  %5389 = verf.f32 %v4765_v52  ;;  %v4681_v25 = vadd.f32 %v8999_v14, %v9029_v10  ;;  %v4874_v33 = vmul.f32 %v4842_v58, %v9039_v61  ;;  %v4654_v36 = vadd.f32 %v9072_v12, %v8999_v14  ;;  %v5510_v12 = vld [vmem:[%s5594_s29 + $0xb0] sm:$0xff] }
 0x47d   : > { %4953 = vst.msk [vmem:[%s9058_s13 + $0x28] sm:$0xff] %vm314_vm0, %v4921_v42  ;;  %v4872_v23 = vmul.f32 %v4840_v55, %v4744_v47  ;;  %v4646_v50 = vadd.f32 %v8999_v14, %v9079_v62  ;;  %v4894_v46 = vmul.f32 %v4862_v37, %v9761_v19  ;;  %5391 = verf.f32 %v4779_v63  ;;  %v5386_v13 = vpop.eup %5385  ;;  %v9766_v37 = vld [vmem:[#allocation53_spill] sm:$0xff]  ;;  %v5513_v19 = vld [vmem:[%s5594_s29 + $0x58] sm:$0xff] }
 0x47e   : > { %v4777_v3 = vmul.f32 0.70710677, %v4681_v25  ;;  %v4906_v10 = vmul.f32 %v4874_v33, %v9762_v20  ;;  %v4770_v5 = vmul.f32 0.70710677, %v4654_v36  ;;  %v4657_v15 = vadd.f32 %v9086_v38, %v8999_v14 }
 0x47f   : > { %v4904_v7 = vmul.f32 %v4872_v23, %v9763_v39  ;;  %v4926_v61 = vadd.f32 %v5509_v11, %v4894_v46  ;;  %v4768_v17 = vmul.f32 0.70710677, %v4646_v50  ;;  %v4649_v34 = vadd.f32 %v8999_v14, %v9093_v22  ;;  %v5514_v39 = vld [vmem:[%s5594_s29 + $0x48] sm:$0xff] }
 0x480   : > { %5393 = verf.f32 %v4777_v3  ;;  %v4938_v60 = vadd.f32 %v5510_v12, %v4906_v10  ;;  %v9166_v41 = vadd.f32 %v9095_v40, %v8999_v14  ;;  %v9170_v26 = vadd.f32 %v8999_v14, %v9103_v54 }
 0x481   : > { %v4936_v62 = vadd.f32 %v5511_v59, %v4904_v7  ;;  %5395 = verf.f32 %v4770_v5  ;;  %4958 = vst.msk [vmem:[%s9058_s13 + $0x50] sm:$0xff] %vm314_vm0, %v4926_v61  ;;  %v4732_v1 = vmul.f32 0.5, %v9048_v28  ;;  %v4828_v27 = vadd.f32 1.0, %v5386_v13  ;;  %v9767_v5 = vld [vmem:[#allocation42_spill] sm:$0xff] }
 0x482   : > { %5397 = verf.f32 %v4768_v17  ;;  %4970 = vst.msk [vmem:[%s9058_s13 + $0xb0] sm:$0xff] %vm314_vm0, %v4938_v60  ;;  %v4771_v38 = vmul.f32 0.70710677, %v4657_v15  ;;  %v9179_v29 = vadd.f32 %v9114_v9, %v8999_v14  ;;  %v4735_v22 = vmul.f32 0.5, %v9112_v4  ;;  %v9764_v4 = vld [vmem:[#allocation47_spill] sm:$0xff] }
 0x483   : > { %4968 = vst.msk [vmem:[%s9058_s13 + $0xa0] sm:$0xff] %vm314_vm0, %v4936_v62  ;;  %v4747_v40 = vmul.f32 0.5, %v9044_v48  ;;  %v4769_v24 = vmul.f32 0.70710677, %v4649_v34  ;;  %v4782_v54 = vmul.f32 0.70710677, %v9166_v41  ;;  %v4860_v35 = vmul.f32 %v4828_v27, %v4732_v1 }
 0x484   : > { %v5388_v6 = vpop.eup %5387  ;;  %v4733_v28 = vmul.f32 0.5, %v9122_v18  ;;  %5399 = verf.f32 %v4771_v38  ;;  %v4780_v53 = vmul.f32 0.70710677, %v9170_v26  ;;  %v4745_v57 = vmul.f32 0.5, %v4681_v25  ;;  %v9768_v27 = vld [vmem:[#allocation15_spill] sm:$0xff] }
 0x485   : > { %v4831_v2 = vadd.f32 1.0, %v5388_v6  ;;  %5401 = verf.f32 %v4769_v24  ;;  %v4783_v9 = vmul.f32 0.70710677, %v9179_v29  ;;  %v4892_v43 = vmul.f32 %v4860_v35, %v9764_v4  ;;  %v5517_v4 = vld [vmem:[%s5594_s29 + $0x70] sm:$0xff] }
 0x486   : > { %v5390_v32 = vpop.eup %5389  ;;  %5403 = verf.f32 %v4782_v54  ;;  %v9190_v31 = vadd.f32 %v8999_v14, %v9124_v8  ;;  %v4738_v49 = vmul.f32 0.5, %v4654_v36  ;;  %v4736_v30 = vmul.f32 0.5, %v4646_v50  ;;  %v9769_v54 = vld [vmem:[#allocation59_spill] sm:$0xff] }
 0x487   : > { %v4829_v48 = vadd.f32 1.0, %v5390_v32  ;;  %v5392_v44 = vpop.eup %5391  ;;  %v4863_v18 = vmul.f32 %v4831_v2, %v4735_v22  ;;  %5405 = verf.f32 %v4780_v53  ;;  %v4924_v47 = vadd.f32 %v5512_v51, %v4892_v43  ;;  %v9770_v32 = vld [vmem:[#allocation54_spill] sm:$0xff] }
 0x488   : > { %v4843_v0 = vadd.f32 1.0, %v5392_v44  ;;  %5407 = verf.f32 %v4783_v9  ;;  %v4739_v16 = vmul.f32 0.5, %v4657_v15  ;;  %v4737_v42 = vmul.f32 0.5, %v4649_v34  ;;  %v5515_v34 = vld [vmem:[%s5594_s29 + $0xb8] sm:$0xff] }
 0x489   : > { %v4861_v21 = vmul.f32 %v4829_v48, %v4733_v28  ;;  %v4895_v52 = vmul.f32 %v4863_v18, %v9765_v45  ;;  %v4781_v8 = vmul.f32 0.70710677, %v9190_v31  ;;  %4956 = vst.msk [vmem:[%s9058_s13 + $0x40] sm:$0xff] %vm314_vm0, %v4924_v47  ;;  %v4750_v59 = vmul.f32 0.5, %v9166_v41  ;;  %v5516_v28 = vld [vmem:[%s5594_s29 + $0xa8] sm:$0xff] }
 0x48a   : > { %v5394_v56 = vpop.eup %5393  ;;  %v4875_v25 = vmul.f32 %v4843_v0, %v4747_v40  ;;  %v4748_v62 = vmul.f32 0.5, %v9170_v26  ;;  %v4751_v18 = vmul.f32 0.5, %v9179_v29  ;;  %v9772_v29 = vld [vmem:[#allocation55_spill] sm:$0xff] }
 0x48b   : > { %v5396_v55 = vpop.eup %5395  ;;  %v4893_v63 = vmul.f32 %v4861_v21, %v9766_v37  ;;  %v4841_v33 = vadd.f32 1.0, %v5394_v56  ;;  %v4927_v46 = vadd.f32 %v5513_v19, %v4895_v52  ;;  %5409 = verf.f32 %v4781_v8  ;;  %v9771_v56 = vld [vmem:[#allocation68_spill] sm:$0xff]  ;;  %v5519_v37 = vld [vmem:[%s5594_s29 + $0x78] sm:$0xff] }
 0x48c   : > { %v5398_v50 = vpop.eup %5397  ;;  %v4834_v3 = vadd.f32 1.0, %v5396_v55  ;;  %v4907_v11 = vmul.f32 %v4875_v25, %v9767_v5  ;;  %v9773_v25 = vld [vmem:[#allocation29_spill] sm:$0xff] }
 0x48d   : > { %v4925_v7 = vadd.f32 %v5514_v39, %v4893_v63  ;;  %v4873_v61 = vmul.f32 %v4841_v33, %v4745_v57  ;;  %v4832_v17 = vadd.f32 1.0, %v5398_v50  ;;  %4959 = vst.msk [vmem:[%s9058_s13 + $0x58] sm:$0xff] %vm314_vm0, %v4927_v46  ;;  %v4749_v50 = vmul.f32 0.5, %v9190_v31  ;;  %v9774_v46 = vld [vmem:[#allocation79_spill] sm:$0xff] }
 0x48e   : > { %v5277_v58 = vpop.f32.mrb[12].mxu1  ;;  %v4866_v60 = vmul.f32 %v4834_v3, %v4738_v49  ;;  %v5400_v13 = vpop.eup %5399  ;;  %v4939_v1 = vadd.f32 %v5515_v34, %v4907_v11  ;;  %v9775_v11 = vld [vmem:[#allocation98_spill] sm:$0xff] }
 0x48f   : > { %v9199_v23 = vadd.f32 %v5277_v58, %v8999_v14  ;;  %v4709_v36 = vpop.f32.mrb[13].mxu1  ;;  %4957 = vst.msk [vmem:[%s9058_s13 + $0x48] sm:$0xff] %vm314_vm0, %v4925_v7  ;;  %v4905_v38 = vmul.f32 %v4873_v61, %v9768_v27  ;;  %v4864_v22 = vmul.f32 %v4832_v17, %v4736_v30  ;;  %v5402_v24 = vpop.eup %5401  ;;  %v4835_v6 = vadd.f32 1.0, %v5400_v13  ;;  %v5518_v30 = vld [vmem:[%s5594_s29 + $0x60] sm:$0xff]  ;;  %v5521_v7 = vld [vmem:[%s5594_s29 + $0xd0] sm:$0xff]  ;;  %v9776_v13 = vld [vmem:[#allocation80_spill] sm:$0xff] }
 0x490   : > { %v9203_v20 = vadd.f32 %v8999_v14, %v4709_v36  ;;  %v5278_v10 = vpop.f32.mrb[14].mxu1  ;;  %v4898_v41 = vmul.f32 %v4866_v60, %v9769_v54  ;;  %v5404_v35 = vpop.eup %5403  ;;  %4971 = vst.msk [vmem:[%s9058_s13 + $0xb8] sm:$0xff] %vm314_vm0, %v4939_v1  ;;  %v4833_v57 = vadd.f32 1.0, %v5402_v24  ;;  %v5522_v17 = vld [vmem:[%s5594_s29 + $0xc0] sm:$0xff] }
 0x491   : > { %v4712_v12 = vpop.f32.mrb[15].mxu1  ;;  %v4786_v15 = vmul.f32 0.70710677, %v9199_v23  ;;  %v9219_v26 = vadd.f32 %v5278_v10, %v8999_v14  ;;  %v4937_v53 = vadd.f32 %v5516_v28, %v4905_v38  ;;  %v4896_v2 = vmul.f32 %v4864_v22, %v9770_v32  ;;  %v5406_v9 = vpop.eup %5405 }
 0x492   : > { %v4784_v40 = vmul.f32 0.70710677, %v9203_v20  ;;  %v4930_v43 = vadd.f32 %v5517_v4, %v4898_v41  ;;  %v4867_v48 = vmul.f32 %v4835_v6, %v4739_v16  ;;  %v4846_v44 = vadd.f32 1.0, %v5404_v35  ;;  %v5408_v49 = vpop.eup %5407  ;;  %v9777_v35 = vld [vmem:[#allocation49_spill] sm:$0xff] }
 0x493   : > { %5411 = verf.f32 %v4786_v15  ;;  %4969 = vst.msk [vmem:[%s9058_s13 + $0xa8] sm:$0xff] %vm314_vm0, %v4937_v53  ;;  %v4928_v51 = vadd.f32 %v5518_v30, %v4896_v2  ;;  %v4865_v47 = vmul.f32 %v4833_v57, %v4737_v42  ;;  %v4844_v21 = vadd.f32 1.0, %v5406_v9  ;;  %v5526_v9 = vld [vmem:[%s5594_s29 + $0xe0] sm:$0xff] }
 0x494   : > { %5413 = verf.f32 %v4784_v40  ;;  %v4787_v0 = vmul.f32 0.70710677, %v9219_v26  ;;  %4962 = vst.msk [vmem:[%s9058_s13 + $0x70] sm:$0xff] %vm314_vm0, %v4930_v43  ;;  %v4899_v45 = vmul.f32 %v4867_v48, %v9771_v56  ;;  %v4878_v52 = vmul.f32 %v4846_v44, %v4750_v59  ;;  %v5523_v59 = vld [vmem:[%s5594_s29 + $0xd8] sm:$0xff]  ;;  %v5524_v40 = vld [vmem:[%s5594_s29 + $0xc8] sm:$0xff]  ;;  %v9779_v44 = vld [vmem:[#allocation41_spill] sm:$0xff] }
 0x495   : > { %v4847_v16 = vadd.f32 1.0, %v5408_v49  ;;  %v4713_v8 = vadd.f32 %v8999_v14, %v4712_v12  ;;  %4960 = vst.msk [vmem:[%s9058_s13 + $0x60] sm:$0xff] %vm314_vm0, %v4928_v51  ;;  %v4897_v58 = vmul.f32 %v4865_v47, %v9772_v29  ;;  %v4876_v55 = vmul.f32 %v4844_v21, %v4748_v62  ;;  %v5410_v42 = vpop.eup %5409  ;;  %v5520_v14 = vld [vmem:[%s5594_s29 + $0x68] sm:$0xff]  ;;  %v5527_v51 = vld [vmem:[%s5594_s29 + $0xf8] sm:$0xff] }
 0x496   : > { %5415 = verf.f32 %v4787_v0  ;;  %v4931_v63 = vadd.f32 %v5519_v37, %v4899_v45  ;;  %v4910_v33 = vmul.f32 %v4878_v52, %v9773_v25  ;;  %v4845_v10 = vadd.f32 1.0, %v5410_v42  ;;  %v9780_v21 = vld [vmem:[#allocation44_spill] sm:$0xff] }
 0x497   : > { %v4879_v36 = vmul.f32 %v4847_v16, %v4751_v18  ;;  %v4929_v19 = vadd.f32 %v5520_v14, %v4897_v58  ;;  %v4908_v3 = vmul.f32 %v4876_v55, %v9774_v46  ;;  %v4785_v39 = vmul.f32 0.70710677, %v4713_v8  ;;  %v5528_v56 = vld [vmem:[%s5594_s29 + $0xe8] sm:$0xff] }
 0x498   : > { %4963 = vst.msk [vmem:[%s9058_s13 + $0x78] sm:$0xff] %vm314_vm0, %v4931_v63  ;;  %v4942_v5 = vadd.f32 %v5521_v7, %v4910_v33  ;;  %v4877_v12 = vmul.f32 %v4845_v10, %v4749_v50  ;;  %v4754_v1 = vmul.f32 0.5, %v9199_v23  ;;  %v4752_v38 = vmul.f32 0.5, %v9203_v20  ;;  %v9778_v23 = vld [vmem:[#allocation48_spill] sm:$0xff]  ;;  %v5525_v20 = vld [vmem:[%s5594_s29 + $0xf0] sm:$0xff] }
 0x499   : > { %v4911_v61 = vmul.f32 %v4879_v36, %v9775_v11  ;;  %4961 = vst.msk [vmem:[%s9058_s13 + $0x68] sm:$0xff] %vm314_vm0, %v4929_v19  ;;  %v4940_v31 = vadd.f32 %v5522_v17, %v4908_v3  ;;  %5417 = verf.f32 %v4785_v39  ;;  %v4755_v32 = vmul.f32 0.5, %v9219_v26 }
 0x49a   : > { %4974 = vst.msk [vmem:[%s9058_s13 + $0xd0] sm:$0xff] %vm314_vm0, %v4942_v5  ;;  %v4909_v34 = vmul.f32 %v4877_v12, %v9776_v13  ;;  %v4753_v49 = vmul.f32 0.5, %v4713_v8 }
 0x49b   : > { %v4943_v62 = vadd.f32 %v5523_v59, %v4911_v61  ;;  %4972 = vst.msk [vmem:[%s9058_s13 + $0xc0] sm:$0xff] %vm314_vm0, %v4940_v31 }
 0x49c   : > { %v4941_v24 = vadd.f32 %v5524_v40, %v4909_v34 }
 0x49d   : > { %v5412_v60 = vpop.eup %5411  ;;  %4975 = vst.msk [vmem:[%s9058_s13 + $0xd8] sm:$0xff] %vm314_vm0, %v4943_v62 }
 0x49e   : > { %v5414_v15 = vpop.eup %5413  ;;  %v4850_v27 = vadd.f32 1.0, %v5412_v60  ;;  %4973 = vst.msk [vmem:[%s9058_s13 + $0xc8] sm:$0xff] %vm314_vm0, %v4941_v24 }
 0x49f   : > { %v4848_v22 = vadd.f32 1.0, %v5414_v15 }
 0x4a0   : > { %v4882_v54 = vmul.f32 %v4850_v27, %v4754_v1  ;;  %v5416_v6 = vpop.eup %5415 }
 0x4a1   : > { %v4880_v41 = vmul.f32 %v4848_v22, %v4752_v38  ;;  %v4851_v2 = vadd.f32 1.0, %v5416_v6 }
 0x4a2   : > { %v4914_v28 = vmul.f32 %v4882_v54, %v9777_v35 }
 0x4a3   : > { %v4912_v53 = vmul.f32 %v4880_v41, %v9778_v23  ;;  %v4883_v43 = vmul.f32 %v4851_v2, %v4755_v32  ;;  %v5418_v48 = vpop.eup %5417 }
 0x4a4   : > { %v4946_v57 = vadd.f32 %v5525_v20, %v4914_v28  ;;  %v4849_v30 = vadd.f32 1.0, %v5418_v48 }
 0x4a5   : > { %v4944_v4 = vadd.f32 %v5526_v9, %v4912_v53  ;;  %v4915_v18 = vmul.f32 %v4883_v43, %v9779_v44 }
 0x4a6   : > { %4978 = vst.msk [vmem:[%s9058_s13 + $0xf0] sm:$0xff] %vm314_vm0, %v4946_v57  ;;  %v4881_v47 = vmul.f32 %v4849_v30, %v4753_v49 }
 0x4a7   : > { %4976 = vst.msk [vmem:[%s9058_s13 + $0xe0] sm:$0xff] %vm314_vm0, %v4944_v4  ;;  %v4947_v26 = vadd.f32 %v5527_v51, %v4915_v18 }
 0x4a8   : > { %v4913_v0 = vmul.f32 %v4881_v47, %v9780_v21 }
 0x4a9   : > { %4979 = vst.msk [vmem:[%s9058_s13 + $0xf8] sm:$0xff] %vm314_vm0, %v4947_v26 }
 0x4aa   : > { %v4945_v45 = vadd.f32 %v5528_v56, %v4913_v0 }
 0x4ac   : > { %4977 = vst.msk [vmem:[%s9058_s13 + $0xe8] sm:$0xff] %vm314_vm0, %v4945_v45 }
 0x4ad PF: > { %s17_s24 = sadd.s32 1, %s5535_s24  }
 0x4ae   : > { %p14_p4 = scmp.ge.s32.totalorder %s17_s24, 4  }
 0x4b0   :  { %16 = sbr.rel (!%p14_p4) target bundleno = 1 (0x1), region = 98 }

</bundles_post_ra>
